<compile_context>
chip_gen: v7x
topology: tpu7x:2x2x1
jax: 0.10.0
libtpu: 0.0.40
codegen_flags: <defaults>
</compile_context>

<pallas_src>
import jax
import jax.numpy as jnp
import numpy as np
from jax.experimental import pallas as pl
from jax.experimental.pallas import tpu as pltpu

POOL_SIZES = (5, 9, 13)
_MIB = 1024 * 1024


def _round_up(x, m):
    return (x + m - 1) // m * m


def _pad_value(dtype):
    if jnp.issubdtype(dtype, jnp.floating):
        return float("-inf")
    return int(jnp.iinfo(dtype).min)


def _cascade_radii(pool_sizes):
    ks = tuple(sorted(pool_sizes))
    assert all(k % 2 == 1 for k in ks), "pool sizes must be odd (MaxPool2d(k, 1, k//2))"
    radii = [k // 2 for k in ks]
    inc = [radii[0]] + [radii[i] - radii[i - 1] for i in range(1, len(radii))]
    assert all(r >= 1 for r in inc), "pool sizes must be distinct"
    return ks, inc, max(inc)


def _device_kind():
    try:
        return jax.devices()[0].device_kind.lower()
    except Exception:
        return ""


def _has_native_bf16_valu():
    # v6e / v7x (and newer) have bf16 VALU; v4 / v5e / v5p do not.
    return any(tag in _device_kind() for tag in ("v6", "v7", "v8"))


def _physical_vmem_bytes():
    try:
        cap = int(pltpu.get_tpu_info().vmem_capacity_bytes)
        if cap > 0:
            return cap
    except Exception:
        pass
    kind = _device_kind()
    if "v7" in kind:
        return 64 * _MIB
    if "tpu" in kind:
        return 128 * _MIB
    return 64 * _MIB          # unknown: be conservative


def _compute_dtype(in_dtype):
    d = jnp.dtype(in_dtype)
    if jnp.issubdtype(d, jnp.floating) and d.itemsize < 4:
        if d == jnp.dtype(jnp.bfloat16) and _has_native_bf16_valu():
            return d                      # keep packed 16x128 bf16 vregs on v6e/v7x
        return jnp.dtype(jnp.float32)     # widen once on v5e / for fp16 (max is exact)
    return d


def _make_spp_kernel(pool_sizes, bt, tc, H, W, cdtype, out_dtype, interleaved):
    ks, inc, rm = _cascade_radii(pool_sizes)
    F = len(ks) + 1
    WL = 8                                 # sublane-aligned left frame of the scratch
    Hp = H + 2 * rm
    Wp = _round_up(WL + W + rm, 8)
    neg = _pad_value(cdtype)

    def kernel(x_ref, o_ref, pad_ref):
        def store(slot, val):
            # torch order along the feature axis: 0=p13, 1=p9, 2=p5, 3=x
            if interleaved:
                o_ref[:, :, :, slot * tc:(slot + 1) * tc] = val.astype(out_dtype)
            else:
                o_ref[:, slot * H:(slot + 1) * H, :, :] = val.astype(out_dtype)

        xb = x_ref[...]                     # (bt, H, W, tc)
        store(F - 1, xb)                    # passthrough written first -> frees xb early
        v = xb.astype(cdtype)

        # -inf frame of the padded scratch (thin ring only; the (H, W) center is
        # overwritten by every cascade step, so the frame never goes stale).
        pad_ref[:, :, 0:WL, :] = jnp.full((bt, Hp, WL, tc), neg, cdtype)
        pad_ref[:, :, WL + W:Wp, :] = jnp.full((bt, Hp, Wp - WL - W, tc), neg, cdtype)
        pad_ref[:, 0:rm, WL:WL + W, :] = jnp.full((bt, rm, W, tc), neg, cdtype)
        pad_ref[:, rm + H:Hp, WL:WL + W, :] = jnp.full((bt, rm, W, tc), neg, cdtype)

        # SPPF cascade: p5 = mp5(x), p9 = mp5(p5), p13 = mp5(p9) (exact identity for
        # stride-1, -inf "same"-padded max pools) -> 24 per-element maxima total.
        # TODO(synk): measure-first on v7x - tree-structured max (3 maxima per axis
        # pass) and/or pltpu.roll-based W shifts if vld/vst slots become the limiter.
        for i, r in enumerate(inc):
            # --- W axis (sublane axis): shifted reads of the -inf-framed scratch ---
            pad_ref[:, rm:rm + H, WL:WL + W, :] = v          # aligned center store
            wb = WL - r
            acc = pad_ref[:, rm:rm + H, wb:wb + W, :]
            for j in range(1, 2 * r + 1):
                acc = jnp.maximum(acc, pad_ref[:, rm:rm + H, wb + j:wb + j + W, :])
            # --- H axis (untiled leading dim): same trick through the scratch rows ---
            pad_ref[:, rm:rm + H, WL:WL + W, :] = acc        # aligned center store
            hb = rm - r
            v = pad_ref[:, hb:hb + H, WL:WL + W, :]
            for j in range(1, 2 * r + 1):
                v = jnp.maximum(v, pad_ref[:, hb + j:hb + j + H, WL:WL + W, :])
            store(len(ks) - 1 - i, v)       # k=5 -> slot 2, k=9 -> slot 1, k=13 -> slot 0

    scratch = pltpu.VMEM((bt, Hp, Wp, tc), cdtype)
    return kernel, scratch


def _spp_core(x_nhwc, pool_sizes, want_interleaved):
    """Runs the SPP kernel on an NHWC input.

    Returns (out, interleaved): out is (N, H, W, F*C) with channel blocks
    [p13, p9, p5, x] when interleaved, else feature-major (N, F*H, W, C).
    """
    N, H, W, C = x_nhwc.shape
    ks, inc, rm = _cascade_radii(pool_sizes)
    F = len(ks) + 1

    dtype = jnp.dtype(x_nhwc.dtype)
    isz = dtype.itemsize
    cdtype = _compute_dtype(dtype)
    csz = jnp.dtype(cdtype).itemsize

    # --- generation-aware VMEM sizing ---
    vmem_cap = _physical_vmem_bytes()
    base_limit = 64 * _MIB if vmem_cap >= 96 * _MIB else 32 * _MIB
    budget = (3 * base_limit) // 4              # per-step working-set target

    WL = 8
    Hp = H + 2 * rm
    Wp = _round_up(WL + W + rm, 8)
    # Per (bt=1, tc=1) VMEM estimate: double-buffered in/out blocks, the framed
    # scratch, and ~3 live full-size temporaries.
    unit = H * W * ((2 + 2 * F) * isz + 3 * csz) + Hp * Wp * csz
    max_btc = max(1, budget // unit)            # bound on the bt * tc product

    # --- channel tile (multiples of 128, only when needed) ---
    if C % 128 == 0 and C > max_btc:
        tc = 128
        for cand in range(C, 128, -128):
            if C % cand == 0 and cand <= max_btc:
                tc = cand
                break
        interleaved = False                     # lane-offset interleave needs tc == C
    else:
        tc = C
        interleaved = bool(want_interleaved and C % 128 == 0)

    # --- batch tile (pad awkward N instead of collapsing to bt=1) ---
    bt_target = int(max(1, min(N, max_btc // max(tc, 1))))
    bt_div = max(d for d in range(1, bt_target + 1) if N % d == 0)
    if 2 * bt_div >= bt_target:
        bt, Np = bt_div, N
    else:
        bt = bt_target
        Np = _round_up(N, bt)
        x_nhwc = jnp.pad(x_nhwc, ((0, Np - N), (0, 0), (0, 0), (0, 0)))

    grid_n = Np // bt
    grid_c = C // tc
    # A 1-step grid has nothing to pipeline and starves the second v7x TensorCore;
    # split the channel axis in two when possible.
    if (not interleaved) and grid_n * grid_c == 1 and C % 256 == 0:
        tc = C // 2
        grid_c = 2

    kernel, scratch = _make_spp_kernel(pool_sizes, bt, tc, H, W, cdtype, dtype, interleaved)

    in_spec = pl.BlockSpec((bt, H, W, tc), lambda n, c: (n, 0, 0, c))
    if interleaved:
        out_shape = jax.ShapeDtypeStruct((Np, H, W, F * C), dtype)
        out_spec = pl.BlockSpec((bt, H, W, F * tc), lambda n, c: (n, 0, 0, c))
    else:
        out_shape = jax.ShapeDtypeStruct((Np, F * H, W, C), dtype)
        out_spec = pl.BlockSpec((bt, F * H, W, tc), lambda n, c: (n, 0, 0, c))

    # Advisory cost so XLA schedules surrounding layout ops around the call.
    max_ops = sum(4 * r for r in inc) * Np * C * H * W
    cost = pl.CostEstimate(
        flops=max_ops,
        transcendentals=0,
        bytes_accessed=(1 + F) * Np * C * H * W * isz,
    )

    est = unit * bt * tc
    vmem_limit = int(min(int(0.9 * vmem_cap), max(base_limit, est + 8 * _MIB)))

    out = pl.pallas_call(
        kernel,
        out_shape=out_shape,
        grid=(grid_n, grid_c),
        in_specs=[in_spec],
        out_specs=out_spec,
        scratch_shapes=[scratch],
        compiler_params=pltpu.CompilerParams(
            dimension_semantics=("parallel", "parallel"),
            vmem_limit_bytes=vmem_limit,
        ),
        cost_estimate=cost,
    )(x_nhwc)

    if Np != N:
        out = out[:N]
    return out, interleaved


def spatial_pyramid_pooling(x, pool_sizes=POOL_SIZES):
    """PyTorch-parity SPP: x (N, C, H, W) -> (N, (len+1)*C, H, W), concat [p13, p9, p5, x].

    NOTE(perf): the two permutes below are pure layout plumbing around a mem-bound
    kernel; NHWC pipelines should call spatial_pyramid_pooling_nhwc instead (no
    input transpose, and zero output permute when C % 128 == 0).
    """
    N, C, H, W = x.shape
    pool_sizes = tuple(pool_sizes)
    F = len(pool_sizes) + 1

    x_nhwc = jnp.transpose(x, (0, 2, 3, 1))     # channels onto the lane axis
    out4, _ = _spp_core(x_nhwc, pool_sizes, want_interleaved=False)

    # (N, F*H, W, C) -> (N, F, C, H, W) -> (N, F*C, H, W): identical to the
    # PyTorch channel-dim concatenation order [p13, p9, p5, x].
    out = out4.reshape(N, F, H, W, C)
    out = jnp.transpose(out, (0, 1, 4, 2, 3)).reshape(N, F * C, H, W)
    return out


def spatial_pyramid_pooling_nhwc(x_nhwc, pool_sizes=POOL_SIZES):
    """NHWC SPP: x (N, H, W, C) -> (N, H, W, (len+1)*C), channel blocks [p13, p9, p5, x]."""
    N, H, W, C = x_nhwc.shape
    pool_sizes = tuple(pool_sizes)
    F = len(pool_sizes) + 1
    out, interleaved = _spp_core(x_nhwc, pool_sizes, want_interleaved=True)
    if interleaved:
        return out                               # kernel already wrote the final layout
    out = out.reshape(N, F, H, W, C)
    return jnp.transpose(out, (0, 2, 3, 1, 4)).reshape(N, H, W, F * C)


def _reference_spp(x, pool_sizes=POOL_SIZES):
    if jnp.issubdtype(x.dtype, jnp.floating):
        init = jnp.array(-jnp.inf, dtype=x.dtype)
    else:
        init = jnp.array(jnp.iinfo(x.dtype).min, dtype=x.dtype)
    feats = []
    for k in sorted(pool_sizes)[::-1]:
        r = k // 2
        p = jax.lax.reduce_window(
            x, init, jax.lax.max,
            window_dimensions=(1, 1, k, k),
            window_strides=(1, 1, 1, 1),
            padding=[(0, 0), (0, 0), (r, r), (r, r)])
        feats.append(p)
    feats.append(x)
    return jnp.concatenate(feats, axis=1)


if __name__ == "__main__":
    # 1) PyTorch-parity NCHW path, small f32 shape.
    x = jax.random.normal(jax.random.PRNGKey(0), (2, 4, 16, 16), dtype=jnp.float32)
    out = jax.block_until_ready(spatial_pyramid_pooling(x))
    ref = jax.block_until_ready(_reference_spp(x))
    assert out.shape == (2, 16, 16, 16), out.shape
    np.testing.assert_array_equal(np.asarray(out), np.asarray(ref))

    # 2) Representative SPP shape: bf16, C=256, odd spatial — exercises the
    #    channel-tiled two-step grid.  Max is exact in bf16, so compare exactly.
    xb = jax.random.normal(jax.random.PRNGKey(1), (1, 256, 13, 13)).astype(jnp.bfloat16)
    outb = jax.block_until_ready(spatial_pyramid_pooling(xb))
    refb = jax.block_until_ready(_reference_spp(xb))
    np.testing.assert_array_equal(
        np.asarray(jnp.asarray(outb, jnp.float32)),
        np.asarray(jnp.asarray(refb, jnp.float32)))

    # 3) NHWC fast path: kernel writes the final (N, H, W, 4C) layout directly.
    xn = jnp.transpose(xb, (0, 2, 3, 1))
    outn = jax.block_until_ready(spatial_pyramid_pooling_nhwc(xn))
    refn = jnp.transpose(refb, (0, 2, 3, 1))
    np.testing.assert_array_equal(
        np.asarray(jnp.asarray(outn, jnp.float32)),
        np.asarray(jnp.asarray(refn, jnp.float32)))

    print("KERNEL_OK")
</pallas_src>

<mosaic_0001>
module attributes {stable_mosaic.version = 11 : i64} {
  func.func @kernel(%arg0: i32, %arg1: i32, %arg2: memref<2x16x16x4xf32, #tpu.memory_space<vmem>>, %arg3: memref<2x64x16x4xf32, #tpu.memory_space<vmem>>, %arg4: memref<2x20x32x4xf32, #tpu.memory_space<vmem>>) attributes {dimension_semantics = [#tpu.dimension_semantics<parallel>, #tpu.dimension_semantics<parallel>], iteration_bounds = array<i64: 1, 1>, scalar_prefetch = 0 : i64, scratch_operands = 1 : i64, tpu.core_type = #tpu.core_type<tc>, window_params = [{transform_indices = @transform_0, window_bounds = array<i64: 2, 16, 16, 4>}, {transform_indices = @transform_1, window_bounds = array<i64: 2, 64, 16, 4>}]} {
    %c0 = arith.constant 0 : index
    %c0_0 = arith.constant 0 : index
    %c0_1 = arith.constant 0 : index
    %c0_2 = arith.constant 0 : index
    %0 = vector.load %arg2[%c0, %c0_0, %c0_1, %c0_2] : memref<2x16x16x4xf32, #tpu.memory_space<vmem>>, vector<2x16x16x4xf32>
    %c0_3 = arith.constant 0 : index
    %c48 = arith.constant 48 : index
    %c0_4 = arith.constant 0 : index
    %c0_5 = arith.constant 0 : index
    %1 = vector.load %arg3[%c0_3, %c48, %c0_4, %c0_5] : memref<2x64x16x4xf32, #tpu.memory_space<vmem>>, vector<2x16x16x4xf32>
    tpu.vector_store %arg3[%c0_3, %c48, %c0_4, %c0_5], %0 {strides = array<i32>} : memref<2x64x16x4xf32, #tpu.memory_space<vmem>>, vector<2x16x16x4xf32>,
    %cst = arith.constant 0xFF800000 : f32
    %2 = vector.broadcast %cst : f32 to vector<2x20x8x4xf32>
    %c0_6 = arith.constant 0 : index
    %c0_7 = arith.constant 0 : index
    %c0_8 = arith.constant 0 : index
    %c0_9 = arith.constant 0 : index
    %3 = vector.load %arg4[%c0_6, %c0_7, %c0_8, %c0_9] : memref<2x20x32x4xf32, #tpu.memory_space<vmem>>, vector<2x20x8x4xf32>
    tpu.vector_store %arg4[%c0_6, %c0_7, %c0_8, %c0_9], %2 {strides = array<i32>} : memref<2x20x32x4xf32, #tpu.memory_space<vmem>>, vector<2x20x8x4xf32>,
    %cst_10 = arith.constant 0xFF800000 : f32
    %4 = vector.broadcast %cst_10 : f32 to vector<2x20x8x4xf32>
    %c0_11 = arith.constant 0 : index
    %c0_12 = arith.constant 0 : index
    %c24 = arith.constant 24 : index
    %c0_13 = arith.constant 0 : index
    %5 = vector.load %arg4[%c0_11, %c0_12, %c24, %c0_13] : memref<2x20x32x4xf32, #tpu.memory_space<vmem>>, vector<2x20x8x4xf32>
    tpu.vector_store %arg4[%c0_11, %c0_12, %c24, %c0_13], %4 {strides = array<i32>} : memref<2x20x32x4xf32, #tpu.memory_space<vmem>>, vector<2x20x8x4xf32>,
    %cst_14 = arith.constant 0xFF800000 : f32
    %6 = vector.broadcast %cst_14 : f32 to vector<2x2x16x4xf32>
    %c0_15 = arith.constant 0 : index
    %c0_16 = arith.constant 0 : index
    %c8 = arith.constant 8 : index
    %c0_17 = arith.constant 0 : index
    %7 = vector.load %arg4[%c0_15, %c0_16, %c8, %c0_17] : memref<2x20x32x4xf32, #tpu.memory_space<vmem>>, vector<2x2x16x4xf32>
    tpu.vector_store %arg4[%c0_15, %c0_16, %c8, %c0_17], %6 {strides = array<i32>} : memref<2x20x32x4xf32, #tpu.memory_space<vmem>>, vector<2x2x16x4xf32>,
    %cst_18 = arith.constant 0xFF800000 : f32
    %8 = vector.broadcast %cst_18 : f32 to vector<2x2x16x4xf32>
    %c0_19 = arith.constant 0 : index
    %c18 = arith.constant 18 : index
    %c8_20 = arith.constant 8 : index
    %c0_21 = arith.constant 0 : index
    %9 = vector.load %arg4[%c0_19, %c18, %c8_20, %c0_21] : memref<2x20x32x4xf32, #tpu.memory_space<vmem>>, vector<2x2x16x4xf32>
    tpu.vector_store %arg4[%c0_19, %c18, %c8_20, %c0_21], %8 {strides = array<i32>} : memref<2x20x32x4xf32, #tpu.memory_space<vmem>>, vector<2x2x16x4xf32>,
    %c0_22 = arith.constant 0 : index
    %c2 = arith.constant 2 : index
    %c8_23 = arith.constant 8 : index
    %c0_24 = arith.constant 0 : index
    %10 = vector.load %arg4[%c0_22, %c2, %c8_23, %c0_24] : memref<2x20x32x4xf32, #tpu.memory_space<vmem>>, vector<2x16x16x4xf32>
    tpu.vector_store %arg4[%c0_22, %c2, %c8_23, %c0_24], %0 {strides = array<i32>} : memref<2x20x32x4xf32, #tpu.memory_space<vmem>>, vector<2x16x16x4xf32>,
    %c0_25 = arith.constant 0 : index
    %c2_26 = arith.constant 2 : index
    %c6 = arith.constant 6 : index
    %c0_27 = arith.constant 0 : index
    %11 = vector.load %arg4[%c0_25, %c2_26, %c6, %c0_27] : memref<2x20x32x4xf32, #tpu.memory_space<vmem>>, vector<2x16x16x4xf32>
    %c0_28 = arith.constant 0 : index
    %c2_29 = arith.constant 2 : index
    %c7 = arith.constant 7 : index
    %c0_30 = arith.constant 0 : index
    %12 = vector.load %arg4[%c0_28, %c2_29, %c7, %c0_30] : memref<2x20x32x4xf32, #tpu.memory_space<vmem>>, vector<2x16x16x4xf32>
    %13 = arith.maximumf %11, %12 : vector<2x16x16x4xf32>
    %c0_31 = arith.constant 0 : index
    %c2_32 = arith.constant 2 : index
    %c8_33 = arith.constant 8 : index
    %c0_34 = arith.constant 0 : index
    %14 = vector.load %arg4[%c0_31, %c2_32, %c8_33, %c0_34] : memref<2x20x32x4xf32, #tpu.memory_space<vmem>>, vector<2x16x16x4xf32>
    %15 = arith.maximumf %13, %14 : vector<2x16x16x4xf32>
    %c0_35 = arith.constant 0 : index
    %c2_36 = arith.constant 2 : index
    %c9 = arith.constant 9 : index
    %c0_37 = arith.constant 0 : index
    %16 = vector.load %arg4[%c0_35, %c2_36, %c9, %c0_37] : memref<2x20x32x4xf32, #tpu.memory_space<vmem>>, vector<2x16x16x4xf32>
    %17 = arith.maximumf %15, %16 : vector<2x16x16x4xf32>
    %c0_38 = arith.constant 0 : index
    %c2_39 = arith.constant 2 : index
    %c10 = arith.constant 10 : index
    %c0_40 = arith.constant 0 : index
    %18 = vector.load %arg4[%c0_38, %c2_39, %c10, %c0_40] : memref<2x20x32x4xf32, #tpu.memory_space<vmem>>, vector<2x16x16x4xf32>
    %19 = arith.maximumf %17, %18 : vector<2x16x16x4xf32>
    %c0_41 = arith.constant 0 : index
    %c2_42 = arith.constant 2 : index
    %c8_43 = arith.constant 8 : index
    %c0_44 = arith.constant 0 : index
    %20 = vector.load %arg4[%c0_41, %c2_42, %c8_43, %c0_44] : memref<2x20x32x4xf32, #tpu.memory_space<vmem>>, vector<2x16x16x4xf32>
    tpu.vector_store %arg4[%c0_41, %c2_42, %c8_43, %c0_44], %19 {strides = array<i32>} : memref<2x20x32x4xf32, #tpu.memory_space<vmem>>, vector<2x16x16x4xf32>,
    %c0_45 = arith.constant 0 : index
    %c0_46 = arith.constant 0 : index
    %c8_47 = arith.constant 8 : index
    %c0_48 = arith.constant 0 : index
    %21 = vector.load %arg4[%c0_45, %c0_46, %c8_47, %c0_48] : memref<2x20x32x4xf32, #tpu.memory_space<vmem>>, vector<2x16x16x4xf32>
    %c0_49 = arith.constant 0 : index
    %c1 = arith.constant 1 : index
    %c8_50 = arith.constant 8 : index
    %c0_51 = arith.constant 0 : index
    %22 = vector.load %arg4[%c0_49, %c1, %c8_50, %c0_51] : memref<2x20x32x4xf32, #tpu.memory_space<vmem>>, vector<2x16x16x4xf32>
    %23 = arith.maximumf %21, %22 : vector<2x16x16x4xf32>
    %c0_52 = arith.constant 0 : index
    %c2_53 = arith.constant 2 : index
    %c8_54 = arith.constant 8 : index
    %c0_55 = arith.constant 0 : index
    %24 = vector.load %arg4[%c0_52, %c2_53, %c8_54, %c0_55] : memref<2x20x32x4xf32, #tpu.memory_space<vmem>>, vector<2x16x16x4xf32>
    %25 = arith.maximumf %23, %24 : vector<2x16x16x4xf32>
    %c0_56 = arith.constant 0 : index
    %c3 = arith.constant 3 : index
    %c8_57 = arith.constant 8 : index
    %c0_58 = arith.constant 0 : index
    %26 = vector.load %arg4[%c0_56, %c3, %c8_57, %c0_58] : memref<2x20x32x4xf32, #tpu.memory_space<vmem>>, vector<2x16x16x4xf32>
    %27 = arith.maximumf %25, %26 : vector<2x16x16x4xf32>
    %c0_59 = arith.constant 0 : index
    %c4 = arith.constant 4 : index
    %c8_60 = arith.constant 8 : index
    %c0_61 = arith.constant 0 : index
    %28 = vector.load %arg4[%c0_59, %c4, %c8_60, %c0_61] : memref<2x20x32x4xf32, #tpu.memory_space<vmem>>, vector<2x16x16x4xf32>
    %29 = arith.maximumf %27, %28 : vector<2x16x16x4xf32>
    %c0_62 = arith.constant 0 : index
    %c32 = arith.constant 32 : index
    %c0_63 = arith.constant 0 : index
    %c0_64 = arith.constant 0 : index
    %30 = vector.load %arg3[%c0_62, %c32, %c0_63, %c0_64] : memref<2x64x16x4xf32, #tpu.memory_space<vmem>>, vector<2x16x16x4xf32>
    tpu.vector_store %arg3[%c0_62, %c32, %c0_63, %c0_64], %29 {strides = array<i32>} : memref<2x64x16x4xf32, #tpu.memory_space<vmem>>, vector<2x16x16x4xf32>,
    %c0_65 = arith.constant 0 : index
    %c2_66 = arith.constant 2 : index
    %c8_67 = arith.constant 8 : index
    %c0_68 = arith.constant 0 : index
    %31 = vector.load %arg4[%c0_65, %c2_66, %c8_67, %c0_68] : memref<2x20x32x4xf32, #tpu.memory_space<vmem>>, vector<2x16x16x4xf32>
    tpu.vector_store %arg4[%c0_65, %c2_66, %c8_67, %c0_68], %29 {strides = array<i32>} : memref<2x20x32x4xf32, #tpu.memory_space<vmem>>, vector<2x16x16x4xf32>,
    %c0_69 = arith.constant 0 : index
    %c2_70 = arith.constant 2 : index
    %c6_71 = arith.constant 6 : index
    %c0_72 = arith.constant 0 : index
    %32 = vector.load %arg4[%c0_69, %c2_70, %c6_71, %c0_72] : memref<2x20x32x4xf32, #tpu.memory_space<vmem>>, vector<2x16x16x4xf32>
    %c0_73 = arith.constant 0 : index
    %c2_74 = arith.constant 2 : index
    %c7_75 = arith.constant 7 : index
    %c0_76 = arith.constant 0 : index
    %33 = vector.load %arg4[%c0_73, %c2_74, %c7_75, %c0_76] : memref<2x20x32x4xf32, #tpu.memory_space<vmem>>, vector<2x16x16x4xf32>
    %34 = arith.maximumf %32, %33 : vector<2x16x16x4xf32>
    %c0_77 = arith.constant 0 : index
    %c2_78 = arith.constant 2 : index
    %c8_79 = arith.constant 8 : index
    %c0_80 = arith.constant 0 : index
    %35 = vector.load %arg4[%c0_77, %c2_78, %c8_79, %c0_80] : memref<2x20x32x4xf32, #tpu.memory_space<vmem>>, vector<2x16x16x4xf32>
    %36 = arith.maximumf %34, %35 : vector<2x16x16x4xf32>
    %c0_81 = arith.constant 0 : index
    %c2_82 = arith.constant 2 : index
    %c9_83 = arith.constant 9 : index
    %c0_84 = arith.constant 0 : index
    %37 = vector.load %arg4[%c0_81, %c2_82, %c9_83, %c0_84] : memref<2x20x32x4xf32, #tpu.memory_space<vmem>>, vector<2x16x16x4xf32>
    %38 = arith.maximumf %36, %37 : vector<2x16x16x4xf32>
    %c0_85 = arith.constant 0 : index
    %c2_86 = arith.constant 2 : index
    %c10_87 = arith.constant 10 : index
    %c0_88 = arith.constant 0 : index
    %39 = vector.load %arg4[%c0_85, %c2_86, %c10_87, %c0_88] : memref<2x20x32x4xf32, #tpu.memory_space<vmem>>, vector<2x16x16x4xf32>
    %40 = arith.maximumf %38, %39 : vector<2x16x16x4xf32>
    %c0_89 = arith.constant 0 : index
    %c2_90 = arith.constant 2 : index
    %c8_91 = arith.constant 8 : index
    %c0_92 = arith.constant 0 : index
    %41 = vector.load %arg4[%c0_89, %c2_90, %c8_91, %c0_92] : memref<2x20x32x4xf32, #tpu.memory_space<vmem>>, vector<2x16x16x4xf32>
    tpu.vector_store %arg4[%c0_89, %c2_90, %c8_91, %c0_92], %40 {strides = array<i32>} : memref<2x20x32x4xf32, #tpu.memory_space<vmem>>, vector<2x16x16x4xf32>,
    %c0_93 = arith.constant 0 : index
    %c0_94 = arith.constant 0 : index
    %c8_95 = arith.constant 8 : index
    %c0_96 = arith.constant 0 : index
    %42 = vector.load %arg4[%c0_93, %c0_94, %c8_95, %c0_96] : memref<2x20x32x4xf32, #tpu.memory_space<vmem>>, vector<2x16x16x4xf32>
    %c0_97 = arith.constant 0 : index
    %c1_98 = arith.constant 1 : index
    %c8_99 = arith.constant 8 : index
    %c0_100 = arith.constant 0 : index
    %43 = vector.load %arg4[%c0_97, %c1_98, %c8_99, %c0_100] : memref<2x20x32x4xf32, #tpu.memory_space<vmem>>, vector<2x16x16x4xf32>
    %44 = arith.maximumf %42, %43 : vector<2x16x16x4xf32>
    %c0_101 = arith.constant 0 : index
    %c2_102 = arith.constant 2 : index
    %c8_103 = arith.constant 8 : index
    %c0_104 = arith.constant 0 : index
    %45 = vector.load %arg4[%c0_101, %c2_102, %c8_103, %c0_104] : memref<2x20x32x4xf32, #tpu.memory_space<vmem>>, vector<2x16x16x4xf32>
    %46 = arith.maximumf %44, %45 : vector<2x16x16x4xf32>
    %c0_105 = arith.constant 0 : index
    %c3_106 = arith.constant 3 : index
    %c8_107 = arith.constant 8 : index
    %c0_108 = arith.constant 0 : index
    %47 = vector.load %arg4[%c0_105, %c3_106, %c8_107, %c0_108] : memref<2x20x32x4xf32, #tpu.memory_space<vmem>>, vector<2x16x16x4xf32>
    %48 = arith.maximumf %46, %47 : vector<2x16x16x4xf32>
    %c0_109 = arith.constant 0 : index
    %c4_110 = arith.constant 4 : index
    %c8_111 = arith.constant 8 : index
    %c0_112 = arith.constant 0 : index
    %49 = vector.load %arg4[%c0_109, %c4_110, %c8_111, %c0_112] : memref<2x20x32x4xf32, #tpu.memory_space<vmem>>, vector<2x16x16x4xf32>
    %50 = arith.maximumf %48, %49 : vector<2x16x16x4xf32>
    %c0_113 = arith.constant 0 : index
    %c16 = arith.constant 16 : index
    %c0_114 = arith.constant 0 : index
    %c0_115 = arith.constant 0 : index
    %51 = vector.load %arg3[%c0_113, %c16, %c0_114, %c0_115] : memref<2x64x16x4xf32, #tpu.memory_space<vmem>>, vector<2x16x16x4xf32>
    tpu.vector_store %arg3[%c0_113, %c16, %c0_114, %c0_115], %50 {strides = array<i32>} : memref<2x64x16x4xf32, #tpu.memory_space<vmem>>, vector<2x16x16x4xf32>,
    %c0_116 = arith.constant 0 : index
    %c2_117 = arith.constant 2 : index
    %c8_118 = arith.constant 8 : index
    %c0_119 = arith.constant 0 : index
    %52 = vector.load %arg4[%c0_116, %c2_117, %c8_118, %c0_119] : memref<2x20x32x4xf32, #tpu.memory_space<vmem>>, vector<2x16x16x4xf32>
    tpu.vector_store %arg4[%c0_116, %c2_117, %c8_118, %c0_119], %50 {strides = array<i32>} : memref<2x20x32x4xf32, #tpu.memory_space<vmem>>, vector<2x16x16x4xf32>,
    %c0_120 = arith.constant 0 : index
    %c2_121 = arith.constant 2 : index
    %c6_122 = arith.constant 6 : index
    %c0_123 = arith.constant 0 : index
    %53 = vector.load %arg4[%c0_120, %c2_121, %c6_122, %c0_123] : memref<2x20x32x4xf32, #tpu.memory_space<vmem>>, vector<2x16x16x4xf32>
    %c0_124 = arith.constant 0 : index
    %c2_125 = arith.constant 2 : index
    %c7_126 = arith.constant 7 : index
    %c0_127 = arith.constant 0 : index
    %54 = vector.load %arg4[%c0_124, %c2_125, %c7_126, %c0_127] : memref<2x20x32x4xf32, #tpu.memory_space<vmem>>, vector<2x16x16x4xf32>
    %55 = arith.maximumf %53, %54 : vector<2x16x16x4xf32>
    %c0_128 = arith.constant 0 : index
    %c2_129 = arith.constant 2 : index
    %c8_130 = arith.constant 8 : index
    %c0_131 = arith.constant 0 : index
    %56 = vector.load %arg4[%c0_128, %c2_129, %c8_130, %c0_131] : memref<2x20x32x4xf32, #tpu.memory_space<vmem>>, vector<2x16x16x4xf32>
    %57 = arith.maximumf %55, %56 : vector<2x16x16x4xf32>
    %c0_132 = arith.constant 0 : index
    %c2_133 = arith.constant 2 : index
    %c9_134 = arith.constant 9 : index
    %c0_135 = arith.constant 0 : index
    %58 = vector.load %arg4[%c0_132, %c2_133, %c9_134, %c0_135] : memref<2x20x32x4xf32, #tpu.memory_space<vmem>>, vector<2x16x16x4xf32>
    %59 = arith.maximumf %57, %58 : vector<2x16x16x4xf32>
    %c0_136 = arith.constant 0 : index
    %c2_137 = arith.constant 2 : index
    %c10_138 = arith.constant 10 : index
    %c0_139 = arith.constant 0 : index
    %60 = vector.load %arg4[%c0_136, %c2_137, %c10_138, %c0_139] : memref<2x20x32x4xf32, #tpu.memory_space<vmem>>, vector<2x16x16x4xf32>
    %61 = arith.maximumf %59, %60 : vector<2x16x16x4xf32>
    %c0_140 = arith.constant 0 : index
    %c2_141 = arith.constant 2 : index
    %c8_142 = arith.constant 8 : index
    %c0_143 = arith.constant 0 : index
    %62 = vector.load %arg4[%c0_140, %c2_141, %c8_142, %c0_143] : memref<2x20x32x4xf32, #tpu.memory_space<vmem>>, vector<2x16x16x4xf32>
    tpu.vector_store %arg4[%c0_140, %c2_141, %c8_142, %c0_143], %61 {strides = array<i32>} : memref<2x20x32x4xf32, #tpu.memory_space<vmem>>, vector<2x16x16x4xf32>,
    %c0_144 = arith.constant 0 : index
    %c0_145 = arith.constant 0 : index
    %c8_146 = arith.constant 8 : index
    %c0_147 = arith.constant 0 : index
    %63 = vector.load %arg4[%c0_144, %c0_145, %c8_146, %c0_147] : memref<2x20x32x4xf32, #tpu.memory_space<vmem>>, vector<2x16x16x4xf32>
    %c0_148 = arith.constant 0 : index
    %c1_149 = arith.constant 1 : index
    %c8_150 = arith.constant 8 : index
    %c0_151 = arith.constant 0 : index
    %64 = vector.load %arg4[%c0_148, %c1_149, %c8_150, %c0_151] : memref<2x20x32x4xf32, #tpu.memory_space<vmem>>, vector<2x16x16x4xf32>
    %65 = arith.maximumf %63, %64 : vector<2x16x16x4xf32>
    %c0_152 = arith.constant 0 : index
    %c2_153 = arith.constant 2 : index
    %c8_154 = arith.constant 8 : index
    %c0_155 = arith.constant 0 : index
    %66 = vector.load %arg4[%c0_152, %c2_153, %c8_154, %c0_155] : memref<2x20x32x4xf32, #tpu.memory_space<vmem>>, vector<2x16x16x4xf32>
    %67 = arith.maximumf %65, %66 : vector<2x16x16x4xf32>
    %c0_156 = arith.constant 0 : index
    %c3_157 = arith.constant 3 : index
    %c8_158 = arith.constant 8 : index
    %c0_159 = arith.constant 0 : index
    %68 = vector.load %arg4[%c0_156, %c3_157, %c8_158, %c0_159] : memref<2x20x32x4xf32, #tpu.memory_space<vmem>>, vector<2x16x16x4xf32>
    %69 = arith.maximumf %67, %68 : vector<2x16x16x4xf32>
    %c0_160 = arith.constant 0 : index
    %c4_161 = arith.constant 4 : index
    %c8_162 = arith.constant 8 : index
    %c0_163 = arith.constant 0 : index
    %70 = vector.load %arg4[%c0_160, %c4_161, %c8_162, %c0_163] : memref<2x20x32x4xf32, #tpu.memory_space<vmem>>, vector<2x16x16x4xf32>
    %71 = arith.maximumf %69, %70 : vector<2x16x16x4xf32>
    %c0_164 = arith.constant 0 : index
    %c0_165 = arith.constant 0 : index
    %c0_166 = arith.constant 0 : index
    %c0_167 = arith.constant 0 : index
    %72 = vector.load %arg3[%c0_164, %c0_165, %c0_166, %c0_167] : memref<2x64x16x4xf32, #tpu.memory_space<vmem>>, vector<2x16x16x4xf32>
    tpu.vector_store %arg3[%c0_164, %c0_165, %c0_166, %c0_167], %71 {strides = array<i32>} : memref<2x64x16x4xf32, #tpu.memory_space<vmem>>, vector<2x16x16x4xf32>,
    return
  }
  func.func @transform_0(%arg0: i32, %arg1: i32) -> (i32, i32, i32, i32) {
    %c0_i32 = arith.constant 0 : i32
    %c0_i32_0 = arith.constant 0 : i32
    %c0_i32_1 = arith.constant 0 : i32
    return %arg0, %c0_i32, %c0_i32_0, %arg1 : i32, i32, i32, i32
  }
  func.func @transform_1(%arg0: i32, %arg1: i32) -> (i32, i32, i32, i32) {
    %c0_i32 = arith.constant 0 : i32
    %c0_i32_0 = arith.constant 0 : i32
    %c0_i32_1 = arith.constant 0 : i32
    return %arg0, %c0_i32, %c0_i32_0, %arg1 : i32, i32, i32, i32
  }
}

</mosaic_0001>

<bundles_post_ra>
// kernel: tpu_custom_call.1
= control target key start
LH: loop header
LB: loop body
LE: loop exit
PB: predicated region body
PF: predicated region fallthrough
CT: control target
= control target key end

     0   :  { %vm73_vm0 = vcmask 31744   ;;  %v4470_v0 = vmov -inf   ;;  %s8708_s0 = inlined_call_operand.vmem [shape: f32[2,16,16,4], index: 0, kind: input, shape index: {}]   ;;  %s8709_s1 = inlined_call_operand.vmem [shape: f32[2,64,16,4], index: 1, kind: output, shape index: {}]  }
   0x1   :  { %140 = vst.msk [vmem:[#allocation2 + $0x40] sm:$0xff] %vm73_vm0, %v4470_v0  ;;  %141 = vst.msk [vmem:[#allocation2 + $0x60] sm:$0xff] %vm73_vm0, %v4470_v0  ;;  %v8_v1 = vld [vmem:[%s8708_s0] sm:$0xff]  ;;  %v9_v2 = vld [vmem:[%s8708_s0 + $0x8] sm:$0xff] }
   0x2   :  { %142 = vst.msk [vmem:[#allocation2 + $0x80] sm:$0xff] %vm73_vm0, %v4470_v0  ;;  %143 = vst.msk [vmem:[#allocation2 + $0xa0] sm:$0xff] %vm73_vm0, %v4470_v0  ;;  %v10_v3 = vld [vmem:[%s8708_s0 + $0x10] sm:$0xff]  ;;  %v11_v4 = vld [vmem:[%s8708_s0 + $0x18] sm:$0xff] }
   0x3   :  { %144 = vst.msk [vmem:[#allocation2 + $0xc0] sm:$0xff] %vm73_vm0, %v4470_v0  ;;  %145 = vst.msk [vmem:[#allocation2 + $0xe0] sm:$0xff] %vm73_vm0, %v4470_v0  ;;  %v12_v5 = vld [vmem:[%s8708_s0 + $0x20] sm:$0xff]  ;;  %v13_v6 = vld [vmem:[%s8708_s0 + $0x28] sm:$0xff] }
   0x4   :  { %146 = vst.msk [vmem:[#allocation2 + $0x100] sm:$0xff] %vm73_vm0, %v4470_v0  ;;  %147 = vst.msk [vmem:[#allocation2 + $0x120] sm:$0xff] %vm73_vm0, %v4470_v0  ;;  %v14_v7 = vld [vmem:[%s8708_s0 + $0x30] sm:$0xff]  ;;  %v15_v8 = vld [vmem:[%s8708_s0 + $0x38] sm:$0xff] }
   0x5   :  { %148 = vst.msk [vmem:[#allocation2 + $0x140] sm:$0xff] %vm73_vm0, %v4470_v0  ;;  %149 = vst.msk [vmem:[#allocation2 + $0x160] sm:$0xff] %vm73_vm0, %v4470_v0  ;;  %v16_v9 = vld [vmem:[%s8708_s0 + $0x40] sm:$0xff]  ;;  %v17_v10 = vld [vmem:[%s8708_s0 + $0x48] sm:$0xff] }
   0x6   :  { %150 = vst.msk [vmem:[#allocation2 + $0x180] sm:$0xff] %vm73_vm0, %v4470_v0  ;;  %151 = vst.msk [vmem:[#allocation2 + $0x1a0] sm:$0xff] %vm73_vm0, %v4470_v0  ;;  %v18_v11 = vld [vmem:[%s8708_s0 + $0x50] sm:$0xff]  ;;  %v19_v12 = vld [vmem:[%s8708_s0 + $0x58] sm:$0xff] }
   0x7   :  { %152 = vst.msk [vmem:[#allocation2 + $0x1c0] sm:$0xff] %vm73_vm0, %v4470_v0  ;;  %153 = vst.msk [vmem:[#allocation2 + $0x1e0] sm:$0xff] %vm73_vm0, %v4470_v0  ;;  %v20_v13 = vld [vmem:[%s8708_s0 + $0x60] sm:$0xff]  ;;  %v21_v14 = vld [vmem:[%s8708_s0 + $0x68] sm:$0xff] }
   0x8   :  { %154 = vst.msk [vmem:[#allocation2 + $0x200] sm:$0xff] %vm73_vm0, %v4470_v0  ;;  %155 = vst.msk [vmem:[#allocation2 + $0x220] sm:$0xff] %vm73_vm0, %v4470_v0  ;;  %v22_v15 = vld [vmem:[%s8708_s0 + $0x70] sm:$0xff]  ;;  %v23_v16 = vld [vmem:[%s8708_s0 + $0x78] sm:$0xff] }
   0x9   :  { %160 = vst.msk [vmem:[#allocation2 + $0x2c0] sm:$0xff] %vm73_vm0, %v4470_v0  ;;  %161 = vst.msk [vmem:[#allocation2 + $0x2e0] sm:$0xff] %vm73_vm0, %v4470_v0  ;;  %v24_v17 = vld [vmem:[%s8708_s0 + $0x80] sm:$0xff]  ;;  %v25_v18 = vld [vmem:[%s8708_s0 + $0x88] sm:$0xff] }
   0xa   :  { %162 = vst.msk [vmem:[#allocation2 + $0x300] sm:$0xff] %vm73_vm0, %v4470_v0  ;;  %163 = vst.msk [vmem:[#allocation2 + $0x320] sm:$0xff] %vm73_vm0, %v4470_v0  ;;  %v26_v19 = vld [vmem:[%s8708_s0 + $0x90] sm:$0xff]  ;;  %v27_v20 = vld [vmem:[%s8708_s0 + $0x98] sm:$0xff] }
   0xb   :  { %164 = vst.msk [vmem:[#allocation2 + $0x340] sm:$0xff] %vm73_vm0, %v4470_v0  ;;  %165 = vst.msk [vmem:[#allocation2 + $0x360] sm:$0xff] %vm73_vm0, %v4470_v0  ;;  %v28_v21 = vld [vmem:[%s8708_s0 + $0xa0] sm:$0xff]  ;;  %v29_v22 = vld [vmem:[%s8708_s0 + $0xa8] sm:$0xff] }
   0xc   :  { %166 = vst.msk [vmem:[#allocation2 + $0x380] sm:$0xff] %vm73_vm0, %v4470_v0  ;;  %167 = vst.msk [vmem:[#allocation2 + $0x3a0] sm:$0xff] %vm73_vm0, %v4470_v0  ;;  %v30_v23 = vld [vmem:[%s8708_s0 + $0xb0] sm:$0xff]  ;;  %v31_v24 = vld [vmem:[%s8708_s0 + $0xb8] sm:$0xff] }
   0xd   :  { %168 = vst.msk [vmem:[#allocation2 + $0x3c0] sm:$0xff] %vm73_vm0, %v4470_v0  ;;  %169 = vst.msk [vmem:[#allocation2 + $0x3e0] sm:$0xff] %vm73_vm0, %v4470_v0  ;;  %v32_v25 = vld [vmem:[%s8708_s0 + $0xc0] sm:$0xff]  ;;  %v33_v26 = vld [vmem:[%s8708_s0 + $0xc8] sm:$0xff] }
   0xe   :  { %170 = vst.msk [vmem:[#allocation2 + $0x400] sm:$0xff] %vm73_vm0, %v4470_v0  ;;  %171 = vst.msk [vmem:[#allocation2 + $0x420] sm:$0xff] %vm73_vm0, %v4470_v0  ;;  %v34_v27 = vld [vmem:[%s8708_s0 + $0xd0] sm:$0xff]  ;;  %v35_v28 = vld [vmem:[%s8708_s0 + $0xd8] sm:$0xff] }
   0xf   :  { %172 = vst.msk [vmem:[#allocation2 + $0x440] sm:$0xff] %vm73_vm0, %v4470_v0  ;;  %173 = vst.msk [vmem:[#allocation2 + $0x460] sm:$0xff] %vm73_vm0, %v4470_v0  ;;  %v36_v29 = vld [vmem:[%s8708_s0 + $0xe0] sm:$0xff]  ;;  %v37_v30 = vld [vmem:[%s8708_s0 + $0xe8] sm:$0xff] }
  0x10   :  { %174 = vst.msk [vmem:[#allocation2 + $0x480] sm:$0xff] %vm73_vm0, %v4470_v0  ;;  %175 = vst.msk [vmem:[#allocation2 + $0x4a0] sm:$0xff] %vm73_vm0, %v4470_v0  ;;  %v38_v31 = vld [vmem:[%s8708_s0 + $0xf0] sm:$0xff]  ;;  %v39_v32 = vld [vmem:[%s8708_s0 + $0xf8] sm:$0xff] }
  0x11   :  { %180 = vst.msk [vmem:[#allocation2 + $0x58] sm:$0xff] %vm73_vm0, %v4470_v0  ;;  %181 = vst.msk [vmem:[#allocation2 + $0x78] sm:$0xff] %vm73_vm0, %v4470_v0  ;;  %v40_v33 = vld [vmem:[%s8708_s0 + $0x100] sm:$0xff]  ;;  %v41_v34 = vld [vmem:[%s8708_s0 + $0x108] sm:$0xff] }
  0x12   :  { %182 = vst.msk [vmem:[#allocation2 + $0x98] sm:$0xff] %vm73_vm0, %v4470_v0  ;;  %183 = vst.msk [vmem:[#allocation2 + $0xb8] sm:$0xff] %vm73_vm0, %v4470_v0  ;;  %v42_v35 = vld [vmem:[%s8708_s0 + $0x110] sm:$0xff]  ;;  %v43_v36 = vld [vmem:[%s8708_s0 + $0x118] sm:$0xff] }
  0x13   :  { %184 = vst.msk [vmem:[#allocation2 + $0xd8] sm:$0xff] %vm73_vm0, %v4470_v0  ;;  %185 = vst.msk [vmem:[#allocation2 + $0xf8] sm:$0xff] %vm73_vm0, %v4470_v0  ;;  %v44_v37 = vld [vmem:[%s8708_s0 + $0x120] sm:$0xff]  ;;  %v45_v38 = vld [vmem:[%s8708_s0 + $0x128] sm:$0xff] }
  0x14   :  { %186 = vst.msk [vmem:[#allocation2 + $0x118] sm:$0xff] %vm73_vm0, %v4470_v0  ;;  %187 = vst.msk [vmem:[#allocation2 + $0x138] sm:$0xff] %vm73_vm0, %v4470_v0  ;;  %v46_v39 = vld [vmem:[%s8708_s0 + $0x130] sm:$0xff]  ;;  %v47_v40 = vld [vmem:[%s8708_s0 + $0x138] sm:$0xff] }
  0x15   :  { %188 = vst.msk [vmem:[#allocation2 + $0x158] sm:$0xff] %vm73_vm0, %v4470_v0  ;;  %189 = vst.msk [vmem:[#allocation2 + $0x178] sm:$0xff] %vm73_vm0, %v4470_v0  ;;  %v48_v41 = vld [vmem:[%s8708_s0 + $0x140] sm:$0xff]  ;;  %v49_v42 = vld [vmem:[%s8708_s0 + $0x148] sm:$0xff] }
  0x16   :  { %190 = vst.msk [vmem:[#allocation2 + $0x198] sm:$0xff] %vm73_vm0, %v4470_v0  ;;  %191 = vst.msk [vmem:[#allocation2 + $0x1b8] sm:$0xff] %vm73_vm0, %v4470_v0  ;;  %v50_v43 = vld [vmem:[%s8708_s0 + $0x150] sm:$0xff]  ;;  %v51_v44 = vld [vmem:[%s8708_s0 + $0x158] sm:$0xff] }
  0x17   :  { %192 = vst.msk [vmem:[#allocation2 + $0x1d8] sm:$0xff] %vm73_vm0, %v4470_v0  ;;  %193 = vst.msk [vmem:[#allocation2 + $0x1f8] sm:$0xff] %vm73_vm0, %v4470_v0  ;;  %v52_v45 = vld [vmem:[%s8708_s0 + $0x160] sm:$0xff]  ;;  %v53_v46 = vld [vmem:[%s8708_s0 + $0x168] sm:$0xff] }
  0x18   :  { %194 = vst.msk [vmem:[#allocation2 + $0x218] sm:$0xff] %vm73_vm0, %v4470_v0  ;;  %195 = vst.msk [vmem:[#allocation2 + $0x238] sm:$0xff] %vm73_vm0, %v4470_v0  ;;  %v54_v47 = vld [vmem:[%s8708_s0 + $0x170] sm:$0xff]  ;;  %v55_v48 = vld [vmem:[%s8708_s0 + $0x178] sm:$0xff] }
  0x19   :  { %200 = vst.msk [vmem:[#allocation2 + $0x2d8] sm:$0xff] %vm73_vm0, %v4470_v0  ;;  %201 = vst.msk [vmem:[#allocation2 + $0x2f8] sm:$0xff] %vm73_vm0, %v4470_v0  ;;  %v56_v49 = vld [vmem:[%s8708_s0 + $0x180] sm:$0xff]  ;;  %v57_v50 = vld [vmem:[%s8708_s0 + $0x188] sm:$0xff] }
  0x1a   :  { %202 = vst.msk [vmem:[#allocation2 + $0x318] sm:$0xff] %vm73_vm0, %v4470_v0  ;;  %203 = vst.msk [vmem:[#allocation2 + $0x338] sm:$0xff] %vm73_vm0, %v4470_v0  ;;  %v58_v51 = vld [vmem:[%s8708_s0 + $0x190] sm:$0xff]  ;;  %v59_v52 = vld [vmem:[%s8708_s0 + $0x198] sm:$0xff] }
  0x1b   :  { %204 = vst.msk [vmem:[#allocation2 + $0x358] sm:$0xff] %vm73_vm0, %v4470_v0  ;;  %205 = vst.msk [vmem:[#allocation2 + $0x378] sm:$0xff] %vm73_vm0, %v4470_v0  ;;  %v60_v53 = vld [vmem:[%s8708_s0 + $0x1a0] sm:$0xff]  ;;  %v61_v54 = vld [vmem:[%s8708_s0 + $0x1a8] sm:$0xff] }
  0x1c   :  { %206 = vst.msk [vmem:[#allocation2 + $0x398] sm:$0xff] %vm73_vm0, %v4470_v0  ;;  %207 = vst.msk [vmem:[#allocation2 + $0x3b8] sm:$0xff] %vm73_vm0, %v4470_v0  ;;  %v62_v55 = vld [vmem:[%s8708_s0 + $0x1b0] sm:$0xff]  ;;  %v63_v56 = vld [vmem:[%s8708_s0 + $0x1b8] sm:$0xff] }
  0x1d   :  { %208 = vst.msk [vmem:[#allocation2 + $0x3d8] sm:$0xff] %vm73_vm0, %v4470_v0  ;;  %209 = vst.msk [vmem:[#allocation2 + $0x3f8] sm:$0xff] %vm73_vm0, %v4470_v0  ;;  %v64_v57 = vld [vmem:[%s8708_s0 + $0x1c0] sm:$0xff]  ;;  %v65_v58 = vld [vmem:[%s8708_s0 + $0x1c8] sm:$0xff] }
  0x1e   :  { %210 = vst.msk [vmem:[#allocation2 + $0x418] sm:$0xff] %vm73_vm0, %v4470_v0  ;;  %211 = vst.msk [vmem:[#allocation2 + $0x438] sm:$0xff] %vm73_vm0, %v4470_v0  ;;  %v66_v59 = vld [vmem:[%s8708_s0 + $0x1d0] sm:$0xff]  ;;  %v67_v60 = vld [vmem:[%s8708_s0 + $0x1d8] sm:$0xff] }
  0x1f   :  { %212 = vst.msk [vmem:[#allocation2 + $0x458] sm:$0xff] %vm73_vm0, %v4470_v0  ;;  %213 = vst.msk [vmem:[#allocation2 + $0x478] sm:$0xff] %vm73_vm0, %v4470_v0  ;;  %v68_v61 = vld [vmem:[%s8708_s0 + $0x1e0] sm:$0xff]  ;;  %v69_v62 = vld [vmem:[%s8708_s0 + $0x1e8] sm:$0xff] }
  0x20   :  { %214 = vst.msk [vmem:[#allocation2 + $0x498] sm:$0xff] %vm73_vm0, %v4470_v0  ;;  %215 = vst.msk [vmem:[#allocation2 + $0x4b8] sm:$0xff] %vm73_vm0, %v4470_v0  ;;  %v70_v63 = vld [vmem:[%s8708_s0 + $0x1f0] sm:$0xff] }
  0x21   :  { %218 = vst.msk [vmem:[#allocation2 + $0x8] sm:$0xff] %vm73_vm0, %v4470_v0  ;;  %219 = vst.msk [vmem:[#allocation2 + $0x10] sm:$0xff] %vm73_vm0, %v4470_v0 }
  0x22   :  { %220 = vst.msk [vmem:[#allocation2 + $0x28] sm:$0xff] %vm73_vm0, %v4470_v0  ;;  %221 = vst.msk [vmem:[#allocation2 + $0x30] sm:$0xff] %vm73_vm0, %v4470_v0 }
  0x23   :  { %222 = vst.msk [vmem:[#allocation2 + $0x288] sm:$0xff] %vm73_vm0, %v4470_v0  ;;  %223 = vst.msk [vmem:[#allocation2 + $0x290] sm:$0xff] %vm73_vm0, %v4470_v0 }
  0x24   :  { %224 = vst.msk [vmem:[#allocation2 + $0x2a8] sm:$0xff] %vm73_vm0, %v4470_v0  ;;  %225 = vst.msk [vmem:[#allocation2 + $0x2b0] sm:$0xff] %vm73_vm0, %v4470_v0 }
  0x25   :  { %227 = vst.msk [vmem:[#allocation2 + $0x248] sm:$0xff] %vm73_vm0, %v4470_v0  ;;  %228 = vst.msk [vmem:[#allocation2 + $0x250] sm:$0xff] %vm73_vm0, %v4470_v0 }
  0x26   :  { %229 = vst.msk [vmem:[#allocation2 + $0x268] sm:$0xff] %vm73_vm0, %v4470_v0  ;;  %230 = vst.msk [vmem:[#allocation2 + $0x270] sm:$0xff] %vm73_vm0, %v4470_v0 }
  0x27   :  { %231 = vst.msk [vmem:[#allocation2 + $0x4c8] sm:$0xff] %vm73_vm0, %v4470_v0  ;;  %232 = vst.msk [vmem:[#allocation2 + $0x4d0] sm:$0xff] %vm73_vm0, %v4470_v0 }
  0x28   :  { %233 = vst.msk [vmem:[#allocation2 + $0x4e8] sm:$0xff] %vm73_vm0, %v4470_v0  ;;  %234 = vst.msk [vmem:[#allocation2 + $0x4f0] sm:$0xff] %vm73_vm0, %v4470_v0  ;;  %v71_v0 = vld [vmem:[%s8708_s0 + $0x1f8] sm:$0xff] }
  0x29   :  { %236 = vst.msk [vmem:[#allocation2 + $0x48] sm:$0xff] %vm73_vm0, %v8_v1  ;;  %237 = vst.msk [vmem:[#allocation2 + $0x50] sm:$0xff] %vm73_vm0, %v9_v2 }
  0x2a   :  { %238 = vst.msk [vmem:[#allocation2 + $0x68] sm:$0xff] %vm73_vm0, %v10_v3  ;;  %239 = vst.msk [vmem:[#allocation2 + $0x70] sm:$0xff] %vm73_vm0, %v11_v4 }
  0x2b   :  { %240 = vst.msk [vmem:[#allocation2 + $0x88] sm:$0xff] %vm73_vm0, %v12_v5  ;;  %241 = vst.msk [vmem:[#allocation2 + $0x90] sm:$0xff] %vm73_vm0, %v13_v6 }
  0x2c   :  { %242 = vst.msk [vmem:[#allocation2 + $0xa8] sm:$0xff] %vm73_vm0, %v14_v7  ;;  %243 = vst.msk [vmem:[#allocation2 + $0xb0] sm:$0xff] %vm73_vm0, %v15_v8 }
  0x2d   :  { %244 = vst.msk [vmem:[#allocation2 + $0xc8] sm:$0xff] %vm73_vm0, %v16_v9  ;;  %245 = vst.msk [vmem:[#allocation2 + $0xd0] sm:$0xff] %vm73_vm0, %v17_v10 }
  0x2e   :  { %246 = vst.msk [vmem:[#allocation2 + $0xe8] sm:$0xff] %vm73_vm0, %v18_v11  ;;  %247 = vst.msk [vmem:[#allocation2 + $0xf0] sm:$0xff] %vm73_vm0, %v19_v12 }
  0x2f   :  { %248 = vst.msk [vmem:[#allocation2 + $0x108] sm:$0xff] %vm73_vm0, %v20_v13  ;;  %249 = vst.msk [vmem:[#allocation2 + $0x110] sm:$0xff] %vm73_vm0, %v21_v14 }
  0x30   :  { %250 = vst.msk [vmem:[#allocation2 + $0x128] sm:$0xff] %vm73_vm0, %v22_v15  ;;  %251 = vst.msk [vmem:[#allocation2 + $0x130] sm:$0xff] %vm73_vm0, %v23_v16 }
  0x31   :  { %252 = vst.msk [vmem:[#allocation2 + $0x148] sm:$0xff] %vm73_vm0, %v24_v17  ;;  %253 = vst.msk [vmem:[#allocation2 + $0x150] sm:$0xff] %vm73_vm0, %v25_v18 }
  0x32   :  { %254 = vst.msk [vmem:[#allocation2 + $0x168] sm:$0xff] %vm73_vm0, %v26_v19  ;;  %255 = vst.msk [vmem:[#allocation2 + $0x170] sm:$0xff] %vm73_vm0, %v27_v20 }
  0x33   :  { %256 = vst.msk [vmem:[#allocation2 + $0x188] sm:$0xff] %vm73_vm0, %v28_v21  ;;  %257 = vst.msk [vmem:[#allocation2 + $0x190] sm:$0xff] %vm73_vm0, %v29_v22 }
  0x34   :  { %258 = vst.msk [vmem:[#allocation2 + $0x1a8] sm:$0xff] %vm73_vm0, %v30_v23  ;;  %259 = vst.msk [vmem:[#allocation2 + $0x1b0] sm:$0xff] %vm73_vm0, %v31_v24 }
  0x35   :  { %260 = vst.msk [vmem:[#allocation2 + $0x1c8] sm:$0xff] %vm73_vm0, %v32_v25  ;;  %261 = vst.msk [vmem:[#allocation2 + $0x1d0] sm:$0xff] %vm73_vm0, %v33_v26 }
  0x36   :  { %262 = vst.msk [vmem:[#allocation2 + $0x1e8] sm:$0xff] %vm73_vm0, %v34_v27  ;;  %4277 = vst.msk [vmem:[%s8709_s1 + $0x300] sm:$0xff] %vm73_vm0, %v8_v1  ;;  %v300_v1 = vld [vmem:[#allocation2 + $0x46] sm:$0xff] }
  0x37   :  { %4278 = vst.msk [vmem:[%s8709_s1 + $0x308] sm:$0xff] %vm73_vm0, %v9_v2  ;;  %4279 = vst.msk [vmem:[%s8709_s1 + $0x310] sm:$0xff] %vm73_vm0, %v10_v3  ;;  %v301_v2 = vld [vmem:[#allocation2 + $0x4e] sm:$0xff] }
  0x38   :  { %4280 = vst.msk [vmem:[%s8709_s1 + $0x318] sm:$0xff] %vm73_vm0, %v11_v4  ;;  %4281 = vst.msk [vmem:[%s8709_s1 + $0x320] sm:$0xff] %vm73_vm0, %v12_v5  ;;  %v364_v3 = vld [vmem:[#allocation2 + $0x47] sm:$0xff]  ;;  %v365_v4 = vld [vmem:[#allocation2 + $0x4f] sm:$0xff] }
  0x39   :  { %4282 = vst.msk [vmem:[%s8709_s1 + $0x328] sm:$0xff] %vm73_vm0, %v13_v6  ;;  %4283 = vst.msk [vmem:[%s8709_s1 + $0x330] sm:$0xff] %vm73_vm0, %v14_v7  ;;  %v428_v5 = vmax.f32 %v300_v1, %v364_v3  ;;  %v429_v6 = vmax.f32 %v301_v2, %v365_v4  ;;  %v492_v7 = vld [vmem:[#allocation2 + $0x48] sm:$0xff] }
  0x3a   :  { %4284 = vst.msk [vmem:[%s8709_s1 + $0x338] sm:$0xff] %vm73_vm0, %v15_v8  ;;  %4285 = vst.msk [vmem:[%s8709_s1 + $0x340] sm:$0xff] %vm73_vm0, %v16_v9  ;;  %v493_v8 = vld [vmem:[#allocation2 + $0x50] sm:$0xff]  ;;  %v302_v9 = vld [vmem:[#allocation2 + $0x66] sm:$0xff] }
  0x3b   :  { %4286 = vst.msk [vmem:[%s8709_s1 + $0x348] sm:$0xff] %vm73_vm0, %v17_v10  ;;  %4287 = vst.msk [vmem:[%s8709_s1 + $0x350] sm:$0xff] %vm73_vm0, %v18_v11  ;;  %v556_v10 = vmax.f32 %v428_v5, %v492_v7  ;;  %v557_v11 = vmax.f32 %v429_v6, %v493_v8  ;;  %v309_v1 = vld [vmem:[#allocation2 + $0xce] sm:$0xff] }
  0x3c   :  { %4288 = vst.msk [vmem:[%s8709_s1 + $0x358] sm:$0xff] %vm73_vm0, %v19_v12  ;;  %4289 = vst.msk [vmem:[%s8709_s1 + $0x360] sm:$0xff] %vm73_vm0, %v20_v13  ;;  %v303_v12 = vld [vmem:[#allocation2 + $0x6e] sm:$0xff] }
  0x3d   :  { %4290 = vst.msk [vmem:[%s8709_s1 + $0x368] sm:$0xff] %vm73_vm0, %v21_v14  ;;  %4291 = vst.msk [vmem:[%s8709_s1 + $0x370] sm:$0xff] %vm73_vm0, %v22_v15  ;;  %v366_v13 = vld [vmem:[#allocation2 + $0x67] sm:$0xff]  ;;  %v367_v14 = vld [vmem:[#allocation2 + $0x6f] sm:$0xff] }
  0x3e   :  { %4292 = vst.msk [vmem:[%s8709_s1 + $0x378] sm:$0xff] %vm73_vm0, %v23_v16  ;;  %4293 = vst.msk [vmem:[%s8709_s1 + $0x380] sm:$0xff] %vm73_vm0, %v24_v17  ;;  %v620_v15 = vld [vmem:[#allocation2 + $0x49] sm:$0xff]  ;;  %v621_v17 = vld [vmem:[#allocation2 + $0x51] sm:$0xff] }
  0x3f   :  { %4294 = vst.msk [vmem:[%s8709_s1 + $0x388] sm:$0xff] %vm73_vm0, %v25_v18  ;;  %4295 = vst.msk [vmem:[%s8709_s1 + $0x390] sm:$0xff] %vm73_vm0, %v26_v19  ;;  %v748_v16 = vld [vmem:[#allocation2 + $0x4a] sm:$0xff]  ;;  %v430_v18 = vmax.f32 %v302_v9, %v366_v13  ;;  %v431_v19 = vmax.f32 %v303_v12, %v367_v14  ;;  %v755_v12 = vld [vmem:[#allocation2 + $0xb2] sm:$0xff] }
  0x40   :  { %4296 = vst.msk [vmem:[%s8709_s1 + $0x398] sm:$0xff] %vm73_vm0, %v27_v20  ;;  %4297 = vst.msk [vmem:[%s8709_s1 + $0x3a0] sm:$0xff] %vm73_vm0, %v28_v21  ;;  %v684_v20 = vmax.f32 %v556_v10, %v620_v15  ;;  %v685_v21 = vmax.f32 %v557_v11, %v621_v17  ;;  %v372_v2 = vld [vmem:[#allocation2 + $0xc7] sm:$0xff]  ;;  %v373_v3 = vld [vmem:[#allocation2 + $0xcf] sm:$0xff] }
  0x41   :  { %4298 = vst.msk [vmem:[%s8709_s1 + $0x3a8] sm:$0xff] %vm73_vm0, %v29_v22  ;;  %4299 = vst.msk [vmem:[%s8709_s1 + $0x3b0] sm:$0xff] %vm73_vm0, %v30_v23  ;;  %v749_v22 = vld [vmem:[#allocation2 + $0x52] sm:$0xff]  ;;  %v494_v23 = vld [vmem:[#allocation2 + $0x68] sm:$0xff]  ;;  %v437_v9 = vmax.f32 %v309_v1, %v373_v3 }
  0x42   :  { %4300 = vst.msk [vmem:[%s8709_s1 + $0x3b8] sm:$0xff] %vm73_vm0, %v31_v24  ;;  %4301 = vst.msk [vmem:[%s8709_s1 + $0x3c0] sm:$0xff] %vm73_vm0, %v32_v25  ;;  %v495_v24 = vld [vmem:[#allocation2 + $0x70] sm:$0xff]  ;;  %v558_v25 = vmax.f32 %v430_v18, %v494_v23  ;;  %v500_v13 = vld [vmem:[#allocation2 + $0xc8] sm:$0xff] }
  0x43   :  { %4302 = vst.msk [vmem:[%s8709_s1 + $0x3c8] sm:$0xff] %vm73_vm0, %v33_v26  ;;  %4303 = vst.msk [vmem:[%s8709_s1 + $0x3d0] sm:$0xff] %vm73_vm0, %v34_v27  ;;  %v559_v26 = vmax.f32 %v431_v19, %v495_v24  ;;  %v304_v27 = vld [vmem:[#allocation2 + $0x86] sm:$0xff]  ;;  %v627_v7 = vld [vmem:[#allocation2 + $0xb1] sm:$0xff] }
  0x44   :  { %263 = vst.msk [vmem:[#allocation2 + $0x1f0] sm:$0xff] %vm73_vm0, %v35_v28  ;;  %264 = vst.msk [vmem:[#allocation2 + $0x208] sm:$0xff] %vm73_vm0, %v36_v29  ;;  %v626_v5 = vld [vmem:[#allocation2 + $0xa9] sm:$0xff]  ;;  %v629_v18 = vld [vmem:[#allocation2 + $0xd1] sm:$0xff] }
  0x45   :  { %265 = vst.msk [vmem:[#allocation2 + $0x210] sm:$0xff] %vm73_vm0, %v37_v30  ;;  %4304 = vst.msk [vmem:[%s8709_s1 + $0x3d8] sm:$0xff] %vm73_vm0, %v35_v28  ;;  %v305_v28 = vld [vmem:[#allocation2 + $0x8e] sm:$0xff]  ;;  %v310_v19 = vld [vmem:[#allocation2 + $0xe6] sm:$0xff] }
  0x46   :  { %4305 = vst.msk [vmem:[%s8709_s1 + $0x3e0] sm:$0xff] %vm73_vm0, %v36_v29  ;;  %4306 = vst.msk [vmem:[%s8709_s1 + $0x3e8] sm:$0xff] %vm73_vm0, %v37_v30  ;;  %v368_v29 = vld [vmem:[#allocation2 + $0x87] sm:$0xff]  ;;  %v812_v30 = vmax.f32 %v684_v20, %v748_v16  ;;  %v501_v14 = vld [vmem:[#allocation2 + $0xd0] sm:$0xff] }
  0x47   :  { %266 = vst.msk [vmem:[#allocation2 + $0x228] sm:$0xff] %vm73_vm0, %v38_v31  ;;  %267 = vst.msk [vmem:[#allocation2 + $0x230] sm:$0xff] %vm73_vm0, %v39_v32  ;;  %v754_v6 = vld [vmem:[#allocation2 + $0xaa] sm:$0xff]  ;;  %v565_v17 = vmax.f32 %v437_v9, %v501_v14 }
  0x48   :  { %268 = vst.msk [vmem:[#allocation2 + $0x2c8] sm:$0xff] %vm73_vm0, %v40_v33  ;;  %4307 = vst.msk [vmem:[%s8709_s1 + $0x3f0] sm:$0xff] %vm73_vm0, %v38_v31  ;;  %v813_v31 = vmax.f32 %v685_v21, %v749_v22  ;;  %v628_v16 = vld [vmem:[#allocation2 + $0xc9] sm:$0xff] }
  0x49   :  { %4308 = vst.msk [vmem:[%s8709_s1 + $0x3f8] sm:$0xff] %vm73_vm0, %v39_v32  ;;  %4309 = vst.msk [vmem:[%s8709_s1 + $0x700] sm:$0xff] %vm73_vm0, %v40_v33  ;;  %v622_v32 = vld [vmem:[#allocation2 + $0x69] sm:$0xff]  ;;  %v623_v33 = vld [vmem:[#allocation2 + $0x71] sm:$0xff] }
  0x4a   :  { %269 = vst.msk [vmem:[#allocation2 + $0x2d0] sm:$0xff] %vm73_vm0, %v41_v34  ;;  %270 = vst.msk [vmem:[#allocation2 + $0x2e8] sm:$0xff] %vm73_vm0, %v42_v35  ;;  %v311_v22 = vld [vmem:[#allocation2 + $0xee] sm:$0xff] }
  0x4b   :  { %271 = vst.msk [vmem:[#allocation2 + $0x2f0] sm:$0xff] %vm73_vm0, %v43_v36  ;;  %4310 = vst.msk [vmem:[%s8709_s1 + $0x708] sm:$0xff] %vm73_vm0, %v41_v34  ;;  %v369_v34 = vld [vmem:[#allocation2 + $0x8f] sm:$0xff]  ;;  %v374_v23 = vld [vmem:[#allocation2 + $0xe7] sm:$0xff] }
  0x4c   :  { %4311 = vst.msk [vmem:[%s8709_s1 + $0x710] sm:$0xff] %vm73_vm0, %v42_v35  ;;  %4312 = vst.msk [vmem:[%s8709_s1 + $0x718] sm:$0xff] %vm73_vm0, %v43_v36  ;;  %v432_v35 = vmax.f32 %v304_v27, %v368_v29  ;;  %v686_v36 = vmax.f32 %v558_v25, %v622_v32  ;;  %v375_v24 = vld [vmem:[#allocation2 + $0xef] sm:$0xff]  ;;  %v693_v27 = vmax.f32 %v565_v17, %v629_v18 }
  0x4d   :  { %272 = vst.msk [vmem:[#allocation2 + $0x308] sm:$0xff] %vm73_vm0, %v44_v37  ;;  %273 = vst.msk [vmem:[#allocation2 + $0x310] sm:$0xff] %vm73_vm0, %v45_v38  ;;  %v438_v29 = vmax.f32 %v310_v19, %v374_v23  ;;  %v630_v32 = vld [vmem:[#allocation2 + $0xe9] sm:$0xff] }
  0x4e   :  { %274 = vst.msk [vmem:[#allocation2 + $0x328] sm:$0xff] %vm73_vm0, %v46_v39  ;;  %4313 = vst.msk [vmem:[%s8709_s1 + $0x720] sm:$0xff] %vm73_vm0, %v44_v37  ;;  %v750_v37 = vld [vmem:[#allocation2 + $0x6a] sm:$0xff] }
  0x4f   :  { %4314 = vst.msk [vmem:[%s8709_s1 + $0x728] sm:$0xff] %vm73_vm0, %v45_v38  ;;  %4315 = vst.msk [vmem:[%s8709_s1 + $0x730] sm:$0xff] %vm73_vm0, %v46_v39  ;;  %v687_v38 = vmax.f32 %v559_v26, %v623_v33  ;;  %v751_v39 = vld [vmem:[#allocation2 + $0x72] sm:$0xff]  ;;  %v756_v26 = vld [vmem:[#allocation2 + $0xca] sm:$0xff] }
  0x50   :  { %275 = vst.msk [vmem:[#allocation2 + $0x330] sm:$0xff] %vm73_vm0, %v47_v40  ;;  %276 = vst.msk [vmem:[#allocation2 + $0x348] sm:$0xff] %vm73_vm0, %v48_v41  ;;  %v503_v33 = vld [vmem:[#allocation2 + $0xf0] sm:$0xff]  ;;  %v506_v1 = vld [vmem:[#allocation2 + $0x128] sm:$0xff] }
  0x51   :  { %277 = vst.msk [vmem:[#allocation2 + $0x350] sm:$0xff] %vm73_vm0, %v49_v42  ;;  %4316 = vst.msk [vmem:[%s8709_s1 + $0x738] sm:$0xff] %vm73_vm0, %v47_v40  ;;  %v496_v40 = vld [vmem:[#allocation2 + $0x88] sm:$0xff]  ;;  %v509_v23 = vld [vmem:[#allocation2 + $0x150] sm:$0xff] }
  0x52   :  { %4317 = vst.msk [vmem:[%s8709_s1 + $0x740] sm:$0xff] %vm73_vm0, %v48_v41  ;;  %4318 = vst.msk [vmem:[%s8709_s1 + $0x748] sm:$0xff] %vm73_vm0, %v49_v42  ;;  %v433_v41 = vmax.f32 %v305_v28, %v369_v34  ;;  %v560_v42 = vmax.f32 %v432_v35, %v496_v40  ;;  %v757_v28 = vld [vmem:[#allocation2 + $0xd2] sm:$0xff]  ;;  %v376_v40 = vld [vmem:[#allocation2 + $0x107] sm:$0xff] }
  0x53   :  { %278 = vst.msk [vmem:[#allocation2 + $0x368] sm:$0xff] %vm73_vm0, %v50_v43  ;;  %279 = vst.msk [vmem:[#allocation2 + $0x370] sm:$0xff] %vm73_vm0, %v51_v44  ;;  %v821_v35 = vmax.f32 %v693_v27, %v757_v28  ;;  %v762_v14 = vld [vmem:[#allocation2 + $0x12a] sm:$0xff] }
  0x54   :  { %280 = vst.msk [vmem:[#allocation2 + $0x388] sm:$0xff] %vm73_vm0, %v52_v45  ;;  %4319 = vst.msk [vmem:[%s8709_s1 + $0x750] sm:$0xff] %vm73_vm0, %v50_v43  ;;  %v497_v43 = vld [vmem:[#allocation2 + $0x90] sm:$0xff]  ;;  %v382_v28 = vld [vmem:[#allocation2 + $0x167] sm:$0xff] }
  0x55   :  { %4320 = vst.msk [vmem:[%s8709_s1 + $0x758] sm:$0xff] %vm73_vm0, %v51_v44  ;;  %4321 = vst.msk [vmem:[%s8709_s1 + $0x760] sm:$0xff] %vm73_vm0, %v52_v45  ;;  %v306_v44 = vld [vmem:[#allocation2 + $0xa6] sm:$0xff]  ;;  %v307_v45 = vld [vmem:[#allocation2 + $0xae] sm:$0xff] }
  0x56   :  { %281 = vst.msk [vmem:[#allocation2 + $0x390] sm:$0xff] %vm73_vm0, %v53_v46  ;;  %282 = vst.msk [vmem:[#allocation2 + $0x3a8] sm:$0xff] %vm73_vm0, %v54_v47  ;;  %v319_v27 = vld [vmem:[#allocation2 + $0x16e] sm:$0xff] }
  0x57   :  { %283 = vst.msk [vmem:[#allocation2 + $0x3b0] sm:$0xff] %vm73_vm0, %v55_v48  ;;  %4322 = vst.msk [vmem:[%s8709_s1 + $0x768] sm:$0xff] %vm73_vm0, %v53_v46  ;;  %v814_v46 = vmax.f32 %v686_v36, %v750_v37 }
  0x58   :  { %4323 = vst.msk [vmem:[%s8709_s1 + $0x770] sm:$0xff] %vm73_vm0, %v54_v47  ;;  %4324 = vst.msk [vmem:[%s8709_s1 + $0x778] sm:$0xff] %vm73_vm0, %v55_v48  ;;  %v815_v47 = vmax.f32 %v687_v38, %v751_v39  ;;  %v624_v48 = vld [vmem:[#allocation2 + $0x89] sm:$0xff] }
  0x59   :  { %284 = vst.msk [vmem:[#allocation2 + $0x3c8] sm:$0xff] %vm73_vm0, %v56_v49  ;;  %285 = vst.msk [vmem:[#allocation2 + $0x3d0] sm:$0xff] %vm73_vm0, %v57_v50  ;;  %v312_v38 = vld [vmem:[#allocation2 + $0x106] sm:$0xff]  ;;  %v313_v39 = vld [vmem:[#allocation2 + $0x10e] sm:$0xff] }
  0x5a   :  { %286 = vst.msk [vmem:[#allocation2 + $0x3e8] sm:$0xff] %vm73_vm0, %v58_v51  ;;  %4325 = vst.msk [vmem:[%s8709_s1 + $0x780] sm:$0xff] %vm73_vm0, %v56_v49  ;;  %v561_v49 = vmax.f32 %v433_v41, %v497_v43  ;;  %v758_v41 = vld [vmem:[#allocation2 + $0xea] sm:$0xff] }
  0x5b   :  { %4326 = vst.msk [vmem:[%s8709_s1 + $0x788] sm:$0xff] %vm73_vm0, %v57_v50  ;;  %4327 = vst.msk [vmem:[%s8709_s1 + $0x790] sm:$0xff] %vm73_vm0, %v58_v51  ;;  %v370_v50 = vld [vmem:[#allocation2 + $0xa7] sm:$0xff]  ;;  %v371_v51 = vld [vmem:[#allocation2 + $0xaf] sm:$0xff] }
  0x5c   :  { %287 = vst.msk [vmem:[#allocation2 + $0x3f0] sm:$0xff] %vm73_vm0, %v59_v52  ;;  %288 = vst.msk [vmem:[#allocation2 + $0x408] sm:$0xff] %vm73_vm0, %v60_v53  ;;  %v377_v43 = vld [vmem:[#allocation2 + $0x10f] sm:$0xff] }
  0x5d   :  { %289 = vst.msk [vmem:[#allocation2 + $0x410] sm:$0xff] %vm73_vm0, %v61_v54  ;;  %4328 = vst.msk [vmem:[%s8709_s1 + $0x798] sm:$0xff] %vm73_vm0, %v59_v52  ;;  %v688_v52 = vmax.f32 %v560_v42, %v624_v48  ;;  %v631_v42 = vld [vmem:[#allocation2 + $0xf1] sm:$0xff]  ;;  %v504_v48 = vld [vmem:[#allocation2 + $0x108] sm:$0xff] }
  0x5e   :  { %4329 = vst.msk [vmem:[%s8709_s1 + $0x7a0] sm:$0xff] %vm73_vm0, %v60_v53  ;;  %4330 = vst.msk [vmem:[%s8709_s1 + $0x7a8] sm:$0xff] %vm73_vm0, %v61_v54  ;;  %v752_v53 = vld [vmem:[#allocation2 + $0x8a] sm:$0xff] }
  0x5f   :  { %290 = vst.msk [vmem:[#allocation2 + $0x428] sm:$0xff] %vm73_vm0, %v62_v55  ;;  %291 = vst.msk [vmem:[#allocation2 + $0x430] sm:$0xff] %vm73_vm0, %v63_v56  ;;  %v625_v54 = vld [vmem:[#allocation2 + $0x91] sm:$0xff] }
  0x60   :  { %292 = vst.msk [vmem:[#allocation2 + $0x448] sm:$0xff] %vm73_vm0, %v64_v57  ;;  %4331 = vst.msk [vmem:[%s8709_s1 + $0x7b0] sm:$0xff] %vm73_vm0, %v62_v55  ;;  %v753_v55 = vld [vmem:[#allocation2 + $0x92] sm:$0xff] }
  0x61   :  { %4332 = vst.msk [vmem:[%s8709_s1 + $0x7b8] sm:$0xff] %vm73_vm0, %v63_v56  ;;  %4333 = vst.msk [vmem:[%s8709_s1 + $0x7c0] sm:$0xff] %vm73_vm0, %v64_v57  ;;  %v434_v56 = vmax.f32 %v306_v44, %v370_v50  ;;  %v435_v57 = vmax.f32 %v307_v45, %v371_v51  ;;  %v440_v44 = vmax.f32 %v312_v38, %v376_v40  ;;  %v510_v38 = vld [vmem:[#allocation2 + $0x168] sm:$0xff] }
  0x62   :  { %293 = vst.msk [vmem:[#allocation2 + $0x450] sm:$0xff] %vm73_vm0, %v65_v58  ;;  %294 = vst.msk [vmem:[#allocation2 + $0x468] sm:$0xff] %vm73_vm0, %v66_v59  ;;  %v441_v50 = vmax.f32 %v313_v39, %v377_v43  ;;  %v638_v39 = vld [vmem:[#allocation2 + $0x169] sm:$0xff] }
  0x63   :  { %295 = vst.msk [vmem:[#allocation2 + $0x470] sm:$0xff] %vm73_vm0, %v67_v60  ;;  %4334 = vst.msk [vmem:[%s8709_s1 + $0x7c8] sm:$0xff] %vm73_vm0, %v65_v58  ;;  %v689_v58 = vmax.f32 %v561_v49, %v625_v54  ;;  %v632_v49 = vld [vmem:[#allocation2 + $0x109] sm:$0xff]  ;;  %v568_v51 = vmax.f32 %v440_v44, %v504_v48 }
  0x64   :  { %4335 = vst.msk [vmem:[%s8709_s1 + $0x7d0] sm:$0xff] %vm73_vm0, %v66_v59  ;;  %4336 = vst.msk [vmem:[%s8709_s1 + $0x7d8] sm:$0xff] %vm73_vm0, %v67_v60  ;;  %v498_v59 = vld [vmem:[#allocation2 + $0xa8] sm:$0xff]  ;;  %v499_v60 = vld [vmem:[#allocation2 + $0xb0] sm:$0xff] }
  0x65   :  { %296 = vst.msk [vmem:[#allocation2 + $0x488] sm:$0xff] %vm73_vm0, %v68_v61  ;;  %297 = vst.msk [vmem:[#allocation2 + $0x490] sm:$0xff] %vm73_vm0, %v69_v62  ;;  %v817_v4 = vmax.f32 %v689_v58, %v753_v55  ;;  %v315_v54 = vld [vmem:[#allocation2 + $0x12e] sm:$0xff]  ;;  %v320_v43 = vld [vmem:[#allocation2 + $0x186] sm:$0xff] }
  0x66   :  { %298 = vst.msk [vmem:[#allocation2 + $0x4a8] sm:$0xff] %vm73_vm0, %v70_v63  ;;  %4337 = vst.msk [vmem:[%s8709_s1 + $0x7e0] sm:$0xff] %vm73_vm0, %v68_v61  ;;  %v308_v61 = vld [vmem:[#allocation2 + $0xc6] sm:$0xff]  ;;  %v321_v44 = vld [vmem:[#allocation2 + $0x18e] sm:$0xff] }
  0x67   :  { %4338 = vst.msk [vmem:[%s8709_s1 + $0x7e8] sm:$0xff] %vm73_vm0, %v69_v62  ;;  %4339 = vst.msk [vmem:[%s8709_s1 + $0x7f0] sm:$0xff] %vm73_vm0, %v70_v63  ;;  %v816_v62 = vmax.f32 %v688_v52, %v752_v53  ;;  %v562_v63 = vmax.f32 %v434_v56, %v498_v59  ;;  %v436_v8 = vmax.f32 %v308_v61, %v372_v2  ;;  %v505_v52 = vld [vmem:[#allocation2 + $0x110] sm:$0xff]  ;;  %v314_v53 = vld [vmem:[#allocation2 + $0x126] sm:$0xff] }
  0x68   :  { %299 = vst.msk [vmem:[#allocation2 + $0x4b0] sm:$0xff] %vm73_vm0, %v71_v0  ;;  %4340 = vst.msk [vmem:[%s8709_s1 + $0x7f8] sm:$0xff] %vm73_vm0, %v71_v0  ;;  %v563_v0 = vmax.f32 %v435_v57, %v499_v60  ;;  %v760_v57 = vld [vmem:[#allocation2 + $0x10a] sm:$0xff]  ;;  %v569_v58 = vmax.f32 %v441_v50, %v505_v52  ;;  %v696_v61 = vmax.f32 %v568_v51, %v632_v49 }
  0x69   :  { %876 = vst.msk [vmem:[#allocation2 + $0x48] sm:$0xff] %vm73_vm0, %v812_v30  ;;  %877 = vst.msk [vmem:[#allocation2 + $0x50] sm:$0xff] %vm73_vm0, %v813_v31  ;;  %v690_v10 = vmax.f32 %v562_v63, %v626_v5  ;;  %v564_v15 = vmax.f32 %v436_v8, %v500_v13  ;;  %v439_v30 = vmax.f32 %v311_v22, %v375_v24  ;;  %v502_v31 = vld [vmem:[#allocation2 + $0xe8] sm:$0xff]  ;;  %v761_v63 = vld [vmem:[#allocation2 + $0x112] sm:$0xff] }
  0x6a   :  { %878 = vst.msk [vmem:[#allocation2 + $0x68] sm:$0xff] %vm73_vm0, %v814_v46  ;;  %879 = vst.msk [vmem:[#allocation2 + $0x70] sm:$0xff] %vm73_vm0, %v815_v47  ;;  %v691_v11 = vmax.f32 %v563_v0, %v627_v7  ;;  %v566_v36 = vmax.f32 %v438_v29, %v502_v31  ;;  %v759_v47 = vld [vmem:[#allocation2 + $0xf2] sm:$0xff]  ;;  %v378_v59 = vld [vmem:[#allocation2 + $0x127] sm:$0xff]  ;;  %v824_v7 = vmax.f32 %v696_v61, %v760_v57 }
  0x6b   :  { %880 = vst.msk [vmem:[#allocation2 + $0x88] sm:$0xff] %vm73_vm0, %v816_v62  ;;  %881 = vst.msk [vmem:[#allocation2 + $0x90] sm:$0xff] %vm73_vm0, %v817_v4  ;;  %v818_v20 = vmax.f32 %v690_v10, %v754_v6  ;;  %v692_v25 = vmax.f32 %v564_v15, %v628_v16  ;;  %v567_v37 = vmax.f32 %v439_v30, %v503_v33  ;;  %v379_v60 = vld [vmem:[#allocation2 + $0x12f] sm:$0xff]  ;;  %v316_v6 = vld [vmem:[#allocation2 + $0x146] sm:$0xff] }
  0x6c   :  { %v819_v21 = vmax.f32 %v691_v11, %v755_v12  ;;  %885 = vst.msk [vmem:[#allocation2 + $0xd0] sm:$0xff] %vm73_vm0, %v821_v35  ;;  %v694_v45 = vmax.f32 %v566_v36, %v630_v32  ;;  %v633_v62 = vld [vmem:[#allocation2 + $0x111] sm:$0xff]  ;;  %v442_v0 = vmax.f32 %v314_v53, %v378_v59  ;;  %v443_v2 = vmax.f32 %v315_v54, %v379_v60  ;;  %v634_v4 = vld [vmem:[#allocation2 + $0x129] sm:$0xff] }
  0x6d   :  { %882 = vst.msk [vmem:[#allocation2 + $0xa8] sm:$0xff] %vm73_vm0, %v818_v20  ;;  %v820_v34 = vmax.f32 %v692_v25, %v756_v26  ;;  %v695_v46 = vmax.f32 %v567_v37, %v631_v42  ;;  %v697_v3 = vmax.f32 %v569_v58, %v633_v62  ;;  %v507_v5 = vld [vmem:[#allocation2 + $0x130] sm:$0xff]  ;;  %v380_v11 = vld [vmem:[#allocation2 + $0x147] sm:$0xff]  ;;  %888 = vst.msk [vmem:[#allocation2 + $0x108] sm:$0xff] %vm73_vm0, %v824_v7 }
  0x6e   :  { %883 = vst.msk [vmem:[#allocation2 + $0xb0] sm:$0xff] %vm73_vm0, %v819_v21  ;;  %v822_v55 = vmax.f32 %v694_v45, %v758_v41  ;;  %v570_v8 = vmax.f32 %v442_v0, %v506_v1  ;;  %v571_v9 = vmax.f32 %v443_v2, %v507_v5  ;;  %v317_v10 = vld [vmem:[#allocation2 + $0x14e] sm:$0xff]  ;;  %v444_v17 = vmax.f32 %v316_v6, %v380_v11  ;;  %v318_v26 = vld [vmem:[#allocation2 + $0x166] sm:$0xff] }
  0x6f   :  { %884 = vst.msk [vmem:[#allocation2 + $0xc8] sm:$0xff] %vm73_vm0, %v820_v34  ;;  %v823_v56 = vmax.f32 %v695_v46, %v759_v47  ;;  %v381_v12 = vld [vmem:[#allocation2 + $0x14f] sm:$0xff]  ;;  %v825_v13 = vmax.f32 %v697_v3, %v761_v63  ;;  %v446_v34 = vmax.f32 %v318_v26, %v382_v28  ;;  %v384_v49 = vld [vmem:[#allocation2 + $0x187] sm:$0xff] }
  0x70   :  { %886 = vst.msk [vmem:[#allocation2 + $0xe8] sm:$0xff] %vm73_vm0, %v822_v55  ;;  %v635_v15 = vld [vmem:[#allocation2 + $0x131] sm:$0xff]  ;;  %v445_v18 = vmax.f32 %v317_v10, %v381_v12  ;;  %v698_v19 = vmax.f32 %v570_v8, %v634_v4  ;;  %v508_v21 = vld [vmem:[#allocation2 + $0x148] sm:$0xff]  ;;  %v448_v54 = vmax.f32 %v320_v43, %v384_v49 }
  0x71   :  { %887 = vst.msk [vmem:[#allocation2 + $0xf0] sm:$0xff] %vm73_vm0, %v823_v56  ;;  %v763_v16 = vld [vmem:[#allocation2 + $0x132] sm:$0xff]  ;;  %v699_v20 = vmax.f32 %v571_v9, %v635_v15  ;;  %v636_v22 = vld [vmem:[#allocation2 + $0x149] sm:$0xff]  ;;  %889 = vst.msk [vmem:[#allocation2 + $0x110] sm:$0xff] %vm73_vm0, %v825_v13  ;;  %v572_v24 = vmax.f32 %v444_v17, %v508_v21  ;;  %v574_v41 = vmax.f32 %v446_v34, %v510_v38 }
  0x72   :  { %v573_v25 = vmax.f32 %v445_v18, %v509_v23  ;;  %v826_v29 = vmax.f32 %v698_v19, %v762_v14  ;;  %v764_v31 = vld [vmem:[#allocation2 + $0x14a] sm:$0xff]  ;;  %v765_v37 = vld [vmem:[#allocation2 + $0x152] sm:$0xff] }
  0x73   :  { %v827_v30 = vmax.f32 %v699_v20, %v763_v16  ;;  %v637_v32 = vld [vmem:[#allocation2 + $0x151] sm:$0xff]  ;;  %v700_v35 = vmax.f32 %v572_v24, %v636_v22  ;;  %v702_v51 = vmax.f32 %v574_v41, %v638_v39  ;;  %v512_v55 = vld [vmem:[#allocation2 + $0x188] sm:$0xff] }
  0x74   :  { %v383_v33 = vld [vmem:[#allocation2 + $0x16f] sm:$0xff]  ;;  %v701_v36 = vmax.f32 %v573_v25, %v637_v32  ;;  %890 = vst.msk [vmem:[#allocation2 + $0x128] sm:$0xff] %vm73_vm0, %v826_v29  ;;  %v322_v60 = vld [vmem:[#allocation2 + $0x1a6] sm:$0xff]  ;;  %v576_v62 = vmax.f32 %v448_v54, %v512_v55 }
  0x75   :  { %v447_v40 = vmax.f32 %v319_v27, %v383_v33  ;;  %891 = vst.msk [vmem:[#allocation2 + $0x130] sm:$0xff] %vm73_vm0, %v827_v30  ;;  %v511_v42 = vld [vmem:[#allocation2 + $0x170] sm:$0xff]  ;;  %v828_v45 = vmax.f32 %v700_v35, %v764_v31  ;;  %v386_v1 = vld [vmem:[#allocation2 + $0x1a7] sm:$0xff] }
  0x76   :  { %v829_v46 = vmax.f32 %v701_v36, %v765_v37  ;;  %v766_v47 = vld [vmem:[#allocation2 + $0x16a] sm:$0xff]  ;;  %v767_v53 = vld [vmem:[#allocation2 + $0x172] sm:$0xff]  ;;  %v450_v7 = vmax.f32 %v322_v60, %v386_v1 }
  0x77   :  { %v575_v48 = vmax.f32 %v447_v40, %v511_v42  ;;  %v385_v50 = vld [vmem:[#allocation2 + $0x18f] sm:$0xff]  ;;  %892 = vst.msk [vmem:[#allocation2 + $0x148] sm:$0xff] %vm73_vm0, %v828_v45  ;;  %v830_v61 = vmax.f32 %v702_v51, %v766_v47  ;;  %v324_v16 = vld [vmem:[#allocation2 + $0x1c6] sm:$0xff] }
  0x78   :  { %v639_v52 = vld [vmem:[#allocation2 + $0x171] sm:$0xff]  ;;  %v449_v56 = vmax.f32 %v321_v44, %v385_v50  ;;  %893 = vst.msk [vmem:[#allocation2 + $0x150] sm:$0xff] %vm73_vm0, %v829_v46  ;;  %v640_v58 = vld [vmem:[#allocation2 + $0x189] sm:$0xff] }
  0x79   :  { %v703_v57 = vmax.f32 %v575_v48, %v639_v52  ;;  %v513_v59 = vld [vmem:[#allocation2 + $0x190] sm:$0xff]  ;;  %894 = vst.msk [vmem:[#allocation2 + $0x168] sm:$0xff] %vm73_vm0, %v830_v61  ;;  %v704_v9 = vmax.f32 %v576_v62, %v640_v58  ;;  %v514_v11 = vld [vmem:[#allocation2 + $0x1a8] sm:$0xff] }
  0x7a   :  { %v577_v63 = vmax.f32 %v449_v56, %v513_v59  ;;  %v323_v0 = vld [vmem:[#allocation2 + $0x1ae] sm:$0xff]  ;;  %v578_v14 = vmax.f32 %v450_v7, %v514_v11  ;;  %v326_v33 = vld [vmem:[#allocation2 + $0x1e6] sm:$0xff] }
  0x7b   :  { %v387_v2 = vld [vmem:[#allocation2 + $0x1af] sm:$0xff]  ;;  %v831_v3 = vmax.f32 %v703_v57, %v767_v53  ;;  %v388_v18 = vld [vmem:[#allocation2 + $0x1c7] sm:$0xff] }
  0x7c   :  { %v768_v4 = vld [vmem:[#allocation2 + $0x18a] sm:$0xff]  ;;  %v769_v6 = vld [vmem:[#allocation2 + $0x192] sm:$0xff]  ;;  %v451_v8 = vmax.f32 %v323_v0, %v387_v2  ;;  %v452_v24 = vmax.f32 %v324_v16, %v388_v18 }
  0x7d   :  { %v641_v5 = vld [vmem:[#allocation2 + $0x191] sm:$0xff]  ;;  %v642_v12 = vld [vmem:[#allocation2 + $0x1a9] sm:$0xff]  ;;  %895 = vst.msk [vmem:[#allocation2 + $0x170] sm:$0xff] %vm73_vm0, %v831_v3  ;;  %v832_v19 = vmax.f32 %v704_v9, %v768_v4 }
  0x7e   :  { %v705_v10 = vmax.f32 %v577_v63, %v641_v5  ;;  %v515_v13 = vld [vmem:[#allocation2 + $0x1b0] sm:$0xff]  ;;  %v706_v25 = vmax.f32 %v578_v14, %v642_v12  ;;  %v516_v28 = vld [vmem:[#allocation2 + $0x1c8] sm:$0xff] }
  0x7f   :  { %v579_v15 = vmax.f32 %v451_v8, %v515_v13  ;;  %v325_v17 = vld [vmem:[#allocation2 + $0x1ce] sm:$0xff]  ;;  %896 = vst.msk [vmem:[#allocation2 + $0x188] sm:$0xff] %vm73_vm0, %v832_v19  ;;  %v580_v31 = vmax.f32 %v452_v24, %v516_v28  ;;  %v328_v50 = vld [vmem:[#allocation2 + $0x206] sm:$0xff] }
  0x80   :  { %v833_v20 = vmax.f32 %v705_v10, %v769_v6  ;;  %v770_v21 = vld [vmem:[#allocation2 + $0x1aa] sm:$0xff]  ;;  %v771_v27 = vld [vmem:[#allocation2 + $0x1b2] sm:$0xff] }
  0x81   :  { %v643_v22 = vld [vmem:[#allocation2 + $0x1b1] sm:$0xff]  ;;  %v644_v29 = vld [vmem:[#allocation2 + $0x1c9] sm:$0xff]  ;;  %v834_v35 = vmax.f32 %v706_v25, %v770_v21 }
  0x82   :  { %v389_v23 = vld [vmem:[#allocation2 + $0x1cf] sm:$0xff]  ;;  %v707_v26 = vmax.f32 %v579_v15, %v643_v22  ;;  %897 = vst.msk [vmem:[#allocation2 + $0x190] sm:$0xff] %vm73_vm0, %v833_v20  ;;  %v390_v38 = vld [vmem:[#allocation2 + $0x1e7] sm:$0xff]  ;;  %v708_v41 = vmax.f32 %v580_v31, %v644_v29 }
  0x83   :  { %v453_v30 = vmax.f32 %v325_v17, %v389_v23  ;;  %v517_v32 = vld [vmem:[#allocation2 + $0x1d0] sm:$0xff]  ;;  %v518_v40 = vld [vmem:[#allocation2 + $0x1e8] sm:$0xff]  ;;  %v454_v44 = vmax.f32 %v326_v33, %v390_v38  ;;  %898 = vst.msk [vmem:[#allocation2 + $0x1a8] sm:$0xff] %vm73_vm0, %v834_v35 }
  0x84   :  { %v327_v34 = vld [vmem:[#allocation2 + $0x1ee] sm:$0xff]  ;;  %v835_v36 = vmax.f32 %v707_v26, %v771_v27  ;;  %v330_v7 = vld [vmem:[#allocation2 + $0x226] sm:$0xff] }
  0x85   :  { %v581_v37 = vmax.f32 %v453_v30, %v517_v32  ;;  %v391_v39 = vld [vmem:[#allocation2 + $0x1ef] sm:$0xff]  ;;  %v582_v52 = vmax.f32 %v454_v44, %v518_v40  ;;  %v392_v55 = vld [vmem:[#allocation2 + $0x207] sm:$0xff] }
  0x86   :  { %v772_v42 = vld [vmem:[#allocation2 + $0x1ca] sm:$0xff]  ;;  %v455_v45 = vmax.f32 %v327_v34, %v391_v39  ;;  %899 = vst.msk [vmem:[#allocation2 + $0x1b0] sm:$0xff] %vm73_vm0, %v835_v36  ;;  %v773_v48 = vld [vmem:[#allocation2 + $0x1d2] sm:$0xff]  ;;  %v456_v61 = vmax.f32 %v328_v50, %v392_v55 }
  0x87   :  { %v645_v43 = vld [vmem:[#allocation2 + $0x1d1] sm:$0xff]  ;;  %v646_v49 = vld [vmem:[#allocation2 + $0x1e9] sm:$0xff]  ;;  %v836_v51 = vmax.f32 %v708_v41, %v772_v42 }
  0x88   :  { %v519_v46 = vld [vmem:[#allocation2 + $0x1f0] sm:$0xff]  ;;  %v709_v47 = vmax.f32 %v581_v37, %v645_v43  ;;  %v520_v62 = vld [vmem:[#allocation2 + $0x208] sm:$0xff]  ;;  %v710_v0 = vmax.f32 %v582_v52, %v646_v49 }
  0x89   :  { %v583_v53 = vmax.f32 %v455_v45, %v519_v46  ;;  %v329_v54 = vld [vmem:[#allocation2 + $0x20e] sm:$0xff]  ;;  %900 = vst.msk [vmem:[#allocation2 + $0x1c8] sm:$0xff] %vm73_vm0, %v836_v51  ;;  %v584_v5 = vmax.f32 %v456_v61, %v520_v62  ;;  %v332_v24 = vld [vmem:[#allocation2 + $0x2c6] sm:$0xff] }
  0x8a   :  { %v393_v56 = vld [vmem:[#allocation2 + $0x20f] sm:$0xff]  ;;  %v837_v57 = vmax.f32 %v709_v47, %v773_v48  ;;  %v394_v9 = vld [vmem:[#allocation2 + $0x227] sm:$0xff] }
  0x8b   :  { %v774_v58 = vld [vmem:[#allocation2 + $0x1ea] sm:$0xff]  ;;  %v775_v60 = vld [vmem:[#allocation2 + $0x1f2] sm:$0xff]  ;;  %v457_v63 = vmax.f32 %v329_v54, %v393_v56  ;;  %v458_v14 = vmax.f32 %v330_v7, %v394_v9 }
  0x8c   :  { %v647_v59 = vld [vmem:[#allocation2 + $0x1f1] sm:$0xff]  ;;  %v648_v2 = vld [vmem:[#allocation2 + $0x209] sm:$0xff]  ;;  %901 = vst.msk [vmem:[#allocation2 + $0x1d0] sm:$0xff] %vm73_vm0, %v837_v57  ;;  %v838_v10 = vmax.f32 %v710_v0, %v774_v58 }
  0x8d   :  { %v711_v1 = vmax.f32 %v583_v53, %v647_v59  ;;  %v521_v3 = vld [vmem:[#allocation2 + $0x210] sm:$0xff]  ;;  %v522_v15 = vld [vmem:[#allocation2 + $0x228] sm:$0xff]  ;;  %v712_v16 = vmax.f32 %v584_v5, %v648_v2 }
  0x8e   :  { %v649_v4 = vld [vmem:[#allocation2 + $0x211] sm:$0xff]  ;;  %v585_v6 = vmax.f32 %v457_v63, %v521_v3  ;;  %v650_v19 = vld [vmem:[#allocation2 + $0x229] sm:$0xff]  ;;  %902 = vst.msk [vmem:[#allocation2 + $0x1e8] sm:$0xff] %vm73_vm0, %v838_v10  ;;  %v586_v22 = vmax.f32 %v458_v14, %v522_v15 }
  0x8f   :  { %v331_v8 = vld [vmem:[#allocation2 + $0x22e] sm:$0xff]  ;;  %v839_v11 = vmax.f32 %v711_v1, %v775_v60  ;;  %v334_v39 = vld [vmem:[#allocation2 + $0x2e6] sm:$0xff] }
  0x90   :  { %v776_v12 = vld [vmem:[#allocation2 + $0x20a] sm:$0xff]  ;;  %v713_v17 = vmax.f32 %v585_v6, %v649_v4  ;;  %v777_v18 = vld [vmem:[#allocation2 + $0x212] sm:$0xff]  ;;  %v714_v32 = vmax.f32 %v586_v22, %v650_v19 }
  0x91   :  { %v395_v13 = vld [vmem:[#allocation2 + $0x22f] sm:$0xff]  ;;  %903 = vst.msk [vmem:[#allocation2 + $0x1f0] sm:$0xff] %vm73_vm0, %v839_v11  ;;  %v840_v26 = vmax.f32 %v712_v16, %v776_v12  ;;  %v396_v30 = vld [vmem:[#allocation2 + $0x2c7] sm:$0xff] }
  0x92   :  { %v459_v20 = vmax.f32 %v331_v8, %v395_v13  ;;  %v523_v21 = vld [vmem:[#allocation2 + $0x230] sm:$0xff]  ;;  %v841_v27 = vmax.f32 %v713_v17, %v777_v18  ;;  %v460_v34 = vmax.f32 %v332_v24, %v396_v30  ;;  %v524_v37 = vld [vmem:[#allocation2 + $0x2c8] sm:$0xff] }
  0x93   :  { %v651_v23 = vld [vmem:[#allocation2 + $0x231] sm:$0xff]  ;;  %904 = vst.msk [vmem:[#allocation2 + $0x208] sm:$0xff] %vm73_vm0, %v840_v26  ;;  %v398_v44 = vld [vmem:[#allocation2 + $0x2e7] sm:$0xff] }
  0x94   :  { %v333_v25 = vld [vmem:[#allocation2 + $0x2ce] sm:$0xff]  ;;  %v587_v29 = vmax.f32 %v459_v20, %v523_v21  ;;  %905 = vst.msk [vmem:[#allocation2 + $0x210] sm:$0xff] %vm73_vm0, %v841_v27  ;;  %v588_v41 = vmax.f32 %v460_v34, %v524_v37  ;;  %v462_v50 = vmax.f32 %v334_v39, %v398_v44  ;;  %v336_v59 = vld [vmem:[#allocation2 + $0x306] sm:$0xff] }
  0x95   :  { %v778_v28 = vld [vmem:[#allocation2 + $0x22a] sm:$0xff]  ;;  %v779_v33 = vld [vmem:[#allocation2 + $0x232] sm:$0xff] }
  0x96   :  { %v397_v31 = vld [vmem:[#allocation2 + $0x2cf] sm:$0xff]  ;;  %v715_v36 = vmax.f32 %v587_v29, %v651_v23  ;;  %v842_v40 = vmax.f32 %v714_v32, %v778_v28  ;;  %v400_v61 = vld [vmem:[#allocation2 + $0x307] sm:$0xff] }
  0x97   :  { %v461_v35 = vmax.f32 %v333_v25, %v397_v31  ;;  %v525_v38 = vld [vmem:[#allocation2 + $0x2d0] sm:$0xff]  ;;  %v526_v55 = vld [vmem:[#allocation2 + $0x2e8] sm:$0xff]  ;;  %v464_v3 = vmax.f32 %v336_v59, %v400_v61 }
  0x98   :  { %v335_v43 = vld [vmem:[#allocation2 + $0x2ee] sm:$0xff]  ;;  %v843_v46 = vmax.f32 %v715_v36, %v779_v33  ;;  %906 = vst.msk [vmem:[#allocation2 + $0x228] sm:$0xff] %vm73_vm0, %v842_v40  ;;  %v590_v57 = vmax.f32 %v462_v50, %v526_v55  ;;  %v338_v12 = vld [vmem:[#allocation2 + $0x326] sm:$0xff] }
  0x99   :  { %v589_v42 = vmax.f32 %v461_v35, %v525_v38  ;;  %v399_v45 = vld [vmem:[#allocation2 + $0x2ef] sm:$0xff]  ;;  %v402_v18 = vld [vmem:[#allocation2 + $0x327] sm:$0xff] }
  0x9a   :  { %v652_v47 = vld [vmem:[#allocation2 + $0x2c9] sm:$0xff]  ;;  %v653_v49 = vld [vmem:[#allocation2 + $0x2d1] sm:$0xff]  ;;  %v463_v51 = vmax.f32 %v335_v43, %v399_v45  ;;  %907 = vst.msk [vmem:[#allocation2 + $0x230] sm:$0xff] %vm73_vm0, %v843_v46  ;;  %v466_v24 = vmax.f32 %v338_v12, %v402_v18 }
  0x9b   :  { %v780_v48 = vld [vmem:[#allocation2 + $0x2ca] sm:$0xff]  ;;  %v716_v52 = vmax.f32 %v588_v41, %v652_v47  ;;  %v717_v53 = vmax.f32 %v589_v42, %v653_v49  ;;  %v781_v54 = vld [vmem:[#allocation2 + $0x2d2] sm:$0xff] }
  0x9c   :  { %v527_v56 = vld [vmem:[#allocation2 + $0x2f0] sm:$0xff]  ;;  %v528_v8 = vld [vmem:[#allocation2 + $0x308] sm:$0xff] }
  0x9d   :  { %v591_v58 = vmax.f32 %v463_v51, %v527_v56  ;;  %v337_v60 = vld [vmem:[#allocation2 + $0x30e] sm:$0xff]  ;;  %v844_v62 = vmax.f32 %v716_v52, %v780_v48  ;;  %v845_v63 = vmax.f32 %v717_v53, %v781_v54  ;;  %v592_v10 = vmax.f32 %v464_v3, %v528_v8  ;;  %v340_v29 = vld [vmem:[#allocation2 + $0x346] sm:$0xff] }
  0x9e   :  { %v654_v0 = vld [vmem:[#allocation2 + $0x2e9] sm:$0xff]  ;;  %v655_v1 = vld [vmem:[#allocation2 + $0x2f1] sm:$0xff] }
  0x9f   :  { %v401_v2 = vld [vmem:[#allocation2 + $0x30f] sm:$0xff]  ;;  %v718_v4 = vmax.f32 %v590_v57, %v654_v0  ;;  %v719_v6 = vmax.f32 %v591_v58, %v655_v1  ;;  %908 = vst.msk [vmem:[#allocation2 + $0x2c8] sm:$0xff] %vm73_vm0, %v844_v62  ;;  %909 = vst.msk [vmem:[#allocation2 + $0x2d0] sm:$0xff] %vm73_vm0, %v845_v63  ;;  %v404_v34 = vld [vmem:[#allocation2 + $0x347] sm:$0xff] }
  0xa0   :  { %v782_v5 = vld [vmem:[#allocation2 + $0x2ea] sm:$0xff]  ;;  %v783_v7 = vld [vmem:[#allocation2 + $0x2f2] sm:$0xff]  ;;  %v465_v9 = vmax.f32 %v337_v60, %v401_v2  ;;  %v468_v40 = vmax.f32 %v340_v29, %v404_v34 }
  0xa1   :  { %v529_v11 = vld [vmem:[#allocation2 + $0x310] sm:$0xff]  ;;  %v846_v14 = vmax.f32 %v718_v4, %v782_v5  ;;  %v847_v15 = vmax.f32 %v719_v6, %v783_v7  ;;  %v530_v27 = vld [vmem:[#allocation2 + $0x328] sm:$0xff] }
  0xa2   :  { %v339_v13 = vld [vmem:[#allocation2 + $0x32e] sm:$0xff]  ;;  %v593_v17 = vmax.f32 %v465_v9, %v529_v11  ;;  %v594_v31 = vmax.f32 %v466_v24, %v530_v27  ;;  %v342_v51 = vld [vmem:[#allocation2 + $0x366] sm:$0xff] }
  0xa3   :  { %v656_v16 = vld [vmem:[#allocation2 + $0x309] sm:$0xff]  ;;  %v657_v22 = vld [vmem:[#allocation2 + $0x311] sm:$0xff]  ;;  %910 = vst.msk [vmem:[#allocation2 + $0x2e8] sm:$0xff] %vm73_vm0, %v846_v14  ;;  %911 = vst.msk [vmem:[#allocation2 + $0x2f0] sm:$0xff] %vm73_vm0, %v847_v15 }
  0xa4   :  { %v403_v19 = vld [vmem:[#allocation2 + $0x32f] sm:$0xff]  ;;  %v720_v20 = vmax.f32 %v592_v10, %v656_v16  ;;  %v721_v26 = vmax.f32 %v593_v17, %v657_v22  ;;  %v406_v55 = vld [vmem:[#allocation2 + $0x367] sm:$0xff] }
  0xa5   :  { %v784_v21 = vld [vmem:[#allocation2 + $0x30a] sm:$0xff]  ;;  %v785_v23 = vld [vmem:[#allocation2 + $0x312] sm:$0xff]  ;;  %v467_v25 = vmax.f32 %v339_v13, %v403_v19  ;;  %v470_v61 = vmax.f32 %v342_v51, %v406_v55 }
  0xa6   :  { %v531_v28 = vld [vmem:[#allocation2 + $0x330] sm:$0xff]  ;;  %v848_v30 = vmax.f32 %v720_v20, %v784_v21  ;;  %v849_v36 = vmax.f32 %v721_v26, %v785_v23  ;;  %v532_v45 = vld [vmem:[#allocation2 + $0x348] sm:$0xff] }
  0xa7   :  { %v595_v32 = vmax.f32 %v467_v25, %v531_v28  ;;  %v341_v33 = vld [vmem:[#allocation2 + $0x34e] sm:$0xff]  ;;  %v596_v47 = vmax.f32 %v468_v40, %v532_v45  ;;  %v344_v6 = vld [vmem:[#allocation2 + $0x386] sm:$0xff] }
  0xa8   :  { %v405_v35 = vld [vmem:[#allocation2 + $0x34f] sm:$0xff]  ;;  %912 = vst.msk [vmem:[#allocation2 + $0x308] sm:$0xff] %vm73_vm0, %v848_v30  ;;  %913 = vst.msk [vmem:[#allocation2 + $0x310] sm:$0xff] %vm73_vm0, %v849_v36  ;;  %v408_v8 = vld [vmem:[#allocation2 + $0x387] sm:$0xff] }
  0xa9   :  { %v658_v37 = vld [vmem:[#allocation2 + $0x329] sm:$0xff]  ;;  %v659_v39 = vld [vmem:[#allocation2 + $0x331] sm:$0xff]  ;;  %v469_v41 = vmax.f32 %v341_v33, %v405_v35  ;;  %v472_v12 = vmax.f32 %v344_v6, %v408_v8 }
  0xaa   :  { %v786_v38 = vld [vmem:[#allocation2 + $0x32a] sm:$0xff]  ;;  %v722_v42 = vmax.f32 %v594_v31, %v658_v37  ;;  %v723_v43 = vmax.f32 %v595_v32, %v659_v39  ;;  %v787_v44 = vld [vmem:[#allocation2 + $0x332] sm:$0xff] }
  0xab   :  { %v533_v46 = vld [vmem:[#allocation2 + $0x350] sm:$0xff]  ;;  %v534_v63 = vld [vmem:[#allocation2 + $0x368] sm:$0xff] }
  0xac   :  { %v660_v48 = vld [vmem:[#allocation2 + $0x349] sm:$0xff]  ;;  %v597_v49 = vmax.f32 %v469_v41, %v533_v46  ;;  %v661_v50 = vld [vmem:[#allocation2 + $0x351] sm:$0xff]  ;;  %v850_v52 = vmax.f32 %v722_v42, %v786_v38  ;;  %v851_v53 = vmax.f32 %v723_v43, %v787_v44  ;;  %v598_v4 = vmax.f32 %v470_v61, %v534_v63 }
  0xad   :  { %v343_v54 = vld [vmem:[#allocation2 + $0x36e] sm:$0xff]  ;;  %v724_v57 = vmax.f32 %v596_v47, %v660_v48  ;;  %v346_v21 = vld [vmem:[#allocation2 + $0x3a6] sm:$0xff] }
  0xae   :  { %v407_v56 = vld [vmem:[#allocation2 + $0x36f] sm:$0xff]  ;;  %v725_v59 = vmax.f32 %v597_v49, %v661_v50  ;;  %914 = vst.msk [vmem:[#allocation2 + $0x328] sm:$0xff] %vm73_vm0, %v850_v52  ;;  %915 = vst.msk [vmem:[#allocation2 + $0x330] sm:$0xff] %vm73_vm0, %v851_v53  ;;  %v410_v27 = vld [vmem:[#allocation2 + $0x3a7] sm:$0xff] }
  0xaf   :  { %v788_v58 = vld [vmem:[#allocation2 + $0x34a] sm:$0xff]  ;;  %v789_v60 = vld [vmem:[#allocation2 + $0x352] sm:$0xff]  ;;  %v471_v62 = vmax.f32 %v343_v54, %v407_v56  ;;  %v474_v32 = vmax.f32 %v346_v21, %v410_v27 }
  0xb0   :  { %v662_v0 = vld [vmem:[#allocation2 + $0x369] sm:$0xff]  ;;  %v852_v2 = vmax.f32 %v724_v57, %v788_v58  ;;  %v853_v3 = vmax.f32 %v725_v59, %v789_v60  ;;  %v663_v10 = vld [vmem:[#allocation2 + $0x371] sm:$0xff] }
  0xb1   :  { %v535_v1 = vld [vmem:[#allocation2 + $0x370] sm:$0xff]  ;;  %v726_v13 = vmax.f32 %v598_v4, %v662_v0  ;;  %v536_v16 = vld [vmem:[#allocation2 + $0x388] sm:$0xff] }
  0xb2   :  { %v599_v5 = vmax.f32 %v471_v62, %v535_v1  ;;  %v345_v7 = vld [vmem:[#allocation2 + $0x38e] sm:$0xff]  ;;  %916 = vst.msk [vmem:[#allocation2 + $0x348] sm:$0xff] %vm73_vm0, %v852_v2  ;;  %917 = vst.msk [vmem:[#allocation2 + $0x350] sm:$0xff] %vm73_vm0, %v853_v3  ;;  %v600_v19 = vmax.f32 %v472_v12, %v536_v16  ;;  %v348_v38 = vld [vmem:[#allocation2 + $0x3c6] sm:$0xff] }
  0xb3   :  { %v790_v9 = vld [vmem:[#allocation2 + $0x36a] sm:$0xff]  ;;  %v791_v15 = vld [vmem:[#allocation2 + $0x372] sm:$0xff] }
  0xb4   :  { %v409_v11 = vld [vmem:[#allocation2 + $0x38f] sm:$0xff]  ;;  %v727_v14 = vmax.f32 %v599_v5, %v663_v10  ;;  %v854_v23 = vmax.f32 %v726_v13, %v790_v9  ;;  %v412_v43 = vld [vmem:[#allocation2 + $0x3c7] sm:$0xff] }
  0xb5   :  { %v664_v17 = vld [vmem:[#allocation2 + $0x389] sm:$0xff]  ;;  %v473_v18 = vmax.f32 %v345_v7, %v409_v11  ;;  %v665_v30 = vld [vmem:[#allocation2 + $0x391] sm:$0xff]  ;;  %v476_v49 = vmax.f32 %v348_v38, %v412_v43 }
  0xb6   :  { %v537_v20 = vld [vmem:[#allocation2 + $0x390] sm:$0xff]  ;;  %v855_v24 = vmax.f32 %v727_v14, %v791_v15  ;;  %v728_v29 = vmax.f32 %v600_v19, %v664_v17  ;;  %v538_v33 = vld [vmem:[#allocation2 + $0x3a8] sm:$0xff]  ;;  %918 = vst.msk [vmem:[#allocation2 + $0x368] sm:$0xff] %vm73_vm0, %v854_v23 }
  0xb7   :  { %v347_v22 = vld [vmem:[#allocation2 + $0x3ae] sm:$0xff]  ;;  %v601_v26 = vmax.f32 %v473_v18, %v537_v20  ;;  %v602_v40 = vmax.f32 %v474_v32, %v538_v33  ;;  %v350_v58 = vld [vmem:[#allocation2 + $0x3e6] sm:$0xff] }
  0xb8   :  { %v792_v25 = vld [vmem:[#allocation2 + $0x38a] sm:$0xff]  ;;  %v793_v31 = vld [vmem:[#allocation2 + $0x392] sm:$0xff]  ;;  %919 = vst.msk [vmem:[#allocation2 + $0x370] sm:$0xff] %vm73_vm0, %v855_v24 }
  0xb9   :  { %v411_v28 = vld [vmem:[#allocation2 + $0x3af] sm:$0xff]  ;;  %v729_v35 = vmax.f32 %v601_v26, %v665_v30  ;;  %v856_v39 = vmax.f32 %v728_v29, %v792_v25  ;;  %v414_v60 = vld [vmem:[#allocation2 + $0x3e7] sm:$0xff] }
  0xba   :  { %v475_v34 = vmax.f32 %v347_v22, %v411_v28  ;;  %v666_v36 = vld [vmem:[#allocation2 + $0x3a9] sm:$0xff]  ;;  %v667_v47 = vld [vmem:[#allocation2 + $0x3b1] sm:$0xff]  ;;  %v478_v2 = vmax.f32 %v350_v58, %v414_v60 }
  0xbb   :  { %v539_v37 = vld [vmem:[#allocation2 + $0x3b0] sm:$0xff]  ;;  %v857_v45 = vmax.f32 %v729_v35, %v793_v31  ;;  %920 = vst.msk [vmem:[#allocation2 + $0x388] sm:$0xff] %vm73_vm0, %v856_v39  ;;  %v730_v51 = vmax.f32 %v602_v40, %v666_v36  ;;  %v540_v53 = vld [vmem:[#allocation2 + $0x3c8] sm:$0xff] }
  0xbc   :  { %v603_v41 = vmax.f32 %v475_v34, %v539_v37  ;;  %v349_v42 = vld [vmem:[#allocation2 + $0x3ce] sm:$0xff]  ;;  %v604_v56 = vmax.f32 %v476_v49, %v540_v53  ;;  %v352_v11 = vld [vmem:[#allocation2 + $0x406] sm:$0xff] }
  0xbd   :  { %v413_v44 = vld [vmem:[#allocation2 + $0x3cf] sm:$0xff]  ;;  %921 = vst.msk [vmem:[#allocation2 + $0x390] sm:$0xff] %vm73_vm0, %v857_v45  ;;  %v416_v17 = vld [vmem:[#allocation2 + $0x407] sm:$0xff] }
  0xbe   :  { %v794_v46 = vld [vmem:[#allocation2 + $0x3aa] sm:$0xff]  ;;  %v795_v48 = vld [vmem:[#allocation2 + $0x3b2] sm:$0xff]  ;;  %v477_v50 = vmax.f32 %v349_v42, %v413_v44  ;;  %v731_v52 = vmax.f32 %v603_v41, %v667_v47  ;;  %v480_v22 = vmax.f32 %v352_v11, %v416_v17 }
  0xbf   :  { %v668_v54 = vld [vmem:[#allocation2 + $0x3c9] sm:$0xff]  ;;  %v858_v61 = vmax.f32 %v730_v51, %v794_v46  ;;  %v669_v0 = vld [vmem:[#allocation2 + $0x3d1] sm:$0xff] }
  0xc0   :  { %v541_v55 = vld [vmem:[#allocation2 + $0x3d0] sm:$0xff]  ;;  %v859_v62 = vmax.f32 %v731_v52, %v795_v48  ;;  %v732_v3 = vmax.f32 %v604_v56, %v668_v54  ;;  %v542_v6 = vld [vmem:[#allocation2 + $0x3e8] sm:$0xff] }
  0xc1   :  { %v605_v57 = vmax.f32 %v477_v50, %v541_v55  ;;  %v351_v59 = vld [vmem:[#allocation2 + $0x3ee] sm:$0xff]  ;;  %922 = vst.msk [vmem:[#allocation2 + $0x3a8] sm:$0xff] %vm73_vm0, %v858_v61  ;;  %v606_v9 = vmax.f32 %v478_v2, %v542_v6  ;;  %v354_v28 = vld [vmem:[#allocation2 + $0x426] sm:$0xff] }
  0xc2   :  { %v796_v63 = vld [vmem:[#allocation2 + $0x3ca] sm:$0xff]  ;;  %v797_v5 = vld [vmem:[#allocation2 + $0x3d2] sm:$0xff]  ;;  %923 = vst.msk [vmem:[#allocation2 + $0x3b0] sm:$0xff] %vm73_vm0, %v859_v62 }
  0xc3   :  { %v415_v1 = vld [vmem:[#allocation2 + $0x3ef] sm:$0xff]  ;;  %v733_v4 = vmax.f32 %v605_v57, %v669_v0  ;;  %v860_v13 = vmax.f32 %v732_v3, %v796_v63  ;;  %v418_v33 = vld [vmem:[#allocation2 + $0x427] sm:$0xff] }
  0xc4   :  { %v670_v7 = vld [vmem:[#allocation2 + $0x3e9] sm:$0xff]  ;;  %v479_v8 = vmax.f32 %v351_v59, %v415_v1  ;;  %v671_v20 = vld [vmem:[#allocation2 + $0x3f1] sm:$0xff]  ;;  %v482_v39 = vmax.f32 %v354_v28, %v418_v33 }
  0xc5   :  { %v543_v10 = vld [vmem:[#allocation2 + $0x3f0] sm:$0xff]  ;;  %v861_v14 = vmax.f32 %v733_v4, %v797_v5  ;;  %v734_v19 = vmax.f32 %v606_v9, %v670_v7  ;;  %v544_v23 = vld [vmem:[#allocation2 + $0x408] sm:$0xff]  ;;  %924 = vst.msk [vmem:[#allocation2 + $0x3c8] sm:$0xff] %vm73_vm0, %v860_v13 }
  0xc6   :  { %v353_v12 = vld [vmem:[#allocation2 + $0x40e] sm:$0xff]  ;;  %v607_v16 = vmax.f32 %v479_v8, %v543_v10  ;;  %v608_v30 = vmax.f32 %v480_v22, %v544_v23  ;;  %v356_v48 = vld [vmem:[#allocation2 + $0x446] sm:$0xff] }
  0xc7   :  { %v798_v15 = vld [vmem:[#allocation2 + $0x3ea] sm:$0xff]  ;;  %v799_v21 = vld [vmem:[#allocation2 + $0x3f2] sm:$0xff]  ;;  %925 = vst.msk [vmem:[#allocation2 + $0x3d0] sm:$0xff] %vm73_vm0, %v861_v14 }
  0xc8   :  { %v417_v18 = vld [vmem:[#allocation2 + $0x40f] sm:$0xff]  ;;  %v735_v25 = vmax.f32 %v607_v16, %v671_v20  ;;  %v862_v29 = vmax.f32 %v734_v19, %v798_v15  ;;  %v420_v50 = vld [vmem:[#allocation2 + $0x447] sm:$0xff] }
  0xc9   :  { %v481_v24 = vmax.f32 %v353_v12, %v417_v18  ;;  %v672_v26 = vld [vmem:[#allocation2 + $0x409] sm:$0xff]  ;;  %v673_v37 = vld [vmem:[#allocation2 + $0x411] sm:$0xff]  ;;  %v484_v56 = vmax.f32 %v356_v48, %v420_v50 }
  0xca   :  { %v545_v27 = vld [vmem:[#allocation2 + $0x410] sm:$0xff]  ;;  %v863_v35 = vmax.f32 %v735_v25, %v799_v21  ;;  %926 = vst.msk [vmem:[#allocation2 + $0x3e8] sm:$0xff] %vm73_vm0, %v862_v29  ;;  %v736_v41 = vmax.f32 %v608_v30, %v672_v26  ;;  %v546_v43 = vld [vmem:[#allocation2 + $0x428] sm:$0xff] }
  0xcb   :  { %v609_v31 = vmax.f32 %v481_v24, %v545_v27  ;;  %v355_v32 = vld [vmem:[#allocation2 + $0x42e] sm:$0xff]  ;;  %v610_v46 = vmax.f32 %v482_v39, %v546_v43  ;;  %v358_v1 = vld [vmem:[#allocation2 + $0x466] sm:$0xff] }
  0xcc   :  { %v419_v34 = vld [vmem:[#allocation2 + $0x42f] sm:$0xff]  ;;  %927 = vst.msk [vmem:[#allocation2 + $0x3f0] sm:$0xff] %vm73_vm0, %v863_v35  ;;  %v422_v6 = vld [vmem:[#allocation2 + $0x467] sm:$0xff] }
  0xcd   :  { %v800_v36 = vld [vmem:[#allocation2 + $0x40a] sm:$0xff]  ;;  %v801_v38 = vld [vmem:[#allocation2 + $0x412] sm:$0xff]  ;;  %v483_v40 = vmax.f32 %v355_v32, %v419_v34  ;;  %v737_v42 = vmax.f32 %v609_v31, %v673_v37  ;;  %v486_v12 = vmax.f32 %v358_v1, %v422_v6 }
  0xce   :  { %v674_v44 = vld [vmem:[#allocation2 + $0x429] sm:$0xff]  ;;  %v864_v51 = vmax.f32 %v736_v41, %v800_v36  ;;  %v675_v54 = vld [vmem:[#allocation2 + $0x431] sm:$0xff] }
  0xcf   :  { %v547_v45 = vld [vmem:[#allocation2 + $0x430] sm:$0xff]  ;;  %v865_v52 = vmax.f32 %v737_v42, %v801_v38  ;;  %v738_v57 = vmax.f32 %v610_v46, %v674_v44  ;;  %v548_v60 = vld [vmem:[#allocation2 + $0x448] sm:$0xff] }
  0xd0   :  { %v611_v47 = vmax.f32 %v483_v40, %v547_v45  ;;  %v357_v49 = vld [vmem:[#allocation2 + $0x44e] sm:$0xff]  ;;  %928 = vst.msk [vmem:[#allocation2 + $0x408] sm:$0xff] %vm73_vm0, %v864_v51  ;;  %v612_v63 = vmax.f32 %v484_v56, %v548_v60  ;;  %v360_v18 = vld [vmem:[#allocation2 + $0x486] sm:$0xff] }
  0xd1   :  { %v802_v53 = vld [vmem:[#allocation2 + $0x42a] sm:$0xff]  ;;  %v803_v59 = vld [vmem:[#allocation2 + $0x432] sm:$0xff]  ;;  %929 = vst.msk [vmem:[#allocation2 + $0x410] sm:$0xff] %vm73_vm0, %v865_v52 }
  0xd2   :  { %v421_v55 = vld [vmem:[#allocation2 + $0x44f] sm:$0xff]  ;;  %v739_v58 = vmax.f32 %v611_v47, %v675_v54  ;;  %v866_v3 = vmax.f32 %v738_v57, %v802_v53  ;;  %v424_v23 = vld [vmem:[#allocation2 + $0x487] sm:$0xff] }
  0xd3   :  { %v676_v61 = vld [vmem:[#allocation2 + $0x449] sm:$0xff]  ;;  %v485_v62 = vmax.f32 %v357_v49, %v421_v55  ;;  %v677_v11 = vld [vmem:[#allocation2 + $0x451] sm:$0xff]  ;;  %v488_v29 = vmax.f32 %v360_v18, %v424_v23 }
  0xd4   :  { %v549_v0 = vld [vmem:[#allocation2 + $0x450] sm:$0xff]  ;;  %v867_v4 = vmax.f32 %v739_v58, %v803_v59  ;;  %v550_v8 = vld [vmem:[#allocation2 + $0x468] sm:$0xff]  ;;  %v740_v9 = vmax.f32 %v612_v63, %v676_v61  ;;  %930 = vst.msk [vmem:[#allocation2 + $0x428] sm:$0xff] %vm73_vm0, %v866_v3 }
  0xd5   :  { %v359_v2 = vld [vmem:[#allocation2 + $0x46e] sm:$0xff]  ;;  %v613_v5 = vmax.f32 %v485_v62, %v549_v0  ;;  %v614_v20 = vmax.f32 %v486_v12, %v550_v8  ;;  %v362_v40 = vld [vmem:[#allocation2 + $0x4a6] sm:$0xff] }
  0xd6   :  { %v423_v7 = vld [vmem:[#allocation2 + $0x46f] sm:$0xff]  ;;  %931 = vst.msk [vmem:[#allocation2 + $0x430] sm:$0xff] %vm73_vm0, %v867_v4  ;;  %v426_v42 = vld [vmem:[#allocation2 + $0x4a7] sm:$0xff] }
  0xd7   :  { %v804_v10 = vld [vmem:[#allocation2 + $0x44a] sm:$0xff]  ;;  %v487_v13 = vmax.f32 %v359_v2, %v423_v7  ;;  %v741_v15 = vmax.f32 %v613_v5, %v677_v11  ;;  %v805_v16 = vld [vmem:[#allocation2 + $0x452] sm:$0xff]  ;;  %v490_v49 = vmax.f32 %v362_v40, %v426_v42 }
  0xd8   :  { %v551_v14 = vld [vmem:[#allocation2 + $0x470] sm:$0xff]  ;;  %v868_v19 = vmax.f32 %v740_v9, %v804_v10  ;;  %v552_v30 = vld [vmem:[#allocation2 + $0x488] sm:$0xff] }
  0xd9   :  { %v678_v17 = vld [vmem:[#allocation2 + $0x469] sm:$0xff]  ;;  %v615_v21 = vmax.f32 %v487_v13, %v551_v14  ;;  %v869_v25 = vmax.f32 %v741_v15, %v805_v16  ;;  %v679_v27 = vld [vmem:[#allocation2 + $0x471] sm:$0xff]  ;;  %v616_v38 = vmax.f32 %v488_v29, %v552_v30 }
  0xda   :  { %v361_v22 = vld [vmem:[#allocation2 + $0x48e] sm:$0xff]  ;;  %932 = vst.msk [vmem:[#allocation2 + $0x448] sm:$0xff] %vm73_vm0, %v868_v19  ;;  %v742_v32 = vmax.f32 %v614_v20, %v678_v17 }
  0xdb   :  { %v425_v24 = vld [vmem:[#allocation2 + $0x48f] sm:$0xff]  ;;  %v743_v33 = vmax.f32 %v615_v21, %v679_v27  ;;  %933 = vst.msk [vmem:[#allocation2 + $0x450] sm:$0xff] %vm73_vm0, %v869_v25 }
  0xdc   :  { %v806_v26 = vld [vmem:[#allocation2 + $0x46a] sm:$0xff]  ;;  %v807_v28 = vld [vmem:[#allocation2 + $0x472] sm:$0xff]  ;;  %v489_v31 = vmax.f32 %v361_v22, %v425_v24 }
  0xdd   :  { %v680_v34 = vld [vmem:[#allocation2 + $0x489] sm:$0xff]  ;;  %v681_v36 = vld [vmem:[#allocation2 + $0x491] sm:$0xff]  ;;  %v870_v44 = vmax.f32 %v742_v32, %v806_v26  ;;  %v871_v45 = vmax.f32 %v743_v33, %v807_v28 }
  0xde   :  { %v553_v35 = vld [vmem:[#allocation2 + $0x490] sm:$0xff]  ;;  %v944_v37 = vld [vmem:[#allocation2 + $0x48] sm:$0xff]  ;;  %v744_v52 = vmax.f32 %v616_v38, %v680_v34 }
  0xdf   :  { %v617_v39 = vmax.f32 %v489_v31, %v553_v35  ;;  %v363_v41 = vld [vmem:[#allocation2 + $0x4ae] sm:$0xff]  ;;  %934 = vst.msk [vmem:[#allocation2 + $0x468] sm:$0xff] %vm73_vm0, %v870_v44  ;;  %935 = vst.msk [vmem:[#allocation2 + $0x470] sm:$0xff] %vm73_vm0, %v871_v45 }
  0xe0   :  { %v5211_v43 = vld [vmem:[#allocation2 + $0x50] sm:$0xff]  ;;  %v554_v50 = vld [vmem:[#allocation2 + $0x4a8] sm:$0xff] }
  0xe1   :  { %v808_v46 = vld [vmem:[#allocation2 + $0x48a] sm:$0xff]  ;;  %v809_v47 = vld [vmem:[#allocation2 + $0x492] sm:$0xff]  ;;  %v745_v53 = vmax.f32 %v617_v39, %v681_v36  ;;  %v618_v58 = vmax.f32 %v490_v49, %v554_v50 }
  0xe2   :  { %v427_v48 = vld [vmem:[#allocation2 + $0x4af] sm:$0xff]  ;;  %v872_v62 = vmax.f32 %v744_v52, %v808_v46 }
  0xe3   :  { %v682_v51 = vld [vmem:[#allocation2 + $0x4a9] sm:$0xff]  ;;  %v491_v55 = vmax.f32 %v363_v41, %v427_v48  ;;  %v683_v57 = vld [vmem:[#allocation2 + $0x4b1] sm:$0xff]  ;;  %v873_v63 = vmax.f32 %v745_v53, %v809_v47 }
  0xe4   :  { %v810_v54 = vld [vmem:[#allocation2 + $0x4aa] sm:$0xff]  ;;  %v811_v59 = vld [vmem:[#allocation2 + $0x4b2] sm:$0xff]  ;;  %v746_v5 = vmax.f32 %v618_v58, %v682_v51  ;;  %936 = vst.msk [vmem:[#allocation2 + $0x488] sm:$0xff] %vm73_vm0, %v872_v62 }
  0xe5   :  { %v555_v56 = vld [vmem:[#allocation2 + $0x4b0] sm:$0xff]  ;;  %v940_v60 = vld [vmem:[#allocation2 + $0x8] sm:$0xff]  ;;  %937 = vst.msk [vmem:[#allocation2 + $0x490] sm:$0xff] %vm73_vm0, %v873_v63 }
  0xe6   :  { %v1005_v61 = vld [vmem:[#allocation2 + $0x28] sm:$0xff]  ;;  %v619_v0 = vmax.f32 %v491_v55, %v555_v56  ;;  %v941_v6 = vld [vmem:[#allocation2 + $0x10] sm:$0xff]  ;;  %v874_v20 = vmax.f32 %v746_v5, %v810_v54 }
  0xe7   :  { %v1069_v1 = vmax.f32 %v940_v60, %v1005_v61  ;;  %v1133_v2 = vld [vmem:[#allocation2 + $0x48] sm:$0xff]  ;;  %v1006_v7 = vld [vmem:[#allocation2 + $0x30] sm:$0xff]  ;;  %v1071_v9 = vmax.f32 %v1005_v61, %v944_v37 }
  0xe8   :  { %v1262_v3 = vld [vmem:[#allocation2 + $0x68] sm:$0xff]  ;;  %v1134_v8 = vld [vmem:[#allocation2 + $0x50] sm:$0xff]  ;;  %v747_v12 = vmax.f32 %v619_v0, %v683_v57  ;;  %v1070_v14 = vmax.f32 %v941_v6, %v1006_v7  ;;  %v1072_v17 = vmax.f32 %v1006_v7, %v5211_v43  ;;  %938 = vst.msk [vmem:[#allocation2 + $0x4a8] sm:$0xff] %vm73_vm0, %v874_v20 }
  0xe9   :  { %v5215_v4 = vld [vmem:[#allocation2 + $0x88] sm:$0xff]  ;;  %v1073_v10 = vmax.f32 %v944_v37, %v1262_v3  ;;  %v1197_v13 = vmax.f32 %v1069_v1, %v1133_v2  ;;  %v5220_v15 = vld [vmem:[#allocation2 + $0x70] sm:$0xff]  ;;  %v1199_v22 = vmax.f32 %v1071_v9, %v1262_v3 }
  0xea   :  { %v1075_v11 = vmax.f32 %v1262_v3, %v5215_v4  ;;  %v972_v16 = vld [vmem:[#allocation2 + $0x288] sm:$0xff]  ;;  %v5225_v19 = vld [vmem:[#allocation2 + $0x2d0] sm:$0xff]  ;;  %v1074_v24 = vmax.f32 %v5211_v43, %v5220_v15  ;;  %v875_v25 = vmax.f32 %v747_v12, %v811_v59  ;;  %v1198_v27 = vmax.f32 %v1070_v14, %v1134_v8 }
  0xeb   :  { %v5223_v18 = vld [vmem:[#allocation2 + $0x2c8] sm:$0xff]  ;;  %v1201_v23 = vmax.f32 %v1073_v10, %v5215_v4  ;;  %v1326_v26 = vmax.f32 %v1197_v13, %v1262_v3  ;;  %v1392_v28 = vld [vmem:[#allocation2 + $0x90] sm:$0xff]  ;;  %v1328_v33 = vmax.f32 %v1199_v22, %v5215_v4  ;;  %v1200_v35 = vmax.f32 %v1072_v17, %v5220_v15 }
  0xec   :  { %v5227_v21 = vld [vmem:[#allocation2 + $0x2a8] sm:$0xff]  ;;  %v973_v30 = vld [vmem:[#allocation2 + $0x290] sm:$0xff]  ;;  %v1202_v36 = vmax.f32 %v1074_v24, %v1392_v28  ;;  %939 = vst.msk [vmem:[#allocation2 + $0x4b0] sm:$0xff] %vm73_vm0, %v875_v25  ;;  %v1327_v38 = vmax.f32 %v1198_v27, %v5220_v15  ;;  %v1076_v59 = vmax.f32 %v5220_v15, %v1392_v28 }
  0xed   :  { %v1101_v29 = vmax.f32 %v972_v16, %v5227_v21  ;;  %v5233_v31 = vld [vmem:[#allocation2 + $0x2b0] sm:$0xff]  ;;  %v1393_v34 = vld [vmem:[#allocation2 + $0xa8] sm:$0xff]  ;;  %v1455_v37 = vmax.f32 %v1326_v26, %v5215_v4  ;;  %v1329_v45 = vmax.f32 %v1200_v35, %v1392_v28 }
  0xee   :  { %v1102_v32 = vmax.f32 %v973_v30, %v5233_v31  ;;  %v1394_v40 = vld [vmem:[#allocation2 + $0xb0] sm:$0xff]  ;;  %v1330_v41 = vmax.f32 %v1201_v23, %v1393_v34  ;;  %v5243_v42 = vld [vmem:[#allocation2 + $0x2e8] sm:$0xff]  ;;  %v1457_v44 = vmax.f32 %v1328_v33, %v1393_v34  ;;  %v1456_v48 = vmax.f32 %v1327_v38, %v1392_v28 }
  0xef   :  { %v1229_v39 = vmax.f32 %v1101_v29, %v5223_v18  ;;  %v1395_v46 = vld [vmem:[#allocation2 + $0xc8] sm:$0xff]  ;;  %v1331_v47 = vmax.f32 %v1202_v36, %v1394_v40  ;;  %4341 = vst.msk [vmem:[%s8709_s1 + $0x200] sm:$0xff] %vm73_vm0, %v1455_v37  ;;  %1584 = vst.msk [vmem:[#allocation2 + $0x48] sm:$0xff] %vm73_vm0, %v1455_v37  ;;  %v5252_v50 = vld [vmem:[#allocation2 + $0x2f0] sm:$0xff]  ;;  %v1203_v53 = vmax.f32 %v1075_v11, %v1393_v34 }
  0xf0   :  { %v1230_v43 = vmax.f32 %v1102_v32, %v5225_v19  ;;  %v1459_v51 = vmax.f32 %v1330_v41, %v1395_v46  ;;  %v1396_v52 = vld [vmem:[#allocation2 + $0xd0] sm:$0xff]  ;;  %v5254_v54 = vld [vmem:[#allocation2 + $0x308] sm:$0xff]  ;;  %4343 = vst.msk [vmem:[%s8709_s1 + $0x210] sm:$0xff] %vm73_vm0, %v1457_v44  ;;  %v1458_v56 = vmax.f32 %v1329_v45, %v1394_v40  ;;  %1586 = vst.msk [vmem:[#allocation2 + $0x68] sm:$0xff] %vm73_vm0, %v1457_v44 }
  0xf1   :  { %v1358_v49 = vmax.f32 %v1229_v39, %v5243_v42  ;;  %v1460_v57 = vmax.f32 %v1331_v47, %v1396_v52  ;;  %v5261_v58 = vld [vmem:[#allocation2 + $0xe8] sm:$0xff]  ;;  %4342 = vst.msk [vmem:[%s8709_s1 + $0x208] sm:$0xff] %vm73_vm0, %v1456_v48  ;;  %1585 = vst.msk [vmem:[#allocation2 + $0x50] sm:$0xff] %vm73_vm0, %v1456_v48  ;;  %v5271_v61 = vld [vmem:[#allocation2 + $0x310] sm:$0xff]  ;;  %v1332_v62 = vmax.f32 %v1203_v53, %v1395_v46 }
  0xf2   :  { %v1359_v55 = vmax.f32 %v1230_v43, %v5252_v50  ;;  %4345 = vst.msk [vmem:[%s8709_s1 + $0x220] sm:$0xff] %vm73_vm0, %v1459_v51  ;;  %v5277_v63 = vld [vmem:[#allocation2 + $0xf0] sm:$0xff]  ;;  %v1077_v0 = vmax.f32 %v5215_v4, %v1393_v34  ;;  %1588 = vst.msk [vmem:[#allocation2 + $0x88] sm:$0xff] %vm73_vm0, %v1459_v51  ;;  %v1078_v1 = vmax.f32 %v1392_v28, %v1394_v40  ;;  %v5291_v5 = vld [vmem:[#allocation2 + $0x108] sm:$0xff] }
  0xf3   :  { %v1487_v60 = vmax.f32 %v1358_v49, %v5254_v54  ;;  %4344 = vst.msk [vmem:[%s8709_s1 + $0x218] sm:$0xff] %vm73_vm0, %v1458_v56  ;;  %4346 = vst.msk [vmem:[%s8709_s1 + $0x228] sm:$0xff] %vm73_vm0, %v1460_v57  ;;  %v1204_v3 = vmax.f32 %v1076_v59, %v1394_v40  ;;  %v1079_v4 = vmax.f32 %v1393_v34, %v1395_v46  ;;  %v5315_v17 = vld [vmem:[#allocation2 + $0x110] sm:$0xff]  ;;  %v5323_v27 = vld [vmem:[#allocation2 + $0x128] sm:$0xff] }
  0xf4   :  { %v1488_v2 = vmax.f32 %v1359_v55, %v5271_v61  ;;  %1587 = vst.msk [vmem:[#allocation2 + $0x70] sm:$0xff] %vm73_vm0, %v1458_v56  ;;  %1589 = vst.msk [vmem:[#allocation2 + $0x90] sm:$0xff] %vm73_vm0, %v1460_v57  ;;  %v1080_v6 = vmax.f32 %v1394_v40, %v1396_v52  ;;  %v1461_v7 = vmax.f32 %v1332_v62, %v5261_v58  ;;  %v5329_v34 = vld [vmem:[#allocation2 + $0x130] sm:$0xff]  ;;  %v5332_v36 = vld [vmem:[#allocation2 + $0x148] sm:$0xff] }
  0xf5   :  { %4373 = vst.msk [vmem:[%s8709_s1 + $0x600] sm:$0xff] %vm73_vm0, %v1487_v60  ;;  %1616 = vst.msk [vmem:[#allocation2 + $0x2c8] sm:$0xff] %vm73_vm0, %v1487_v60  ;;  %v1205_v8 = vmax.f32 %v1077_v0, %v1395_v46  ;;  %v1206_v9 = vmax.f32 %v1078_v1, %v1396_v52  ;;  %v1081_v10 = vmax.f32 %v1395_v46, %v5261_v58  ;;  %v5353_v49 = vld [vmem:[#allocation2 + $0x150] sm:$0xff] }
  0xf6   :  { %4374 = vst.msk [vmem:[%s8709_s1 + $0x608] sm:$0xff] %vm73_vm0, %v1488_v2  ;;  %1617 = vst.msk [vmem:[#allocation2 + $0x2d0] sm:$0xff] %vm73_vm0, %v1488_v2  ;;  %v1333_v11 = vmax.f32 %v1204_v3, %v1396_v52  ;;  %v1207_v12 = vmax.f32 %v1079_v4, %v5261_v58  ;;  %v1208_v13 = vmax.f32 %v1080_v6, %v5277_v63  ;;  %v1648_v23 = vld [vmem:[#allocation2 + $0x46] sm:$0xff] }
  0xf7   :  { %v1082_v14 = vmax.f32 %v1396_v52, %v5277_v63  ;;  %4347 = vst.msk [vmem:[%s8709_s1 + $0x230] sm:$0xff] %vm73_vm0, %v1461_v7  ;;  %v1334_v15 = vmax.f32 %v1205_v8, %v5261_v58  ;;  %v1335_v16 = vmax.f32 %v1206_v9, %v5277_v63  ;;  %1590 = vst.msk [vmem:[#allocation2 + $0xa8] sm:$0xff] %vm73_vm0, %v1461_v7  ;;  %v1712_v24 = vld [vmem:[#allocation2 + $0x47] sm:$0xff] }
  0xf8   :  { %v1209_v20 = vmax.f32 %v1081_v10, %v5291_v5  ;;  %v1083_v22 = vmax.f32 %v5261_v58, %v5291_v5  ;;  %v1462_v25 = vmax.f32 %v1333_v11, %v5277_v63  ;;  %v1336_v26 = vmax.f32 %v1207_v12, %v5291_v5  ;;  %v1649_v37 = vld [vmem:[#allocation2 + $0x4e] sm:$0xff] }
  0xf9   :  { %v1337_v28 = vmax.f32 %v1208_v13, %v5315_v17  ;;  %v1210_v29 = vmax.f32 %v1082_v14, %v5315_v17  ;;  %v1776_v30 = vmax.f32 %v1648_v23, %v1712_v24  ;;  %v1463_v32 = vmax.f32 %v1334_v15, %v5291_v5  ;;  %v1713_v38 = vld [vmem:[#allocation2 + $0x4f] sm:$0xff] }
  0xfa   :  { %v1464_v33 = vmax.f32 %v1335_v16, %v5315_v17  ;;  %v1338_v35 = vmax.f32 %v1209_v20, %v5323_v27  ;;  %v1840_v39 = vld [vmem:[#allocation2 + $0x48] sm:$0xff]  ;;  %4348 = vst.msk [vmem:[%s8709_s1 + $0x238] sm:$0xff] %vm73_vm0, %v1462_v25  ;;  %v1465_v40 = vmax.f32 %v1336_v26, %v5323_v27  ;;  %1591 = vst.msk [vmem:[#allocation2 + $0xb0] sm:$0xff] %vm73_vm0, %v1462_v25  ;;  %v1841_v46 = vld [vmem:[#allocation2 + $0x50] sm:$0xff] }
  0xfb   :  { %v1466_v41 = vmax.f32 %v1337_v28, %v5329_v34  ;;  %v1339_v43 = vmax.f32 %v1210_v29, %v5329_v34  ;;  %v1211_v44 = vmax.f32 %v1083_v22, %v5323_v27  ;;  %v1777_v45 = vmax.f32 %v1649_v37, %v1713_v38  ;;  %4349 = vst.msk [vmem:[%s8709_s1 + $0x240] sm:$0xff] %vm73_vm0, %v1463_v32  ;;  %v1968_v55 = vld [vmem:[#allocation2 + $0x49] sm:$0xff]  ;;  %v1969_v6 = vld [vmem:[#allocation2 + $0x51] sm:$0xff] }
  0xfc   :  { %v1904_v47 = vmax.f32 %v1776_v30, %v1840_v39  ;;  %4350 = vst.msk [vmem:[%s8709_s1 + $0x248] sm:$0xff] %vm73_vm0, %v1464_v33  ;;  %v1467_v48 = vmax.f32 %v1338_v35, %v5332_v36  ;;  %1592 = vst.msk [vmem:[#allocation2 + $0xc8] sm:$0xff] %vm73_vm0, %v1463_v32  ;;  %v1084_v51 = vmax.f32 %v5277_v63, %v5315_v17  ;;  %v1680_v52 = vld [vmem:[#allocation2 + $0x2c6] sm:$0xff]  ;;  %v1406_v16 = vld [vmem:[#allocation2 + $0x170] sm:$0xff] }
  0xfd   :  { %1593 = vst.msk [vmem:[#allocation2 + $0xd0] sm:$0xff] %vm73_vm0, %v1464_v33  ;;  %v1744_v53 = vld [vmem:[#allocation2 + $0x2c7] sm:$0xff]  ;;  %4351 = vst.msk [vmem:[%s8709_s1 + $0x250] sm:$0xff] %vm73_vm0, %v1465_v40  ;;  %v1468_v56 = vmax.f32 %v1339_v43, %v5353_v49  ;;  %v1340_v57 = vmax.f32 %v1211_v44, %v5332_v36  ;;  %v1085_v58 = vmax.f32 %v5291_v5, %v5323_v27  ;;  %v1745_v62 = vld [vmem:[#allocation2 + $0x2cf] sm:$0xff] }
  0xfe   :  { %4352 = vst.msk [vmem:[%s8709_s1 + $0x258] sm:$0xff] %vm73_vm0, %v1466_v41  ;;  %1594 = vst.msk [vmem:[#allocation2 + $0xe8] sm:$0xff] %vm73_vm0, %v1465_v40  ;;  %v1086_v59 = vmax.f32 %v5315_v17, %v5329_v34  ;;  %v1681_v60 = vld [vmem:[#allocation2 + $0x2ce] sm:$0xff]  ;;  %v1808_v63 = vmax.f32 %v1680_v52, %v1744_v53  ;;  %v1905_v0 = vmax.f32 %v1777_v45, %v1841_v46 }
  0xff   :  { %1595 = vst.msk [vmem:[#allocation2 + $0xf0] sm:$0xff] %vm73_vm0, %v1466_v41  ;;  %v2032_v1 = vmax.f32 %v1904_v47, %v1968_v55  ;;  %4353 = vst.msk [vmem:[%s8709_s1 + $0x260] sm:$0xff] %vm73_vm0, %v1467_v48  ;;  %v5378_v2 = vld [vmem:[#allocation2 + $0x168] sm:$0xff]  ;;  %v1212_v3 = vmax.f32 %v1084_v51, %v5329_v34  ;;  %v1809_v5 = vmax.f32 %v1681_v60, %v1745_v62  ;;  %v1873_v11 = vld [vmem:[#allocation2 + $0x2d0] sm:$0xff] }
 0x100   :  { %1596 = vst.msk [vmem:[#allocation2 + $0x108] sm:$0xff] %vm73_vm0, %v1467_v48  ;;  %v1872_v4 = vld [vmem:[#allocation2 + $0x2c8] sm:$0xff]  ;;  %4354 = vst.msk [vmem:[%s8709_s1 + $0x268] sm:$0xff] %vm73_vm0, %v1468_v56  ;;  %v1469_v8 = vmax.f32 %v1340_v57, %v5378_v2  ;;  %v1213_v9 = vmax.f32 %v1085_v58, %v5332_v36  ;;  %v1214_v10 = vmax.f32 %v1086_v59, %v5353_v49  ;;  %v2097_v22 = vld [vmem:[#allocation2 + $0x52] sm:$0xff] }
 0x101   :  { %v2096_v7 = vld [vmem:[#allocation2 + $0x4a] sm:$0xff]  ;;  %1597 = vst.msk [vmem:[#allocation2 + $0x110] sm:$0xff] %vm73_vm0, %v1468_v56  ;;  %v1936_v12 = vmax.f32 %v1808_v63, %v1872_v4  ;;  %v2033_v13 = vmax.f32 %v1905_v0, %v1969_v6  ;;  %v1341_v15 = vmax.f32 %v1212_v3, %v5353_v49  ;;  %v1937_v17 = vmax.f32 %v1809_v5, %v1873_v11  ;;  %v2129_v43 = vld [vmem:[#allocation2 + $0x2d2] sm:$0xff] }
 0x102   :  { %v2160_v14 = vmax.f32 %v2032_v1, %v2096_v7  ;;  %v2000_v20 = vld [vmem:[#allocation2 + $0x2c9] sm:$0xff]  ;;  %4355 = vst.msk [vmem:[%s8709_s1 + $0x270] sm:$0xff] %vm73_vm0, %v1469_v8  ;;  %v1342_v23 = vmax.f32 %v1213_v9, %v5378_v2  ;;  %v1343_v24 = vmax.f32 %v1214_v10, %v1406_v16  ;;  %v1087_v25 = vmax.f32 %v5323_v27, %v5332_v36  ;;  %v2001_v26 = vld [vmem:[#allocation2 + $0x2d1] sm:$0xff] }
 0x103   :  { %1598 = vst.msk [vmem:[#allocation2 + $0x128] sm:$0xff] %vm73_vm0, %v1469_v8  ;;  %v2064_v28 = vmax.f32 %v1936_v12, %v2000_v20  ;;  %v2161_v29 = vmax.f32 %v2033_v13, %v2097_v22  ;;  %v1470_v30 = vmax.f32 %v1341_v15, %v1406_v16  ;;  %v1407_v32 = vld [vmem:[#allocation2 + $0x188] sm:$0xff]  ;;  %v1408_v33 = vld [vmem:[#allocation2 + $0x190] sm:$0xff]  ;;  %v1088_v35 = vmax.f32 %v5329_v34, %v5353_v49 }
 0x104   :  { %2224 = vst.msk [vmem:[#allocation2 + $0x48] sm:$0xff] %vm73_vm0, %v2160_v14  ;;  %v2065_v37 = vmax.f32 %v1937_v17, %v2001_v26  ;;  %v2128_v38 = vld [vmem:[#allocation2 + $0x2ca] sm:$0xff]  ;;  %v1471_v39 = vmax.f32 %v1342_v23, %v1407_v32  ;;  %v1472_v40 = vmax.f32 %v1343_v24, %v1408_v33  ;;  %v1215_v41 = vmax.f32 %v1087_v25, %v5378_v2 }
 0x105   :  { %v1409_v27 = vld [vmem:[#allocation2 + $0x1a8] sm:$0xff]  ;;  %v2192_v44 = vmax.f32 %v2064_v28, %v2128_v38  ;;  %2225 = vst.msk [vmem:[#allocation2 + $0x50] sm:$0xff] %vm73_vm0, %v2161_v29  ;;  %4356 = vst.msk [vmem:[%s8709_s1 + $0x278] sm:$0xff] %vm73_vm0, %v1470_v30  ;;  %v1216_v45 = vmax.f32 %v1088_v35, %v1406_v16  ;;  %v1410_v46 = vld [vmem:[#allocation2 + $0x1b0] sm:$0xff]  ;;  %v1089_v34 = vmax.f32 %v5332_v36, %v5378_v2 }
 0x106   :  { %1599 = vst.msk [vmem:[#allocation2 + $0x130] sm:$0xff] %vm73_vm0, %v1470_v30  ;;  %v1090_v47 = vmax.f32 %v5353_v49, %v1406_v16  ;;  %v2193_v48 = vmax.f32 %v2065_v37, %v2129_v43  ;;  %4357 = vst.msk [vmem:[%s8709_s1 + $0x280] sm:$0xff] %vm73_vm0, %v1471_v39  ;;  %v1344_v51 = vmax.f32 %v1215_v41, %v1407_v32  ;;  %v1411_v55 = vld [vmem:[#allocation2 + $0x1c8] sm:$0xff]  ;;  %v1412_v59 = vld [vmem:[#allocation2 + $0x1d0] sm:$0xff] }
 0x107   :  { %4358 = vst.msk [vmem:[%s8709_s1 + $0x288] sm:$0xff] %vm73_vm0, %v1472_v40  ;;  %1600 = vst.msk [vmem:[#allocation2 + $0x148] sm:$0xff] %vm73_vm0, %v1471_v39  ;;  %v1091_v36 = vmax.f32 %v5378_v2, %v1407_v32  ;;  %v1092_v52 = vmax.f32 %v1406_v16, %v1408_v33  ;;  %v1345_v49 = vmax.f32 %v1216_v45, %v1408_v33  ;;  %v1413_v4 = vld [vmem:[#allocation2 + $0x1e8] sm:$0xff]  ;;  %v1414_v7 = vld [vmem:[#allocation2 + $0x1f0] sm:$0xff] }
 0x108   :  { %1601 = vst.msk [vmem:[#allocation2 + $0x150] sm:$0xff] %vm73_vm0, %v1472_v40  ;;  %2256 = vst.msk [vmem:[#allocation2 + $0x2c8] sm:$0xff] %vm73_vm0, %v2192_v44  ;;  %v1217_v53 = vmax.f32 %v1089_v34, %v1407_v32  ;;  %v1218_v56 = vmax.f32 %v1090_v47, %v1408_v33  ;;  %v1093_v57 = vmax.f32 %v1407_v32, %v1409_v27  ;;  %v1415_v13 = vld [vmem:[#allocation2 + $0x208] sm:$0xff]  ;;  %v1416_v14 = vld [vmem:[#allocation2 + $0x210] sm:$0xff] }
 0x109   :  { %2257 = vst.msk [vmem:[#allocation2 + $0x2d0] sm:$0xff] %vm73_vm0, %v2193_v48  ;;  %v1473_v58 = vmax.f32 %v1344_v51, %v1409_v27  ;;  %v1219_v60 = vmax.f32 %v1091_v36, %v1409_v27  ;;  %v1220_v62 = vmax.f32 %v1092_v52, %v1410_v46  ;;  %v1094_v63 = vmax.f32 %v1408_v33, %v1410_v46  ;;  %v1417_v30 = vld [vmem:[#allocation2 + $0x228] sm:$0xff]  ;;  %v1418_v37 = vld [vmem:[#allocation2 + $0x230] sm:$0xff] }
 0x10a   :  { %v1474_v0 = vmax.f32 %v1345_v49, %v1410_v46  ;;  %v1346_v1 = vmax.f32 %v1217_v53, %v1409_v27  ;;  %v1347_v3 = vmax.f32 %v1218_v56, %v1410_v46  ;;  %v1221_v5 = vmax.f32 %v1093_v57, %v1411_v55  ;;  %v1419_v39 = vld [vmem:[#allocation2 + $0x248] sm:$0xff]  ;;  %v1420_v41 = vld [vmem:[#allocation2 + $0x250] sm:$0xff] }
 0x10b   :  { %4359 = vst.msk [vmem:[%s8709_s1 + $0x290] sm:$0xff] %vm73_vm0, %v1473_v58  ;;  %v1348_v2 = vmax.f32 %v1219_v60, %v1411_v55  ;;  %1602 = vst.msk [vmem:[#allocation2 + $0x168] sm:$0xff] %vm73_vm0, %v1473_v58  ;;  %v1349_v6 = vmax.f32 %v1220_v62, %v1412_v59  ;;  %v1222_v8 = vmax.f32 %v1094_v63, %v1412_v59  ;;  %v1421_v51 = vld [vmem:[#allocation2 + $0x268] sm:$0xff]  ;;  %v1422_v36 = vld [vmem:[#allocation2 + $0x270] sm:$0xff] }
 0x10c   :  { %v1095_v9 = vmax.f32 %v1409_v27, %v1411_v55  ;;  %4360 = vst.msk [vmem:[%s8709_s1 + $0x298] sm:$0xff] %vm73_vm0, %v1474_v0  ;;  %v1475_v10 = vmax.f32 %v1346_v1, %v1411_v55  ;;  %v1476_v11 = vmax.f32 %v1347_v3, %v1412_v59  ;;  %1603 = vst.msk [vmem:[#allocation2 + $0x170] sm:$0xff] %vm73_vm0, %v1474_v0  ;;  %v1425_v58 = vld [vmem:[#allocation2 + $0x328] sm:$0xff] }
 0x10d   :  { %v1350_v12 = vmax.f32 %v1221_v5, %v1413_v4  ;;  %v1096_v15 = vmax.f32 %v1410_v46, %v1412_v59  ;;  %v1477_v16 = vmax.f32 %v1348_v2, %v1413_v4  ;;  %v1478_v17 = vmax.f32 %v1349_v6, %v1414_v7  ;;  %v1427_v1 = vld [vmem:[#allocation2 + $0x348] sm:$0xff]  ;;  %v1428_v5 = vld [vmem:[#allocation2 + $0x350] sm:$0xff] }
 0x10e   :  { %v1351_v20 = vmax.f32 %v1222_v8, %v1414_v7  ;;  %v1223_v22 = vmax.f32 %v1095_v9, %v1413_v4  ;;  %4361 = vst.msk [vmem:[%s8709_s1 + $0x2a0] sm:$0xff] %vm73_vm0, %v1475_v10  ;;  %4362 = vst.msk [vmem:[%s8709_s1 + $0x2a8] sm:$0xff] %vm73_vm0, %v1476_v11  ;;  %v1097_v25 = vmax.f32 %v1411_v55, %v1413_v4 }
 0x10f   :  { %v1479_v23 = vmax.f32 %v1350_v12, %v1415_v13  ;;  %1604 = vst.msk [vmem:[#allocation2 + $0x188] sm:$0xff] %vm73_vm0, %v1475_v10  ;;  %1605 = vst.msk [vmem:[#allocation2 + $0x190] sm:$0xff] %vm73_vm0, %v1476_v11  ;;  %v1224_v24 = vmax.f32 %v1096_v15, %v1414_v7  ;;  %v1098_v26 = vmax.f32 %v1412_v59, %v1414_v7  ;;  %v1426_v59 = vld [vmem:[#allocation2 + $0x330] sm:$0xff]  ;;  %v1429_v10 = vld [vmem:[#allocation2 + $0x368] sm:$0xff] }
 0x110   :  { %4363 = vst.msk [vmem:[%s8709_s1 + $0x2b0] sm:$0xff] %vm73_vm0, %v1477_v16  ;;  %4364 = vst.msk [vmem:[%s8709_s1 + $0x2b8] sm:$0xff] %vm73_vm0, %v1478_v17  ;;  %v1480_v28 = vmax.f32 %v1351_v20, %v1416_v14  ;;  %v1352_v29 = vmax.f32 %v1223_v22, %v1415_v13  ;;  %v1099_v32 = vmax.f32 %v1413_v4, %v1415_v13 }
 0x111   :  { %1606 = vst.msk [vmem:[#allocation2 + $0x1a8] sm:$0xff] %vm73_vm0, %v1477_v16  ;;  %1607 = vst.msk [vmem:[#allocation2 + $0x1b0] sm:$0xff] %vm73_vm0, %v1478_v17  ;;  %v1100_v33 = vmax.f32 %v1414_v7, %v1416_v14  ;;  %v1353_v35 = vmax.f32 %v1224_v24, %v1416_v14  ;;  %v1225_v38 = vmax.f32 %v1097_v25, %v1415_v13  ;;  %v1430_v13 = vld [vmem:[#allocation2 + $0x370] sm:$0xff]  ;;  %v1431_v24 = vld [vmem:[#allocation2 + $0x388] sm:$0xff] }
 0x112   :  { %4365 = vst.msk [vmem:[%s8709_s1 + $0x2c0] sm:$0xff] %vm73_vm0, %v1479_v23  ;;  %1608 = vst.msk [vmem:[#allocation2 + $0x1c8] sm:$0xff] %vm73_vm0, %v1479_v23  ;;  %v1226_v40 = vmax.f32 %v1098_v26, %v1416_v14  ;;  %v1103_v27 = vmax.f32 %v5227_v21, %v5223_v18  ;;  %v1481_v43 = vmax.f32 %v1352_v29, %v1417_v30  ;;  %v1432_v26 = vld [vmem:[#allocation2 + $0x390] sm:$0xff] }
 0x113   :  { %4366 = vst.msk [vmem:[%s8709_s1 + $0x2c8] sm:$0xff] %vm73_vm0, %v1480_v28  ;;  %1609 = vst.msk [vmem:[#allocation2 + $0x1d0] sm:$0xff] %vm73_vm0, %v1480_v28  ;;  %v1227_v44 = vmax.f32 %v1099_v32, %v1417_v30  ;;  %v1228_v45 = vmax.f32 %v1100_v33, %v1418_v37  ;;  %v1104_v46 = vmax.f32 %v5233_v31, %v5225_v19 }
 0x114   :  { %v1482_v34 = vmax.f32 %v1353_v35, %v1418_v37  ;;  %v1354_v47 = vmax.f32 %v1225_v38, %v1417_v30  ;;  %v1355_v48 = vmax.f32 %v1226_v40, %v1418_v37  ;;  %v1231_v21 = vmax.f32 %v1103_v27, %v5243_v42  ;;  %4367 = vst.msk [vmem:[%s8709_s1 + $0x2d0] sm:$0xff] %vm73_vm0, %v1481_v43  ;;  %v1433_v35 = vld [vmem:[#allocation2 + $0x3a8] sm:$0xff]  ;;  %v1434_v37 = vld [vmem:[#allocation2 + $0x3b0] sm:$0xff] }
 0x115   :  { %v1356_v52 = vmax.f32 %v1227_v44, %v1419_v39  ;;  %1610 = vst.msk [vmem:[#allocation2 + $0x1e8] sm:$0xff] %vm73_vm0, %v1481_v43  ;;  %v1357_v49 = vmax.f32 %v1228_v45, %v1420_v41  ;;  %v1232_v53 = vmax.f32 %v1104_v46, %v5252_v50  ;;  %v1105_v31 = vmax.f32 %v5223_v18, %v5243_v42  ;;  %v1435_v43 = vld [vmem:[#allocation2 + $0x3c8] sm:$0xff]  ;;  %v1436_v46 = vld [vmem:[#allocation2 + $0x3d0] sm:$0xff] }
 0x116   :  { %4368 = vst.msk [vmem:[%s8709_s1 + $0x2d8] sm:$0xff] %vm73_vm0, %v1482_v34  ;;  %v1483_v55 = vmax.f32 %v1354_v47, %v1419_v39  ;;  %v1484_v56 = vmax.f32 %v1355_v48, %v1420_v41  ;;  %1611 = vst.msk [vmem:[#allocation2 + $0x1f0] sm:$0xff] %vm73_vm0, %v1482_v34  ;;  %v1360_v57 = vmax.f32 %v1231_v21, %v5254_v54 }
 0x117   :  { %v1106_v60 = vmax.f32 %v5225_v19, %v5252_v50  ;;  %v1485_v62 = vmax.f32 %v1356_v52, %v1421_v51  ;;  %v1486_v63 = vmax.f32 %v1357_v49, %v1422_v36  ;;  %v1361_v18 = vmax.f32 %v1232_v53, %v5271_v61  ;;  %v1437_v53 = vld [vmem:[#allocation2 + $0x3e8] sm:$0xff] }
 0x118   :  { %v1233_v0 = vmax.f32 %v1105_v31, %v5254_v54  ;;  %4369 = vst.msk [vmem:[%s8709_s1 + $0x2e0] sm:$0xff] %vm73_vm0, %v1483_v55  ;;  %4370 = vst.msk [vmem:[%s8709_s1 + $0x2e8] sm:$0xff] %vm73_vm0, %v1484_v56  ;;  %v1489_v19 = vmax.f32 %v1360_v57, %v1425_v58  ;;  %v1107_v2 = vmax.f32 %v5243_v42, %v5254_v54  ;;  %v1438_v57 = vld [vmem:[#allocation2 + $0x3f0] sm:$0xff] }
 0x119   :  { %1612 = vst.msk [vmem:[#allocation2 + $0x208] sm:$0xff] %vm73_vm0, %v1483_v55  ;;  %1613 = vst.msk [vmem:[#allocation2 + $0x210] sm:$0xff] %vm73_vm0, %v1484_v56  ;;  %v1234_v3 = vmax.f32 %v1106_v60, %v5271_v61  ;;  %v1108_v4 = vmax.f32 %v5252_v50, %v5271_v61  ;;  %v1490_v6 = vmax.f32 %v1361_v18, %v1426_v59 }
 0x11a   :  { %4371 = vst.msk [vmem:[%s8709_s1 + $0x2f0] sm:$0xff] %vm73_vm0, %v1485_v62  ;;  %1614 = vst.msk [vmem:[#allocation2 + $0x228] sm:$0xff] %vm73_vm0, %v1485_v62  ;;  %v1362_v7 = vmax.f32 %v1233_v0, %v1425_v58  ;;  %v1109_v42 = vmax.f32 %v5254_v54, %v1425_v58  ;;  %v1110_v50 = vmax.f32 %v5271_v61, %v1426_v59 }
 0x11b   :  { %4372 = vst.msk [vmem:[%s8709_s1 + $0x2f8] sm:$0xff] %vm73_vm0, %v1486_v63  ;;  %1615 = vst.msk [vmem:[#allocation2 + $0x230] sm:$0xff] %vm73_vm0, %v1486_v63  ;;  %v1363_v8 = vmax.f32 %v1234_v3, %v1426_v59  ;;  %v1235_v9 = vmax.f32 %v1107_v2, %v1425_v58  ;;  %v1236_v11 = vmax.f32 %v1108_v4, %v1426_v59 }
 0x11c   :  { %4375 = vst.msk [vmem:[%s8709_s1 + $0x610] sm:$0xff] %vm73_vm0, %v1489_v19  ;;  %1618 = vst.msk [vmem:[#allocation2 + $0x2e8] sm:$0xff] %vm73_vm0, %v1489_v19  ;;  %v1111_v12 = vmax.f32 %v1425_v58, %v1427_v1  ;;  %v1491_v54 = vmax.f32 %v1362_v7, %v1427_v1  ;;  %v1237_v61 = vmax.f32 %v1109_v42, %v1427_v1  ;;  %v1439_v19 = vld [vmem:[#allocation2 + $0x408] sm:$0xff] }
 0x11d   :  { %4376 = vst.msk [vmem:[%s8709_s1 + $0x618] sm:$0xff] %vm73_vm0, %v1490_v6  ;;  %1619 = vst.msk [vmem:[#allocation2 + $0x2f0] sm:$0xff] %vm73_vm0, %v1490_v6  ;;  %v1238_v14 = vmax.f32 %v1110_v50, %v1428_v5  ;;  %v1112_v15 = vmax.f32 %v1426_v59, %v1428_v5  ;;  %v1492_v16 = vmax.f32 %v1363_v8, %v1428_v5  ;;  %v1441_v50 = vld [vmem:[#allocation2 + $0x428] sm:$0xff]  ;;  %v1442_v8 = vld [vmem:[#allocation2 + $0x430] sm:$0xff] }
 0x11e   :  { %v1364_v17 = vmax.f32 %v1235_v9, %v1427_v1  ;;  %v1365_v20 = vmax.f32 %v1236_v11, %v1428_v5  ;;  %v1239_v22 = vmax.f32 %v1111_v12, %v1429_v10  ;;  %4377 = vst.msk [vmem:[%s8709_s1 + $0x620] sm:$0xff] %vm73_vm0, %v1491_v54  ;;  %v1366_v23 = vmax.f32 %v1237_v61, %v1429_v10 }
 0x11f   :  { %1620 = vst.msk [vmem:[#allocation2 + $0x308] sm:$0xff] %vm73_vm0, %v1491_v54  ;;  %v1367_v25 = vmax.f32 %v1238_v14, %v1430_v13  ;;  %v1240_v28 = vmax.f32 %v1112_v15, %v1430_v13  ;;  %v1113_v29 = vmax.f32 %v1427_v1, %v1429_v10  ;;  %4378 = vst.msk [vmem:[%s8709_s1 + $0x628] sm:$0xff] %vm73_vm0, %v1492_v16  ;;  %v1444_v15 = vld [vmem:[#allocation2 + $0x450] sm:$0xff] }
 0x120   :  { %v1493_v30 = vmax.f32 %v1364_v17, %v1429_v10  ;;  %v1494_v32 = vmax.f32 %v1365_v20, %v1430_v13  ;;  %1621 = vst.msk [vmem:[#allocation2 + $0x310] sm:$0xff] %vm73_vm0, %v1492_v16  ;;  %v1368_v33 = vmax.f32 %v1239_v22, %v1431_v24  ;;  %v1114_v38 = vmax.f32 %v1428_v5, %v1430_v13  ;;  %v1440_v5 = vld [vmem:[#allocation2 + $0x410] sm:$0xff] }
 0x121   :  { %v1495_v39 = vmax.f32 %v1366_v23, %v1431_v24  ;;  %v1496_v40 = vmax.f32 %v1367_v25, %v1432_v26  ;;  %v1369_v41 = vmax.f32 %v1240_v28, %v1432_v26  ;;  %v1241_v27 = vmax.f32 %v1113_v29, %v1431_v24  ;;  %v1445_v28 = vld [vmem:[#allocation2 + $0x468] sm:$0xff] }
 0x122   :  { %4379 = vst.msk [vmem:[%s8709_s1 + $0x630] sm:$0xff] %vm73_vm0, %v1493_v30  ;;  %4380 = vst.msk [vmem:[%s8709_s1 + $0x638] sm:$0xff] %vm73_vm0, %v1494_v32  ;;  %v1497_v44 = vmax.f32 %v1368_v33, %v1433_v35  ;;  %v1242_v45 = vmax.f32 %v1114_v38, %v1432_v26  ;;  %v1115_v34 = vmax.f32 %v1429_v10, %v1431_v24  ;;  %v1446_v33 = vld [vmem:[#allocation2 + $0x470] sm:$0xff] }
 0x123   :  { %1622 = vst.msk [vmem:[#allocation2 + $0x328] sm:$0xff] %vm73_vm0, %v1493_v30  ;;  %1623 = vst.msk [vmem:[#allocation2 + $0x330] sm:$0xff] %vm73_vm0, %v1494_v32  ;;  %v1116_v47 = vmax.f32 %v1430_v13, %v1432_v26  ;;  %v1498_v48 = vmax.f32 %v1369_v41, %v1434_v37  ;;  %v1370_v51 = vmax.f32 %v1241_v27, %v1433_v35  ;;  %v1443_v13 = vld [vmem:[#allocation2 + $0x448] sm:$0xff] }
 0x124   :  { %4381 = vst.msk [vmem:[%s8709_s1 + $0x640] sm:$0xff] %vm73_vm0, %v1495_v39  ;;  %4382 = vst.msk [vmem:[%s8709_s1 + $0x648] sm:$0xff] %vm73_vm0, %v1496_v40  ;;  %v1117_v36 = vmax.f32 %v1431_v24, %v1433_v35  ;;  %v1118_v21 = vmax.f32 %v1432_v26, %v1434_v37  ;;  %v1371_v52 = vmax.f32 %v1242_v45, %v1434_v37 }
 0x125   :  { %1624 = vst.msk [vmem:[#allocation2 + $0x348] sm:$0xff] %vm73_vm0, %v1495_v39  ;;  %1625 = vst.msk [vmem:[#allocation2 + $0x350] sm:$0xff] %vm73_vm0, %v1496_v40  ;;  %v1243_v49 = vmax.f32 %v1115_v34, %v1433_v35  ;;  %v1244_v31 = vmax.f32 %v1116_v47, %v1434_v37  ;;  %v1119_v55 = vmax.f32 %v1433_v35, %v1435_v43 }
 0x126   :  { %4383 = vst.msk [vmem:[%s8709_s1 + $0x650] sm:$0xff] %vm73_vm0, %v1497_v44  ;;  %1626 = vst.msk [vmem:[#allocation2 + $0x368] sm:$0xff] %vm73_vm0, %v1497_v44  ;;  %v1499_v56 = vmax.f32 %v1370_v51, %v1435_v43  ;;  %v1245_v58 = vmax.f32 %v1117_v36, %v1435_v43  ;;  %v1246_v59 = vmax.f32 %v1118_v21, %v1436_v46  ;;  %v1447_v44 = vld [vmem:[#allocation2 + $0x488] sm:$0xff] }
 0x127   :  { %4384 = vst.msk [vmem:[%s8709_s1 + $0x658] sm:$0xff] %vm73_vm0, %v1498_v48  ;;  %1627 = vst.msk [vmem:[#allocation2 + $0x370] sm:$0xff] %vm73_vm0, %v1498_v48  ;;  %v1120_v60 = vmax.f32 %v1434_v37, %v1436_v46  ;;  %v1500_v62 = vmax.f32 %v1371_v52, %v1436_v46  ;;  %v1372_v63 = vmax.f32 %v1243_v49, %v1435_v43 }
 0x128   :  { %v1373_v18 = vmax.f32 %v1244_v31, %v1436_v46  ;;  %v1247_v0 = vmax.f32 %v1119_v55, %v1437_v53  ;;  %4385 = vst.msk [vmem:[%s8709_s1 + $0x660] sm:$0xff] %vm73_vm0, %v1499_v56  ;;  %v1374_v1 = vmax.f32 %v1245_v58, %v1437_v53  ;;  %1628 = vst.msk [vmem:[#allocation2 + $0x388] sm:$0xff] %vm73_vm0, %v1499_v56  ;;  %v1451_v58 = vld [vmem:[#allocation2 + $0x4c8] sm:$0xff] }
 0x129   :  { %v1375_v3 = vmax.f32 %v1246_v59, %v1438_v57  ;;  %v1248_v2 = vmax.f32 %v1120_v60, %v1438_v57  ;;  %v1121_v4 = vmax.f32 %v1435_v43, %v1437_v53  ;;  %4386 = vst.msk [vmem:[%s8709_s1 + $0x668] sm:$0xff] %vm73_vm0, %v1500_v62  ;;  %v1501_v6 = vmax.f32 %v1372_v63, %v1437_v53 }
 0x12a   :  { %v1502_v7 = vmax.f32 %v1373_v18, %v1438_v57  ;;  %1629 = vst.msk [vmem:[#allocation2 + $0x390] sm:$0xff] %vm73_vm0, %v1500_v62  ;;  %v1376_v42 = vmax.f32 %v1247_v0, %v1439_v19  ;;  %v1122_v9 = vmax.f32 %v1436_v46, %v1438_v57  ;;  %v1503_v10 = vmax.f32 %v1374_v1, %v1439_v19  ;;  %v1448_v46 = vld [vmem:[#allocation2 + $0x490] sm:$0xff]  ;;  %v1453_v1 = vld [vmem:[#allocation2 + $0x4e8] sm:$0xff] }
 0x12b   :  { %v1504_v11 = vmax.f32 %v1375_v3, %v1440_v5  ;;  %v1377_v12 = vmax.f32 %v1248_v2, %v1440_v5  ;;  %v1249_v54 = vmax.f32 %v1121_v4, %v1439_v19  ;;  %4387 = vst.msk [vmem:[%s8709_s1 + $0x670] sm:$0xff] %vm73_vm0, %v1501_v6  ;;  %1630 = vst.msk [vmem:[#allocation2 + $0x3a8] sm:$0xff] %vm73_vm0, %v1501_v6  ;;  %v1452_v0 = vld [vmem:[#allocation2 + $0x4d0] sm:$0xff]  ;;  %v5640_v4 = vld [vmem:[#allocation2 + $0x66] sm:$0xff] }
 0x12c   :  { %4388 = vst.msk [vmem:[%s8709_s1 + $0x678] sm:$0xff] %vm73_vm0, %v1502_v7  ;;  %v1505_v61 = vmax.f32 %v1376_v42, %v1441_v50  ;;  %1631 = vst.msk [vmem:[#allocation2 + $0x3b0] sm:$0xff] %vm73_vm0, %v1502_v7  ;;  %v1250_v14 = vmax.f32 %v1122_v9, %v1440_v5  ;;  %v1123_v16 = vmax.f32 %v1437_v53, %v1439_v19  ;;  %v1449_v53 = vld [vmem:[#allocation2 + $0x4a8] sm:$0xff] }
 0x12d   :  { %v1124_v17 = vmax.f32 %v1438_v57, %v1440_v5  ;;  %4389 = vst.msk [vmem:[%s8709_s1 + $0x680] sm:$0xff] %vm73_vm0, %v1503_v10  ;;  %4390 = vst.msk [vmem:[%s8709_s1 + $0x688] sm:$0xff] %vm73_vm0, %v1504_v11  ;;  %v1506_v20 = vmax.f32 %v1377_v12, %v1442_v8  ;;  %v1378_v22 = vmax.f32 %v1249_v54, %v1441_v50  ;;  %v1450_v57 = vld [vmem:[#allocation2 + $0x4b0] sm:$0xff]  ;;  %v5644_v7 = vld [vmem:[#allocation2 + $0x67] sm:$0xff] }
 0x12e   :  { %1632 = vst.msk [vmem:[#allocation2 + $0x3c8] sm:$0xff] %vm73_vm0, %v1503_v10  ;;  %1633 = vst.msk [vmem:[#allocation2 + $0x3d0] sm:$0xff] %vm73_vm0, %v1504_v11  ;;  %v1125_v23 = vmax.f32 %v1439_v19, %v1441_v50  ;;  %v1126_v24 = vmax.f32 %v1440_v5, %v1442_v8  ;;  %v1379_v25 = vmax.f32 %v1250_v14, %v1442_v8  ;;  %v1454_v19 = vld [vmem:[#allocation2 + $0x4f0] sm:$0xff]  ;;  %v5657_v10 = vld [vmem:[#allocation2 + $0xa6] sm:$0xff] }
 0x12f   :  { %4391 = vst.msk [vmem:[%s8709_s1 + $0x690] sm:$0xff] %vm73_vm0, %v1505_v61  ;;  %v1251_v26 = vmax.f32 %v1123_v16, %v1441_v50  ;;  %1634 = vst.msk [vmem:[#allocation2 + $0x3e8] sm:$0xff] %vm73_vm0, %v1505_v61  ;;  %v1252_v29 = vmax.f32 %v1124_v17, %v1442_v8  ;;  %v1127_v30 = vmax.f32 %v1441_v50, %v1443_v13  ;;  %v5642_v6 = vld [vmem:[#allocation2 + $0x6e] sm:$0xff]  ;;  %v5669_v17 = vld [vmem:[#allocation2 + $0xc6] sm:$0xff] }
 0x130   :  { %4392 = vst.msk [vmem:[%s8709_s1 + $0x698] sm:$0xff] %vm73_vm0, %v1506_v20  ;;  %v1507_v32 = vmax.f32 %v1378_v22, %v1443_v13  ;;  %1635 = vst.msk [vmem:[#allocation2 + $0x3f0] sm:$0xff] %vm73_vm0, %v1506_v20  ;;  %v1253_v35 = vmax.f32 %v1125_v23, %v1443_v13  ;;  %v1254_v37 = vmax.f32 %v1126_v24, %v1444_v15  ;;  %v5646_v42 = vld [vmem:[#allocation2 + $0x6f] sm:$0xff]  ;;  %v5661_v12 = vld [vmem:[#allocation2 + $0x87] sm:$0xff] }
 0x131   :  { %v1128_v38 = vmax.f32 %v1442_v8, %v1444_v15  ;;  %v1508_v39 = vmax.f32 %v1379_v25, %v1444_v15  ;;  %v1380_v40 = vmax.f32 %v1251_v26, %v1443_v13  ;;  %v1381_v41 = vmax.f32 %v1252_v29, %v1444_v15  ;;  %v5653_v8 = vld [vmem:[#allocation2 + $0x86] sm:$0xff]  ;;  %v5655_v9 = vld [vmem:[#allocation2 + $0x8e] sm:$0xff]  ;;  %9002 = vst [vmem:[#allocation3_spill] sm:$0xff] %v5657_v10 }
 0x132   :  { %v1255_v27 = vmax.f32 %v1127_v30, %v1445_v28  ;;  %4393 = vst.msk [vmem:[%s8709_s1 + $0x6a0] sm:$0xff] %vm73_vm0, %v1507_v32  ;;  %v1382_v43 = vmax.f32 %v1253_v35, %v1445_v28  ;;  %1636 = vst.msk [vmem:[#allocation2 + $0x408] sm:$0xff] %vm73_vm0, %v1507_v32  ;;  %v1383_v45 = vmax.f32 %v1254_v37, %v1446_v33  ;;  %v5659_v11 = vld [vmem:[#allocation2 + $0xae] sm:$0xff]  ;;  %v5673_v22 = vld [vmem:[#allocation2 + $0xe6] sm:$0xff] }
 0x133   :  { %v1256_v34 = vmax.f32 %v1128_v38, %v1446_v33  ;;  %v1129_v47 = vmax.f32 %v1443_v13, %v1445_v28  ;;  %4394 = vst.msk [vmem:[%s8709_s1 + $0x6a8] sm:$0xff] %vm73_vm0, %v1508_v39  ;;  %v1509_v48 = vmax.f32 %v1380_v40, %v1445_v28  ;;  %v1510_v51 = vmax.f32 %v1381_v41, %v1446_v33  ;;  %v5663_v54 = vld [vmem:[#allocation2 + $0x8f] sm:$0xff]  ;;  %v5665_v13 = vld [vmem:[#allocation2 + $0xa7] sm:$0xff] }
 0x134   :  { %1637 = vst.msk [vmem:[#allocation2 + $0x410] sm:$0xff] %vm73_vm0, %v1508_v39  ;;  %v1384_v36 = vmax.f32 %v1255_v27, %v1447_v44  ;;  %v1130_v21 = vmax.f32 %v1444_v15, %v1446_v33  ;;  %v1511_v52 = vmax.f32 %v1382_v43, %v1447_v44  ;;  %v1512_v49 = vmax.f32 %v1383_v45, %v1448_v46  ;;  %v5667_v61 = vld [vmem:[#allocation2 + $0xaf] sm:$0xff]  ;;  %v5677_v24 = vld [vmem:[#allocation2 + $0xc7] sm:$0xff] }
 0x135   :  { %v1385_v31 = vmax.f32 %v1256_v34, %v1448_v46  ;;  %v1257_v55 = vmax.f32 %v1129_v47, %v1447_v44  ;;  %4395 = vst.msk [vmem:[%s8709_s1 + $0x6b0] sm:$0xff] %vm73_vm0, %v1509_v48  ;;  %4396 = vst.msk [vmem:[%s8709_s1 + $0x6b8] sm:$0xff] %vm73_vm0, %v1510_v51  ;;  %v1131_v60 = vmax.f32 %v1445_v28, %v1447_v44  ;;  %v5671_v20 = vld [vmem:[#allocation2 + $0xce] sm:$0xff]  ;;  %v5690_v29 = vld [vmem:[#allocation2 + $0x106] sm:$0xff] }
 0x136   :  { %v1513_v56 = vmax.f32 %v1384_v36, %v1449_v53  ;;  %1638 = vst.msk [vmem:[#allocation2 + $0x428] sm:$0xff] %vm73_vm0, %v1509_v48  ;;  %1639 = vst.msk [vmem:[#allocation2 + $0x430] sm:$0xff] %vm73_vm0, %v1510_v51  ;;  %v1258_v59 = vmax.f32 %v1130_v21, %v1448_v46  ;;  %v1132_v62 = vmax.f32 %v1446_v33, %v1448_v46  ;;  %v5675_v23 = vld [vmem:[#allocation2 + $0xee] sm:$0xff]  ;;  %v5694_v32 = vld [vmem:[#allocation2 + $0x126] sm:$0xff] }
 0x137   :  { %4397 = vst.msk [vmem:[%s8709_s1 + $0x6c0] sm:$0xff] %vm73_vm0, %v1511_v52  ;;  %4398 = vst.msk [vmem:[%s8709_s1 + $0x6c8] sm:$0xff] %vm73_vm0, %v1512_v49  ;;  %v1514_v63 = vmax.f32 %v1385_v31, %v1450_v57  ;;  %v1386_v18 = vmax.f32 %v1257_v55, %v1449_v53  ;;  %v1259_v5 = vmax.f32 %v1131_v60, %v1449_v53  ;;  %v5679_v25 = vld [vmem:[#allocation2 + $0xcf] sm:$0xff]  ;;  %v5681_v26 = vld [vmem:[#allocation2 + $0xe7] sm:$0xff] }
 0x138   :  { %1640 = vst.msk [vmem:[#allocation2 + $0x448] sm:$0xff] %vm73_vm0, %v1511_v52  ;;  %1641 = vst.msk [vmem:[#allocation2 + $0x450] sm:$0xff] %vm73_vm0, %v1512_v49  ;;  %v1387_v3 = vmax.f32 %v1258_v59, %v1450_v57  ;;  %v1260_v2 = vmax.f32 %v1132_v62, %v1450_v57  ;;  %v5683_v28 = vld [vmem:[#allocation2 + $0xef] sm:$0xff]  ;;  %v5698_v35 = vld [vmem:[#allocation2 + $0x107] sm:$0xff] }
 0x139   :  { %4399 = vst.msk [vmem:[%s8709_s1 + $0x6d0] sm:$0xff] %vm73_vm0, %v1513_v56  ;;  %1642 = vst.msk [vmem:[#allocation2 + $0x468] sm:$0xff] %vm73_vm0, %v1513_v56  ;;  %v1515_v50 = vmax.f32 %v1386_v18, %v1451_v58  ;;  %v1388_v15 = vmax.f32 %v1259_v5, %v1451_v58  ;;  %v5692_v30 = vld [vmem:[#allocation2 + $0x10e] sm:$0xff]  ;;  %v5711_v27 = vld [vmem:[#allocation2 + $0x146] sm:$0xff] }
 0x13a   :  { %4400 = vst.msk [vmem:[%s8709_s1 + $0x6d8] sm:$0xff] %vm73_vm0, %v1514_v63  ;;  %1643 = vst.msk [vmem:[#allocation2 + $0x470] sm:$0xff] %vm73_vm0, %v1514_v63  ;;  %v1516_v14 = vmax.f32 %v1387_v3, %v1452_v0  ;;  %v1389_v16 = vmax.f32 %v1260_v2, %v1452_v0  ;;  %v5696_v33 = vld [vmem:[#allocation2 + $0x12e] sm:$0xff]  ;;  %v5715_v44 = vld [vmem:[#allocation2 + $0x166] sm:$0xff] }
 0x13b   :  { %9003 = vst [vmem:[#allocation4_spill] sm:$0xff] %v5659_v11  ;;  %9004 = vst [vmem:[#allocation5_spill] sm:$0xff] %v5663_v54  ;;  %v5700_v37 = vld [vmem:[#allocation2 + $0x10f] sm:$0xff]  ;;  %v5702_v38 = vld [vmem:[#allocation2 + $0x127] sm:$0xff]  ;;  %v1517_v40 = vmax.f32 %v1388_v15, %v1453_v1 }
 0x13c   :  { %9005 = vst [vmem:[#allocation6_spill] sm:$0xff] %v5665_v13  ;;  %9006 = vst [vmem:[#allocation7_spill] sm:$0xff] %v5667_v61  ;;  %v5704_v39 = vld [vmem:[#allocation2 + $0x12f] sm:$0xff]  ;;  %v1518_v41 = vmax.f32 %v1389_v16, %v1454_v19  ;;  %v5719_v46 = vld [vmem:[#allocation2 + $0x147] sm:$0xff] }
 0x13d   :  { %9007 = vst [vmem:[#allocation8_spill] sm:$0xff] %v5669_v17  ;;  %9008 = vst [vmem:[#allocation9_spill] sm:$0xff] %v5671_v20  ;;  %v5713_v43 = vld [vmem:[#allocation2 + $0x14e] sm:$0xff]  ;;  %v5727_v51 = vld [vmem:[#allocation2 + $0x186] sm:$0xff] }
 0x13e   :  { %9009 = vst [vmem:[#allocation10_spill] sm:$0xff] %v5673_v22  ;;  %9010 = vst [vmem:[#allocation11_spill] sm:$0xff] %v5675_v23  ;;  %v5717_v45 = vld [vmem:[#allocation2 + $0x16e] sm:$0xff]  ;;  %v5731_v21 = vld [vmem:[#allocation2 + $0x1a6] sm:$0xff] }
 0x13f   :  { %9011 = vst [vmem:[#allocation12_spill] sm:$0xff] %v5677_v24  ;;  %9012 = vst [vmem:[#allocation13_spill] sm:$0xff] %v5679_v25  ;;  %v5721_v34 = vld [vmem:[#allocation2 + $0x14f] sm:$0xff]  ;;  %v5723_v47 = vld [vmem:[#allocation2 + $0x167] sm:$0xff] }
 0x140   :  { %9013 = vst [vmem:[#allocation14_spill] sm:$0xff] %v5681_v26  ;;  %9014 = vst [vmem:[#allocation15_spill] sm:$0xff] %v5683_v28  ;;  %v5725_v48 = vld [vmem:[#allocation2 + $0x16f] sm:$0xff]  ;;  %v5735_v49 = vld [vmem:[#allocation2 + $0x187] sm:$0xff] }
 0x141   :  { %4401 = vst.msk [vmem:[%s8709_s1 + $0x6e0] sm:$0xff] %vm73_vm0, %v1515_v50  ;;  %1644 = vst.msk [vmem:[#allocation2 + $0x488] sm:$0xff] %vm73_vm0, %v1515_v50  ;;  %v5729_v36 = vld [vmem:[#allocation2 + $0x18e] sm:$0xff]  ;;  %v5757_v58 = vld [vmem:[#allocation2 + $0x1c6] sm:$0xff] }
 0x142   :  { %9015 = vst [vmem:[#allocation16_spill] sm:$0xff] %v5690_v29  ;;  %9016 = vst [vmem:[#allocation17_spill] sm:$0xff] %v5692_v30  ;;  %v5733_v52 = vld [vmem:[#allocation2 + $0x1ae] sm:$0xff]  ;;  %v5761_v60 = vld [vmem:[#allocation2 + $0x1e6] sm:$0xff] }
 0x143   :  { %9017 = vst [vmem:[#allocation18_spill] sm:$0xff] %v5694_v32  ;;  %9018 = vst [vmem:[#allocation19_spill] sm:$0xff] %v5696_v33  ;;  %v5737_v53 = vld [vmem:[#allocation2 + $0x18f] sm:$0xff]  ;;  %v5739_v31 = vld [vmem:[#allocation2 + $0x1a7] sm:$0xff] }
 0x144   :  { %9019 = vst [vmem:[#allocation20_spill] sm:$0xff] %v5698_v35  ;;  %9020 = vst [vmem:[#allocation21_spill] sm:$0xff] %v5700_v37  ;;  %v5741_v55 = vld [vmem:[#allocation2 + $0x1af] sm:$0xff]  ;;  %v5765_v63 = vld [vmem:[#allocation2 + $0x1c7] sm:$0xff] }
 0x145   :  { %9021 = vst [vmem:[#allocation22_spill] sm:$0xff] %v5702_v38  ;;  %9022 = vst [vmem:[#allocation23_spill] sm:$0xff] %v5704_v39  ;;  %v5759_v59 = vld [vmem:[#allocation2 + $0x1ce] sm:$0xff]  ;;  %v5781_v50 = vld [vmem:[#allocation2 + $0x206] sm:$0xff] }
 0x146   :  { %4402 = vst.msk [vmem:[%s8709_s1 + $0x6e8] sm:$0xff] %vm73_vm0, %v1516_v14  ;;  %1645 = vst.msk [vmem:[#allocation2 + $0x490] sm:$0xff] %vm73_vm0, %v1516_v14  ;;  %v5763_v62 = vld [vmem:[#allocation2 + $0x1ee] sm:$0xff]  ;;  %v5785_v15 = vld [vmem:[#allocation2 + $0x226] sm:$0xff] }
 0x147   :  { %9023 = vst [vmem:[#allocation24_spill] sm:$0xff] %v5711_v27  ;;  %9024 = vst [vmem:[#allocation25_spill] sm:$0xff] %v5713_v43  ;;  %v5767_v18 = vld [vmem:[#allocation2 + $0x1cf] sm:$0xff]  ;;  %v5769_v0 = vld [vmem:[#allocation2 + $0x1e7] sm:$0xff] }
 0x148   :  { %9025 = vst [vmem:[#allocation26_spill] sm:$0xff] %v5715_v44  ;;  %9026 = vst [vmem:[#allocation27_spill] sm:$0xff] %v5717_v45  ;;  %v5771_v1 = vld [vmem:[#allocation2 + $0x1ef] sm:$0xff]  ;;  %v5793_v19 = vld [vmem:[#allocation2 + $0x227] sm:$0xff] }
 0x149   :  { %9027 = vst [vmem:[#allocation28_spill] sm:$0xff] %v5719_v46  ;;  %9028 = vst [vmem:[#allocation29_spill] sm:$0xff] %v5721_v34  ;;  %v5783_v14 = vld [vmem:[#allocation2 + $0x20e] sm:$0xff]  ;;  %v5805_v61 = vld [vmem:[#allocation2 + $0x2e6] sm:$0xff] }
 0x14a   :  { %9029 = vst [vmem:[#allocation30_spill] sm:$0xff] %v5723_v47  ;;  %9030 = vst [vmem:[#allocation31_spill] sm:$0xff] %v5725_v48  ;;  %v5787_v16 = vld [vmem:[#allocation2 + $0x22e] sm:$0xff]  ;;  %v5809_v13 = vld [vmem:[#allocation2 + $0x306] sm:$0xff] }
 0x14b   :  { %9031 = vst [vmem:[#allocation32_spill] sm:$0xff] %v5727_v51  ;;  %9032 = vst [vmem:[#allocation33_spill] sm:$0xff] %v5729_v36  ;;  %v5795_v3 = vld [vmem:[#allocation2 + $0x22f] sm:$0xff]  ;;  %v5813_v54 = vld [vmem:[#allocation2 + $0x2e7] sm:$0xff] }
 0x14c   :  { %9033 = vst [vmem:[#allocation34_spill] sm:$0xff] %v5731_v21  ;;  %9034 = vst [vmem:[#allocation35_spill] sm:$0xff] %v5733_v52  ;;  %v5807_v11 = vld [vmem:[#allocation2 + $0x2ee] sm:$0xff]  ;;  %v5829_v26 = vld [vmem:[#allocation2 + $0x326] sm:$0xff] }
 0x14d   :  { %9035 = vst [vmem:[#allocation36_spill] sm:$0xff] %v5735_v49  ;;  %9036 = vst [vmem:[#allocation37_spill] sm:$0xff] %v5737_v53  ;;  %v5811_v10 = vld [vmem:[#allocation2 + $0x30e] sm:$0xff]  ;;  %v5833_v25 = vld [vmem:[#allocation2 + $0x346] sm:$0xff] }
 0x14e   :  { %9037 = vst [vmem:[#allocation38_spill] sm:$0xff] %v5739_v31  ;;  %9038 = vst [vmem:[#allocation39_spill] sm:$0xff] %v5741_v55  ;;  %v5815_v5 = vld [vmem:[#allocation2 + $0x2ef] sm:$0xff]  ;;  %v5817_v24 = vld [vmem:[#allocation2 + $0x307] sm:$0xff] }
 0x14f   :  { %4403 = vst.msk [vmem:[%s8709_s1 + $0x6f0] sm:$0xff] %vm73_vm0, %v1517_v40  ;;  %1646 = vst.msk [vmem:[#allocation2 + $0x4a8] sm:$0xff] %vm73_vm0, %v1517_v40  ;;  %v5789_v40 = vld [vmem:[#allocation2 + $0x207] sm:$0xff]  ;;  %v5819_v2 = vld [vmem:[#allocation2 + $0x30f] sm:$0xff] }
 0x150   :  { %4404 = vst.msk [vmem:[%s8709_s1 + $0x6f8] sm:$0xff] %vm73_vm0, %v1518_v41  ;;  %1647 = vst.msk [vmem:[#allocation2 + $0x4b0] sm:$0xff] %vm73_vm0, %v1518_v41  ;;  %v5791_v41 = vld [vmem:[#allocation2 + $0x20f] sm:$0xff]  ;;  %v5837_v17 = vld [vmem:[#allocation2 + $0x327] sm:$0xff] }
 0x151   :  { %9039 = vst [vmem:[#allocation40_spill] sm:$0xff] %v5757_v58  ;;  %9040 = vst [vmem:[#allocation41_spill] sm:$0xff] %v5759_v59  ;;  %v5831_v22 = vld [vmem:[#allocation2 + $0x32e] sm:$0xff]  ;;  %v5853_v38 = vld [vmem:[#allocation2 + $0x366] sm:$0xff] }
 0x152   :  { %9041 = vst [vmem:[#allocation42_spill] sm:$0xff] %v5761_v60  ;;  %9042 = vst [vmem:[#allocation43_spill] sm:$0xff] %v5763_v62  ;;  %v5835_v20 = vld [vmem:[#allocation2 + $0x34e] sm:$0xff]  ;;  %v5857_v37 = vld [vmem:[#allocation2 + $0x386] sm:$0xff] }
 0x153   :  { %9043 = vst [vmem:[#allocation44_spill] sm:$0xff] %v5765_v63  ;;  %9044 = vst [vmem:[#allocation45_spill] sm:$0xff] %v5767_v18  ;;  %v5839_v57 = vld [vmem:[#allocation2 + $0x32f] sm:$0xff]  ;;  %v5841_v35 = vld [vmem:[#allocation2 + $0x347] sm:$0xff] }
 0x154   :  { %9045 = vst [vmem:[#allocation46_spill] sm:$0xff] %v5769_v0  ;;  %9046 = vst [vmem:[#allocation47_spill] sm:$0xff] %v5771_v1  ;;  %v5843_v56 = vld [vmem:[#allocation2 + $0x34f] sm:$0xff]  ;;  %v5861_v29 = vld [vmem:[#allocation2 + $0x367] sm:$0xff] }
 0x155   :  { %9047 = vst [vmem:[#allocation48_spill] sm:$0xff] %v5785_v15  ;;  %9048 = vst [vmem:[#allocation49_spill] sm:$0xff] %v5787_v16  ;;  %v5855_v32 = vld [vmem:[#allocation2 + $0x36e] sm:$0xff]  ;;  %v5877_v47 = vld [vmem:[#allocation2 + $0x3a6] sm:$0xff] }
 0x156   :  { %9049 = vst [vmem:[#allocation50_spill] sm:$0xff] %v5789_v40  ;;  %9050 = vst [vmem:[#allocation51_spill] sm:$0xff] %v5791_v41  ;;  %v5859_v30 = vld [vmem:[#allocation2 + $0x38e] sm:$0xff]  ;;  %v5881_v34 = vld [vmem:[#allocation2 + $0x3c6] sm:$0xff] }
 0x157   :  { %9051 = vst [vmem:[#allocation52_spill] sm:$0xff] %v5793_v19  ;;  %9052 = vst [vmem:[#allocation53_spill] sm:$0xff] %v5795_v3  ;;  %v5863_v28 = vld [vmem:[#allocation2 + $0x36f] sm:$0xff]  ;;  %v5865_v46 = vld [vmem:[#allocation2 + $0x387] sm:$0xff] }
 0x158   :  { %9053 = vst [vmem:[#allocation54_spill] sm:$0xff] %v5809_v13  ;;  %9054 = vst [vmem:[#allocation55_spill] sm:$0xff] %v5811_v10  ;;  %v5867_v23 = vld [vmem:[#allocation2 + $0x38f] sm:$0xff]  ;;  %v5885_v27 = vld [vmem:[#allocation2 + $0x3a7] sm:$0xff] }
 0x159   :  { %9055 = vst [vmem:[#allocation56_spill] sm:$0xff] %v5817_v24  ;;  %9056 = vst [vmem:[#allocation57_spill] sm:$0xff] %v5819_v2  ;;  %v5879_v44 = vld [vmem:[#allocation2 + $0x3ae] sm:$0xff]  ;;  %v5901_v31 = vld [vmem:[#allocation2 + $0x3e6] sm:$0xff] }
 0x15a   :  { %9057 = vst [vmem:[#allocation58_spill] sm:$0xff] %v5835_v20  ;;  %9058 = vst [vmem:[#allocation59_spill] sm:$0xff] %v5841_v35  ;;  %v5883_v43 = vld [vmem:[#allocation2 + $0x3ce] sm:$0xff]  ;;  %v5905_v53 = vld [vmem:[#allocation2 + $0x406] sm:$0xff] }
 0x15b   :  { %9059 = vst [vmem:[#allocation60_spill] sm:$0xff] %v5843_v56  ;;  %9060 = vst [vmem:[#allocation61_spill] sm:$0xff] %v5859_v30  ;;  %v5887_v39 = vld [vmem:[#allocation2 + $0x3af] sm:$0xff]  ;;  %v5889_v49 = vld [vmem:[#allocation2 + $0x3c7] sm:$0xff] }
 0x15c   :  { %9061 = vst [vmem:[#allocation62_spill] sm:$0xff] %v5865_v46  ;;  %9062 = vst [vmem:[#allocation63_spill] sm:$0xff] %v5867_v23  ;;  %v5891_v33 = vld [vmem:[#allocation2 + $0x3cf] sm:$0xff]  ;;  %v5909_v51 = vld [vmem:[#allocation2 + $0x3e7] sm:$0xff] }
 0x15d   :  { %9063 = vst [vmem:[#allocation64_spill] sm:$0xff] %v5883_v43  ;;  %9064 = vst [vmem:[#allocation65_spill] sm:$0xff] %v5889_v49  ;;  %v5903_v21 = vld [vmem:[#allocation2 + $0x3ee] sm:$0xff]  ;;  %v5925_v0 = vld [vmem:[#allocation2 + $0x426] sm:$0xff]  ;;  %v9087_v43 = vmax.f32 %v5642_v6, %v5646_v42 }
 0x15e   :  { %9065 = vst [vmem:[#allocation66_spill] sm:$0xff] %v5891_v33  ;;  %9066 = vst [vmem:[#allocation67_spill] sm:$0xff] %v5903_v21  ;;  %v5907_v36 = vld [vmem:[#allocation2 + $0x40e] sm:$0xff]  ;;  %v5929_v18 = vld [vmem:[#allocation2 + $0x446] sm:$0xff]  ;;  %v9085_v33 = vmax.f32 %v5640_v4, %v5644_v7 }
 0x15f   :  { %v5911_v48 = vld [vmem:[#allocation2 + $0x3ef] sm:$0xff]  ;;  %v5913_v63 = vld [vmem:[#allocation2 + $0x407] sm:$0xff]  ;;  %9070 = vst [vmem:[#allocation71_spill] sm:$0xff] %v5929_v18 }
 0x160   :  { %9067 = vst [vmem:[#allocation68_spill] sm:$0xff] %v5911_v48  ;;  %9068 = vst [vmem:[#allocation69_spill] sm:$0xff] %v5913_v63  ;;  %v5915_v45 = vld [vmem:[#allocation2 + $0x40f] sm:$0xff]  ;;  %v5933_v58 = vld [vmem:[#allocation2 + $0x427] sm:$0xff] }
 0x161   :  { %9069 = vst [vmem:[#allocation70_spill] sm:$0xff] %v5915_v45  ;;  %v5927_v60 = vld [vmem:[#allocation2 + $0x42e] sm:$0xff]  ;;  %v5947_v16 = vld [vmem:[#allocation2 + $0x466] sm:$0xff] }
 0x162   :  { %v5931_v59 = vld [vmem:[#allocation2 + $0x44e] sm:$0xff]  ;;  %9073 = vst [vmem:[#allocation74_spill] sm:$0xff] %v5947_v16  ;;  %v5963_v2 = vld [vmem:[#allocation2 + $0x486] sm:$0xff] }
 0x163   :  { %9071 = vst [vmem:[#allocation72_spill] sm:$0xff] %v5931_v59  ;;  %v5935_v55 = vld [vmem:[#allocation2 + $0x42f] sm:$0xff]  ;;  %v5937_v40 = vld [vmem:[#allocation2 + $0x447] sm:$0xff]  ;;  %9076 = vst [vmem:[#allocation77_spill] sm:$0xff] %v5963_v2  ;;  %v9089_v59 = vmax.f32 %v5653_v8, %v5661_v12 }
 0x164   :  { %9072 = vst [vmem:[#allocation73_spill] sm:$0xff] %v5937_v40  ;;  %v5949_v19 = vld [vmem:[#allocation2 + $0x46e] sm:$0xff]  ;;  %v5979_v3 = vld [vmem:[#allocation2 + $0x4a6] sm:$0xff] }
 0x165   :  { %v5951_v15 = vld [vmem:[#allocation2 + $0x44f] sm:$0xff]  ;;  %v5953_v41 = vld [vmem:[#allocation2 + $0x467] sm:$0xff]  ;;  %9080 = vst [vmem:[#allocation81_spill] sm:$0xff] %v5979_v3 }
 0x166   :  { %9074 = vst [vmem:[#allocation75_spill] sm:$0xff] %v5951_v15  ;;  %9075 = vst [vmem:[#allocation76_spill] sm:$0xff] %v5953_v41  ;;  %v5965_v10 = vld [vmem:[#allocation2 + $0x46f] sm:$0xff]  ;;  %v5967_v24 = vld [vmem:[#allocation2 + $0x487] sm:$0xff] }
 0x167   :  { %9077 = vst [vmem:[#allocation78_spill] sm:$0xff] %v5965_v10  ;;  %9078 = vst [vmem:[#allocation79_spill] sm:$0xff] %v5967_v24  ;;  %v5977_v35 = vld [vmem:[#allocation2 + $0x48e] sm:$0xff]  ;;  %v9094_v7 = vld [vmem:[#allocation3_spill] sm:$0xff] }
 0x168   :  { %9079 = vst [vmem:[#allocation80_spill] sm:$0xff] %v5977_v35  ;;  %v5981_v56 = vld [vmem:[#allocation2 + $0x48f] sm:$0xff]  ;;  %v5993_v52 = vld [vmem:[#allocation2 + $0x4a7] sm:$0xff] }
 0x169   :  { %9081 = vst [vmem:[#allocation82_spill] sm:$0xff] %v5981_v56  ;;  %v5991_v46 = vld [vmem:[#allocation2 + $0x4ae] sm:$0xff]  ;;  %9083 = vst [vmem:[#allocation84_spill] sm:$0xff] %v5993_v52 }
 0x16a   :  { %9082 = vst [vmem:[#allocation83_spill] sm:$0xff] %v5991_v46  ;;  %v5995_v23 = vld [vmem:[#allocation2 + $0x4af] sm:$0xff] }
 0x16b   :  { %9084 = vst [vmem:[#allocation85_spill] sm:$0xff] %v5995_v23  ;;  %v1842_v49 = vld [vmem:[#allocation2 + $0x68] sm:$0xff]  ;;  %v1843_v62 = vld [vmem:[#allocation2 + $0x70] sm:$0xff] }
 0x16c   :  { %v1844_v48 = vld [vmem:[#allocation2 + $0x88] sm:$0xff]  ;;  %v1845_v21 = vld [vmem:[#allocation2 + $0x90] sm:$0xff]  ;;  %v6028_v24 = vmax.f32 %v9085_v33, %v1842_v49  ;;  %v6033_v56 = vmax.f32 %v9087_v43, %v1843_v62  ;;  %v9095_v33 = vld [vmem:[#allocation6_spill] sm:$0xff] }
 0x16d   :  { %v1846_v13 = vld [vmem:[#allocation2 + $0xa8] sm:$0xff]  ;;  %v1847_v63 = vld [vmem:[#allocation2 + $0xb0] sm:$0xff]  ;;  %v6038_v23 = vmax.f32 %v9089_v59, %v1844_v48  ;;  %v9096_v49 = vmax.f32 %v9094_v7, %v9095_v33  ;;  %v9099_v43 = vld [vmem:[#allocation7_spill] sm:$0xff] }
 0x16e   :  { %v1848_v30 = vld [vmem:[#allocation2 + $0xc8] sm:$0xff]  ;;  %v1849_v40 = vld [vmem:[#allocation2 + $0xd0] sm:$0xff]  ;;  %9086 = vst [vmem:[#allocation86_spill] sm:$0xff] %v6028_v24  ;;  %9088 = vst [vmem:[#allocation87_spill] sm:$0xff] %v6033_v56 }
 0x16f   :  { %v1850_v18 = vld [vmem:[#allocation2 + $0xe8] sm:$0xff]  ;;  %v1851_v20 = vld [vmem:[#allocation2 + $0xf0] sm:$0xff]  ;;  %9090 = vst [vmem:[#allocation88_spill] sm:$0xff] %v6038_v23  ;;  %v6048_v6 = vmax.f32 %v9096_v49, %v1846_v13  ;;  %v9110_v13 = vld [vmem:[#allocation10_spill] sm:$0xff] }
 0x170   :  { %v1852_v1 = vld [vmem:[#allocation2 + $0x108] sm:$0xff]  ;;  %v1853_v41 = vld [vmem:[#allocation2 + $0x110] sm:$0xff]  ;;  %v9111_v33 = vld [vmem:[#allocation14_spill] sm:$0xff] }
 0x171   :  { %v1854_v16 = vld [vmem:[#allocation2 + $0x128] sm:$0xff]  ;;  %v1855_v45 = vld [vmem:[#allocation2 + $0x130] sm:$0xff]  ;;  %9097 = vst [vmem:[#allocation3_spill] sm:$0xff] %v6048_v6  ;;  %v9112_v49 = vmax.f32 %v9110_v13, %v9111_v33  ;;  %v9127_v33 = vld [vmem:[#allocation22_spill] sm:$0xff] }
 0x172   :  { %v1856_v35 = vld [vmem:[#allocation2 + $0x148] sm:$0xff]  ;;  %v1857_v2 = vld [vmem:[#allocation2 + $0x150] sm:$0xff] }
 0x173   :  { %v1858_v15 = vld [vmem:[#allocation2 + $0x168] sm:$0xff]  ;;  %v1859_v52 = vld [vmem:[#allocation2 + $0x170] sm:$0xff] }
 0x174   :  { %v9091_v46 = vld [vmem:[#allocation5_spill] sm:$0xff]  ;;  %v9098_v42 = vld [vmem:[#allocation4_spill] sm:$0xff] }
 0x175   :  { %v9092_v3 = vmax.f32 %v5655_v9, %v9091_v46  ;;  %v9100_v62 = vmax.f32 %v9098_v42, %v9099_v43  ;;  %v1860_v24 = vld [vmem:[#allocation2 + $0x188] sm:$0xff]  ;;  %v1861_v10 = vld [vmem:[#allocation2 + $0x190] sm:$0xff]  ;;  %v6068_v42 = vmax.f32 %v9112_v49, %v1850_v18  ;;  %v9115_v43 = vld [vmem:[#allocation15_spill] sm:$0xff] }
 0x176   :  { %v1862_v8 = vld [vmem:[#allocation2 + $0x1a8] sm:$0xff]  ;;  %v1863_v12 = vld [vmem:[#allocation2 + $0x1b0] sm:$0xff]  ;;  %v9126_v18 = vld [vmem:[#allocation18_spill] sm:$0xff] }
 0x177   :  { %v6043_v4 = vmax.f32 %v9092_v3, %v1845_v21  ;;  %v6053_v56 = vmax.f32 %v9100_v62, %v1847_v63  ;;  %v9102_v48 = vld [vmem:[#allocation8_spill] sm:$0xff]  ;;  %v9106_v46 = vld [vmem:[#allocation9_spill] sm:$0xff]  ;;  %v9114_v63 = vld [vmem:[#allocation11_spill] sm:$0xff]  ;;  %v9128_v49 = vmax.f32 %v9126_v18, %v9127_v33 }
 0x178   :  { %v9103_v59 = vld [vmem:[#allocation12_spill] sm:$0xff]  ;;  %v9107_v21 = vld [vmem:[#allocation13_spill] sm:$0xff]  ;;  %9113 = vst [vmem:[#allocation8_spill] sm:$0xff] %v6068_v42  ;;  %v9116_v62 = vmax.f32 %v9114_v63, %v9115_v43  ;;  %v9131_v43 = vld [vmem:[#allocation23_spill] sm:$0xff] }
 0x179   :  { %9093 = vst [vmem:[#allocation5_spill] sm:$0xff] %v6043_v4  ;;  %9101 = vst [vmem:[#allocation6_spill] sm:$0xff] %v6053_v56  ;;  %v9104_v23 = vmax.f32 %v9102_v48, %v9103_v59  ;;  %v9108_v3 = vmax.f32 %v9106_v46, %v9107_v21  ;;  %v1864_v6 = vld [vmem:[#allocation2 + $0x1c8] sm:$0xff]  ;;  %v1865_v4 = vld [vmem:[#allocation2 + $0x1d0] sm:$0xff]  ;;  %v6088_v63 = vmax.f32 %v9128_v49, %v1854_v16 }
 0x17a   :  { %v6073_v56 = vmax.f32 %v9116_v62, %v1851_v20  ;;  %v1866_v48 = vld [vmem:[#allocation2 + $0x1e8] sm:$0xff]  ;;  %v9123_v21 = vld [vmem:[#allocation21_spill] sm:$0xff]  ;;  %v9130_v20 = vld [vmem:[#allocation19_spill] sm:$0xff] }
 0x17b   :  { %v6058_v9 = vmax.f32 %v9104_v23, %v1848_v30  ;;  %v6063_v7 = vmax.f32 %v9108_v3, %v1849_v40  ;;  %v1867_v23 = vld [vmem:[#allocation2 + $0x1f0] sm:$0xff]  ;;  %v9118_v30 = vld [vmem:[#allocation16_spill] sm:$0xff]  ;;  %9129 = vst [vmem:[#allocation10_spill] sm:$0xff] %v6088_v63  ;;  %v9132_v62 = vmax.f32 %v9130_v20, %v9131_v43  ;;  %v9142_v16 = vld [vmem:[#allocation26_spill] sm:$0xff] }
 0x17c   :  { %9117 = vst [vmem:[#allocation12_spill] sm:$0xff] %v6073_v56  ;;  %v9119_v59 = vld [vmem:[#allocation20_spill] sm:$0xff]  ;;  %v9122_v40 = vld [vmem:[#allocation17_spill] sm:$0xff]  ;;  %v9143_v33 = vld [vmem:[#allocation30_spill] sm:$0xff] }
 0x17d   :  { %9105 = vst [vmem:[#allocation4_spill] sm:$0xff] %v6058_v9  ;;  %9109 = vst [vmem:[#allocation7_spill] sm:$0xff] %v6063_v7  ;;  %v9120_v9 = vmax.f32 %v9118_v30, %v9119_v59  ;;  %v9124_v3 = vmax.f32 %v9122_v40, %v9123_v21  ;;  %v6093_v56 = vmax.f32 %v9132_v62, %v1855_v45  ;;  %v1868_v42 = vld [vmem:[#allocation2 + $0x208] sm:$0xff]  ;;  %v1869_v7 = vld [vmem:[#allocation2 + $0x210] sm:$0xff] }
 0x17e   :  { %v1870_v30 = vld [vmem:[#allocation2 + $0x228] sm:$0xff]  ;;  %v9139_v21 = vld [vmem:[#allocation29_spill] sm:$0xff]  ;;  %v9144_v49 = vmax.f32 %v9142_v16, %v9143_v33  ;;  %v9146_v45 = vld [vmem:[#allocation27_spill] sm:$0xff] }
 0x17f   :  { %v6078_v46 = vmax.f32 %v9120_v9, %v1852_v1  ;;  %v6083_v13 = vmax.f32 %v9124_v3, %v1853_v41  ;;  %9133 = vst [vmem:[#allocation14_spill] sm:$0xff] %v6093_v56  ;;  %v1871_v1 = vld [vmem:[#allocation2 + $0x230] sm:$0xff]  ;;  %v9134_v9 = vld [vmem:[#allocation24_spill] sm:$0xff]  ;;  %v9147_v43 = vld [vmem:[#allocation31_spill] sm:$0xff] }
 0x180   :  { %v9135_v59 = vld [vmem:[#allocation28_spill] sm:$0xff]  ;;  %v9138_v41 = vld [vmem:[#allocation25_spill] sm:$0xff]  ;;  %v6108_v20 = vmax.f32 %v9144_v49, %v1858_v15  ;;  %v9148_v62 = vmax.f32 %v9146_v45, %v9147_v43  ;;  %v9158_v15 = vld [vmem:[#allocation34_spill] sm:$0xff] }
 0x181   :  { %9121 = vst [vmem:[#allocation9_spill] sm:$0xff] %v6078_v46  ;;  %9125 = vst [vmem:[#allocation13_spill] sm:$0xff] %v6083_v13  ;;  %v9136_v46 = vmax.f32 %v9134_v9, %v9135_v59  ;;  %v9140_v3 = vmax.f32 %v9138_v41, %v9139_v21  ;;  %v1874_v63 = vld [vmem:[#allocation2 + $0x2e8] sm:$0xff]  ;;  %v1875_v13 = vld [vmem:[#allocation2 + $0x2f0] sm:$0xff] }
 0x182   :  { %9145 = vst [vmem:[#allocation16_spill] sm:$0xff] %v6108_v20  ;;  %v6113_v56 = vmax.f32 %v9148_v62, %v1859_v52  ;;  %v1876_v9 = vld [vmem:[#allocation2 + $0x308] sm:$0xff]  ;;  %v9155_v21 = vld [vmem:[#allocation37_spill] sm:$0xff]  ;;  %v9159_v33 = vld [vmem:[#allocation38_spill] sm:$0xff] }
 0x183   :  { %v6098_v40 = vmax.f32 %v9136_v46, %v1856_v35  ;;  %v6103_v18 = vmax.f32 %v9140_v3, %v1857_v2  ;;  %v1877_v35 = vld [vmem:[#allocation2 + $0x310] sm:$0xff]  ;;  %v9150_v46 = vld [vmem:[#allocation32_spill] sm:$0xff]  ;;  %v9160_v49 = vmax.f32 %v9158_v15, %v9159_v33  ;;  %v9162_v52 = vld [vmem:[#allocation35_spill] sm:$0xff] }
 0x184   :  { %9149 = vst [vmem:[#allocation20_spill] sm:$0xff] %v6113_v56  ;;  %v9151_v59 = vld [vmem:[#allocation36_spill] sm:$0xff]  ;;  %v9154_v2 = vld [vmem:[#allocation33_spill] sm:$0xff]  ;;  %v9163_v43 = vld [vmem:[#allocation39_spill] sm:$0xff] }
 0x185   :  { %9137 = vst [vmem:[#allocation11_spill] sm:$0xff] %v6098_v40  ;;  %9141 = vst [vmem:[#allocation15_spill] sm:$0xff] %v6103_v18  ;;  %v9152_v40 = vmax.f32 %v9150_v46, %v9151_v59  ;;  %v9156_v3 = vmax.f32 %v9154_v2, %v9155_v21  ;;  %v6128_v45 = vmax.f32 %v9160_v49, %v1862_v8  ;;  %v1878_v20 = vld [vmem:[#allocation2 + $0x328] sm:$0xff]  ;;  %v1879_v18 = vld [vmem:[#allocation2 + $0x330] sm:$0xff] }
 0x186   :  { %v9164_v62 = vmax.f32 %v9162_v52, %v9163_v43  ;;  %v1880_v46 = vld [vmem:[#allocation2 + $0x348] sm:$0xff]  ;;  %v9170_v21 = vld [vmem:[#allocation45_spill] sm:$0xff]  ;;  %v9172_v8 = vld [vmem:[#allocation42_spill] sm:$0xff] }
 0x187   :  { %v6118_v41 = vmax.f32 %v9152_v40, %v1860_v24  ;;  %v6123_v16 = vmax.f32 %v9156_v3, %v1861_v10  ;;  %9161 = vst [vmem:[#allocation18_spill] sm:$0xff] %v6128_v45  ;;  %v1881_v24 = vld [vmem:[#allocation2 + $0x350] sm:$0xff]  ;;  %v9166_v40 = vld [vmem:[#allocation40_spill] sm:$0xff]  ;;  %v9173_v33 = vld [vmem:[#allocation46_spill] sm:$0xff] }
 0x188   :  { %v6133_v56 = vmax.f32 %v9164_v62, %v1863_v12  ;;  %v9167_v59 = vld [vmem:[#allocation44_spill] sm:$0xff]  ;;  %v9169_v10 = vld [vmem:[#allocation41_spill] sm:$0xff]  ;;  %v9174_v49 = vmax.f32 %v9172_v8, %v9173_v33  ;;  %v9176_v12 = vld [vmem:[#allocation43_spill] sm:$0xff] }
 0x189   :  { %9153 = vst [vmem:[#allocation17_spill] sm:$0xff] %v6118_v41  ;;  %9157 = vst [vmem:[#allocation21_spill] sm:$0xff] %v6123_v16  ;;  %v9168_v41 = vmax.f32 %v9166_v40, %v9167_v59  ;;  %v9171_v3 = vmax.f32 %v9169_v10, %v9170_v21  ;;  %v9177_v43 = vld [vmem:[#allocation47_spill] sm:$0xff]  ;;  %v1882_v45 = vld [vmem:[#allocation2 + $0x368] sm:$0xff] }
 0x18a   :  { %9165 = vst [vmem:[#allocation22_spill] sm:$0xff] %v6133_v56  ;;  %v6148_v52 = vmax.f32 %v9174_v49, %v1866_v48  ;;  %v9178_v62 = vmax.f32 %v9176_v12, %v9177_v43  ;;  %v1883_v16 = vld [vmem:[#allocation2 + $0x370] sm:$0xff]  ;;  %v1884_v40 = vld [vmem:[#allocation2 + $0x388] sm:$0xff] }
 0x18b   :  { %v6138_v2 = vmax.f32 %v9168_v41, %v1864_v6  ;;  %v6143_v15 = vmax.f32 %v9171_v3, %v1865_v4  ;;  %v1885_v6 = vld [vmem:[#allocation2 + $0x390] sm:$0xff]  ;;  %v9180_v41 = vld [vmem:[#allocation50_spill] sm:$0xff]  ;;  %v9182_v4 = vld [vmem:[#allocation51_spill] sm:$0xff] }
 0x18c   :  { %9175 = vst [vmem:[#allocation19_spill] sm:$0xff] %v6148_v52  ;;  %v6153_v56 = vmax.f32 %v9178_v62, %v1867_v23  ;;  %v9181_v59 = vmax.f32 %v5781_v50, %v9180_v41  ;;  %v9183_v21 = vmax.f32 %v5783_v14, %v9182_v4  ;;  %v9184_v48 = vld [vmem:[#allocation48_spill] sm:$0xff]  ;;  %v9187_v23 = vld [vmem:[#allocation49_spill] sm:$0xff]  ;;  %v9191_v41 = vmax.f32 %v5805_v61, %v5813_v54 }
 0x18d   :  { %v9185_v8 = vld [vmem:[#allocation52_spill] sm:$0xff]  ;;  %v9188_v12 = vld [vmem:[#allocation53_spill] sm:$0xff] }
 0x18e   :  { %9179 = vst [vmem:[#allocation23_spill] sm:$0xff] %v6153_v56  ;;  %v6158_v10 = vmax.f32 %v9181_v59, %v1868_v42  ;;  %v6163_v3 = vmax.f32 %v9183_v21, %v1869_v7  ;;  %v9186_v33 = vmax.f32 %v9184_v48, %v9185_v8  ;;  %v9189_v43 = vmax.f32 %v9187_v23, %v9188_v12  ;;  %v1886_v56 = vld [vmem:[#allocation2 + $0x3a8] sm:$0xff]  ;;  %v1887_v52 = vld [vmem:[#allocation2 + $0x3b0] sm:$0xff] }
 0x18f   :  { %v1888_v50 = vld [vmem:[#allocation2 + $0x3c8] sm:$0xff]  ;;  %v1889_v42 = vld [vmem:[#allocation2 + $0x3d0] sm:$0xff]  ;;  %v6178_v14 = vmax.f32 %v9191_v41, %v1874_v63  ;;  %v9192_v7 = vmax.f32 %v5807_v11, %v5815_v5  ;;  %v9199_v63 = vmax.f32 %v5829_v26, %v5837_v17  ;;  %v9200_v5 = vmax.f32 %v5831_v22, %v5839_v57 }
 0x190   :  { %v6168_v49 = vmax.f32 %v9186_v33, %v1870_v30  ;;  %v6173_v62 = vmax.f32 %v9189_v43, %v1871_v1  ;;  %v9193_v30 = vld [vmem:[#allocation54_spill] sm:$0xff]  ;;  %v9194_v4 = vld [vmem:[#allocation56_spill] sm:$0xff]  ;;  %v9196_v1 = vld [vmem:[#allocation55_spill] sm:$0xff]  ;;  %v9208_v57 = vmax.f32 %v5855_v32, %v5863_v28  ;;  %v9218_v32 = vmax.f32 %v5879_v44, %v5887_v39 }
 0x191   :  { %v6183_v59 = vmax.f32 %v9192_v7, %v1875_v13  ;;  %v9195_v21 = vmax.f32 %v9193_v30, %v9194_v4  ;;  %v9197_v8 = vld [vmem:[#allocation57_spill] sm:$0xff]  ;;  %v1890_v12 = vld [vmem:[#allocation2 + $0x3e8] sm:$0xff]  ;;  %v6198_v11 = vmax.f32 %v9199_v63, %v1878_v20  ;;  %v6203_v13 = vmax.f32 %v9200_v5, %v1879_v18  ;;  %v9210_v18 = vld [vmem:[#allocation62_spill] sm:$0xff] }
 0x192   :  { %9190 = vst [vmem:[#allocation24_spill] sm:$0xff] %v6173_v62  ;;  %v9198_v33 = vmax.f32 %v9196_v1, %v9197_v8  ;;  %v1891_v43 = vld [vmem:[#allocation2 + $0x3f0] sm:$0xff]  ;;  %v1892_v54 = vld [vmem:[#allocation2 + $0x408] sm:$0xff]  ;;  %v9207_v20 = vmax.f32 %v5853_v38, %v5861_v29  ;;  %v9214_v63 = vld [vmem:[#allocation63_spill] sm:$0xff] }
 0x193   :  { %v6188_v48 = vmax.f32 %v9195_v21, %v1876_v9  ;;  %v1893_v61 = vld [vmem:[#allocation2 + $0x410] sm:$0xff]  ;;  %9201 = vst [vmem:[#allocation28_spill] sm:$0xff] %v6203_v13  ;;  %v9202_v9 = vld [vmem:[#allocation59_spill] sm:$0xff]  ;;  %v9205_v30 = vld [vmem:[#allocation60_spill] sm:$0xff] }
 0x194   :  { %v6193_v23 = vmax.f32 %v9198_v33, %v1877_v35  ;;  %v9203_v41 = vmax.f32 %v5833_v25, %v9202_v9  ;;  %v9204_v35 = vld [vmem:[#allocation58_spill] sm:$0xff]  ;;  %v1894_v1 = vld [vmem:[#allocation2 + $0x428] sm:$0xff]  ;;  %v1895_v8 = vld [vmem:[#allocation2 + $0x430] sm:$0xff]  ;;  %v6218_v22 = vmax.f32 %v9207_v20, %v1882_v45  ;;  %v6223_v25 = vmax.f32 %v9208_v57, %v1883_v16 }
 0x195   :  { %v9206_v4 = vmax.f32 %v9204_v35, %v9205_v30  ;;  %v1896_v17 = vld [vmem:[#allocation2 + $0x448] sm:$0xff]  ;;  %v1897_v26 = vld [vmem:[#allocation2 + $0x450] sm:$0xff]  ;;  %v9217_v45 = vmax.f32 %v5877_v47, %v5885_v27  ;;  %v9225_v27 = vmax.f32 %v5901_v31, %v5909_v51  ;;  %v9227_v39 = vld [vmem:[#allocation67_spill] sm:$0xff]  ;;  %v9237_v31 = vmax.f32 %v5925_v0, %v5933_v58 }
 0x196   :  { %v6208_v7 = vmax.f32 %v9203_v41, %v1880_v46  ;;  %9209 = vst [vmem:[#allocation25_spill] sm:$0xff] %v6223_v25  ;;  %v9211_v46 = vmax.f32 %v5857_v37, %v9210_v18  ;;  %v1898_v41 = vld [vmem:[#allocation2 + $0x468] sm:$0xff]  ;;  %v1899_v35 = vld [vmem:[#allocation2 + $0x470] sm:$0xff]  ;;  %v6243_v37 = vmax.f32 %v9218_v32, %v1887_v52 }
 0x197   :  { %v6213_v21 = vmax.f32 %v9206_v4, %v1881_v24  ;;  %v9213_v24 = vld [vmem:[#allocation61_spill] sm:$0xff]  ;;  %v1900_v29 = vld [vmem:[#allocation2 + $0x488] sm:$0xff]  ;;  %v6238_v28 = vmax.f32 %v9217_v45, %v1886_v56  ;;  %v9223_v4 = vld [vmem:[#allocation66_spill] sm:$0xff]  ;;  %v6258_v47 = vmax.f32 %v9225_v27, %v1890_v12  ;;  %v6282_v12 = vmax.f32 %v9237_v31, %v1894_v1 }
 0x198   :  { %v6228_v33 = vmax.f32 %v9211_v46, %v1884_v40  ;;  %v9215_v5 = vmax.f32 %v9213_v24, %v9214_v63  ;;  %v1901_v38 = vld [vmem:[#allocation2 + $0x490] sm:$0xff]  ;;  %v1902_v18 = vld [vmem:[#allocation2 + $0x4a8] sm:$0xff] }
 0x199   :  { %v9219_v16 = vld [vmem:[#allocation65_spill] sm:$0xff]  ;;  %9226 = vst [vmem:[#allocation27_spill] sm:$0xff] %v6258_v47  ;;  %v9228_v44 = vld [vmem:[#allocation68_spill] sm:$0xff]  ;;  %9238 = vst [vmem:[#allocation33_spill] sm:$0xff] %v6282_v12 }
 0x19a   :  { %9212 = vst [vmem:[#allocation29_spill] sm:$0xff] %v6228_v33  ;;  %v6233_v9 = vmax.f32 %v9215_v5, %v1885_v6  ;;  %v9220_v40 = vmax.f32 %v5881_v34, %v9219_v16  ;;  %v9222_v6 = vld [vmem:[#allocation64_spill] sm:$0xff]  ;;  %v1903_v46 = vld [vmem:[#allocation2 + $0x4b0] sm:$0xff]  ;;  %v9229_v56 = vmax.f32 %v9227_v39, %v9228_v44 }
 0x19b   :  { %v9224_v20 = vmax.f32 %v9222_v6, %v9223_v4  ;;  %v9231_v34 = vld [vmem:[#allocation69_spill] sm:$0xff] }
 0x19c   :  { %9216 = vst [vmem:[#allocation26_spill] sm:$0xff] %v6233_v9  ;;  %v6248_v30 = vmax.f32 %v9220_v40, %v1888_v50  ;;  %v6263_v52 = vmax.f32 %v9229_v56, %v1891_v43  ;;  %v9232_v50 = vmax.f32 %v5905_v53, %v9231_v34  ;;  %v6275_v45 = vld [vmem:[#allocation2 + $0x69] sm:$0xff]  ;;  %v6277_v51 = vld [vmem:[#allocation2 + $0x71] sm:$0xff]  ;;  %v9239_v43 = vmax.f32 %v5927_v60, %v5935_v55  ;;  %v9246_v40 = vld [vmem:[#allocation75_spill] sm:$0xff] }
 0x19d   :  { %v6253_v57 = vmax.f32 %v9224_v20, %v1889_v42  ;;  %v9234_v42 = vld [vmem:[#allocation70_spill] sm:$0xff]  ;;  %v9242_v32 = vld [vmem:[#allocation73_spill] sm:$0xff]  ;;  %v9250_v60 = vld [vmem:[#allocation76_spill] sm:$0xff] }
 0x19e   :  { %9221 = vst [vmem:[#allocation30_spill] sm:$0xff] %v6248_v30  ;;  %9230 = vst [vmem:[#allocation31_spill] sm:$0xff] %v6263_v52  ;;  %v6268_v24 = vmax.f32 %v9232_v50, %v1892_v54  ;;  %v9235_v63 = vmax.f32 %v5907_v36, %v9234_v42  ;;  %v6287_v53 = vmax.f32 %v9239_v43, %v1895_v8  ;;  %v9241_v54 = vld [vmem:[#allocation71_spill] sm:$0xff]  ;;  %v6299_v20 = vld [vmem:[#allocation2 + $0x89] sm:$0xff] }
 0x19f   :  { %v9243_v16 = vmax.f32 %v9241_v54, %v9242_v32  ;;  %v6301_v58 = vld [vmem:[#allocation2 + $0x91] sm:$0xff]  ;;  %v6303_v0 = vld [vmem:[#allocation2 + $0xa9] sm:$0xff]  ;;  %v9257_v56 = vld [vmem:[#allocation79_spill] sm:$0xff] }
 0x1a0   :  { %9233 = vst [vmem:[#allocation32_spill] sm:$0xff] %v6268_v24  ;;  %v6273_v5 = vmax.f32 %v9235_v63, %v1893_v61  ;;  %9240 = vst [vmem:[#allocation37_spill] sm:$0xff] %v6287_v53  ;;  %v9245_v61 = vld [vmem:[#allocation72_spill] sm:$0xff]  ;;  %v6305_v1 = vld [vmem:[#allocation2 + $0xb1] sm:$0xff] }
 0x1a1   :  { %v6292_v36 = vmax.f32 %v9243_v16, %v1896_v17  ;;  %v9247_v6 = vmax.f32 %v9245_v61, %v9246_v40  ;;  %v9249_v55 = vld [vmem:[#allocation74_spill] sm:$0xff]  ;;  %v9260_v42 = vld [vmem:[#allocation80_spill] sm:$0xff]  ;;  %v9310_v47 = vld [vmem:[#allocation17_spill] sm:$0xff] }
 0x1a2   :  { %9236 = vst [vmem:[#allocation36_spill] sm:$0xff] %v6273_v5  ;;  %v9251_v8 = vmax.f32 %v9249_v55, %v9250_v60  ;;  %v9253_v17 = vld [vmem:[#allocation78_spill] sm:$0xff]  ;;  %v6327_v54 = vld [vmem:[#allocation2 + $0xc9] sm:$0xff] }
 0x1a3   :  { %9244 = vst [vmem:[#allocation34_spill] sm:$0xff] %v6292_v36  ;;  %v6297_v4 = vmax.f32 %v9247_v6, %v1897_v26  ;;  %v9254_v39 = vmax.f32 %v5949_v19, %v9253_v17  ;;  %v9256_v26 = vld [vmem:[#allocation77_spill] sm:$0xff]  ;;  %v9261_v63 = vld [vmem:[#allocation82_spill] sm:$0xff]  ;;  %9264 = vst [vmem:[#allocation41_spill] sm:$0xff] %v6327_v54 }
 0x1a4   :  { %v6310_v27 = vmax.f32 %v9251_v8, %v1898_v41  ;;  %v9258_v34 = vmax.f32 %v9256_v26, %v9257_v56  ;;  %v9262_v31 = vmax.f32 %v9260_v42, %v9261_v63  ;;  %v6329_v32 = vld [vmem:[#allocation2 + $0xd1] sm:$0xff]  ;;  %v6331_v41 = vld [vmem:[#allocation2 + $0xe9] sm:$0xff]  ;;  %v9305_v54 = vld [vmem:[#allocation11_spill] sm:$0xff] }
 0x1a5   :  { %9248 = vst [vmem:[#allocation38_spill] sm:$0xff] %v6297_v4  ;;  %v6315_v44 = vmax.f32 %v9254_v39, %v1899_v35  ;;  %9265 = vst [vmem:[#allocation45_spill] sm:$0xff] %v6329_v32  ;;  %v6333_v16 = vld [vmem:[#allocation2 + $0xf1] sm:$0xff]  ;;  %v9269_v35 = vld [vmem:[#allocation84_spill] sm:$0xff] }
 0x1a6   :  { %9252 = vst [vmem:[#allocation35_spill] sm:$0xff] %v6310_v27  ;;  %v6320_v50 = vmax.f32 %v9258_v34, %v1900_v29  ;;  %v6325_v43 = vmax.f32 %v9262_v31, %v1901_v38  ;;  %9266 = vst [vmem:[#allocation42_spill] sm:$0xff] %v6331_v41  ;;  %v9268_v19 = vld [vmem:[#allocation81_spill] sm:$0xff]  ;;  %v9272_v29 = vld [vmem:[#allocation83_spill] sm:$0xff] }
 0x1a7   :  { %9255 = vst [vmem:[#allocation39_spill] sm:$0xff] %v6315_v44  ;;  %9267 = vst [vmem:[#allocation46_spill] sm:$0xff] %v6333_v16  ;;  %v9270_v61 = vmax.f32 %v9268_v19, %v9269_v35  ;;  %v9273_v6 = vld [vmem:[#allocation85_spill] sm:$0xff]  ;;  %v9280_v26 = vld [vmem:[#allocation86_spill] sm:$0xff] }
 0x1a8   :  { %9259 = vst [vmem:[#allocation40_spill] sm:$0xff] %v6320_v50  ;;  %9263 = vst [vmem:[#allocation44_spill] sm:$0xff] %v6325_v43  ;;  %v9274_v55 = vmax.f32 %v9272_v29, %v9273_v6  ;;  %v6345_v38 = vld [vmem:[#allocation2 + $0x109] sm:$0xff]  ;;  %v6347_v8 = vld [vmem:[#allocation2 + $0x111] sm:$0xff]  ;;  %v9325_v62 = vmax.f32 %v9280_v26, %v6275_v45 }
 0x1a9   :  { %v6338_v40 = vmax.f32 %v9270_v61, %v1902_v18  ;;  %9276 = vst [vmem:[#allocation50_spill] sm:$0xff] %v6345_v38  ;;  %9277 = vst [vmem:[#allocation51_spill] sm:$0xff] %v6347_v8  ;;  %v6349_v17 = vld [vmem:[#allocation2 + $0x129] sm:$0xff]  ;;  %v6351_v39 = vld [vmem:[#allocation2 + $0x131] sm:$0xff] }
 0x1aa   :  { %v6343_v60 = vmax.f32 %v9274_v55, %v1903_v46  ;;  %9278 = vst [vmem:[#allocation48_spill] sm:$0xff] %v6349_v17  ;;  %9279 = vst [vmem:[#allocation52_spill] sm:$0xff] %v6351_v39  ;;  %v9281_v34 = vld [vmem:[#allocation87_spill] sm:$0xff]  ;;  %v6357_v42 = vld [vmem:[#allocation2 + $0x149] sm:$0xff] }
 0x1ab   :  { %9271 = vst [vmem:[#allocation43_spill] sm:$0xff] %v6338_v40  ;;  %9282 = vst [vmem:[#allocation49_spill] sm:$0xff] %v6357_v42  ;;  %v6359_v63 = vld [vmem:[#allocation2 + $0x151] sm:$0xff]  ;;  %v6361_v46 = vld [vmem:[#allocation2 + $0x169] sm:$0xff]  ;;  %v9327_v17 = vmax.f32 %v9281_v34, %v6277_v51 }
 0x1ac   :  { %9275 = vst [vmem:[#allocation47_spill] sm:$0xff] %v6343_v60  ;;  %9283 = vst [vmem:[#allocation53_spill] sm:$0xff] %v6359_v63  ;;  %v6363_v31 = vld [vmem:[#allocation2 + $0x171] sm:$0xff]  ;;  %v9286_v19 = vld [vmem:[#allocation88_spill] sm:$0xff] }
 0x1ad   :  { %9284 = vst [vmem:[#allocation54_spill] sm:$0xff] %v6361_v46  ;;  %9285 = vst [vmem:[#allocation56_spill] sm:$0xff] %v6363_v31  ;;  %v9287_v61 = vld [vmem:[#allocation5_spill] sm:$0xff]  ;;  %v9288_v6 = vld [vmem:[#allocation3_spill] sm:$0xff] }
 0x1ae   :  { %v9289_v56 = vld [vmem:[#allocation6_spill] sm:$0xff]  ;;  %v6373_v60 = vld [vmem:[#allocation2 + $0x189] sm:$0xff]  ;;  %v9306_v38 = vld [vmem:[#allocation15_spill] sm:$0xff] }
 0x1af   :  { %v6375_v40 = vld [vmem:[#allocation2 + $0x191] sm:$0xff]  ;;  %v6377_v43 = vld [vmem:[#allocation2 + $0x1a9] sm:$0xff]  ;;  %v9316_v42 = vld [vmem:[#allocation19_spill] sm:$0xff] }
 0x1b0   :  { %9290 = vst [vmem:[#allocation55_spill] sm:$0xff] %v6375_v40  ;;  %9291 = vst [vmem:[#allocation57_spill] sm:$0xff] %v6377_v43  ;;  %v6379_v50 = vld [vmem:[#allocation2 + $0x1b1] sm:$0xff]  ;;  %v9293_v44 = vld [vmem:[#allocation4_spill] sm:$0xff] }
 0x1b1   :  { %9292 = vst [vmem:[#allocation59_spill] sm:$0xff] %v6379_v50  ;;  %v6389_v53 = vld [vmem:[#allocation2 + $0x1c9] sm:$0xff]  ;;  %v6391_v12 = vld [vmem:[#allocation2 + $0x1d1] sm:$0xff] }
 0x1b2   :  { %v6393_v5 = vld [vmem:[#allocation2 + $0x1e9] sm:$0xff]  ;;  %v6395_v24 = vld [vmem:[#allocation2 + $0x1f1] sm:$0xff] }
 0x1b3   :  { %9297 = vst [vmem:[#allocation58_spill] sm:$0xff] %v6393_v5  ;;  %9298 = vst [vmem:[#allocation60_spill] sm:$0xff] %v6395_v24  ;;  %v6405_v16 = vld [vmem:[#allocation2 + $0x209] sm:$0xff]  ;;  %v6407_v36 = vld [vmem:[#allocation2 + $0x211] sm:$0xff] }
 0x1b4   :  { %v6409_v4 = vld [vmem:[#allocation2 + $0x229] sm:$0xff]  ;;  %v6411_v27 = vld [vmem:[#allocation2 + $0x231] sm:$0xff] }
 0x1b5   :  { %9303 = vst [vmem:[#allocation62_spill] sm:$0xff] %v6409_v4  ;;  %9304 = vst [vmem:[#allocation61_spill] sm:$0xff] %v6411_v27  ;;  %v6421_v39 = vld [vmem:[#allocation2 + $0x2e9] sm:$0xff]  ;;  %v6423_v41 = vld [vmem:[#allocation2 + $0x2f1] sm:$0xff] }
 0x1b6   :  { %v6425_v32 = vld [vmem:[#allocation2 + $0x309] sm:$0xff]  ;;  %v6435_v8 = vld [vmem:[#allocation2 + $0x311] sm:$0xff] }
 0x1b7   :  { %9309 = vst [vmem:[#allocation63_spill] sm:$0xff] %v6425_v32  ;;  %v9311_v35 = vld [vmem:[#allocation21_spill] sm:$0xff]  ;;  %9314 = vst [vmem:[#allocation65_spill] sm:$0xff] %v6435_v8 }
 0x1b8   :  { %v6437_v18 = vld [vmem:[#allocation2 + $0x329] sm:$0xff]  ;;  %v6439_v31 = vld [vmem:[#allocation2 + $0x331] sm:$0xff] }
 0x1b9   :  { %9315 = vst [vmem:[#allocation64_spill] sm:$0xff] %v6439_v31  ;;  %v6449_v29 = vld [vmem:[#allocation2 + $0x349] sm:$0xff]  ;;  %v6451_v46 = vld [vmem:[#allocation2 + $0x351] sm:$0xff] }
 0x1ba   :  { %9318 = vst [vmem:[#allocation66_spill] sm:$0xff] %v6451_v46  ;;  %v6453_v50 = vld [vmem:[#allocation2 + $0x369] sm:$0xff]  ;;  %v6463_v5 = vld [vmem:[#allocation2 + $0x371] sm:$0xff]  ;;  %v9328_v46 = vmax.f32 %v9286_v19, %v6299_v20  ;;  %v9331_v20 = vmax.f32 %v9289_v56, %v6305_v1  ;;  %v9337_v19 = vld [vmem:[#allocation27_spill] sm:$0xff] }
 0x1bb   :  { %9319 = vst [vmem:[#allocation67_spill] sm:$0xff] %v6463_v5  ;;  %v6465_v43 = vld [vmem:[#allocation2 + $0x389] sm:$0xff]  ;;  %v6467_v24 = vld [vmem:[#allocation2 + $0x391] sm:$0xff] }
 0x1bc   :  { %9320 = vst [vmem:[#allocation68_spill] sm:$0xff] %v6465_v43  ;;  %9321 = vst [vmem:[#allocation69_spill] sm:$0xff] %v6467_v24  ;;  %v6477_v4 = vld [vmem:[#allocation2 + $0x3a9] sm:$0xff]  ;;  %v6479_v40 = vld [vmem:[#allocation2 + $0x3b1] sm:$0xff] }
 0x1bd   :  { %9322 = vst [vmem:[#allocation70_spill] sm:$0xff] %v6477_v4  ;;  %9323 = vst [vmem:[#allocation71_spill] sm:$0xff] %v6479_v40  ;;  %v6481_v27 = vld [vmem:[#allocation2 + $0x3c9] sm:$0xff]  ;;  %v6491_v32 = vld [vmem:[#allocation2 + $0x3d1] sm:$0xff] }
 0x1be   :  { %9324 = vst [vmem:[#allocation73_spill] sm:$0xff] %v6481_v27  ;;  %v2098_v31 = vld [vmem:[#allocation2 + $0x6a] sm:$0xff]  ;;  %v2099_v13 = vld [vmem:[#allocation2 + $0x72] sm:$0xff]  ;;  %v9329_v27 = vmax.f32 %v9287_v61, %v6301_v58 }
 0x1bf   :  { %v6501_v55 = vld [vmem:[#allocation2 + $0x3e9] sm:$0xff]  ;;  %v2101_v5 = vld [vmem:[#allocation2 + $0x92] sm:$0xff]  ;;  %v2162_v63 = vmax.f32 %v9325_v62, %v2098_v31  ;;  %v2163_v4 = vmax.f32 %v9327_v17, %v2099_v13  ;;  %v9330_v62 = vmax.f32 %v9288_v6, %v6303_v0 }
 0x1c0   :  { %v2100_v8 = vld [vmem:[#allocation2 + $0x8a] sm:$0xff]  ;;  %v2103_v9 = vld [vmem:[#allocation2 + $0xb2] sm:$0xff]  ;;  %v2165_v30 = vmax.f32 %v9329_v27, %v2101_v5  ;;  %v9334_v27 = vld [vmem:[#allocation7_spill] sm:$0xff] }
 0x1c1   :  { %v2102_v25 = vld [vmem:[#allocation2 + $0xaa] sm:$0xff]  ;;  %v2105_v33 = vld [vmem:[#allocation2 + $0xd2] sm:$0xff]  ;;  %v2164_v52 = vmax.f32 %v9328_v46, %v2100_v8  ;;  %v2167_v8 = vmax.f32 %v9331_v20, %v2103_v9  ;;  %2226 = vst.msk [vmem:[#allocation2 + $0x68] sm:$0xff] %vm73_vm0, %v2162_v63  ;;  %2227 = vst.msk [vmem:[#allocation2 + $0x70] sm:$0xff] %vm73_vm0, %v2163_v4 }
 0x1c2   :  { %v6512_v24 = vld [vmem:[#allocation2 + $0x3f1] sm:$0xff]  ;;  %v2166_v45 = vmax.f32 %v9330_v62, %v2102_v25  ;;  %v6526_v26 = vld [vmem:[#allocation2 + $0x409] sm:$0xff]  ;;  %2229 = vst.msk [vmem:[#allocation2 + $0x90] sm:$0xff] %vm73_vm0, %v2165_v30 }
 0x1c3   :  { %9326 = vst [vmem:[#allocation72_spill] sm:$0xff] %v6512_v24  ;;  %v2104_v43 = vld [vmem:[#allocation2 + $0xca] sm:$0xff]  ;;  %v2107_v51 = vld [vmem:[#allocation2 + $0xf2] sm:$0xff]  ;;  %2228 = vst.msk [vmem:[#allocation2 + $0x88] sm:$0xff] %vm73_vm0, %v2164_v52 }
 0x1c4   :  { %v2106_v40 = vld [vmem:[#allocation2 + $0xea] sm:$0xff]  ;;  %v2109_v6 = vld [vmem:[#allocation2 + $0x112] sm:$0xff]  ;;  %2230 = vst.msk [vmem:[#allocation2 + $0xa8] sm:$0xff] %vm73_vm0, %v2166_v45  ;;  %2231 = vst.msk [vmem:[#allocation2 + $0xb0] sm:$0xff] %vm73_vm0, %v2167_v8 }
 0x1c5   :  { %v2108_v13 = vld [vmem:[#allocation2 + $0x10a] sm:$0xff]  ;;  %v2111_v31 = vld [vmem:[#allocation2 + $0x132] sm:$0xff] }
 0x1c6   :  { %v9332_v17 = vld [vmem:[#allocation41_spill] sm:$0xff]  ;;  %v9338_v1 = vld [vmem:[#allocation8_spill] sm:$0xff]  ;;  %v9339_v9 = vld [vmem:[#allocation42_spill] sm:$0xff] }
 0x1c7   :  { %v9333_v58 = vmax.f32 %v9293_v44, %v9332_v17  ;;  %v9335_v34 = vld [vmem:[#allocation45_spill] sm:$0xff]  ;;  %v9340_v56 = vmax.f32 %v9338_v1, %v9339_v9  ;;  %v9341_v44 = vld [vmem:[#allocation12_spill] sm:$0xff] }
 0x1c8   :  { %v9336_v0 = vmax.f32 %v9334_v27, %v9335_v34  ;;  %v6540_v46 = vld [vmem:[#allocation2 + $0x411] sm:$0xff]  ;;  %v9352_v4 = vld [vmem:[#allocation48_spill] sm:$0xff] }
 0x1c9   :  { %v2168_v5 = vmax.f32 %v9333_v58, %v2104_v43  ;;  %v2110_v62 = vld [vmem:[#allocation2 + $0x12a] sm:$0xff]  ;;  %v2170_v20 = vmax.f32 %v9340_v56, %v2106_v40  ;;  %v9342_v43 = vld [vmem:[#allocation46_spill] sm:$0xff]  ;;  %v9347_v40 = vld [vmem:[#allocation31_spill] sm:$0xff] }
 0x1ca   :  { %v2169_v25 = vmax.f32 %v9336_v0, %v2105_v33  ;;  %v9343_v17 = vmax.f32 %v9341_v44, %v9342_v43  ;;  %v9344_v27 = vld [vmem:[#allocation9_spill] sm:$0xff]  ;;  %v9345_v33 = vld [vmem:[#allocation50_spill] sm:$0xff]  ;;  %v9349_v43 = vld [vmem:[#allocation51_spill] sm:$0xff] }
 0x1cb   :  { %v9346_v34 = vmax.f32 %v9344_v27, %v9345_v33  ;;  %v6557_v0 = vld [vmem:[#allocation2 + $0x429] sm:$0xff]  ;;  %v2113_v56 = vld [vmem:[#allocation2 + $0x152] sm:$0xff]  ;;  %2232 = vst.msk [vmem:[#allocation2 + $0xc8] sm:$0xff] %vm73_vm0, %v2168_v5  ;;  %2234 = vst.msk [vmem:[#allocation2 + $0xe8] sm:$0xff] %vm73_vm0, %v2170_v20 }
 0x1cc   :  { %v2171_v58 = vmax.f32 %v9343_v17, %v2107_v51  ;;  %v2112_v9 = vld [vmem:[#allocation2 + $0x14a] sm:$0xff]  ;;  %v9351_v27 = vld [vmem:[#allocation10_spill] sm:$0xff]  ;;  %2233 = vst.msk [vmem:[#allocation2 + $0xd0] sm:$0xff] %vm73_vm0, %v2169_v25 }
 0x1cd   :  { %v2172_v63 = vmax.f32 %v9346_v34, %v2108_v13  ;;  %v2114_v51 = vld [vmem:[#allocation2 + $0x16a] sm:$0xff]  ;;  %v9353_v33 = vmax.f32 %v9351_v27, %v9352_v4  ;;  %v9354_v34 = vld [vmem:[#allocation14_spill] sm:$0xff] }
 0x1ce   :  { %v9348_v44 = vld [vmem:[#allocation13_spill] sm:$0xff]  ;;  %v9355_v30 = vld [vmem:[#allocation52_spill] sm:$0xff]  ;;  %v9363_v5 = vld [vmem:[#allocation54_spill] sm:$0xff]  ;;  %2235 = vst.msk [vmem:[#allocation2 + $0xf0] sm:$0xff] %vm73_vm0, %v2171_v58 }
 0x1cf   :  { %v9350_v17 = vmax.f32 %v9348_v44, %v9349_v43  ;;  %v2174_v52 = vmax.f32 %v9353_v33, %v2110_v62  ;;  %v9356_v61 = vmax.f32 %v9354_v34, %v9355_v30  ;;  %v6573_v1 = vld [vmem:[#allocation2 + $0x431] sm:$0xff]  ;;  %v9357_v24 = vld [vmem:[#allocation32_spill] sm:$0xff]  ;;  %2236 = vst.msk [vmem:[#allocation2 + $0x108] sm:$0xff] %vm73_vm0, %v2172_v63  ;;  %v9370_v58 = vld [vmem:[#allocation55_spill] sm:$0xff] }
 0x1d0   :  { %v2116_v43 = vld [vmem:[#allocation2 + $0x18a] sm:$0xff] }
 0x1d1   :  { %v2173_v13 = vmax.f32 %v9350_v17, %v2109_v6  ;;  %v2175_v45 = vmax.f32 %v9356_v61, %v2111_v31  ;;  %v2115_v6 = vld [vmem:[#allocation2 + $0x172] sm:$0xff]  ;;  %v9362_v33 = vld [vmem:[#allocation16_spill] sm:$0xff]  ;;  %2238 = vst.msk [vmem:[#allocation2 + $0x128] sm:$0xff] %vm73_vm0, %v2174_v52  ;;  %v9379_v52 = vmax.f32 %v6138_v2, %v6389_v53 }
 0x1d2   :  { %v2117_v17 = vld [vmem:[#allocation2 + $0x192] sm:$0xff]  ;;  %v9364_v34 = vmax.f32 %v9362_v33, %v9363_v5  ;;  %v6589_v30 = vld [vmem:[#allocation2 + $0x449] sm:$0xff]  ;;  %v9371_v33 = vmax.f32 %v9311_v35, %v9370_v58 }
 0x1d3   :  { %v9358_v62 = vld [vmem:[#allocation49_spill] sm:$0xff]  ;;  %v9365_v44 = vld [vmem:[#allocation36_spill] sm:$0xff]  ;;  %2237 = vst.msk [vmem:[#allocation2 + $0x110] sm:$0xff] %vm73_vm0, %v2173_v13  ;;  %2239 = vst.msk [vmem:[#allocation2 + $0x130] sm:$0xff] %vm73_vm0, %v2175_v45 }
 0x1d4   :  { %v9359_v27 = vmax.f32 %v9305_v54, %v9358_v62  ;;  %v9360_v31 = vld [vmem:[#allocation53_spill] sm:$0xff]  ;;  %v2178_v25 = vmax.f32 %v9364_v34, %v2114_v51  ;;  %v2085_v54 = vmax.f32 %v9365_v44, %v6540_v46  ;;  %v9369_v51 = vmax.f32 %v9310_v47, %v6373_v60  ;;  %v9373_v47 = vld [vmem:[#allocation18_spill] sm:$0xff] }
 0x1d5   :  { %v9361_v61 = vmax.f32 %v9306_v38, %v9360_v31  ;;  %v2119_v62 = vld [vmem:[#allocation2 + $0x1b2] sm:$0xff]  ;;  %v9366_v38 = vld [vmem:[#allocation20_spill] sm:$0xff]  ;;  %v2181_v63 = vmax.f32 %v9371_v33, %v2117_v17  ;;  %v9377_v17 = vld [vmem:[#allocation59_spill] sm:$0xff] }
 0x1d6   :  { %v2176_v4 = vmax.f32 %v9359_v27, %v2112_v9  ;;  %v2118_v9 = vld [vmem:[#allocation2 + $0x1aa] sm:$0xff]  ;;  %v2180_v20 = vmax.f32 %v9369_v51, %v2116_v43  ;;  %v9376_v35 = vld [vmem:[#allocation22_spill] sm:$0xff]  ;;  %2242 = vst.msk [vmem:[#allocation2 + $0x168] sm:$0xff] %vm73_vm0, %v2178_v25 }
 0x1d7   :  { %v2177_v8 = vmax.f32 %v9361_v61, %v2113_v56  ;;  %v2120_v27 = vld [vmem:[#allocation2 + $0x1ca] sm:$0xff]  ;;  %v9378_v58 = vmax.f32 %v9376_v35, %v9377_v17  ;;  %v9382_v2 = vld [vmem:[#allocation58_spill] sm:$0xff]  ;;  %2245 = vst.msk [vmem:[#allocation2 + $0x190] sm:$0xff] %vm73_vm0, %v2181_v63 }
 0x1d8   :  { %v9367_v56 = vld [vmem:[#allocation56_spill] sm:$0xff]  ;;  %v6605_v5 = vld [vmem:[#allocation2 + $0x451] sm:$0xff]  ;;  %v2184_v45 = vmax.f32 %v9379_v52, %v2120_v27  ;;  %2240 = vst.msk [vmem:[#allocation2 + $0x148] sm:$0xff] %vm73_vm0, %v2176_v4  ;;  %v9383_v53 = vmax.f32 %v9316_v42, %v9382_v2  ;;  %v9384_v27 = vld [vmem:[#allocation23_spill] sm:$0xff]  ;;  %v9388_v42 = vmax.f32 %v6158_v10, %v6405_v16 }
 0x1d9   :  { %v9368_v31 = vmax.f32 %v9366_v38, %v9367_v56  ;;  %v9372_v34 = vld [vmem:[#allocation33_spill] sm:$0xff]  ;;  %v2183_v13 = vmax.f32 %v9378_v58, %v2119_v62  ;;  %2241 = vst.msk [vmem:[#allocation2 + $0x150] sm:$0xff] %vm73_vm0, %v2177_v8  ;;  %v9381_v62 = vmax.f32 %v6143_v15, %v6391_v12  ;;  %v9385_v8 = vld [vmem:[#allocation60_spill] sm:$0xff]  ;;  %2244 = vst.msk [vmem:[#allocation2 + $0x188] sm:$0xff] %vm73_vm0, %v2180_v20 }
 0x1da   :  { %v2122_v56 = vld [vmem:[#allocation2 + $0x1ea] sm:$0xff]  ;;  %v9386_v17 = vmax.f32 %v9384_v27, %v9385_v8  ;;  %v9387_v52 = vld [vmem:[#allocation34_spill] sm:$0xff]  ;;  %2248 = vst.msk [vmem:[#allocation2 + $0x1c8] sm:$0xff] %vm73_vm0, %v2184_v45 }
 0x1db   :  { %v2179_v61 = vmax.f32 %v9368_v31, %v2115_v6  ;;  %v2121_v6 = vld [vmem:[#allocation2 + $0x1d2] sm:$0xff]  ;;  %v6621_v33 = vld [vmem:[#allocation2 + $0x469] sm:$0xff]  ;;  %v2186_v4 = vmax.f32 %v9383_v53, %v2122_v56  ;;  %v2088_v15 = vmax.f32 %v9387_v52, %v6589_v30  ;;  %2247 = vst.msk [vmem:[#allocation2 + $0x1b0] sm:$0xff] %vm73_vm0, %v2183_v13  ;;  %v9397_v13 = vmax.f32 %v6183_v59, %v6423_v41 }
 0x1dc   :  { %v2123_v31 = vld [vmem:[#allocation2 + $0x1f2] sm:$0xff]  ;;  %v2185_v35 = vmax.f32 %v9381_v62, %v2121_v6  ;;  %v2130_v6 = vld [vmem:[#allocation2 + $0x2ea] sm:$0xff] }
 0x1dd   :  { %v9374_v60 = vld [vmem:[#allocation57_spill] sm:$0xff]  ;;  %v2187_v25 = vmax.f32 %v9386_v17, %v2123_v31  ;;  %2243 = vst.msk [vmem:[#allocation2 + $0x170] sm:$0xff] %vm73_vm0, %v2179_v61  ;;  %v9389_v31 = vmax.f32 %v6163_v3, %v6407_v36  ;;  %v9390_v20 = vld [vmem:[#allocation62_spill] sm:$0xff]  ;;  %v9393_v3 = vld [vmem:[#allocation24_spill] sm:$0xff] }
 0x1de   :  { %v9375_v43 = vmax.f32 %v9373_v47, %v9374_v60  ;;  %v9380_v38 = vld [vmem:[#allocation37_spill] sm:$0xff]  ;;  %v9391_v2 = vmax.f32 %v6168_v49, %v9390_v20  ;;  %v9392_v27 = vld [vmem:[#allocation38_spill] sm:$0xff]  ;;  %v9396_v49 = vmax.f32 %v6178_v14, %v6421_v39  ;;  %2249 = vst.msk [vmem:[#allocation2 + $0x1d0] sm:$0xff] %vm73_vm0, %v2185_v35  ;;  %2250 = vst.msk [vmem:[#allocation2 + $0x1e8] sm:$0xff] %vm73_vm0, %v2186_v4 }
 0x1df   :  { %v2087_v47 = vmax.f32 %v9380_v38, %v6573_v1  ;;  %v2125_v60 = vld [vmem:[#allocation2 + $0x212] sm:$0xff]  ;;  %v6653_v53 = vld [vmem:[#allocation2 + $0x489] sm:$0xff]  ;;  %v2089_v10 = vmax.f32 %v9392_v27, %v6605_v5  ;;  %2251 = vst.msk [vmem:[#allocation2 + $0x1f0] sm:$0xff] %vm73_vm0, %v2187_v25  ;;  %v9399_v14 = vld [vmem:[#allocation63_spill] sm:$0xff]  ;;  %v9403_v4 = vmax.f32 %v6198_v11, %v6437_v18  ;;  %v9408_v11 = vmax.f32 %v6208_v7, %v6449_v29 }
 0x1e0   :  { %v2182_v51 = vmax.f32 %v9375_v43, %v2118_v9  ;;  %v2124_v9 = vld [vmem:[#allocation2 + $0x20a] sm:$0xff]  ;;  %v2127_v12 = vld [vmem:[#allocation2 + $0x232] sm:$0xff]  ;;  %v2189_v61 = vmax.f32 %v9389_v31, %v2125_v60  ;;  %v9400_v39 = vmax.f32 %v6188_v48, %v9399_v14  ;;  %v9412_v7 = vmax.f32 %v6218_v22, %v6453_v50 }
 0x1e1   :  { %v2126_v43 = vld [vmem:[#allocation2 + $0x22a] sm:$0xff]  ;;  %v2131_v62 = vld [vmem:[#allocation2 + $0x2f2] sm:$0xff]  ;;  %v2188_v56 = vmax.f32 %v9388_v42, %v2124_v9  ;;  %v9398_v42 = vld [vmem:[#allocation35_spill] sm:$0xff] }
 0x1e2   :  { %v6637_v58 = vld [vmem:[#allocation2 + $0x471] sm:$0xff]  ;;  %v2190_v63 = vmax.f32 %v9391_v2, %v2126_v43  ;;  %2246 = vst.msk [vmem:[#allocation2 + $0x1a8] sm:$0xff] %vm73_vm0, %v2182_v51  ;;  %v2194_v51 = vmax.f32 %v9396_v49, %v2130_v6  ;;  %v2195_v45 = vmax.f32 %v9397_v13, %v2131_v62  ;;  %v2090_v31 = vmax.f32 %v9398_v42, %v6621_v33  ;;  %v6685_v62 = vld [vmem:[#allocation2 + $0x4a9] sm:$0xff] }
 0x1e3   :  { %v2132_v16 = vld [vmem:[#allocation2 + $0x30a] sm:$0xff]  ;;  %v2133_v9 = vld [vmem:[#allocation2 + $0x312] sm:$0xff]  ;;  %2252 = vst.msk [vmem:[#allocation2 + $0x208] sm:$0xff] %vm73_vm0, %v2188_v56  ;;  %2253 = vst.msk [vmem:[#allocation2 + $0x210] sm:$0xff] %vm73_vm0, %v2189_v61 }
 0x1e4   :  { %v2134_v8 = vld [vmem:[#allocation2 + $0x32a] sm:$0xff]  ;;  %v2137_v2 = vld [vmem:[#allocation2 + $0x352] sm:$0xff]  ;;  %v2196_v6 = vmax.f32 %v9400_v39, %v2132_v16  ;;  %2254 = vst.msk [vmem:[#allocation2 + $0x228] sm:$0xff] %vm73_vm0, %v2190_v63  ;;  %2258 = vst.msk [vmem:[#allocation2 + $0x2e8] sm:$0xff] %vm73_vm0, %v2194_v51 }
 0x1e5   :  { %v9394_v36 = vld [vmem:[#allocation61_spill] sm:$0xff]  ;;  %v2198_v25 = vmax.f32 %v9403_v4, %v2134_v8  ;;  %v9409_v56 = vld [vmem:[#allocation66_spill] sm:$0xff]  ;;  %2259 = vst.msk [vmem:[#allocation2 + $0x2f0] sm:$0xff] %vm73_vm0, %v2195_v45  ;;  %v9411_v14 = vld [vmem:[#allocation40_spill] sm:$0xff] }
 0x1e6   :  { %v9395_v60 = vmax.f32 %v9393_v3, %v9394_v36  ;;  %v6669_v43 = vld [vmem:[#allocation2 + $0x491] sm:$0xff]  ;;  %v9404_v3 = vld [vmem:[#allocation39_spill] sm:$0xff]  ;;  %v9410_v61 = vmax.f32 %v6213_v21, %v9409_v56  ;;  %v2092_v39 = vmax.f32 %v9411_v14, %v6653_v53  ;;  %v9417_v51 = vld [vmem:[#allocation68_spill] sm:$0xff]  ;;  %2260 = vst.msk [vmem:[#allocation2 + $0x308] sm:$0xff] %vm73_vm0, %v2196_v6 }
 0x1e7   :  { %v2136_v20 = vld [vmem:[#allocation2 + $0x34a] sm:$0xff]  ;;  %v2091_v48 = vmax.f32 %v9404_v3, %v6637_v58  ;;  %v2139_v36 = vld [vmem:[#allocation2 + $0x372] sm:$0xff]  ;;  %2262 = vst.msk [vmem:[#allocation2 + $0x328] sm:$0xff] %vm73_vm0, %v2198_v25  ;;  %v9425_v6 = vld [vmem:[#allocation71_spill] sm:$0xff] }
 0x1e8   :  { %v2191_v17 = vmax.f32 %v9395_v60, %v2127_v12  ;;  %v2135_v12 = vld [vmem:[#allocation2 + $0x332] sm:$0xff]  ;;  %v2138_v16 = vld [vmem:[#allocation2 + $0x36a] sm:$0xff]  ;;  %v2200_v18 = vmax.f32 %v9408_v11, %v2136_v20  ;;  %v2201_v63 = vmax.f32 %v9410_v61, %v2137_v2  ;;  %v9414_v20 = vld [vmem:[#allocation67_spill] sm:$0xff] }
 0x1e9   :  { %v9401_v59 = vld [vmem:[#allocation65_spill] sm:$0xff]  ;;  %v2202_v29 = vmax.f32 %v9412_v7, %v2138_v16  ;;  %v9420_v16 = vld [vmem:[#allocation26_spill] sm:$0xff]  ;;  %v6795_v58 = vld [vmem:[#allocation2 + $0x68] sm:$0xff] }
 0x1ea   :  { %v9402_v41 = vmax.f32 %v6193_v23, %v9401_v59  ;;  %v2140_v60 = vld [vmem:[#allocation2 + $0x38a] sm:$0xff]  ;;  %2255 = vst.msk [vmem:[#allocation2 + $0x230] sm:$0xff] %vm73_vm0, %v2191_v17  ;;  %v2145_v22 = vld [vmem:[#allocation2 + $0x3d2] sm:$0xff]  ;;  %2264 = vst.msk [vmem:[#allocation2 + $0x348] sm:$0xff] %vm73_vm0, %v2200_v18 }
 0x1eb   :  { %v9405_v23 = vld [vmem:[#allocation28_spill] sm:$0xff]  ;;  %v6701_v8 = vld [vmem:[#allocation2 + $0x4b1] sm:$0xff]  ;;  %2265 = vst.msk [vmem:[#allocation2 + $0x350] sm:$0xff] %vm73_vm0, %v2201_v63  ;;  %2266 = vst.msk [vmem:[#allocation2 + $0x368] sm:$0xff] %vm73_vm0, %v2202_v29 }
 0x1ec   :  { %v2197_v35 = vmax.f32 %v9402_v41, %v2133_v9  ;;  %v9406_v9 = vld [vmem:[#allocation64_spill] sm:$0xff]  ;;  %v2143_v41 = vld [vmem:[#allocation2 + $0x3b2] sm:$0xff] }
 0x1ed   :  { %v9407_v49 = vmax.f32 %v9405_v23, %v9406_v9  ;;  %v2142_v59 = vld [vmem:[#allocation2 + $0x3aa] sm:$0xff]  ;;  %v9423_v7 = vld [vmem:[#allocation70_spill] sm:$0xff] }
 0x1ee   :  { %v9413_v21 = vld [vmem:[#allocation25_spill] sm:$0xff]  ;;  %2261 = vst.msk [vmem:[#allocation2 + $0x310] sm:$0xff] %vm73_vm0, %v2197_v35  ;;  %v9419_v9 = vld [vmem:[#allocation44_spill] sm:$0xff] }
 0x1ef   :  { %v2199_v13 = vmax.f32 %v9407_v49, %v2135_v12  ;;  %v2141_v12 = vld [vmem:[#allocation2 + $0x392] sm:$0xff]  ;;  %v9415_v2 = vmax.f32 %v9413_v21, %v9414_v20  ;;  %v2093_v49 = vmax.f32 %v9419_v9, %v6669_v43  ;;  %v2144_v11 = vld [vmem:[#allocation2 + $0x3ca] sm:$0xff]  ;;  %v9424_v21 = vmax.f32 %v6238_v28, %v9423_v7  ;;  %v9427_v43 = vld [vmem:[#allocation43_spill] sm:$0xff] }
 0x1f0   :  { %v9416_v4 = vld [vmem:[#allocation29_spill] sm:$0xff]  ;;  %v9426_v20 = vmax.f32 %v6243_v37, %v9425_v6  ;;  %v2094_v25 = vmax.f32 %v9427_v43, %v6685_v62  ;;  %v9431_v37 = vmax.f32 %v6253_v57, %v6491_v32  ;;  %v9433_v62 = vld [vmem:[#allocation47_spill] sm:$0xff]  ;;  %v6802_v53 = vld [vmem:[#allocation2 + $0x2e8] sm:$0xff] }
 0x1f1   :  { %v2203_v17 = vmax.f32 %v9415_v2, %v2139_v36  ;;  %v9418_v23 = vmax.f32 %v9416_v4, %v9417_v51  ;;  %v2146_v50 = vld [vmem:[#allocation2 + $0x3ea] sm:$0xff]  ;;  %2263 = vst.msk [vmem:[#allocation2 + $0x330] sm:$0xff] %vm73_vm0, %v2199_v13  ;;  %v2147_v2 = vld [vmem:[#allocation2 + $0x3f2] sm:$0xff]  ;;  %v9432_v13 = vmax.f32 %v9337_v19, %v6501_v55  ;;  %v2095_v63 = vmax.f32 %v9433_v62, %v6701_v8 }
 0x1f2   :  { %v9421_v56 = vld [vmem:[#allocation69_spill] sm:$0xff]  ;;  %v2207_v35 = vmax.f32 %v9426_v20, %v2143_v41  ;;  %v9428_v51 = vld [vmem:[#allocation30_spill] sm:$0xff]  ;;  %v2209_v41 = vmax.f32 %v9431_v37, %v2145_v22  ;;  %v9436_v55 = vmax.f32 %v9357_v24, %v6526_v26  ;;  %v6759_v8 = vld [vmem:[#allocation2 + $0x48] sm:$0xff]  ;;  %v9437_v22 = vmax.f32 %v9372_v34, %v6557_v0 }
 0x1f3   :  { %v2204_v45 = vmax.f32 %v9418_v23, %v2140_v60  ;;  %v9422_v61 = vmax.f32 %v9420_v16, %v9421_v56  ;;  %v2206_v60 = vmax.f32 %v9424_v21, %v2142_v59  ;;  %v2148_v4 = vld [vmem:[#allocation2 + $0x40a] sm:$0xff]  ;;  %v2210_v18 = vmax.f32 %v9432_v13, %v2146_v50  ;;  %2267 = vst.msk [vmem:[#allocation2 + $0x370] sm:$0xff] %vm73_vm0, %v2203_v17  ;;  %v2151_v16 = vld [vmem:[#allocation2 + $0x432] sm:$0xff] }
 0x1f4   :  { %v9429_v23 = vld [vmem:[#allocation73_spill] sm:$0xff]  ;;  %v9434_v56 = vld [vmem:[#allocation72_spill] sm:$0xff]  ;;  %v2212_v19 = vmax.f32 %v9436_v55, %v2148_v4  ;;  %2271 = vst.msk [vmem:[#allocation2 + $0x3b0] sm:$0xff] %vm73_vm0, %v2207_v35  ;;  %v2215_v26 = vmax.f32 %v2087_v47, %v2151_v16  ;;  %2273 = vst.msk [vmem:[#allocation2 + $0x3d0] sm:$0xff] %vm73_vm0, %v2209_v41 }
 0x1f5   :  { %v2205_v36 = vmax.f32 %v9422_v61, %v2141_v12  ;;  %v2149_v12 = vld [vmem:[#allocation2 + $0x412] sm:$0xff]  ;;  %v9430_v28 = vmax.f32 %v9428_v51, %v9429_v23  ;;  %2268 = vst.msk [vmem:[#allocation2 + $0x388] sm:$0xff] %vm73_vm0, %v2204_v45  ;;  %v2150_v9 = vld [vmem:[#allocation2 + $0x42a] sm:$0xff]  ;;  %v9435_v57 = vmax.f32 %v9347_v40, %v9434_v56  ;;  %2270 = vst.msk [vmem:[#allocation2 + $0x3a8] sm:$0xff] %vm73_vm0, %v2206_v60 }
 0x1f6   :  { %v2213_v29 = vmax.f32 %v2085_v54, %v2149_v12  ;;  %v2153_v17 = vld [vmem:[#allocation2 + $0x452] sm:$0xff]  ;;  %v2154_v45 = vld [vmem:[#allocation2 + $0x46a] sm:$0xff]  ;;  %v2214_v24 = vmax.f32 %v9437_v22, %v2150_v9  ;;  %2274 = vst.msk [vmem:[#allocation2 + $0x3e8] sm:$0xff] %vm73_vm0, %v2210_v18  ;;  %2276 = vst.msk [vmem:[#allocation2 + $0x408] sm:$0xff] %vm73_vm0, %v2212_v19 }
 0x1f7   :  { %v2208_v59 = vmax.f32 %v9430_v28, %v2144_v11  ;;  %v2152_v11 = vld [vmem:[#allocation2 + $0x44a] sm:$0xff]  ;;  %v2211_v32 = vmax.f32 %v9435_v57, %v2147_v2  ;;  %2269 = vst.msk [vmem:[#allocation2 + $0x390] sm:$0xff] %vm73_vm0, %v2205_v36  ;;  %v2155_v40 = vld [vmem:[#allocation2 + $0x472] sm:$0xff]  ;;  %v2217_v0 = vmax.f32 %v2089_v10, %v2153_v17  ;;  %v2218_v1 = vmax.f32 %v2090_v31, %v2154_v45 }
 0x1f8   :  { %v2216_v46 = vmax.f32 %v2088_v15, %v2152_v11  ;;  %v2293_v44 = vld [vmem:[#allocation2 + $0x50] sm:$0xff]  ;;  %v2219_v30 = vmax.f32 %v2091_v48, %v2155_v40  ;;  %2277 = vst.msk [vmem:[#allocation2 + $0x410] sm:$0xff] %vm73_vm0, %v2213_v29  ;;  %v6785_v34 = vld [vmem:[#allocation2 + $0x2c8] sm:$0xff]  ;;  %2278 = vst.msk [vmem:[#allocation2 + $0x428] sm:$0xff] %vm73_vm0, %v2214_v24  ;;  %v2420_v31 = vmax.f32 %v6759_v8, %v6795_v58 }
 0x1f9   :  { %2272 = vst.msk [vmem:[#allocation2 + $0x3c8] sm:$0xff] %vm73_vm0, %v2208_v59  ;;  %v2156_v54 = vld [vmem:[#allocation2 + $0x48a] sm:$0xff]  ;;  %v2157_v50 = vld [vmem:[#allocation2 + $0x492] sm:$0xff]  ;;  %2275 = vst.msk [vmem:[#allocation2 + $0x3f0] sm:$0xff] %vm73_vm0, %v2211_v32  ;;  %v2452_v6 = vmax.f32 %v6785_v34, %v6802_v53 }
 0x1fa   :  { %v2158_v61 = vld [vmem:[#allocation2 + $0x4aa] sm:$0xff]  ;;  %v2159_v5 = vld [vmem:[#allocation2 + $0x4b2] sm:$0xff]  ;;  %v2220_v33 = vmax.f32 %v2092_v39, %v2156_v54  ;;  %v2221_v47 = vmax.f32 %v2093_v49, %v2157_v50  ;;  %2279 = vst.msk [vmem:[#allocation2 + $0x430] sm:$0xff] %vm73_vm0, %v2215_v26  ;;  %2280 = vst.msk [vmem:[#allocation2 + $0x448] sm:$0xff] %vm73_vm0, %v2216_v46 }
 0x1fb   :  { %v6787_v38 = vld [vmem:[#allocation2 + $0x2d0] sm:$0xff]  ;;  %v2222_v52 = vmax.f32 %v2094_v25, %v2158_v61  ;;  %v2223_v27 = vmax.f32 %v2095_v63, %v2159_v5  ;;  %2281 = vst.msk [vmem:[#allocation2 + $0x450] sm:$0xff] %vm73_vm0, %v2217_v0  ;;  %2282 = vst.msk [vmem:[#allocation2 + $0x468] sm:$0xff] %vm73_vm0, %v2218_v1  ;;  %v2288_v42 = vld [vmem:[#allocation2 + $0x8] sm:$0xff] }
 0x1fc   :  { %v6797_v15 = vld [vmem:[#allocation2 + $0x70] sm:$0xff]  ;;  %2283 = vst.msk [vmem:[#allocation2 + $0x470] sm:$0xff] %vm73_vm0, %v2219_v30  ;;  %2284 = vst.msk [vmem:[#allocation2 + $0x488] sm:$0xff] %vm73_vm0, %v2220_v33  ;;  %v2352_v3 = vld [vmem:[#allocation2 + $0x28] sm:$0xff] }
 0x1fd   :  { %v6804_v10 = vld [vmem:[#allocation2 + $0x2f0] sm:$0xff]  ;;  %2285 = vst.msk [vmem:[#allocation2 + $0x490] sm:$0xff] %vm73_vm0, %v2221_v47  ;;  %2286 = vst.msk [vmem:[#allocation2 + $0x4a8] sm:$0xff] %vm73_vm0, %v2222_v52  ;;  %v2480_v48 = vld [vmem:[#allocation2 + $0x48] sm:$0xff]  ;;  %v2421_v39 = vmax.f32 %v2293_v44, %v6797_v15  ;;  %v2416_v49 = vmax.f32 %v2288_v42, %v2352_v3  ;;  %v2418_v60 = vmax.f32 %v2352_v3, %v6759_v8 }
 0x1fe   :  { %v6811_v14 = vld [vmem:[#allocation2 + $0x88] sm:$0xff]  ;;  %2287 = vst.msk [vmem:[#allocation2 + $0x4b0] sm:$0xff] %vm73_vm0, %v2223_v27  ;;  %v2289_v36 = vld [vmem:[#allocation2 + $0x10] sm:$0xff]  ;;  %v2453_v20 = vmax.f32 %v6787_v38, %v6804_v10 }
 0x1ff   :  { %v2353_v7 = vld [vmem:[#allocation2 + $0x30] sm:$0xff]  ;;  %v2320_v25 = vld [vmem:[#allocation2 + $0x288] sm:$0xff]  ;;  %v2548_v12 = vmax.f32 %v2420_v31, %v6811_v14  ;;  %v2422_v51 = vmax.f32 %v6795_v58, %v6811_v14  ;;  %v2544_v23 = vmax.f32 %v2416_v49, %v2480_v48  ;;  %v2546_v41 = vmax.f32 %v2418_v60, %v6795_v58 }
 0x200   :  { %v2481_v21 = vld [vmem:[#allocation2 + $0x50] sm:$0xff]  ;;  %v2417_v35 = vmax.f32 %v2289_v36, %v2353_v7  ;;  %v2384_v2 = vld [vmem:[#allocation2 + $0x2a8] sm:$0xff]  ;;  %v2419_v4 = vmax.f32 %v2353_v7, %v2293_v44 }
 0x201   :  { %v6820_v43 = vld [vmem:[#allocation2 + $0x90] sm:$0xff]  ;;  %v2448_v28 = vmax.f32 %v2320_v25, %v2384_v2  ;;  %v2512_v59 = vld [vmem:[#allocation2 + $0x2c8] sm:$0xff]  ;;  %v2450_v13 = vmax.f32 %v2384_v2, %v6785_v34  ;;  %v2672_v56 = vmax.f32 %v2544_v23, %v6795_v58  ;;  %v2674_v55 = vmax.f32 %v2546_v41, %v6811_v14 }
 0x202   :  { %v2321_v37 = vld [vmem:[#allocation2 + $0x290] sm:$0xff]  ;;  %v2545_v18 = vmax.f32 %v2417_v35, %v2481_v21  ;;  %v2547_v9 = vmax.f32 %v2419_v4, %v6797_v15  ;;  %v2549_v16 = vmax.f32 %v2421_v39, %v6820_v43  ;;  %v2423_v11 = vmax.f32 %v6797_v15, %v6820_v43  ;;  %v6834_v29 = vld [vmem:[#allocation2 + $0xa8] sm:$0xff] }
 0x203   :  { %v2385_v62 = vld [vmem:[#allocation2 + $0x2b0] sm:$0xff]  ;;  %v2576_v57 = vmax.f32 %v2448_v28, %v2512_v59  ;;  %v2578_v17 = vmax.f32 %v2450_v13, %v6802_v53  ;;  %v2800_v40 = vmax.f32 %v2672_v56, %v6811_v14  ;;  %v6841_v24 = vld [vmem:[#allocation2 + $0x308] sm:$0xff]  ;;  %v2802_v46 = vmax.f32 %v2674_v55, %v6834_v29 }
 0x204   :  { %v2513_v63 = vld [vmem:[#allocation2 + $0x2d0] sm:$0xff]  ;;  %v2449_v32 = vmax.f32 %v2321_v37, %v2385_v62  ;;  %v2673_v19 = vmax.f32 %v2545_v18, %v6797_v15  ;;  %v2675_v8 = vmax.f32 %v2547_v9, %v6820_v43  ;;  %v2451_v45 = vmax.f32 %v2385_v62, %v6787_v38  ;;  %v6861_v33 = vld [vmem:[#allocation2 + $0x328] sm:$0xff] }
 0x205   :  { %v2704_v22 = vmax.f32 %v2576_v57, %v6802_v53  ;;  %v2739_v44 = vld [vmem:[#allocation2 + $0xb0] sm:$0xff]  ;;  %v2706_v61 = vmax.f32 %v2578_v17, %v6841_v24  ;;  %4405 = vst.msk [vmem:[%s8709_s1 + $0x100] sm:$0xff] %vm73_vm0, %v2800_v40  ;;  %2929 = vst.msk [vmem:[#allocation2 + $0x48] sm:$0xff] %vm73_vm0, %v2800_v40  ;;  %v2676_v47 = vmax.f32 %v2548_v12, %v6834_v29  ;;  %v2740_v27 = vld [vmem:[#allocation2 + $0xc8] sm:$0xff] }
 0x206   :  { %v2577_v26 = vmax.f32 %v2449_v32, %v2513_v63  ;;  %v2801_v54 = vmax.f32 %v2673_v19, %v6820_v43  ;;  %v2803_v50 = vmax.f32 %v2675_v8, %v2739_v44  ;;  %v2579_v0 = vmax.f32 %v2451_v45, %v6804_v10  ;;  %v6854_v5 = vld [vmem:[#allocation2 + $0x310] sm:$0xff]  ;;  %4407 = vst.msk [vmem:[%s8709_s1 + $0x110] sm:$0xff] %vm73_vm0, %v2802_v46  ;;  %v6877_v3 = vld [vmem:[#allocation2 + $0xe8] sm:$0xff] }
 0x207   :  { %v2832_v1 = vmax.f32 %v2704_v22, %v6841_v24  ;;  %2931 = vst.msk [vmem:[#allocation2 + $0x68] sm:$0xff] %vm73_vm0, %v2802_v46  ;;  %v2677_v52 = vmax.f32 %v2549_v16, %v2739_v44  ;;  %v2834_v58 = vmax.f32 %v2706_v61, %v6861_v33  ;;  %v2741_v42 = vld [vmem:[#allocation2 + $0xd0] sm:$0xff]  ;;  %v2550_v31 = vmax.f32 %v2422_v51, %v6834_v29  ;;  %v6911_v12 = vld [vmem:[#allocation2 + $0x108] sm:$0xff] }
 0x208   :  { %v2705_v30 = vmax.f32 %v2577_v26, %v6804_v10  ;;  %4406 = vst.msk [vmem:[%s8709_s1 + $0x108] sm:$0xff] %vm73_vm0, %v2801_v54  ;;  %2930 = vst.msk [vmem:[#allocation2 + $0x50] sm:$0xff] %vm73_vm0, %v2801_v54  ;;  %v2707_v15 = vmax.f32 %v2579_v0, %v6854_v5  ;;  %v2551_v48 = vmax.f32 %v2423_v11, %v2739_v44  ;;  %v6885_v49 = vld [vmem:[#allocation2 + $0x330] sm:$0xff]  ;;  %v6929_v63 = vld [vmem:[#allocation2 + $0x128] sm:$0xff] }
 0x209   :  { %4408 = vst.msk [vmem:[%s8709_s1 + $0x118] sm:$0xff] %vm73_vm0, %v2803_v50  ;;  %2932 = vst.msk [vmem:[#allocation2 + $0x70] sm:$0xff] %vm73_vm0, %v2803_v50  ;;  %v2804_v36 = vmax.f32 %v2676_v47, %v2740_v27  ;;  %v2805_v7 = vmax.f32 %v2677_v52, %v2741_v42  ;;  %v6887_v21 = vld [vmem:[#allocation2 + $0xf0] sm:$0xff]  ;;  %v2424_v60 = vmax.f32 %v6811_v14, %v6834_v29  ;;  %v6954_v46 = vld [vmem:[#allocation2 + $0x148] sm:$0xff] }
 0x20a   :  { %4437 = vst.msk [vmem:[%s8709_s1 + $0x500] sm:$0xff] %vm73_vm0, %v2832_v1  ;;  %2961 = vst.msk [vmem:[#allocation2 + $0x2c8] sm:$0xff] %vm73_vm0, %v2832_v1  ;;  %v2833_v39 = vmax.f32 %v2705_v30, %v6854_v5  ;;  %v2835_v35 = vmax.f32 %v2707_v15, %v6885_v49  ;;  %v2678_v25 = vmax.f32 %v2550_v31, %v2740_v27  ;;  %v6943_v32 = vld [vmem:[#allocation2 + $0x130] sm:$0xff] }
 0x20b   :  { %4439 = vst.msk [vmem:[%s8709_s1 + $0x510] sm:$0xff] %vm73_vm0, %v2834_v58  ;;  %2963 = vst.msk [vmem:[#allocation2 + $0x2e8] sm:$0xff] %vm73_vm0, %v2834_v58  ;;  %v2679_v2 = vmax.f32 %v2551_v48, %v2741_v42  ;;  %v2425_v4 = vmax.f32 %v6820_v43, %v2739_v44  ;;  %v2552_v14 = vmax.f32 %v2424_v60, %v2740_v27  ;;  %v6914_v43 = vld [vmem:[#allocation2 + $0x110] sm:$0xff] }
 0x20c   :  { %4438 = vst.msk [vmem:[%s8709_s1 + $0x508] sm:$0xff] %vm73_vm0, %v2833_v39  ;;  %2962 = vst.msk [vmem:[#allocation2 + $0x2d0] sm:$0xff] %vm73_vm0, %v2833_v39  ;;  %v2426_v51 = vmax.f32 %v6834_v29, %v2740_v27  ;;  %v2427_v23 = vmax.f32 %v2739_v44, %v2741_v42  ;;  %v2428_v28 = vmax.f32 %v2740_v27, %v6877_v3  ;;  %v2993_v11 = vld [vmem:[#allocation2 + $0x46] sm:$0xff]  ;;  %v6956_v44 = vld [vmem:[#allocation2 + $0x150] sm:$0xff] }
 0x20d   :  { %4409 = vst.msk [vmem:[%s8709_s1 + $0x120] sm:$0xff] %vm73_vm0, %v2804_v36  ;;  %4410 = vst.msk [vmem:[%s8709_s1 + $0x128] sm:$0xff] %vm73_vm0, %v2805_v7  ;;  %v2806_v59 = vmax.f32 %v2678_v25, %v6877_v3  ;;  %v2807_v37 = vmax.f32 %v2679_v2, %v6887_v21  ;;  %v2553_v41 = vmax.f32 %v2425_v4, %v2741_v42  ;;  %v3057_v56 = vld [vmem:[#allocation2 + $0x47] sm:$0xff] }
 0x20e   :  { %2933 = vst.msk [vmem:[#allocation2 + $0x88] sm:$0xff] %vm73_vm0, %v2804_v36  ;;  %2934 = vst.msk [vmem:[#allocation2 + $0x90] sm:$0xff] %vm73_vm0, %v2805_v7  ;;  %v2429_v13 = vmax.f32 %v2741_v42, %v6887_v21  ;;  %v2680_v18 = vmax.f32 %v2552_v14, %v6877_v3  ;;  %v2554_v62 = vmax.f32 %v2426_v51, %v6877_v3  ;;  %v3185_v0 = vld [vmem:[#allocation2 + $0x48] sm:$0xff] }
 0x20f   :  { %4440 = vst.msk [vmem:[%s8709_s1 + $0x518] sm:$0xff] %vm73_vm0, %v2835_v35  ;;  %2964 = vst.msk [vmem:[#allocation2 + $0x2f0] sm:$0xff] %vm73_vm0, %v2835_v35  ;;  %v2555_v9 = vmax.f32 %v2427_v23, %v6887_v21  ;;  %v2556_v16 = vmax.f32 %v2428_v28, %v6911_v12  ;;  %v2681_v57 = vmax.f32 %v2553_v41, %v6887_v21  ;;  %v2994_v8 = vld [vmem:[#allocation2 + $0x4e] sm:$0xff] }
 0x210   :  { %4411 = vst.msk [vmem:[%s8709_s1 + $0x130] sm:$0xff] %vm73_vm0, %v2806_v59  ;;  %4412 = vst.msk [vmem:[%s8709_s1 + $0x138] sm:$0xff] %vm73_vm0, %v2807_v37  ;;  %v2557_v55 = vmax.f32 %v2429_v13, %v6914_v43  ;;  %v2430_v19 = vmax.f32 %v6877_v3, %v6911_v12  ;;  %v2431_v29 = vmax.f32 %v6887_v21, %v6914_v43  ;;  %v3058_v17 = vld [vmem:[#allocation2 + $0x4f] sm:$0xff] }
 0x211   :  { %2935 = vst.msk [vmem:[#allocation2 + $0xa8] sm:$0xff] %vm73_vm0, %v2806_v59  ;;  %2936 = vst.msk [vmem:[#allocation2 + $0xb0] sm:$0xff] %vm73_vm0, %v2807_v37  ;;  %v3121_v45 = vmax.f32 %v2993_v11, %v3057_v56  ;;  %v2808_v40 = vmax.f32 %v2680_v18, %v6911_v12  ;;  %v2682_v22 = vmax.f32 %v2554_v62, %v6911_v12  ;;  %v3025_v54 = vld [vmem:[#allocation2 + $0x2c6] sm:$0xff]  ;;  %v3186_v58 = vld [vmem:[#allocation2 + $0x50] sm:$0xff] }
 0x212   :  { %v2683_v26 = vmax.f32 %v2555_v9, %v6914_v43  ;;  %v3089_v50 = vld [vmem:[#allocation2 + $0x2c7] sm:$0xff]  ;;  %v3122_v61 = vmax.f32 %v2994_v8, %v3058_v17  ;;  %v2809_v1 = vmax.f32 %v2681_v57, %v6914_v43  ;;  %v2684_v30 = vmax.f32 %v2556_v16, %v6929_v63  ;;  %v3314_v7 = vld [vmem:[#allocation2 + $0x51] sm:$0xff] }
 0x213   :  { %v2685_v47 = vmax.f32 %v2557_v55, %v6943_v32  ;;  %v3153_v52 = vmax.f32 %v3025_v54, %v3089_v50  ;;  %v3217_v15 = vld [vmem:[#allocation2 + $0x2c8] sm:$0xff]  ;;  %v3249_v27 = vmax.f32 %v3121_v45, %v3185_v0  ;;  %4413 = vst.msk [vmem:[%s8709_s1 + $0x140] sm:$0xff] %vm73_vm0, %v2808_v40  ;;  %v2810_v31 = vmax.f32 %v2682_v22, %v6929_v63  ;;  %v3218_v2 = vld [vmem:[#allocation2 + $0x2d0] sm:$0xff] }
 0x214   :  { %v3313_v42 = vld [vmem:[#allocation2 + $0x49] sm:$0xff]  ;;  %v2811_v3 = vmax.f32 %v2683_v26, %v6943_v32  ;;  %2937 = vst.msk [vmem:[#allocation2 + $0xc8] sm:$0xff] %vm73_vm0, %v2808_v40  ;;  %v3250_v36 = vmax.f32 %v3122_v61, %v3186_v58  ;;  %4414 = vst.msk [vmem:[%s8709_s1 + $0x148] sm:$0xff] %vm73_vm0, %v2809_v1  ;;  %v2812_v21 = vmax.f32 %v2684_v30, %v6954_v46  ;;  %v3346_v37 = vld [vmem:[#allocation2 + $0x2d1] sm:$0xff] }
 0x215   :  { %v3026_v48 = vld [vmem:[#allocation2 + $0x2ce] sm:$0xff]  ;;  %v2813_v60 = vmax.f32 %v2685_v47, %v6956_v44  ;;  %2938 = vst.msk [vmem:[#allocation2 + $0xd0] sm:$0xff] %vm73_vm0, %v2809_v1  ;;  %v2558_v35 = vmax.f32 %v2430_v19, %v6929_v63  ;;  %v3281_v4 = vmax.f32 %v3153_v52, %v3217_v15  ;;  %v3377_v51 = vmax.f32 %v3249_v27, %v3313_v42  ;;  %v2995_v62 = vld [vmem:[#allocation2 + $0x66] sm:$0xff] }
 0x216   :  { %v3090_v39 = vld [vmem:[#allocation2 + $0x2cf] sm:$0xff]  ;;  %4415 = vst.msk [vmem:[%s8709_s1 + $0x150] sm:$0xff] %vm73_vm0, %v2810_v31  ;;  %4416 = vst.msk [vmem:[%s8709_s1 + $0x158] sm:$0xff] %vm73_vm0, %v2811_v3  ;;  %v2559_v59 = vmax.f32 %v2431_v29, %v6943_v32  ;;  %v3378_v41 = vmax.f32 %v3250_v36, %v3314_v7  ;;  %v2432_v16 = vmax.f32 %v6911_v12, %v6929_v63  ;;  %v3027_v29 = vld [vmem:[#allocation2 + $0x2e6] sm:$0xff] }
 0x217   :  { %v3154_v25 = vmax.f32 %v3026_v48, %v3090_v39  ;;  %v3345_v14 = vld [vmem:[#allocation2 + $0x2c9] sm:$0xff]  ;;  %2939 = vst.msk [vmem:[#allocation2 + $0xe8] sm:$0xff] %vm73_vm0, %v2810_v31  ;;  %2940 = vst.msk [vmem:[#allocation2 + $0xf0] sm:$0xff] %vm73_vm0, %v2811_v3  ;;  %v3442_v13 = vld [vmem:[#allocation2 + $0x52] sm:$0xff]  ;;  %v2686_v9 = vmax.f32 %v2558_v35, %v6954_v46  ;;  %v2433_v11 = vmax.f32 %v6914_v43, %v6943_v32 }
 0x218   :  { %v3441_v23 = vld [vmem:[#allocation2 + $0x4a] sm:$0xff]  ;;  %4417 = vst.msk [vmem:[%s8709_s1 + $0x160] sm:$0xff] %vm73_vm0, %v2812_v21  ;;  %4418 = vst.msk [vmem:[%s8709_s1 + $0x168] sm:$0xff] %vm73_vm0, %v2813_v60  ;;  %v3409_v57 = vmax.f32 %v3281_v4, %v3345_v14  ;;  %v2687_v17 = vmax.f32 %v2559_v59, %v6956_v44  ;;  %v3506_v45 = vmax.f32 %v3378_v41, %v3442_v13  ;;  %v3474_v52 = vld [vmem:[#allocation2 + $0x2d2] sm:$0xff] }
 0x219   :  { %v6984_v28 = vld [vmem:[#allocation2 + $0x168] sm:$0xff]  ;;  %2941 = vst.msk [vmem:[#allocation2 + $0x108] sm:$0xff] %vm73_vm0, %v2812_v21  ;;  %2942 = vst.msk [vmem:[#allocation2 + $0x110] sm:$0xff] %vm73_vm0, %v2813_v60  ;;  %v3282_v56 = vmax.f32 %v3154_v25, %v3218_v2  ;;  %v3505_v55 = vmax.f32 %v3377_v51, %v3441_v23  ;;  %v2560_v54 = vmax.f32 %v2432_v16, %v6954_v46  ;;  %v7009_v47 = vld [vmem:[#allocation2 + $0x170] sm:$0xff] }
 0x21a   :  { %v3473_v18 = vld [vmem:[#allocation2 + $0x2ca] sm:$0xff]  ;;  %v2814_v12 = vmax.f32 %v2686_v9, %v6984_v28  ;;  %v2561_v43 = vmax.f32 %v2433_v11, %v6956_v44  ;;  %3570 = vst.msk [vmem:[#allocation2 + $0x50] sm:$0xff] %vm73_vm0, %v3506_v45  ;;  %v2815_v31 = vmax.f32 %v2687_v17, %v7009_v47  ;;  %v2434_v59 = vmax.f32 %v6929_v63, %v6954_v46 }
 0x21b   :  { %v2996_v19 = vld [vmem:[#allocation2 + $0x6e] sm:$0xff]  ;;  %v3410_v50 = vmax.f32 %v3282_v56, %v3346_v37  ;;  %v3537_v61 = vmax.f32 %v3409_v57, %v3473_v18  ;;  %3569 = vst.msk [vmem:[#allocation2 + $0x48] sm:$0xff] %vm73_vm0, %v3505_v55  ;;  %v2688_v3 = vmax.f32 %v2560_v54, %v6984_v28  ;;  %v2435_v9 = vmax.f32 %v6943_v32, %v6956_v44 }
 0x21c   :  { %v3028_v8 = vld [vmem:[#allocation2 + $0x2ee] sm:$0xff]  ;;  %4419 = vst.msk [vmem:[%s8709_s1 + $0x170] sm:$0xff] %vm73_vm0, %v2814_v12  ;;  %2943 = vst.msk [vmem:[#allocation2 + $0x128] sm:$0xff] %vm73_vm0, %v2814_v12  ;;  %v2689_v35 = vmax.f32 %v2561_v43, %v7009_v47  ;;  %v2562_v63 = vmax.f32 %v2434_v59, %v6984_v28  ;;  %v2454_v38 = vmax.f32 %v6802_v53, %v6841_v24 }
 0x21d   :  { %v3059_v40 = vld [vmem:[#allocation2 + $0x67] sm:$0xff]  ;;  %v3060_v22 = vld [vmem:[#allocation2 + $0x6f] sm:$0xff]  ;;  %v3538_v48 = vmax.f32 %v3410_v50, %v3474_v52  ;;  %3601 = vst.msk [vmem:[#allocation2 + $0x2c8] sm:$0xff] %vm73_vm0, %v3537_v61  ;;  %4420 = vst.msk [vmem:[%s8709_s1 + $0x178] sm:$0xff] %vm73_vm0, %v2815_v31  ;;  %v2563_v45 = vmax.f32 %v2435_v9, %v7009_v47 }
 0x21e   :  { %v3091_v26 = vld [vmem:[#allocation2 + $0x2e7] sm:$0xff]  ;;  %v3092_v0 = vld [vmem:[#allocation2 + $0x2ef] sm:$0xff]  ;;  %v3123_v1 = vmax.f32 %v2995_v62, %v3059_v40  ;;  %v3124_v30 = vmax.f32 %v2996_v19, %v3060_v22  ;;  %2944 = vst.msk [vmem:[#allocation2 + $0x130] sm:$0xff] %vm73_vm0, %v2815_v31  ;;  %v2436_v19 = vmax.f32 %v6954_v46, %v6984_v28  ;;  %v2437_v22 = vmax.f32 %v6956_v44, %v7009_v47 }
 0x21f   :  { %v3155_v58 = vmax.f32 %v3027_v29, %v3091_v26  ;;  %v3156_v15 = vmax.f32 %v3028_v8, %v3092_v0  ;;  %v3187_v27 = vld [vmem:[#allocation2 + $0x68] sm:$0xff]  ;;  %v3188_v42 = vld [vmem:[#allocation2 + $0x70] sm:$0xff]  ;;  %3602 = vst.msk [vmem:[#allocation2 + $0x2d0] sm:$0xff] %vm73_vm0, %v3538_v48 }
 0x220   :  { %v3219_v39 = vld [vmem:[#allocation2 + $0x2e8] sm:$0xff]  ;;  %v3220_v36 = vld [vmem:[#allocation2 + $0x2f0] sm:$0xff]  ;;  %v3251_v7 = vmax.f32 %v3123_v1, %v3187_v27  ;;  %v3252_v21 = vmax.f32 %v3124_v30, %v3188_v42 }
 0x221   :  { %v7020_v60 = vld [vmem:[#allocation2 + $0x188] sm:$0xff]  ;;  %v3283_v25 = vmax.f32 %v3155_v58, %v3219_v39  ;;  %v3284_v2 = vmax.f32 %v3156_v15, %v3220_v36  ;;  %v3316_v14 = vld [vmem:[#allocation2 + $0x71] sm:$0xff] }
 0x222   :  { %v3315_v4 = vld [vmem:[#allocation2 + $0x69] sm:$0xff]  ;;  %v2816_v51 = vmax.f32 %v2688_v3, %v7020_v60  ;;  %v3348_v41 = vld [vmem:[#allocation2 + $0x2f1] sm:$0xff]  ;;  %v3380_v18 = vmax.f32 %v3252_v21, %v3316_v14  ;;  %v2690_v12 = vmax.f32 %v2562_v63, %v7020_v60  ;;  %v2564_v54 = vmax.f32 %v2436_v19, %v7020_v60 }
 0x223   :  { %v2753_v23 = vld [vmem:[#allocation2 + $0x190] sm:$0xff]  ;;  %v3379_v13 = vmax.f32 %v3251_v7, %v3315_v4  ;;  %v3412_v11 = vmax.f32 %v3284_v2, %v3348_v41  ;;  %v2754_v55 = vld [vmem:[#allocation2 + $0x1a8] sm:$0xff]  ;;  %v2438_v0 = vmax.f32 %v6984_v28, %v7020_v60 }
 0x224   :  { %v3347_v37 = vld [vmem:[#allocation2 + $0x2e9] sm:$0xff]  ;;  %v2817_v62 = vmax.f32 %v2689_v35, %v2753_v23  ;;  %v3444_v57 = vld [vmem:[#allocation2 + $0x72] sm:$0xff]  ;;  %4421 = vst.msk [vmem:[%s8709_s1 + $0x180] sm:$0xff] %vm73_vm0, %v2816_v51  ;;  %2945 = vst.msk [vmem:[#allocation2 + $0x148] sm:$0xff] %vm73_vm0, %v2816_v51  ;;  %v2691_v43 = vmax.f32 %v2563_v45, %v2753_v23  ;;  %v2565_v61 = vmax.f32 %v2437_v22, %v2753_v23 }
 0x225   :  { %v3411_v16 = vmax.f32 %v3283_v25, %v3347_v37  ;;  %v3443_v56 = vld [vmem:[#allocation2 + $0x6a] sm:$0xff]  ;;  %v3476_v8 = vld [vmem:[#allocation2 + $0x2f2] sm:$0xff]  ;;  %v3508_v17 = vmax.f32 %v3380_v18, %v3444_v57  ;;  %v2439_v44 = vmax.f32 %v7009_v47, %v2753_v23  ;;  %v2818_v1 = vmax.f32 %v2690_v12, %v2754_v55 }
 0x226   :  { %v3475_v29 = vld [vmem:[#allocation2 + $0x2ea] sm:$0xff]  ;;  %v3507_v32 = vmax.f32 %v3379_v13, %v3443_v56  ;;  %4422 = vst.msk [vmem:[%s8709_s1 + $0x188] sm:$0xff] %vm73_vm0, %v2817_v62  ;;  %2946 = vst.msk [vmem:[#allocation2 + $0x150] sm:$0xff] %vm73_vm0, %v2817_v62  ;;  %v3540_v26 = vmax.f32 %v3412_v11, %v3476_v8  ;;  %v2692_v30 = vmax.f32 %v2564_v54, %v2754_v55 }
 0x227   :  { %v2755_v40 = vld [vmem:[#allocation2 + $0x1b0] sm:$0xff]  ;;  %v3539_v46 = vmax.f32 %v3411_v16, %v3475_v29  ;;  %3572 = vst.msk [vmem:[#allocation2 + $0x70] sm:$0xff] %vm73_vm0, %v3508_v17  ;;  %v2756_v50 = vld [vmem:[#allocation2 + $0x1c8] sm:$0xff]  ;;  %v2440_v58 = vmax.f32 %v7020_v60, %v2754_v55  ;;  %v2566_v31 = vmax.f32 %v2438_v0, %v2754_v55  ;;  %4423 = vst.msk [vmem:[%s8709_s1 + $0x190] sm:$0xff] %vm73_vm0, %v2818_v1 }
 0x228   :  { %3571 = vst.msk [vmem:[#allocation2 + $0x68] sm:$0xff] %vm73_vm0, %v3507_v32  ;;  %3604 = vst.msk [vmem:[#allocation2 + $0x2f0] sm:$0xff] %vm73_vm0, %v3540_v26  ;;  %v2757_v52 = vld [vmem:[#allocation2 + $0x1d0] sm:$0xff]  ;;  %v2441_v15 = vmax.f32 %v2753_v23, %v2755_v40  ;;  %v2819_v27 = vmax.f32 %v2691_v43, %v2755_v40  ;;  %v2693_v42 = vmax.f32 %v2565_v61, %v2755_v40  ;;  %v2758_v3 = vld [vmem:[#allocation2 + $0x1e8] sm:$0xff] }
 0x229   :  { %3603 = vst.msk [vmem:[#allocation2 + $0x2e8] sm:$0xff] %vm73_vm0, %v3539_v46  ;;  %v2567_v48 = vmax.f32 %v2439_v44, %v2755_v40  ;;  %v2820_v28 = vmax.f32 %v2692_v30, %v2756_v50  ;;  %2947 = vst.msk [vmem:[#allocation2 + $0x168] sm:$0xff] %vm73_vm0, %v2818_v1  ;;  %v2759_v47 = vld [vmem:[#allocation2 + $0x1f0] sm:$0xff]  ;;  %v2568_v39 = vmax.f32 %v2440_v58, %v2756_v50  ;;  %v2760_v4 = vld [vmem:[#allocation2 + $0x208] sm:$0xff] }
 0x22a   :  { %v2569_v36 = vmax.f32 %v2441_v15, %v2757_v52  ;;  %v2442_v7 = vmax.f32 %v2754_v55, %v2756_v50  ;;  %4424 = vst.msk [vmem:[%s8709_s1 + $0x198] sm:$0xff] %vm73_vm0, %v2819_v27  ;;  %v2821_v21 = vmax.f32 %v2693_v42, %v2757_v52  ;;  %v2694_v60 = vmax.f32 %v2566_v31, %v2756_v50  ;;  %v2761_v51 = vld [vmem:[#allocation2 + $0x210] sm:$0xff]  ;;  %v2762_v56 = vld [vmem:[#allocation2 + $0x228] sm:$0xff] }
 0x22b   :  { %v2695_v35 = vmax.f32 %v2567_v48, %v2757_v52  ;;  %2948 = vst.msk [vmem:[#allocation2 + $0x170] sm:$0xff] %vm73_vm0, %v2819_v27  ;;  %v2443_v25 = vmax.f32 %v2755_v40, %v2757_v52  ;;  %4425 = vst.msk [vmem:[%s8709_s1 + $0x1a0] sm:$0xff] %vm73_vm0, %v2820_v28  ;;  %v2696_v2 = vmax.f32 %v2568_v39, %v2758_v3  ;;  %v2763_v8 = vld [vmem:[#allocation2 + $0x230] sm:$0xff]  ;;  %v2764_v22 = vld [vmem:[#allocation2 + $0x248] sm:$0xff] }
 0x22c   :  { %2949 = vst.msk [vmem:[#allocation2 + $0x188] sm:$0xff] %vm73_vm0, %v2820_v28  ;;  %v2697_v14 = vmax.f32 %v2569_v36, %v2759_v47  ;;  %v2570_v23 = vmax.f32 %v2442_v7, %v2758_v3  ;;  %v2444_v59 = vmax.f32 %v2756_v50, %v2758_v3  ;;  %4426 = vst.msk [vmem:[%s8709_s1 + $0x1a8] sm:$0xff] %vm73_vm0, %v2821_v21  ;;  %v2765_v43 = vld [vmem:[#allocation2 + $0x250] sm:$0xff]  ;;  %v2766_v61 = vld [vmem:[#allocation2 + $0x268] sm:$0xff] }
 0x22d   :  { %v2822_v37 = vmax.f32 %v2694_v60, %v2758_v3  ;;  %v2823_v41 = vmax.f32 %v2695_v35, %v2759_v47  ;;  %2950 = vst.msk [vmem:[#allocation2 + $0x190] sm:$0xff] %vm73_vm0, %v2821_v21  ;;  %v2571_v13 = vmax.f32 %v2443_v25, %v2759_v47  ;;  %v2445_v18 = vmax.f32 %v2757_v52, %v2759_v47  ;;  %v2772_v44 = vld [vmem:[#allocation2 + $0x348] sm:$0xff]  ;;  %v2773_v1 = vld [vmem:[#allocation2 + $0x350] sm:$0xff] }
 0x22e   :  { %v2824_v62 = vmax.f32 %v2696_v2, %v2760_v4  ;;  %v2825_v9 = vmax.f32 %v2697_v14, %v2761_v51  ;;  %v2698_v16 = vmax.f32 %v2570_v23, %v2760_v4  ;;  %v2572_v11 = vmax.f32 %v2444_v59, %v2760_v4  ;;  %v2767_v53 = vld [vmem:[#allocation2 + $0x270] sm:$0xff]  ;;  %v2774_v27 = vld [vmem:[#allocation2 + $0x368] sm:$0xff] }
 0x22f   :  { %4427 = vst.msk [vmem:[%s8709_s1 + $0x1b0] sm:$0xff] %vm73_vm0, %v2822_v37  ;;  %4428 = vst.msk [vmem:[%s8709_s1 + $0x1b8] sm:$0xff] %vm73_vm0, %v2823_v41  ;;  %v2699_v57 = vmax.f32 %v2571_v13, %v2761_v51  ;;  %v2573_v63 = vmax.f32 %v2445_v18, %v2761_v51  ;;  %v2446_v55 = vmax.f32 %v2758_v3, %v2760_v4  ;;  %v7130_v42 = vld [vmem:[#allocation2 + $0x370] sm:$0xff]  ;;  %v2776_v7 = vld [vmem:[#allocation2 + $0x388] sm:$0xff] }
 0x230   :  { %2951 = vst.msk [vmem:[#allocation2 + $0x1a8] sm:$0xff] %vm73_vm0, %v2822_v37  ;;  %2952 = vst.msk [vmem:[#allocation2 + $0x1b0] sm:$0xff] %vm73_vm0, %v2823_v41  ;;  %v2447_v19 = vmax.f32 %v2759_v47, %v2761_v51  ;;  %v2826_v29 = vmax.f32 %v2698_v16, %v2762_v56  ;;  %v2700_v32 = vmax.f32 %v2572_v11, %v2762_v56  ;;  %v2777_v25 = vld [vmem:[#allocation2 + $0x390] sm:$0xff]  ;;  %v2778_v23 = vld [vmem:[#allocation2 + $0x3a8] sm:$0xff] }
 0x231   :  { %4429 = vst.msk [vmem:[%s8709_s1 + $0x1c0] sm:$0xff] %vm73_vm0, %v2824_v62  ;;  %4430 = vst.msk [vmem:[%s8709_s1 + $0x1c8] sm:$0xff] %vm73_vm0, %v2825_v9  ;;  %v2580_v17 = vmax.f32 %v2452_v6, %v6841_v24  ;;  %v2581_v45 = vmax.f32 %v2453_v20, %v6854_v5  ;;  %v2827_v40 = vmax.f32 %v2699_v57, %v2763_v8 }
 0x232   :  { %2953 = vst.msk [vmem:[#allocation2 + $0x1c8] sm:$0xff] %vm73_vm0, %v2824_v62  ;;  %2954 = vst.msk [vmem:[#allocation2 + $0x1d0] sm:$0xff] %vm73_vm0, %v2825_v9  ;;  %v2701_v46 = vmax.f32 %v2573_v63, %v2763_v8  ;;  %v2574_v26 = vmax.f32 %v2446_v55, %v2762_v56  ;;  %v2575_v12 = vmax.f32 %v2447_v19, %v2763_v8  ;;  %v2779_v62 = vld [vmem:[#allocation2 + $0x3b0] sm:$0xff]  ;;  %v2780_v56 = vld [vmem:[#allocation2 + $0x3c8] sm:$0xff] }
 0x233   :  { %4431 = vst.msk [vmem:[%s8709_s1 + $0x1d0] sm:$0xff] %vm73_vm0, %v2826_v29  ;;  %v2828_v54 = vmax.f32 %v2700_v32, %v2764_v22  ;;  %2955 = vst.msk [vmem:[#allocation2 + $0x1e8] sm:$0xff] %vm73_vm0, %v2826_v29  ;;  %v2708_v34 = vmax.f32 %v2580_v17, %v6861_v33  ;;  %v2709_v6 = vmax.f32 %v2581_v45, %v6885_v49  ;;  %v2781_v63 = vld [vmem:[#allocation2 + $0x3d0] sm:$0xff]  ;;  %v2782_v32 = vld [vmem:[#allocation2 + $0x3e8] sm:$0xff] }
 0x234   :  { %4432 = vst.msk [vmem:[%s8709_s1 + $0x1d8] sm:$0xff] %vm73_vm0, %v2827_v40  ;;  %v2829_v20 = vmax.f32 %v2701_v46, %v2765_v43  ;;  %v2702_v50 = vmax.f32 %v2574_v26, %v2764_v22  ;;  %v2703_v0 = vmax.f32 %v2575_v12, %v2765_v43  ;;  %2956 = vst.msk [vmem:[#allocation2 + $0x1f0] sm:$0xff] %vm73_vm0, %v2827_v40  ;;  %v7184_v17 = vld [vmem:[#allocation2 + $0x3f0] sm:$0xff] }
 0x235   :  { %v2455_v30 = vmax.f32 %v6804_v10, %v6854_v5  ;;  %4433 = vst.msk [vmem:[%s8709_s1 + $0x1e0] sm:$0xff] %vm73_vm0, %v2828_v54  ;;  %2957 = vst.msk [vmem:[#allocation2 + $0x208] sm:$0xff] %vm73_vm0, %v2828_v54  ;;  %v2836_v52 = vmax.f32 %v2708_v34, %v2772_v44  ;;  %v2837_v58 = vmax.f32 %v2709_v6, %v2773_v1 }
 0x236   :  { %v2582_v15 = vmax.f32 %v2454_v38, %v6861_v33  ;;  %v2456_v31 = vmax.f32 %v6841_v24, %v6861_v33  ;;  %4434 = vst.msk [vmem:[%s8709_s1 + $0x1e8] sm:$0xff] %vm73_vm0, %v2829_v20  ;;  %v2830_v10 = vmax.f32 %v2702_v50, %v2766_v61  ;;  %v2831_v3 = vmax.f32 %v2703_v0, %v2767_v53  ;;  %v2784_v38 = vld [vmem:[#allocation2 + $0x408] sm:$0xff] }
 0x237   :  { %2958 = vst.msk [vmem:[#allocation2 + $0x210] sm:$0xff] %vm73_vm0, %v2829_v20  ;;  %v2583_v48 = vmax.f32 %v2455_v30, %v6885_v49  ;;  %v2457_v28 = vmax.f32 %v6854_v5, %v6885_v49  ;;  %4441 = vst.msk [vmem:[%s8709_s1 + $0x520] sm:$0xff] %vm73_vm0, %v2836_v52  ;;  %v2458_v39 = vmax.f32 %v6861_v33, %v2772_v44 }
 0x238   :  { %4442 = vst.msk [vmem:[%s8709_s1 + $0x528] sm:$0xff] %vm73_vm0, %v2837_v58  ;;  %v2710_v24 = vmax.f32 %v2582_v15, %v2772_v44  ;;  %v2584_v47 = vmax.f32 %v2456_v31, %v2772_v44  ;;  %2965 = vst.msk [vmem:[#allocation2 + $0x308] sm:$0xff] %vm73_vm0, %v2836_v52  ;;  %v2459_v5 = vmax.f32 %v6885_v49, %v2773_v1  ;;  %v2786_v15 = vld [vmem:[#allocation2 + $0x428] sm:$0xff] }
 0x239   :  { %2966 = vst.msk [vmem:[#allocation2 + $0x310] sm:$0xff] %vm73_vm0, %v2837_v58  ;;  %4435 = vst.msk [vmem:[%s8709_s1 + $0x1f0] sm:$0xff] %vm73_vm0, %v2830_v10  ;;  %v2711_v36 = vmax.f32 %v2583_v48, %v2773_v1  ;;  %v2585_v21 = vmax.f32 %v2457_v28, %v2773_v1  ;;  %v2460_v33 = vmax.f32 %v2772_v44, %v2774_v27  ;;  %v2787_v48 = vld [vmem:[#allocation2 + $0x430] sm:$0xff] }
 0x23a   :  { %2959 = vst.msk [vmem:[#allocation2 + $0x228] sm:$0xff] %vm73_vm0, %v2830_v10  ;;  %4436 = vst.msk [vmem:[%s8709_s1 + $0x1f8] sm:$0xff] %vm73_vm0, %v2831_v3  ;;  %v2461_v49 = vmax.f32 %v2773_v1, %v7130_v42  ;;  %v2838_v60 = vmax.f32 %v2710_v24, %v2774_v27  ;;  %v2712_v35 = vmax.f32 %v2584_v47, %v2774_v27  ;;  %v2785_v1 = vld [vmem:[#allocation2 + $0x410] sm:$0xff] }
 0x23b   :  { %2960 = vst.msk [vmem:[#allocation2 + $0x230] sm:$0xff] %vm73_vm0, %v2831_v3  ;;  %v2586_v2 = vmax.f32 %v2458_v39, %v2774_v27  ;;  %v2587_v4 = vmax.f32 %v2459_v5, %v7130_v42  ;;  %v2839_v14 = vmax.f32 %v2711_v36, %v7130_v42  ;;  %v2713_v51 = vmax.f32 %v2585_v21, %v7130_v42  ;;  %v2788_v39 = vld [vmem:[#allocation2 + $0x448] sm:$0xff]  ;;  %v2789_v36 = vld [vmem:[#allocation2 + $0x450] sm:$0xff] }
 0x23c   :  { %v2588_v59 = vmax.f32 %v2460_v33, %v2776_v7  ;;  %v2589_v37 = vmax.f32 %v2461_v49, %v2777_v25  ;;  %4443 = vst.msk [vmem:[%s8709_s1 + $0x530] sm:$0xff] %vm73_vm0, %v2838_v60  ;;  %v2840_v41 = vmax.f32 %v2712_v35, %v2776_v7  ;;  %2967 = vst.msk [vmem:[#allocation2 + $0x328] sm:$0xff] %vm73_vm0, %v2838_v60  ;;  %v2790_v60 = vld [vmem:[#allocation2 + $0x468] sm:$0xff]  ;;  %v7231_v35 = vld [vmem:[#allocation2 + $0x470] sm:$0xff] }
 0x23d   :  { %v2714_v13 = vmax.f32 %v2586_v2, %v2776_v7  ;;  %v2715_v18 = vmax.f32 %v2587_v4, %v2777_v25  ;;  %v2462_v9 = vmax.f32 %v2774_v27, %v2776_v7  ;;  %4444 = vst.msk [vmem:[%s8709_s1 + $0x538] sm:$0xff] %vm73_vm0, %v2839_v14  ;;  %v2841_v16 = vmax.f32 %v2713_v51, %v2777_v25 }
 0x23e   :  { %2968 = vst.msk [vmem:[#allocation2 + $0x330] sm:$0xff] %vm73_vm0, %v2839_v14  ;;  %v2716_v11 = vmax.f32 %v2588_v59, %v2778_v23  ;;  %v2717_v57 = vmax.f32 %v2589_v37, %v2779_v62  ;;  %v2463_v55 = vmax.f32 %v7130_v42, %v2777_v25  ;;  %4445 = vst.msk [vmem:[%s8709_s1 + $0x540] sm:$0xff] %vm73_vm0, %v2840_v41 }
 0x23f   :  { %v2842_v19 = vmax.f32 %v2714_v13, %v2778_v23  ;;  %v2843_v29 = vmax.f32 %v2715_v18, %v2779_v62  ;;  %2969 = vst.msk [vmem:[#allocation2 + $0x348] sm:$0xff] %vm73_vm0, %v2840_v41  ;;  %v2590_v8 = vmax.f32 %v2462_v9, %v2778_v23  ;;  %v2464_v45 = vmax.f32 %v2776_v7, %v2778_v23  ;;  %v2792_v18 = vld [vmem:[#allocation2 + $0x488] sm:$0xff] }
 0x240   :  { %4446 = vst.msk [vmem:[%s8709_s1 + $0x548] sm:$0xff] %vm73_vm0, %v2841_v16  ;;  %v2844_v40 = vmax.f32 %v2716_v11, %v2780_v56  ;;  %v2845_v22 = vmax.f32 %v2717_v57, %v2781_v63  ;;  %2970 = vst.msk [vmem:[#allocation2 + $0x350] sm:$0xff] %vm73_vm0, %v2841_v16  ;;  %v2591_v46 = vmax.f32 %v2463_v55, %v2779_v62  ;;  %v2793_v57 = vld [vmem:[#allocation2 + $0x490] sm:$0xff] }
 0x241   :  { %v2465_v26 = vmax.f32 %v2777_v25, %v2779_v62  ;;  %4447 = vst.msk [vmem:[%s8709_s1 + $0x550] sm:$0xff] %vm73_vm0, %v2842_v19  ;;  %4448 = vst.msk [vmem:[%s8709_s1 + $0x558] sm:$0xff] %vm73_vm0, %v2843_v29  ;;  %v2718_v12 = vmax.f32 %v2590_v8, %v2780_v56  ;;  %v2592_v54 = vmax.f32 %v2464_v45, %v2780_v56 }
 0x242   :  { %2971 = vst.msk [vmem:[#allocation2 + $0x368] sm:$0xff] %vm73_vm0, %v2842_v19  ;;  %2972 = vst.msk [vmem:[#allocation2 + $0x370] sm:$0xff] %vm73_vm0, %v2843_v29  ;;  %v2466_v43 = vmax.f32 %v2778_v23, %v2780_v56  ;;  %v2467_v34 = vmax.f32 %v2779_v62, %v2781_v63  ;;  %v2719_v6 = vmax.f32 %v2591_v46, %v2781_v63  ;;  %v2795_v46 = vld [vmem:[#allocation2 + $0x4b0] sm:$0xff] }
 0x243   :  { %4449 = vst.msk [vmem:[%s8709_s1 + $0x560] sm:$0xff] %vm73_vm0, %v2844_v40  ;;  %4450 = vst.msk [vmem:[%s8709_s1 + $0x568] sm:$0xff] %vm73_vm0, %v2845_v22  ;;  %v2593_v20 = vmax.f32 %v2465_v26, %v2781_v63  ;;  %v2468_v50 = vmax.f32 %v2780_v56, %v2782_v32  ;;  %v2469_v61 = vmax.f32 %v2781_v63, %v7184_v17 }
 0x244   :  { %2973 = vst.msk [vmem:[#allocation2 + $0x388] sm:$0xff] %vm73_vm0, %v2844_v40  ;;  %2974 = vst.msk [vmem:[#allocation2 + $0x390] sm:$0xff] %vm73_vm0, %v2845_v22  ;;  %v2846_v0 = vmax.f32 %v2718_v12, %v2782_v32  ;;  %v2720_v44 = vmax.f32 %v2592_v54, %v2782_v32  ;;  %v2594_v30 = vmax.f32 %v2466_v43, %v2782_v32  ;;  %v2794_v40 = vld [vmem:[#allocation2 + $0x4a8] sm:$0xff] }
 0x245   :  { %v2595_v53 = vmax.f32 %v2467_v34, %v7184_v17  ;;  %v2847_v52 = vmax.f32 %v2719_v6, %v7184_v17  ;;  %v2721_v58 = vmax.f32 %v2593_v20, %v7184_v17  ;;  %v2596_v27 = vmax.f32 %v2468_v50, %v2784_v38  ;;  %v2796_v43 = vld [vmem:[#allocation2 + $0x4c8] sm:$0xff]  ;;  %v2797_v50 = vld [vmem:[#allocation2 + $0x4d0] sm:$0xff] }
 0x246   :  { %v2597_v42 = vmax.f32 %v2469_v61, %v2785_v1  ;;  %4451 = vst.msk [vmem:[%s8709_s1 + $0x570] sm:$0xff] %vm73_vm0, %v2846_v0  ;;  %v2848_v31 = vmax.f32 %v2720_v44, %v2784_v38  ;;  %v2722_v10 = vmax.f32 %v2594_v30, %v2784_v38  ;;  %2975 = vst.msk [vmem:[#allocation2 + $0x3a8] sm:$0xff] %vm73_vm0, %v2846_v0  ;;  %v7278_v0 = vld [vmem:[#allocation2 + $0x86] sm:$0xff] }
 0x247   :  { %v2723_v3 = vmax.f32 %v2595_v53, %v2785_v1  ;;  %v2470_v28 = vmax.f32 %v2782_v32, %v2784_v38  ;;  %4452 = vst.msk [vmem:[%s8709_s1 + $0x578] sm:$0xff] %vm73_vm0, %v2847_v52  ;;  %v2849_v24 = vmax.f32 %v2721_v58, %v2785_v1  ;;  %2976 = vst.msk [vmem:[#allocation2 + $0x3b0] sm:$0xff] %vm73_vm0, %v2847_v52  ;;  %v7280_v44 = vld [vmem:[#allocation2 + $0x87] sm:$0xff] }
 0x248   :  { %v2724_v47 = vmax.f32 %v2596_v27, %v2786_v15  ;;  %v2725_v5 = vmax.f32 %v2597_v42, %v2787_v48  ;;  %v2471_v7 = vmax.f32 %v7184_v17, %v2785_v1  ;;  %4453 = vst.msk [vmem:[%s8709_s1 + $0x580] sm:$0xff] %vm73_vm0, %v2848_v31  ;;  %v2850_v21 = vmax.f32 %v2722_v10, %v2786_v15  ;;  %v2798_v53 = vld [vmem:[#allocation2 + $0x4e8] sm:$0xff] }
 0x249   :  { %v2851_v33 = vmax.f32 %v2723_v3, %v2787_v48  ;;  %2977 = vst.msk [vmem:[#allocation2 + $0x3c8] sm:$0xff] %vm73_vm0, %v2848_v31  ;;  %v2598_v49 = vmax.f32 %v2470_v28, %v2786_v15  ;;  %v2472_v25 = vmax.f32 %v2784_v38, %v2786_v15  ;;  %4454 = vst.msk [vmem:[%s8709_s1 + $0x588] sm:$0xff] %vm73_vm0, %v2849_v24  ;;  %v7287_v58 = vld [vmem:[#allocation2 + $0x8e] sm:$0xff]  ;;  %v7293_v42 = vld [vmem:[#allocation2 + $0xc6] sm:$0xff] }
 0x24a   :  { %v2852_v2 = vmax.f32 %v2724_v47, %v2788_v39  ;;  %v2853_v4 = vmax.f32 %v2725_v5, %v2789_v36  ;;  %2978 = vst.msk [vmem:[#allocation2 + $0x3d0] sm:$0xff] %vm73_vm0, %v2849_v24  ;;  %v2599_v14 = vmax.f32 %v2471_v7, %v2787_v48  ;;  %v2473_v51 = vmax.f32 %v2785_v1, %v2787_v48  ;;  %v7291_v27 = vld [vmem:[#allocation2 + $0xae] sm:$0xff] }
 0x24b   :  { %4455 = vst.msk [vmem:[%s8709_s1 + $0x590] sm:$0xff] %vm73_vm0, %v2850_v21  ;;  %4456 = vst.msk [vmem:[%s8709_s1 + $0x598] sm:$0xff] %vm73_vm0, %v2851_v33  ;;  %v2726_v23 = vmax.f32 %v2598_v49, %v2788_v39  ;;  %v2600_v59 = vmax.f32 %v2472_v25, %v2788_v39  ;;  %v2474_v37 = vmax.f32 %v2786_v15, %v2788_v39  ;;  %v7289_v15 = vld [vmem:[#allocation2 + $0xa6] sm:$0xff]  ;;  %v7295_v31 = vld [vmem:[#allocation2 + $0x8f] sm:$0xff] }
 0x24c   :  { %2979 = vst.msk [vmem:[#allocation2 + $0x3e8] sm:$0xff] %vm73_vm0, %v2850_v21  ;;  %2980 = vst.msk [vmem:[#allocation2 + $0x3f0] sm:$0xff] %vm73_vm0, %v2851_v33  ;;  %v2475_v41 = vmax.f32 %v2787_v48, %v2789_v36  ;;  %v2727_v13 = vmax.f32 %v2599_v14, %v2789_v36  ;;  %v2601_v62 = vmax.f32 %v2473_v51, %v2789_v36  ;;  %v7297_v10 = vld [vmem:[#allocation2 + $0xa7] sm:$0xff]  ;;  %v7299_v3 = vld [vmem:[#allocation2 + $0xaf] sm:$0xff] }
 0x24d   :  { %4457 = vst.msk [vmem:[%s8709_s1 + $0x5a0] sm:$0xff] %vm73_vm0, %v2852_v2  ;;  %4458 = vst.msk [vmem:[%s8709_s1 + $0x5a8] sm:$0xff] %vm73_vm0, %v2853_v4  ;;  %v2476_v9 = vmax.f32 %v2788_v39, %v2790_v60  ;;  %v2477_v16 = vmax.f32 %v2789_v36, %v7231_v35  ;;  %v2854_v11 = vmax.f32 %v2726_v23, %v2790_v60  ;;  %v7301_v48 = vld [vmem:[#allocation2 + $0xc7] sm:$0xff]  ;;  %v2799_v24 = vld [vmem:[#allocation2 + $0x4f0] sm:$0xff] }
 0x24e   :  { %2981 = vst.msk [vmem:[#allocation2 + $0x408] sm:$0xff] %vm73_vm0, %v2852_v2  ;;  %2982 = vst.msk [vmem:[#allocation2 + $0x410] sm:$0xff] %vm73_vm0, %v2853_v4  ;;  %v2728_v56 = vmax.f32 %v2600_v59, %v2790_v60  ;;  %v2602_v63 = vmax.f32 %v2474_v37, %v2790_v60  ;;  %v2603_v55 = vmax.f32 %v2475_v41, %v7231_v35  ;;  %v7313_v47 = vld [vmem:[#allocation2 + $0xce] sm:$0xff]  ;;  %v7315_v39 = vld [vmem:[#allocation2 + $0xe6] sm:$0xff] }
 0x24f   :  { %v2855_v19 = vmax.f32 %v2727_v13, %v7231_v35  ;;  %v2729_v29 = vmax.f32 %v2601_v62, %v7231_v35  ;;  %v2604_v8 = vmax.f32 %v2476_v9, %v2792_v18  ;;  %v2605_v32 = vmax.f32 %v2477_v16, %v2793_v57  ;;  %4459 = vst.msk [vmem:[%s8709_s1 + $0x5b0] sm:$0xff] %vm73_vm0, %v2854_v11  ;;  %v7317_v5 = vld [vmem:[#allocation2 + $0xee] sm:$0xff]  ;;  %v7319_v36 = vld [vmem:[#allocation2 + $0x106] sm:$0xff] }
 0x250   :  { %v2856_v17 = vmax.f32 %v2728_v56, %v2792_v18  ;;  %v2730_v45 = vmax.f32 %v2602_v63, %v2792_v18  ;;  %2983 = vst.msk [vmem:[#allocation2 + $0x428] sm:$0xff] %vm73_vm0, %v2854_v11  ;;  %v2731_v22 = vmax.f32 %v2603_v55, %v2793_v57  ;;  %v2478_v26 = vmax.f32 %v2790_v60, %v2792_v18  ;;  %v7321_v7 = vld [vmem:[#allocation2 + $0xcf] sm:$0xff]  ;;  %v7323_v21 = vld [vmem:[#allocation2 + $0xe7] sm:$0xff] }
 0x251   :  { %4460 = vst.msk [vmem:[%s8709_s1 + $0x5b8] sm:$0xff] %vm73_vm0, %v2855_v19  ;;  %v2857_v12 = vmax.f32 %v2729_v29, %v2793_v57  ;;  %2984 = vst.msk [vmem:[#allocation2 + $0x430] sm:$0xff] %vm73_vm0, %v2855_v19  ;;  %v2732_v54 = vmax.f32 %v2604_v8, %v2794_v40  ;;  %v2733_v34 = vmax.f32 %v2605_v32, %v2795_v46  ;;  %v7325_v33 = vld [vmem:[#allocation2 + $0xef] sm:$0xff]  ;;  %v7327_v49 = vld [vmem:[#allocation2 + $0x107] sm:$0xff] }
 0x252   :  { %v2479_v6 = vmax.f32 %v7231_v35, %v2793_v57  ;;  %4461 = vst.msk [vmem:[%s8709_s1 + $0x5c0] sm:$0xff] %vm73_vm0, %v2856_v17  ;;  %v2858_v38 = vmax.f32 %v2730_v45, %v2794_v40  ;;  %v2859_v20 = vmax.f32 %v2731_v22, %v2795_v46  ;;  %2985 = vst.msk [vmem:[#allocation2 + $0x448] sm:$0xff] %vm73_vm0, %v2856_v17  ;;  %v7339_v35 = vld [vmem:[#allocation2 + $0x10e] sm:$0xff]  ;;  %v7341_v25 = vld [vmem:[#allocation2 + $0x126] sm:$0xff] }
 0x253   :  { %v2606_v61 = vmax.f32 %v2478_v26, %v2794_v40  ;;  %4462 = vst.msk [vmem:[%s8709_s1 + $0x5c8] sm:$0xff] %vm73_vm0, %v2857_v12  ;;  %v2860_v1 = vmax.f32 %v2732_v54, %v2796_v43  ;;  %v2861_v30 = vmax.f32 %v2733_v34, %v2797_v50  ;;  %2986 = vst.msk [vmem:[#allocation2 + $0x450] sm:$0xff] %vm73_vm0, %v2857_v12  ;;  %v7343_v2 = vld [vmem:[#allocation2 + $0x12e] sm:$0xff]  ;;  %v7345_v4 = vld [vmem:[#allocation2 + $0x146] sm:$0xff] }
 0x254   :  { %v2607_v52 = vmax.f32 %v2479_v6, %v2795_v46  ;;  %9438 = vst [vmem:[#allocation75_spill] sm:$0xff] %v7293_v42  ;;  %9439 = vst [vmem:[#allocation74_spill] sm:$0xff] %v7299_v3  ;;  %v7347_v14 = vld [vmem:[#allocation2 + $0x10f] sm:$0xff]  ;;  %v7349_v51 = vld [vmem:[#allocation2 + $0x127] sm:$0xff] }
 0x255   :  { %9440 = vst [vmem:[#allocation76_spill] sm:$0xff] %v7301_v48  ;;  %4463 = vst.msk [vmem:[%s8709_s1 + $0x5d0] sm:$0xff] %vm73_vm0, %v2858_v38  ;;  %v2734_v28 = vmax.f32 %v2606_v61, %v2796_v43  ;;  %v7351_v23 = vld [vmem:[#allocation2 + $0x12f] sm:$0xff]  ;;  %v7353_v59 = vld [vmem:[#allocation2 + $0x147] sm:$0xff] }
 0x256   :  { %4464 = vst.msk [vmem:[%s8709_s1 + $0x5d8] sm:$0xff] %vm73_vm0, %v2859_v20  ;;  %2987 = vst.msk [vmem:[#allocation2 + $0x468] sm:$0xff] %vm73_vm0, %v2858_v38  ;;  %v2735_v60 = vmax.f32 %v2607_v52, %v2797_v50  ;;  %v7355_v41 = vld [vmem:[#allocation2 + $0x14e] sm:$0xff]  ;;  %v7357_v13 = vld [vmem:[#allocation2 + $0x166] sm:$0xff] }
 0x257   :  { %2988 = vst.msk [vmem:[#allocation2 + $0x470] sm:$0xff] %vm73_vm0, %v2859_v20  ;;  %9441 = vst [vmem:[#allocation78_spill] sm:$0xff] %v7313_v47  ;;  %v2862_v37 = vmax.f32 %v2734_v28, %v2798_v53  ;;  %v7359_v18 = vld [vmem:[#allocation2 + $0x16e] sm:$0xff]  ;;  %v7361_v62 = vld [vmem:[#allocation2 + $0x186] sm:$0xff] }
 0x258   :  { %9442 = vst [vmem:[#allocation77_spill] sm:$0xff] %v7315_v39  ;;  %9443 = vst [vmem:[#allocation79_spill] sm:$0xff] %v7317_v5  ;;  %v7363_v9 = vld [vmem:[#allocation2 + $0x14f] sm:$0xff]  ;;  %v7365_v16 = vld [vmem:[#allocation2 + $0x167] sm:$0xff]  ;;  %v2863_v57 = vmax.f32 %v2735_v60, %v2799_v24 }
 0x259   :  { %9444 = vst [vmem:[#allocation80_spill] sm:$0xff] %v7319_v36  ;;  %9445 = vst [vmem:[#allocation82_spill] sm:$0xff] %v7321_v7  ;;  %v7367_v11 = vld [vmem:[#allocation2 + $0x16f] sm:$0xff]  ;;  %v7369_v56 = vld [vmem:[#allocation2 + $0x187] sm:$0xff] }
 0x25a   :  { %9446 = vst [vmem:[#allocation81_spill] sm:$0xff] %v7323_v21  ;;  %9447 = vst [vmem:[#allocation84_spill] sm:$0xff] %v7325_v33  ;;  %v7371_v63 = vld [vmem:[#allocation2 + $0x18e] sm:$0xff]  ;;  %v7373_v55 = vld [vmem:[#allocation2 + $0x1a6] sm:$0xff] }
 0x25b   :  { %9448 = vst [vmem:[#allocation83_spill] sm:$0xff] %v7327_v49  ;;  %4465 = vst.msk [vmem:[%s8709_s1 + $0x5e0] sm:$0xff] %vm73_vm0, %v2860_v1  ;;  %v7375_v19 = vld [vmem:[#allocation2 + $0x1ae] sm:$0xff]  ;;  %v7377_v29 = vld [vmem:[#allocation2 + $0x1c6] sm:$0xff] }
 0x25c   :  { %4466 = vst.msk [vmem:[%s8709_s1 + $0x5e8] sm:$0xff] %vm73_vm0, %v2861_v30  ;;  %2989 = vst.msk [vmem:[#allocation2 + $0x488] sm:$0xff] %vm73_vm0, %v2860_v1  ;;  %v7379_v8 = vld [vmem:[#allocation2 + $0x18f] sm:$0xff]  ;;  %v7381_v32 = vld [vmem:[#allocation2 + $0x1a7] sm:$0xff] }
 0x25d   :  { %2990 = vst.msk [vmem:[#allocation2 + $0x490] sm:$0xff] %vm73_vm0, %v2861_v30  ;;  %9449 = vst [vmem:[#allocation85_spill] sm:$0xff] %v7339_v35  ;;  %v7383_v17 = vld [vmem:[#allocation2 + $0x1af] sm:$0xff]  ;;  %v7385_v45 = vld [vmem:[#allocation2 + $0x1c7] sm:$0xff] }
 0x25e   :  { %9450 = vst [vmem:[#allocation86_spill] sm:$0xff] %v7341_v25  ;;  %9451 = vst [vmem:[#allocation87_spill] sm:$0xff] %v7343_v2  ;;  %v7394_v22 = vld [vmem:[#allocation2 + $0x1ce] sm:$0xff]  ;;  %v7396_v46 = vld [vmem:[#allocation2 + $0x1e6] sm:$0xff] }
 0x25f   :  { %9452 = vst [vmem:[#allocation88_spill] sm:$0xff] %v7345_v4  ;;  %9453 = vst [vmem:[#allocation5_spill] sm:$0xff] %v7347_v14  ;;  %v7398_v26 = vld [vmem:[#allocation2 + $0x1ee] sm:$0xff]  ;;  %v7400_v12 = vld [vmem:[#allocation2 + $0x206] sm:$0xff] }
 0x260   :  { %9454 = vst [vmem:[#allocation3_spill] sm:$0xff] %v7349_v51  ;;  %9455 = vst [vmem:[#allocation6_spill] sm:$0xff] %v7351_v23  ;;  %v7402_v54 = vld [vmem:[#allocation2 + $0x1cf] sm:$0xff]  ;;  %v7404_v43 = vld [vmem:[#allocation2 + $0x1e7] sm:$0xff] }
 0x261   :  { %9456 = vst [vmem:[#allocation4_spill] sm:$0xff] %v7353_v59  ;;  %9457 = vst [vmem:[#allocation11_spill] sm:$0xff] %v7355_v41  ;;  %v7406_v34 = vld [vmem:[#allocation2 + $0x1ef] sm:$0xff]  ;;  %v7408_v6 = vld [vmem:[#allocation2 + $0x207] sm:$0xff] }
 0x262   :  { %9458 = vst [vmem:[#allocation15_spill] sm:$0xff] %v7357_v13  ;;  %9459 = vst [vmem:[#allocation17_spill] sm:$0xff] %v7359_v18  ;;  %v7423_v1 = vld [vmem:[#allocation2 + $0x20e] sm:$0xff]  ;;  %v7425_v30 = vld [vmem:[#allocation2 + $0x226] sm:$0xff] }
 0x263   :  { %9460 = vst [vmem:[#allocation21_spill] sm:$0xff] %v7361_v62  ;;  %9461 = vst [vmem:[#allocation19_spill] sm:$0xff] %v7363_v9  ;;  %v7427_v53 = vld [vmem:[#allocation2 + $0x22e] sm:$0xff]  ;;  %v7429_v52 = vld [vmem:[#allocation2 + $0x306] sm:$0xff] }
 0x264   :  { %9462 = vst [vmem:[#allocation41_spill] sm:$0xff] %v7365_v16  ;;  %9463 = vst [vmem:[#allocation7_spill] sm:$0xff] %v7367_v11  ;;  %v7431_v28 = vld [vmem:[#allocation2 + $0x20f] sm:$0xff]  ;;  %v7433_v24 = vld [vmem:[#allocation2 + $0x227] sm:$0xff] }
 0x265   :  { %9464 = vst [vmem:[#allocation45_spill] sm:$0xff] %v7369_v56  ;;  %9465 = vst [vmem:[#allocation27_spill] sm:$0xff] %v7371_v63  ;;  %v7435_v60 = vld [vmem:[#allocation2 + $0x22f] sm:$0xff]  ;;  %v7449_v40 = vld [vmem:[#allocation2 + $0x326] sm:$0xff] }
 0x266   :  { %9466 = vst [vmem:[#allocation8_spill] sm:$0xff] %v7373_v55  ;;  %9467 = vst [vmem:[#allocation42_spill] sm:$0xff] %v7375_v19  ;;  %v7447_v38 = vld [vmem:[#allocation2 + $0x30e] sm:$0xff]  ;;  %v7453_v42 = vld [vmem:[#allocation2 + $0x346] sm:$0xff] }
 0x267   :  { %9468 = vst [vmem:[#allocation12_spill] sm:$0xff] %v7377_v29  ;;  %9469 = vst [vmem:[#allocation46_spill] sm:$0xff] %v7379_v8  ;;  %v7451_v48 = vld [vmem:[#allocation2 + $0x32e] sm:$0xff]  ;;  %v7473_v5 = vld [vmem:[#allocation2 + $0x366] sm:$0xff] }
 0x268   :  { %9470 = vst [vmem:[#allocation9_spill] sm:$0xff] %v7381_v32  ;;  %9471 = vst [vmem:[#allocation50_spill] sm:$0xff] %v7383_v17  ;;  %v7455_v3 = vld [vmem:[#allocation2 + $0x30f] sm:$0xff]  ;;  %v7457_v61 = vld [vmem:[#allocation2 + $0x327] sm:$0xff] }
 0x269   :  { %9472 = vst [vmem:[#allocation31_spill] sm:$0xff] %v7385_v45  ;;  %4467 = vst.msk [vmem:[%s8709_s1 + $0x5f0] sm:$0xff] %vm73_vm0, %v2862_v37  ;;  %v7459_v7 = vld [vmem:[#allocation2 + $0x32f] sm:$0xff]  ;;  %v7477_v39 = vld [vmem:[#allocation2 + $0x386] sm:$0xff]  ;;  %v9517_v45 = vmax.f32 %v7289_v15, %v7297_v10 }
 0x26a   :  { %2991 = vst.msk [vmem:[#allocation2 + $0x4a8] sm:$0xff] %vm73_vm0, %v2862_v37  ;;  %9473 = vst [vmem:[#allocation13_spill] sm:$0xff] %v7394_v22  ;;  %v7437_v37 = vld [vmem:[#allocation2 + $0x307] sm:$0xff]  ;;  %v7479_v47 = vld [vmem:[#allocation2 + $0x34f] sm:$0xff] }
 0x26b   :  { %9474 = vst [vmem:[#allocation51_spill] sm:$0xff] %v7396_v46  ;;  %9475 = vst [vmem:[#allocation10_spill] sm:$0xff] %v7398_v26  ;;  %v7471_v33 = vld [vmem:[#allocation2 + $0x34e] sm:$0xff]  ;;  %v7497_v2 = vld [vmem:[#allocation2 + $0x3a6] sm:$0xff] }
 0x26c   :  { %9476 = vst [vmem:[#allocation48_spill] sm:$0xff] %v7400_v12  ;;  %9477 = vst [vmem:[#allocation14_spill] sm:$0xff] %v7402_v54  ;;  %v7475_v21 = vld [vmem:[#allocation2 + $0x36e] sm:$0xff]  ;;  %v7501_v25 = vld [vmem:[#allocation2 + $0x3c6] sm:$0xff] }
 0x26d   :  { %9478 = vst [vmem:[#allocation52_spill] sm:$0xff] %v7404_v43  ;;  %9479 = vst [vmem:[#allocation32_spill] sm:$0xff] %v7406_v34  ;;  %v7481_v50 = vld [vmem:[#allocation2 + $0x367] sm:$0xff]  ;;  %v7483_v14 = vld [vmem:[#allocation2 + $0x36f] sm:$0xff] }
 0x26e   :  { %9480 = vst [vmem:[#allocation49_spill] sm:$0xff] %v7408_v6  ;;  %4468 = vst.msk [vmem:[%s8709_s1 + $0x5f8] sm:$0xff] %vm73_vm0, %v2863_v57  ;;  %v7485_v20 = vld [vmem:[#allocation2 + $0x387] sm:$0xff]  ;;  %v7503_v35 = vld [vmem:[#allocation2 + $0x38f] sm:$0xff] }
 0x26f   :  { %2992 = vst.msk [vmem:[#allocation2 + $0x4b0] sm:$0xff] %vm73_vm0, %v2863_v57  ;;  %9481 = vst [vmem:[#allocation53_spill] sm:$0xff] %v7427_v53  ;;  %v7461_v57 = vld [vmem:[#allocation2 + $0x347] sm:$0xff]  ;;  %v7507_v9 = vld [vmem:[#allocation2 + $0x3af] sm:$0xff] }
 0x270   :  { %9482 = vst [vmem:[#allocation16_spill] sm:$0xff] %v7429_v52  ;;  %9483 = vst [vmem:[#allocation54_spill] sm:$0xff] %v7435_v60  ;;  %v7495_v23 = vld [vmem:[#allocation2 + $0x38e] sm:$0xff]  ;;  %v7521_v18 = vld [vmem:[#allocation2 + $0x3e6] sm:$0xff] }
 0x271   :  { %9484 = vst [vmem:[#allocation36_spill] sm:$0xff] %v7437_v37  ;;  %9485 = vst [vmem:[#allocation20_spill] sm:$0xff] %v7453_v42  ;;  %v7499_v51 = vld [vmem:[#allocation2 + $0x3ae] sm:$0xff]  ;;  %v7525_v13 = vld [vmem:[#allocation2 + $0x406] sm:$0xff] }
 0x272   :  { %9486 = vst [vmem:[#allocation56_spill] sm:$0xff] %v7459_v7  ;;  %9487 = vst [vmem:[#allocation55_spill] sm:$0xff] %v7461_v57  ;;  %v7505_v49 = vld [vmem:[#allocation2 + $0x3a7] sm:$0xff]  ;;  %v7527_v41 = vld [vmem:[#allocation2 + $0x3cf] sm:$0xff] }
 0x273   :  { %9488 = vst [vmem:[#allocation33_spill] sm:$0xff] %v7477_v39  ;;  %9489 = vst [vmem:[#allocation18_spill] sm:$0xff] %v7483_v14  ;;  %v7509_v36 = vld [vmem:[#allocation2 + $0x3c7] sm:$0xff]  ;;  %v7531_v8 = vld [vmem:[#allocation2 + $0x3ef] sm:$0xff] }
 0x274   :  { %9490 = vst [vmem:[#allocation57_spill] sm:$0xff] %v7485_v20  ;;  %9491 = vst [vmem:[#allocation22_spill] sm:$0xff] %v7501_v25  ;;  %v7519_v11 = vld [vmem:[#allocation2 + $0x3ce] sm:$0xff]  ;;  %v7545_v19 = vld [vmem:[#allocation2 + $0x426] sm:$0xff] }
 0x275   :  { %9492 = vst [vmem:[#allocation59_spill] sm:$0xff] %v7507_v9  ;;  %9493 = vst [vmem:[#allocation37_spill] sm:$0xff] %v7509_v36  ;;  %v7523_v16 = vld [vmem:[#allocation2 + $0x3ee] sm:$0xff]  ;;  %v7549_v55 = vld [vmem:[#allocation2 + $0x446] sm:$0xff]  ;;  %v9513_v36 = vmax.f32 %v7278_v0, %v7280_v44 }
 0x276   :  { %9494 = vst [vmem:[#allocation58_spill] sm:$0xff] %v7521_v18  ;;  %v7529_v59 = vld [vmem:[#allocation2 + $0x3e7] sm:$0xff]  ;;  %9498 = vst [vmem:[#allocation62_spill] sm:$0xff] %v7549_v55  ;;  %v7551_v63 = vld [vmem:[#allocation2 + $0x40f] sm:$0xff] }
 0x277   :  { %9495 = vst [vmem:[#allocation23_spill] sm:$0xff] %v7529_v59  ;;  %v7533_v4 = vld [vmem:[#allocation2 + $0x407] sm:$0xff]  ;;  %v7555_v54 = vld [vmem:[#allocation2 + $0x42f] sm:$0xff] }
 0x278   :  { %9496 = vst [vmem:[#allocation60_spill] sm:$0xff] %v7533_v4  ;;  %v7543_v17 = vld [vmem:[#allocation2 + $0x40e] sm:$0xff]  ;;  %9499 = vst [vmem:[#allocation38_spill] sm:$0xff] %v7555_v54  ;;  %v7569_v26 = vld [vmem:[#allocation2 + $0x466] sm:$0xff] }
 0x279   :  { %v7547_v32 = vld [vmem:[#allocation2 + $0x42e] sm:$0xff]  ;;  %9501 = vst [vmem:[#allocation61_spill] sm:$0xff] %v7569_v26  ;;  %v7585_v37 = vld [vmem:[#allocation2 + $0x486] sm:$0xff] }
 0x27a   :  { %9497 = vst [vmem:[#allocation34_spill] sm:$0xff] %v7547_v32  ;;  %v7553_v56 = vld [vmem:[#allocation2 + $0x427] sm:$0xff]  ;;  %v7573_v46 = vld [vmem:[#allocation2 + $0x44f] sm:$0xff]  ;;  %9505 = vst [vmem:[#allocation39_spill] sm:$0xff] %v7585_v37 }
 0x27b   :  { %v7557_v62 = vld [vmem:[#allocation2 + $0x447] sm:$0xff]  ;;  %9503 = vst [vmem:[#allocation63_spill] sm:$0xff] %v7573_v46  ;;  %v7589_v60 = vld [vmem:[#allocation2 + $0x46f] sm:$0xff] }
 0x27c   :  { %9500 = vst [vmem:[#allocation24_spill] sm:$0xff] %v7557_v62  ;;  %v7567_v34 = vld [vmem:[#allocation2 + $0x44e] sm:$0xff]  ;;  %9506 = vst [vmem:[#allocation28_spill] sm:$0xff] %v7589_v60  ;;  %v7599_v7 = vld [vmem:[#allocation2 + $0x4a6] sm:$0xff]  ;;  %v9515_v62 = vmax.f32 %v7287_v58, %v7295_v31 }
 0x27d   :  { %v7571_v43 = vld [vmem:[#allocation2 + $0x46e] sm:$0xff]  ;;  %9507 = vst [vmem:[#allocation64_spill] sm:$0xff] %v7599_v7  ;;  %v9522_v44 = vld [vmem:[#allocation75_spill] sm:$0xff]  ;;  %v9526_v31 = vld [vmem:[#allocation78_spill] sm:$0xff] }
 0x27e   :  { %9502 = vst [vmem:[#allocation35_spill] sm:$0xff] %v7571_v43  ;;  %v7575_v22 = vld [vmem:[#allocation2 + $0x467] sm:$0xff]  ;;  %v7603_v57 = vld [vmem:[#allocation2 + $0x48f] sm:$0xff] }
 0x27f   :  { %9504 = vst [vmem:[#allocation65_spill] sm:$0xff] %v7575_v22  ;;  %v7587_v52 = vld [vmem:[#allocation2 + $0x48e] sm:$0xff]  ;;  %9509 = vst [vmem:[#allocation40_spill] sm:$0xff] %v7603_v57 }
 0x280   :  { %v7601_v12 = vld [vmem:[#allocation2 + $0x487] sm:$0xff]  ;;  %v7617_v20 = vld [vmem:[#allocation2 + $0x4af] sm:$0xff] }
 0x281   :  { %9508 = vst [vmem:[#allocation66_spill] sm:$0xff] %v7601_v12  ;;  %v7613_v14 = vld [vmem:[#allocation2 + $0x4ae] sm:$0xff]  ;;  %9512 = vst [vmem:[#allocation29_spill] sm:$0xff] %v7617_v20 }
 0x282   :  { %9510 = vst [vmem:[#allocation25_spill] sm:$0xff] %v7613_v14  ;;  %v7615_v6 = vld [vmem:[#allocation2 + $0x4a7] sm:$0xff]  ;;  %v3190_v42 = vld [vmem:[#allocation2 + $0x90] sm:$0xff]  ;;  %v9519_v14 = vld [vmem:[#allocation74_spill] sm:$0xff] }
 0x283   :  { %9511 = vst [vmem:[#allocation67_spill] sm:$0xff] %v7615_v6  ;;  %v3189_v9 = vld [vmem:[#allocation2 + $0x88] sm:$0xff]  ;;  %v3192_v18 = vld [vmem:[#allocation2 + $0xb0] sm:$0xff]  ;;  %v7657_v55 = vmax.f32 %v9515_v62, %v3190_v42  ;;  %v9520_v6 = vmax.f32 %v7291_v27, %v9519_v14  ;;  %v9527_v62 = vld [vmem:[#allocation82_spill] sm:$0xff] }
 0x284   :  { %v3191_v59 = vld [vmem:[#allocation2 + $0xa8] sm:$0xff]  ;;  %v3194_v25 = vld [vmem:[#allocation2 + $0xd0] sm:$0xff]  ;;  %v7652_v12 = vmax.f32 %v9513_v36, %v3189_v9  ;;  %v9534_v14 = vld [vmem:[#allocation79_spill] sm:$0xff] }
 0x285   :  { %v3193_v53 = vld [vmem:[#allocation2 + $0xc8] sm:$0xff]  ;;  %v3196_v32 = vld [vmem:[#allocation2 + $0xf0] sm:$0xff]  ;;  %9516 = vst [vmem:[#allocation44_spill] sm:$0xff] %v7657_v55  ;;  %v7662_v20 = vmax.f32 %v9517_v45, %v3191_v59  ;;  %v7667_v0 = vmax.f32 %v9520_v6, %v3192_v18  ;;  %v9528_v55 = vmax.f32 %v9526_v31, %v9527_v62 }
 0x286   :  { %v3195_v54 = vld [vmem:[#allocation2 + $0xe8] sm:$0xff]  ;;  %v3198_v4 = vld [vmem:[#allocation2 + $0x110] sm:$0xff]  ;;  %9514 = vst [vmem:[#allocation68_spill] sm:$0xff] %v7652_v12 }
 0x287   :  { %v3197_v39 = vld [vmem:[#allocation2 + $0x108] sm:$0xff]  ;;  %v3200_v26 = vld [vmem:[#allocation2 + $0x130] sm:$0xff]  ;;  %9518 = vst [vmem:[#allocation26_spill] sm:$0xff] %v7662_v20  ;;  %9521 = vst [vmem:[#allocation69_spill] sm:$0xff] %v7667_v0  ;;  %v7677_v15 = vmax.f32 %v9528_v55, %v3194_v25 }
 0x288   :  { %v3199_v22 = vld [vmem:[#allocation2 + $0x128] sm:$0xff]  ;;  %v3202_v37 = vld [vmem:[#allocation2 + $0x150] sm:$0xff] }
 0x289   :  { %v3201_v29 = vld [vmem:[#allocation2 + $0x148] sm:$0xff]  ;;  %v3204_v43 = vld [vmem:[#allocation2 + $0x170] sm:$0xff]  ;;  %9529 = vst [vmem:[#allocation71_spill] sm:$0xff] %v7677_v15 }
 0x28a   :  { %v3203_v60 = vld [vmem:[#allocation2 + $0x168] sm:$0xff]  ;;  %v3206_v7 = vld [vmem:[#allocation2 + $0x190] sm:$0xff] }
 0x28b   :  { %v3205_v46 = vld [vmem:[#allocation2 + $0x188] sm:$0xff]  ;;  %v3208_v58 = vld [vmem:[#allocation2 + $0x1b0] sm:$0xff] }
 0x28c   :  { %v9523_v36 = vld [vmem:[#allocation76_spill] sm:$0xff]  ;;  %v9530_v10 = vld [vmem:[#allocation77_spill] sm:$0xff] }
 0x28d   :  { %v9524_v9 = vmax.f32 %v9522_v44, %v9523_v36  ;;  %v3207_v57 = vld [vmem:[#allocation2 + $0x1a8] sm:$0xff]  ;;  %v9531_v59 = vld [vmem:[#allocation81_spill] sm:$0xff]  ;;  %v9539_v36 = vld [vmem:[#allocation83_spill] sm:$0xff] }
 0x28e   :  { %v3209_v42 = vld [vmem:[#allocation2 + $0x1c8] sm:$0xff]  ;;  %v9532_v45 = vmax.f32 %v9530_v10, %v9531_v59  ;;  %v3210_v0 = vld [vmem:[#allocation2 + $0x1d0] sm:$0xff]  ;;  %v9547_v59 = vld [vmem:[#allocation3_spill] sm:$0xff] }
 0x28f   :  { %v7672_v12 = vmax.f32 %v9524_v9, %v3193_v53  ;;  %v9535_v18 = vld [vmem:[#allocation84_spill] sm:$0xff]  ;;  %v3212_v31 = vld [vmem:[#allocation2 + $0x1f0] sm:$0xff] }
 0x290   :  { %v7682_v27 = vmax.f32 %v9532_v45, %v3195_v54  ;;  %v9536_v6 = vmax.f32 %v9534_v14, %v9535_v18  ;;  %v9538_v53 = vld [vmem:[#allocation80_spill] sm:$0xff]  ;;  %v9542_v55 = vld [vmem:[#allocation85_spill] sm:$0xff]  ;;  %v9546_v54 = vld [vmem:[#allocation86_spill] sm:$0xff] }
 0x291   :  { %9525 = vst [vmem:[#allocation70_spill] sm:$0xff] %v7672_v12  ;;  %v9540_v9 = vmax.f32 %v9538_v53, %v9539_v36  ;;  %v3211_v20 = vld [vmem:[#allocation2 + $0x1e8] sm:$0xff]  ;;  %v9543_v62 = vld [vmem:[#allocation5_spill] sm:$0xff]  ;;  %v9548_v45 = vmax.f32 %v9546_v54, %v9547_v59  ;;  %v9551_v18 = vld [vmem:[#allocation6_spill] sm:$0xff] }
 0x292   :  { %9533 = vst [vmem:[#allocation43_spill] sm:$0xff] %v7682_v27  ;;  %v7687_v44 = vmax.f32 %v9536_v6, %v3196_v32  ;;  %v3213_v25 = vld [vmem:[#allocation2 + $0x208] sm:$0xff]  ;;  %v9544_v15 = vmax.f32 %v9542_v55, %v9543_v62  ;;  %v9550_v32 = vld [vmem:[#allocation87_spill] sm:$0xff]  ;;  %v3216_v55 = vld [vmem:[#allocation2 + $0x230] sm:$0xff] }
 0x293   :  { %v7692_v12 = vmax.f32 %v9540_v9, %v3197_v39  ;;  %v7702_v14 = vmax.f32 %v9548_v45, %v3199_v22  ;;  %v9552_v6 = vmax.f32 %v9550_v32, %v9551_v18  ;;  %v9554_v39 = vld [vmem:[#allocation88_spill] sm:$0xff]  ;;  %v9559_v62 = vld [vmem:[#allocation19_spill] sm:$0xff]  ;;  %v9563_v59 = vld [vmem:[#allocation41_spill] sm:$0xff] }
 0x294   :  { %9537 = vst [vmem:[#allocation30_spill] sm:$0xff] %v7687_v44  ;;  %v7697_v10 = vmax.f32 %v9544_v15, %v3198_v4  ;;  %v9555_v36 = vld [vmem:[#allocation4_spill] sm:$0xff]  ;;  %v3214_v44 = vld [vmem:[#allocation2 + $0x210] sm:$0xff]  ;;  %v9558_v15 = vld [vmem:[#allocation11_spill] sm:$0xff] }
 0x295   :  { %9541 = vst [vmem:[#allocation73_spill] sm:$0xff] %v7692_v12  ;;  %9549 = vst [vmem:[#allocation72_spill] sm:$0xff] %v7702_v14  ;;  %v7707_v53 = vmax.f32 %v9552_v6, %v3200_v26  ;;  %v9556_v9 = vmax.f32 %v9554_v39, %v9555_v36  ;;  %v3215_v27 = vld [vmem:[#allocation2 + $0x228] sm:$0xff]  ;;  %v9562_v22 = vld [vmem:[#allocation15_spill] sm:$0xff] }
 0x296   :  { %9545 = vst [vmem:[#allocation47_spill] sm:$0xff] %v7697_v10  ;;  %v3221_v4 = vld [vmem:[#allocation2 + $0x308] sm:$0xff]  ;;  %v9560_v10 = vmax.f32 %v9558_v15, %v9559_v62  ;;  %v9564_v45 = vmax.f32 %v9562_v22, %v9563_v59  ;;  %v9566_v26 = vld [vmem:[#allocation17_spill] sm:$0xff]  ;;  %v9567_v18 = vld [vmem:[#allocation7_spill] sm:$0xff] }
 0x297   :  { %9553 = vst [vmem:[#allocation74_spill] sm:$0xff] %v7707_v53  ;;  %v7712_v12 = vmax.f32 %v9556_v9, %v3201_v29  ;;  %v9568_v6 = vmax.f32 %v9566_v26, %v9567_v18  ;;  %v9570_v29 = vld [vmem:[#allocation21_spill] sm:$0xff]  ;;  %v3223_v14 = vld [vmem:[#allocation2 + $0x328] sm:$0xff]  ;;  %v9575_v62 = vld [vmem:[#allocation46_spill] sm:$0xff] }
 0x298   :  { %v7717_v54 = vmax.f32 %v9560_v10, %v3202_v37  ;;  %v7722_v32 = vmax.f32 %v9564_v45, %v3203_v60  ;;  %v9571_v36 = vld [vmem:[#allocation45_spill] sm:$0xff]  ;;  %v3225_v37 = vld [vmem:[#allocation2 + $0x348] sm:$0xff]  ;;  %v9574_v10 = vld [vmem:[#allocation27_spill] sm:$0xff] }
 0x299   :  { %9557 = vst [vmem:[#allocation75_spill] sm:$0xff] %v7712_v12  ;;  %v7727_v39 = vmax.f32 %v9568_v6, %v3204_v43  ;;  %v9572_v9 = vmax.f32 %v9570_v29, %v9571_v36  ;;  %v3222_v53 = vld [vmem:[#allocation2 + $0x310] sm:$0xff]  ;;  %v9578_v60 = vld [vmem:[#allocation8_spill] sm:$0xff]  ;;  %v9582_v43 = vld [vmem:[#allocation42_spill] sm:$0xff] }
 0x29a   :  { %9561 = vst [vmem:[#allocation76_spill] sm:$0xff] %v7717_v54  ;;  %9565 = vst [vmem:[#allocation78_spill] sm:$0xff] %v7722_v32  ;;  %v3224_v15 = vld [vmem:[#allocation2 + $0x330] sm:$0xff]  ;;  %v9576_v54 = vmax.f32 %v9574_v10, %v9575_v62  ;;  %v9583_v18 = vld [vmem:[#allocation50_spill] sm:$0xff] }
 0x29b   :  { %9569 = vst [vmem:[#allocation82_spill] sm:$0xff] %v7727_v39  ;;  %v7732_v12 = vmax.f32 %v9572_v9, %v3205_v46  ;;  %v9579_v59 = vld [vmem:[#allocation9_spill] sm:$0xff]  ;;  %v9584_v6 = vmax.f32 %v9582_v43, %v9583_v18  ;;  %v9586_v46 = vld [vmem:[#allocation12_spill] sm:$0xff]  ;;  %v9587_v36 = vld [vmem:[#allocation31_spill] sm:$0xff] }
 0x29c   :  { %v7737_v22 = vmax.f32 %v9576_v54, %v3206_v7  ;;  %v9580_v45 = vmax.f32 %v9578_v60, %v9579_v59  ;;  %v9588_v9 = vmax.f32 %v9586_v46, %v9587_v36  ;;  %v3226_v39 = vld [vmem:[#allocation2 + $0x350] sm:$0xff]  ;;  %v3227_v32 = vld [vmem:[#allocation2 + $0x368] sm:$0xff]  ;;  %v9591_v62 = vld [vmem:[#allocation14_spill] sm:$0xff] }
 0x29d   :  { %9573 = vst [vmem:[#allocation77_spill] sm:$0xff] %v7732_v12  ;;  %v7747_v29 = vmax.f32 %v9584_v6, %v3208_v58  ;;  %v3228_v10 = vld [vmem:[#allocation2 + $0x370] sm:$0xff]  ;;  %v3229_v7 = vld [vmem:[#allocation2 + $0x388] sm:$0xff]  ;;  %v9596_v58 = vld [vmem:[#allocation10_spill] sm:$0xff] }
 0x29e   :  { %9577 = vst [vmem:[#allocation81_spill] sm:$0xff] %v7737_v22  ;;  %v7742_v26 = vmax.f32 %v9580_v45, %v3207_v57  ;;  %v7752_v12 = vmax.f32 %v9588_v9, %v3209_v42  ;;  %v9590_v54 = vld [vmem:[#allocation13_spill] sm:$0xff]  ;;  %v9593_v57 = vld [vmem:[#allocation51_spill] sm:$0xff]  ;;  %v9594_v59 = vld [vmem:[#allocation52_spill] sm:$0xff] }
 0x29f   :  { %9585 = vst [vmem:[#allocation84_spill] sm:$0xff] %v7747_v29  ;;  %v9592_v22 = vmax.f32 %v9590_v54, %v9591_v62  ;;  %v9595_v45 = vmax.f32 %v9593_v57, %v9594_v59  ;;  %v9597_v18 = vld [vmem:[#allocation32_spill] sm:$0xff]  ;;  %v9600_v36 = vld [vmem:[#allocation49_spill] sm:$0xff]  ;;  %v9606_v59 = vld [vmem:[#allocation54_spill] sm:$0xff] }
 0x2a0   :  { %9581 = vst [vmem:[#allocation79_spill] sm:$0xff] %v7742_v26  ;;  %9589 = vst [vmem:[#allocation80_spill] sm:$0xff] %v7752_v12  ;;  %v9598_v6 = vmax.f32 %v9596_v58, %v9597_v18  ;;  %v9599_v42 = vld [vmem:[#allocation48_spill] sm:$0xff]  ;;  %v3230_v29 = vld [vmem:[#allocation2 + $0x390] sm:$0xff] }
 0x2a1   :  { %v7757_v60 = vmax.f32 %v9592_v22, %v3210_v0  ;;  %v7762_v43 = vmax.f32 %v9595_v45, %v3211_v20  ;;  %v9601_v9 = vmax.f32 %v9599_v42, %v9600_v36  ;;  %v3231_v26 = vld [vmem:[#allocation2 + $0x3a8] sm:$0xff]  ;;  %v3232_v54 = vld [vmem:[#allocation2 + $0x3b0] sm:$0xff]  ;;  %v9603_v22 = vmax.f32 %v7423_v1, %v7431_v28 }
 0x2a2   :  { %v7767_v46 = vmax.f32 %v9598_v6, %v3212_v31  ;;  %v3233_v0 = vld [vmem:[#allocation2 + $0x3c8] sm:$0xff]  ;;  %v9604_v20 = vmax.f32 %v7425_v30, %v7433_v24  ;;  %v9605_v31 = vld [vmem:[#allocation53_spill] sm:$0xff]  ;;  %v9613_v24 = vmax.f32 %v7449_v40, %v7457_v61  ;;  %v9620_v61 = vmax.f32 %v7473_v5, %v7481_v50 }
 0x2a3   :  { %v7772_v12 = vmax.f32 %v9601_v9, %v3213_v25  ;;  %v7777_v62 = vmax.f32 %v9603_v22, %v3214_v44  ;;  %v9607_v45 = vmax.f32 %v9605_v31, %v9606_v59  ;;  %v9608_v25 = vld [vmem:[#allocation16_spill] sm:$0xff]  ;;  %v3234_v36 = vld [vmem:[#allocation2 + $0x3d0] sm:$0xff]  ;;  %v9612_v44 = vmax.f32 %v7447_v38, %v7455_v3  ;;  %v9617_v31 = vld [vmem:[#allocation55_spill] sm:$0xff] }
 0x2a4   :  { %v7782_v57 = vmax.f32 %v9604_v20, %v3215_v27  ;;  %v9609_v18 = vld [vmem:[#allocation36_spill] sm:$0xff]  ;;  %v3236_v1 = vld [vmem:[#allocation2 + $0x3f0] sm:$0xff]  ;;  %v7802_v27 = vmax.f32 %v9613_v24, %v3223_v14  ;;  %v9622_v14 = vld [vmem:[#allocation18_spill] sm:$0xff]  ;;  %v9629_v50 = vmax.f32 %v7497_v2, %v7505_v49 }
 0x2a5   :  { %9602 = vst [vmem:[#allocation83_spill] sm:$0xff] %v7772_v12  ;;  %v7787_v58 = vmax.f32 %v9607_v45, %v3216_v55  ;;  %v9610_v6 = vmax.f32 %v9608_v25, %v9609_v18  ;;  %v3235_v9 = vld [vmem:[#allocation2 + $0x3e8] sm:$0xff]  ;;  %v7797_v30 = vmax.f32 %v9612_v44, %v3222_v53  ;;  %v3238_v25 = vld [vmem:[#allocation2 + $0x410] sm:$0xff]  ;;  %v9619_v53 = vmax.f32 %v7471_v33, %v7479_v47  ;;  %v9639_v49 = vld [vmem:[#allocation58_spill] sm:$0xff] }
 0x2a6   :  { %v3237_v28 = vld [vmem:[#allocation2 + $0x408] sm:$0xff]  ;;  %v3240_v3 = vld [vmem:[#allocation2 + $0x430] sm:$0xff]  ;;  %v9640_v2 = vld [vmem:[#allocation23_spill] sm:$0xff] }
 0x2a7   :  { %v7792_v42 = vmax.f32 %v9610_v6, %v3221_v4  ;;  %v9614_v55 = vld [vmem:[#allocation56_spill] sm:$0xff]  ;;  %v7817_v40 = vmax.f32 %v9619_v53, %v3226_v39  ;;  %v9625_v44 = vld [vmem:[#allocation57_spill] sm:$0xff]  ;;  %v9627_v39 = vmax.f32 %v7495_v23, %v7503_v35  ;;  %v9638_v23 = vmax.f32 %v7519_v11, %v7527_v41 }
 0x2a8   :  { %v9615_v22 = vmax.f32 %v7451_v48, %v9614_v55  ;;  %v9616_v4 = vld [vmem:[#allocation20_spill] sm:$0xff]  ;;  %v7822_v48 = vmax.f32 %v9620_v61, %v3227_v32  ;;  %v3244_v47 = vld [vmem:[#allocation2 + $0x470] sm:$0xff]  ;;  %v9631_v32 = vld [vmem:[#allocation59_spill] sm:$0xff]  ;;  %v9647_v41 = vmax.f32 %v7543_v17, %v7551_v63 }
 0x2a9   :  { %9611 = vst [vmem:[#allocation85_spill] sm:$0xff] %v7792_v42  ;;  %v9618_v59 = vmax.f32 %v9616_v4, %v9617_v31  ;;  %v3239_v18 = vld [vmem:[#allocation2 + $0x428] sm:$0xff]  ;;  %v7837_v5 = vmax.f32 %v9627_v39, %v3230_v29  ;;  %v3248_v35 = vld [vmem:[#allocation2 + $0x4b0] sm:$0xff]  ;;  %v7857_v29 = vmax.f32 %v9638_v23, %v3234_v36  ;;  %v9649_v36 = vmax.f32 %v7545_v19, %v7553_v56  ;;  %v9659_v56 = vld [vmem:[#allocation63_spill] sm:$0xff] }
 0x2aa   :  { %v7807_v20 = vmax.f32 %v9615_v22, %v3224_v15  ;;  %v3241_v38 = vld [vmem:[#allocation2 + $0x448] sm:$0xff]  ;;  %9621 = vst [vmem:[#allocation5_spill] sm:$0xff] %v7822_v48  ;;  %v9623_v15 = vmax.f32 %v7475_v21, %v9622_v14  ;;  %v3242_v22 = vld [vmem:[#allocation2 + $0x450] sm:$0xff]  ;;  %v7842_v21 = vmax.f32 %v9629_v50, %v3231_v26  ;;  %v9641_v26 = vmax.f32 %v9639_v49, %v9640_v2 }
 0x2ab   :  { %v7812_v45 = vmax.f32 %v9618_v59, %v3225_v37  ;;  %v9624_v37 = vld [vmem:[#allocation33_spill] sm:$0xff]  ;;  %v3243_v4 = vld [vmem:[#allocation2 + $0x468] sm:$0xff]  ;;  %9628 = vst [vmem:[#allocation86_spill] sm:$0xff] %v7837_v5  ;;  %v7879_v11 = vmax.f32 %v9647_v41, %v3238_v25  ;;  %v9660_v19 = vmax.f32 %v7567_v34, %v9659_v56 }
 0x2ac   :  { %v7827_v6 = vmax.f32 %v9623_v15, %v3228_v10  ;;  %v9626_v24 = vmax.f32 %v9624_v37, %v9625_v44  ;;  %v3245_v33 = vld [vmem:[#allocation2 + $0x488] sm:$0xff]  ;;  %9630 = vst [vmem:[#allocation3_spill] sm:$0xff] %v7842_v21  ;;  %v9632_v10 = vmax.f32 %v7499_v51, %v9631_v32  ;;  %v9635_v59 = vld [vmem:[#allocation37_spill] sm:$0xff]  ;;  %v7862_v37 = vmax.f32 %v9641_v26, %v3235_v9 }
 0x2ad   :  { %v3246_v14 = vld [vmem:[#allocation2 + $0x490] sm:$0xff]  ;;  %v3247_v15 = vld [vmem:[#allocation2 + $0x4a8] sm:$0xff]  ;;  %v9643_v51 = vmax.f32 %v7523_v16, %v7531_v8  ;;  %9648 = vst [vmem:[#allocation11_spill] sm:$0xff] %v7879_v11  ;;  %v7884_v9 = vmax.f32 %v9649_v36, %v3239_v18  ;;  %v9651_v16 = vld [vmem:[#allocation34_spill] sm:$0xff]  ;;  %v7907_v18 = vmax.f32 %v9660_v19, %v3242_v22 }
 0x2ae   :  { %v7832_v55 = vmax.f32 %v9626_v24, %v3229_v7  ;;  %v7847_v31 = vmax.f32 %v9632_v10, %v3232_v54  ;;  %v9634_v7 = vld [vmem:[#allocation22_spill] sm:$0xff]  ;;  %9642 = vst [vmem:[#allocation88_spill] sm:$0xff] %v7862_v37  ;;  %v7874_v39 = vld [vmem:[#allocation2 + $0x89] sm:$0xff] }
 0x2af   :  { %v9636_v53 = vmax.f32 %v9634_v7, %v9635_v59  ;;  %v7867_v54 = vmax.f32 %v9643_v51, %v3236_v1  ;;  %9650 = vst [vmem:[#allocation19_spill] sm:$0xff] %v7884_v9  ;;  %v9652_v8 = vld [vmem:[#allocation38_spill] sm:$0xff]  ;;  %v7898_v63 = vld [vmem:[#allocation2 + $0xa9] sm:$0xff]  ;;  %9661 = vst [vmem:[#allocation17_spill] sm:$0xff] %v7907_v18 }
 0x2b0   :  { %9633 = vst [vmem:[#allocation87_spill] sm:$0xff] %v7847_v31  ;;  %v9653_v1 = vmax.f32 %v9651_v16, %v9652_v8  ;;  %v7896_v7 = vld [vmem:[#allocation2 + $0x91] sm:$0xff]  ;;  %v7902_v25 = vld [vmem:[#allocation2 + $0xc9] sm:$0xff]  ;;  %v9670_v51 = vld [vmem:[#allocation39_spill] sm:$0xff] }
 0x2b1   :  { %v7852_v61 = vmax.f32 %v9636_v53, %v3233_v0  ;;  %v9644_v0 = vld [vmem:[#allocation60_spill] sm:$0xff]  ;;  %v7900_v17 = vld [vmem:[#allocation2 + $0xb1] sm:$0xff]  ;;  %v9709_v9 = vld [vmem:[#allocation47_spill] sm:$0xff] }
 0x2b2   :  { %v9645_v44 = vmax.f32 %v7525_v13, %v9644_v0  ;;  %v7889_v50 = vmax.f32 %v9653_v1, %v3240_v3  ;;  %v9655_v13 = vld [vmem:[#allocation62_spill] sm:$0xff]  ;;  %v9662_v3 = vld [vmem:[#allocation61_spill] sm:$0xff]  ;;  %v9667_v49 = vld [vmem:[#allocation28_spill] sm:$0xff] }
 0x2b3   :  { %9637 = vst [vmem:[#allocation6_spill] sm:$0xff] %v7852_v61  ;;  %v9663_v59 = vld [vmem:[#allocation65_spill] sm:$0xff]  ;;  %v9671_v0 = vld [vmem:[#allocation66_spill] sm:$0xff] }
 0x2b4   :  { %v7872_v24 = vmax.f32 %v9645_v44, %v3237_v28  ;;  %9654 = vst [vmem:[#allocation15_spill] sm:$0xff] %v7889_v50  ;;  %v9656_v28 = vld [vmem:[#allocation24_spill] sm:$0xff]  ;;  %v9664_v53 = vmax.f32 %v9662_v3, %v9663_v59  ;;  %v9672_v44 = vmax.f32 %v9670_v51, %v9671_v0  ;;  %v7924_v36 = vld [vmem:[#allocation2 + $0xd1] sm:$0xff] }
 0x2b5   :  { %v9657_v32 = vmax.f32 %v9655_v13, %v9656_v28  ;;  %v7926_v34 = vld [vmem:[#allocation2 + $0xe9] sm:$0xff]  ;;  %v7928_v22 = vld [vmem:[#allocation2 + $0xf1] sm:$0xff]  ;;  %v9681_v13 = vld [vmem:[#allocation67_spill] sm:$0xff] }
 0x2b6   :  { %9646 = vst [vmem:[#allocation4_spill] sm:$0xff] %v7872_v24  ;;  %v7912_v23 = vmax.f32 %v9664_v53, %v3243_v4  ;;  %v7922_v41 = vmax.f32 %v9672_v44, %v3245_v33  ;;  %9674 = vst [vmem:[#allocation27_spill] sm:$0xff] %v7926_v34  ;;  %v7930_v16 = vld [vmem:[#allocation2 + $0x109] sm:$0xff]  ;;  %v7947_v59 = vld [vmem:[#allocation2 + $0x111] sm:$0xff] }
 0x2b7   :  { %v7894_v10 = vmax.f32 %v9657_v32, %v3241_v38  ;;  %v9666_v38 = vld [vmem:[#allocation35_spill] sm:$0xff]  ;;  %9675 = vst [vmem:[#allocation46_spill] sm:$0xff] %v7928_v22  ;;  %9676 = vst [vmem:[#allocation8_spill] sm:$0xff] %v7930_v16  ;;  %v9677_v4 = vld [vmem:[#allocation40_spill] sm:$0xff] }
 0x2b8   :  { %9665 = vst [vmem:[#allocation7_spill] sm:$0xff] %v7912_v23  ;;  %v9668_v2 = vmax.f32 %v9666_v38, %v9667_v49  ;;  %9673 = vst [vmem:[#allocation45_spill] sm:$0xff] %v7922_v41  ;;  %v9678_v8 = vmax.f32 %v7587_v52, %v9677_v4  ;;  %v9684_v33 = vld [vmem:[#allocation25_spill] sm:$0xff]  ;;  %v9692_v52 = vld [vmem:[#allocation68_spill] sm:$0xff] }
 0x2b9   :  { %9658 = vst [vmem:[#allocation41_spill] sm:$0xff] %v7894_v10  ;;  %v9685_v56 = vld [vmem:[#allocation29_spill] sm:$0xff]  ;;  %9688 = vst [vmem:[#allocation12_spill] sm:$0xff] %v7947_v59  ;;  %v9698_v4 = vld [vmem:[#allocation26_spill] sm:$0xff]  ;;  %v9732_v42 = vmax.f32 %v9692_v52, %v7874_v39 }
 0x2ba   :  { %v7917_v26 = vmax.f32 %v9668_v2, %v3244_v47  ;;  %v7935_v1 = vmax.f32 %v9678_v8, %v3246_v14  ;;  %v9680_v47 = vld [vmem:[#allocation64_spill] sm:$0xff]  ;;  %v9686_v19 = vmax.f32 %v9684_v33, %v9685_v56  ;;  %v7951_v38 = vld [vmem:[#allocation2 + $0x131] sm:$0xff] }
 0x2bb   :  { %v9682_v28 = vmax.f32 %v9680_v47, %v9681_v13  ;;  %v7949_v53 = vld [vmem:[#allocation2 + $0x129] sm:$0xff]  ;;  %9690 = vst [vmem:[#allocation13_spill] sm:$0xff] %v7951_v38  ;;  %v7957_v2 = vld [vmem:[#allocation2 + $0x151] sm:$0xff]  ;;  %v9734_v13 = vmax.f32 %v9698_v4, %v7898_v63 }
 0x2bc   :  { %9669 = vst [vmem:[#allocation21_spill] sm:$0xff] %v7917_v26  ;;  %9679 = vst [vmem:[#allocation9_spill] sm:$0xff] %v7935_v1  ;;  %v7945_v3 = vmax.f32 %v9686_v19, %v3248_v35  ;;  %v7953_v49 = vld [vmem:[#allocation2 + $0x149] sm:$0xff]  ;;  %v7961_v51 = vld [vmem:[#allocation2 + $0x171] sm:$0xff] }
 0x2bd   :  { %v7940_v32 = vmax.f32 %v9682_v28, %v3247_v15  ;;  %9689 = vst [vmem:[#allocation31_spill] sm:$0xff] %v7949_v53  ;;  %9691 = vst [vmem:[#allocation14_spill] sm:$0xff] %v7953_v49  ;;  %v7959_v15 = vld [vmem:[#allocation2 + $0x169] sm:$0xff]  ;;  %v9700_v28 = vld [vmem:[#allocation70_spill] sm:$0xff] }
 0x2be   :  { %9687 = vst [vmem:[#allocation50_spill] sm:$0xff] %v7945_v3  ;;  %9693 = vst [vmem:[#allocation51_spill] sm:$0xff] %v7957_v2  ;;  %v7963_v0 = vld [vmem:[#allocation2 + $0x189] sm:$0xff]  ;;  %v7973_v56 = vld [vmem:[#allocation2 + $0x191] sm:$0xff] }
 0x2bf   :  { %9683 = vst [vmem:[#allocation42_spill] sm:$0xff] %v7940_v32  ;;  %9694 = vst [vmem:[#allocation52_spill] sm:$0xff] %v7959_v15  ;;  %v9697_v35 = vld [vmem:[#allocation44_spill] sm:$0xff]  ;;  %v9699_v47 = vld [vmem:[#allocation69_spill] sm:$0xff] }
 0x2c0   :  { %9695 = vst [vmem:[#allocation10_spill] sm:$0xff] %v7961_v51  ;;  %9696 = vst [vmem:[#allocation32_spill] sm:$0xff] %v7963_v0  ;;  %v7975_v19 = vld [vmem:[#allocation2 + $0x1a9] sm:$0xff]  ;;  %v7977_v14 = vld [vmem:[#allocation2 + $0x1b1] sm:$0xff]  ;;  %v9733_v12 = vmax.f32 %v9697_v35, %v7896_v7 }
 0x2c1   :  { %9701 = vst [vmem:[#allocation48_spill] sm:$0xff] %v7977_v14  ;;  %v7979_v3 = vld [vmem:[#allocation2 + $0x1c9] sm:$0xff]  ;;  %v9703_v32 = vld [vmem:[#allocation71_spill] sm:$0xff]  ;;  %v7989_v23 = vld [vmem:[#allocation2 + $0x1d1] sm:$0xff] }
 0x2c2   :  { %9702 = vst [vmem:[#allocation49_spill] sm:$0xff] %v7979_v3  ;;  %v7991_v18 = vld [vmem:[#allocation2 + $0x1e9] sm:$0xff]  ;;  %v7993_v10 = vld [vmem:[#allocation2 + $0x1f1] sm:$0xff]  ;;  %v9720_v1 = vld [vmem:[#allocation79_spill] sm:$0xff] }
 0x2c3   :  { %9707 = vst [vmem:[#allocation53_spill] sm:$0xff] %v7993_v10  ;;  %v7995_v50 = vld [vmem:[#allocation2 + $0x209] sm:$0xff]  ;;  %v8005_v16 = vld [vmem:[#allocation2 + $0x211] sm:$0xff]  ;;  %v9738_v35 = vld [vmem:[#allocation43_spill] sm:$0xff] }
 0x2c4   :  { %9708 = vst [vmem:[#allocation54_spill] sm:$0xff] %v7995_v50  ;;  %v8007_v26 = vld [vmem:[#allocation2 + $0x229] sm:$0xff]  ;;  %v8009_v41 = vld [vmem:[#allocation2 + $0x231] sm:$0xff]  ;;  %v9739_v4 = vld [vmem:[#allocation27_spill] sm:$0xff] }
 0x2c5   :  { %9713 = vst [vmem:[#allocation16_spill] sm:$0xff] %v8009_v41  ;;  %v9714_v34 = vld [vmem:[#allocation76_spill] sm:$0xff]  ;;  %v9715_v44 = vld [vmem:[#allocation78_spill] sm:$0xff]  ;;  %v9719_v22 = vld [vmem:[#allocation81_spill] sm:$0xff] }
 0x2c6   :  { %v8019_v24 = vld [vmem:[#allocation2 + $0x309] sm:$0xff]  ;;  %v8021_v33 = vld [vmem:[#allocation2 + $0x311] sm:$0xff] }
 0x2c7   :  { %9718 = vst [vmem:[#allocation36_spill] sm:$0xff] %v8019_v24  ;;  %v8023_v49 = vld [vmem:[#allocation2 + $0x329] sm:$0xff]  ;;  %v8033_v8 = vld [vmem:[#allocation2 + $0x331] sm:$0xff] }
 0x2c8   :  { %v9721_v59 = vld [vmem:[#allocation84_spill] sm:$0xff]  ;;  %9723 = vst [vmem:[#allocation56_spill] sm:$0xff] %v8033_v8  ;;  %v8037_v0 = vld [vmem:[#allocation2 + $0x351] sm:$0xff] }
 0x2c9   :  { %v8035_v38 = vld [vmem:[#allocation2 + $0x349] sm:$0xff]  ;;  %v8049_v51 = vld [vmem:[#allocation2 + $0x371] sm:$0xff] }
 0x2ca   :  { %9724 = vst [vmem:[#allocation20_spill] sm:$0xff] %v8035_v38  ;;  %v8047_v14 = vld [vmem:[#allocation2 + $0x369] sm:$0xff]  ;;  %9726 = vst [vmem:[#allocation18_spill] sm:$0xff] %v8049_v51  ;;  %v8061_v10 = vld [vmem:[#allocation2 + $0x391] sm:$0xff] }
 0x2cb   :  { %9725 = vst [vmem:[#allocation55_spill] sm:$0xff] %v8047_v14  ;;  %v8051_v3 = vld [vmem:[#allocation2 + $0x389] sm:$0xff]  ;;  %9727 = vst [vmem:[#allocation33_spill] sm:$0xff] %v8061_v10  ;;  %v8065_v50 = vld [vmem:[#allocation2 + $0x3b1] sm:$0xff] }
 0x2cc   :  { %v8063_v15 = vld [vmem:[#allocation2 + $0x3a9] sm:$0xff]  ;;  %9729 = vst [vmem:[#allocation59_spill] sm:$0xff] %v8065_v50  ;;  %v8077_v2 = vld [vmem:[#allocation2 + $0x3d1] sm:$0xff] }
 0x2cd   :  { %9728 = vst [vmem:[#allocation57_spill] sm:$0xff] %v8063_v15  ;;  %v8075_v41 = vld [vmem:[#allocation2 + $0x3c9] sm:$0xff]  ;;  %v8089_v8 = vld [vmem:[#allocation2 + $0x3f1] sm:$0xff] }
 0x2ce   :  { %9730 = vst [vmem:[#allocation22_spill] sm:$0xff] %v8075_v41  ;;  %v8079_v24 = vld [vmem:[#allocation2 + $0x3e9] sm:$0xff]  ;;  %v3446_v48 = vld [vmem:[#allocation2 + $0x92] sm:$0xff] }
 0x2cf   :  { %9731 = vst [vmem:[#allocation37_spill] sm:$0xff] %v8079_v24  ;;  %v3445_v14 = vld [vmem:[#allocation2 + $0x8a] sm:$0xff]  ;;  %v3448_v10 = vld [vmem:[#allocation2 + $0xb2] sm:$0xff]  ;;  %v3510_v41 = vmax.f32 %v9733_v12, %v3446_v48  ;;  %v9735_v24 = vmax.f32 %v9699_v47, %v7900_v17  ;;  %v9737_v12 = vmax.f32 %v9703_v32, %v7924_v36  ;;  %v9740_v17 = vmax.f32 %v9738_v35, %v9739_v4 }
 0x2d0   :  { %v3447_v53 = vld [vmem:[#allocation2 + $0xaa] sm:$0xff]  ;;  %v3450_v38 = vld [vmem:[#allocation2 + $0xd2] sm:$0xff]  ;;  %v3509_v50 = vmax.f32 %v9732_v42, %v3445_v14  ;;  %v9736_v42 = vmax.f32 %v9700_v28, %v7902_v25 }
 0x2d1   :  { %v8099_v51 = vld [vmem:[#allocation2 + $0x409] sm:$0xff]  ;;  %v8111_v61 = vld [vmem:[#allocation2 + $0x411] sm:$0xff]  ;;  %v3511_v11 = vmax.f32 %v9734_v13, %v3447_v53  ;;  %v3512_v37 = vmax.f32 %v9735_v24, %v3448_v10  ;;  %v3514_v48 = vmax.f32 %v9737_v12, %v3450_v38  ;;  %3574 = vst.msk [vmem:[#allocation2 + $0x90] sm:$0xff] %vm73_vm0, %v3510_v41 }
 0x2d2   :  { %v3449_v5 = vld [vmem:[#allocation2 + $0xca] sm:$0xff]  ;;  %v3452_v15 = vld [vmem:[#allocation2 + $0xf2] sm:$0xff]  ;;  %3573 = vst.msk [vmem:[#allocation2 + $0x88] sm:$0xff] %vm73_vm0, %v3509_v50 }
 0x2d3   :  { %v3451_v31 = vld [vmem:[#allocation2 + $0xea] sm:$0xff]  ;;  %v3513_v39 = vmax.f32 %v9736_v42, %v3449_v5  ;;  %v3454_v14 = vld [vmem:[#allocation2 + $0x112] sm:$0xff]  ;;  %3575 = vst.msk [vmem:[#allocation2 + $0xa8] sm:$0xff] %vm73_vm0, %v3511_v11  ;;  %3576 = vst.msk [vmem:[#allocation2 + $0xb0] sm:$0xff] %vm73_vm0, %v3512_v37 }
 0x2d4   :  { %v3453_v21 = vld [vmem:[#allocation2 + $0x10a] sm:$0xff]  ;;  %v3456_v53 = vld [vmem:[#allocation2 + $0x132] sm:$0xff]  ;;  %v3515_v24 = vmax.f32 %v9740_v17, %v3451_v31  ;;  %3578 = vst.msk [vmem:[#allocation2 + $0xd0] sm:$0xff] %vm73_vm0, %v3514_v48  ;;  %v9760_v11 = vld [vmem:[#allocation51_spill] sm:$0xff] }
 0x2d5   :  { %v8125_v7 = vld [vmem:[#allocation2 + $0x429] sm:$0xff]  ;;  %v9741_v10 = vld [vmem:[#allocation30_spill] sm:$0xff]  ;;  %3577 = vst.msk [vmem:[#allocation2 + $0xc8] sm:$0xff] %vm73_vm0, %v3513_v39 }
 0x2d6   :  { %v3455_v63 = vld [vmem:[#allocation2 + $0x12a] sm:$0xff]  ;;  %v9742_v47 = vld [vmem:[#allocation46_spill] sm:$0xff]  ;;  %3579 = vst.msk [vmem:[#allocation2 + $0xe8] sm:$0xff] %vm73_vm0, %v3515_v24 }
 0x2d7   :  { %v9743_v25 = vmax.f32 %v9741_v10, %v9742_v47  ;;  %v9744_v13 = vld [vmem:[#allocation73_spill] sm:$0xff]  ;;  %v9745_v28 = vld [vmem:[#allocation8_spill] sm:$0xff]  ;;  %v9751_v47 = vld [vmem:[#allocation31_spill] sm:$0xff] }
 0x2d8   :  { %v9746_v36 = vmax.f32 %v9744_v13, %v9745_v28  ;;  %v8140_v38 = vld [vmem:[#allocation2 + $0x431] sm:$0xff]  ;;  %v9747_v42 = vld [vmem:[#allocation4_spill] sm:$0xff] }
 0x2d9   :  { %v3516_v5 = vmax.f32 %v9743_v25, %v3452_v15  ;;  %v3429_v12 = vmax.f32 %v9747_v42, %v8099_v51  ;;  %v3457_v52 = vld [vmem:[#allocation2 + $0x14a] sm:$0xff]  ;;  %v3458_v35 = vld [vmem:[#allocation2 + $0x152] sm:$0xff] }
 0x2da   :  { %v3517_v32 = vmax.f32 %v9746_v36, %v3453_v21  ;;  %v3459_v31 = vld [vmem:[#allocation2 + $0x16a] sm:$0xff]  ;;  %v9753_v13 = vld [vmem:[#allocation74_spill] sm:$0xff] }
 0x2db   :  { %v9748_v4 = vld [vmem:[#allocation12_spill] sm:$0xff]  ;;  %v9754_v50 = vld [vmem:[#allocation13_spill] sm:$0xff]  ;;  %3580 = vst.msk [vmem:[#allocation2 + $0xf0] sm:$0xff] %vm73_vm0, %v3516_v5  ;;  %v9771_v5 = vmax.f32 %v9719_v22, %v7973_v56 }
 0x2dc   :  { %v9749_v17 = vmax.f32 %v9709_v9, %v9748_v4  ;;  %v9750_v10 = vld [vmem:[#allocation72_spill] sm:$0xff]  ;;  %v9755_v28 = vmax.f32 %v9753_v13, %v9754_v50  ;;  %v9756_v9 = vld [vmem:[#allocation11_spill] sm:$0xff]  ;;  %v3460_v4 = vld [vmem:[#allocation2 + $0x172] sm:$0xff]  ;;  %v9761_v13 = vmax.f32 %v9714_v34, %v9760_v11  ;;  %3581 = vst.msk [vmem:[#allocation2 + $0x108] sm:$0xff] %vm73_vm0, %v3517_v32 }
 0x2dd   :  { %v9752_v25 = vmax.f32 %v9750_v10, %v9751_v47  ;;  %v8157_v36 = vld [vmem:[#allocation2 + $0x449] sm:$0xff]  ;;  %v9757_v10 = vld [vmem:[#allocation75_spill] sm:$0xff]  ;;  %v9758_v47 = vld [vmem:[#allocation14_spill] sm:$0xff] }
 0x2de   :  { %v3518_v15 = vmax.f32 %v9749_v17, %v3454_v14  ;;  %v3520_v41 = vmax.f32 %v9755_v28, %v3456_v53  ;;  %v3461_v17 = vld [vmem:[#allocation2 + $0x18a] sm:$0xff]  ;;  %v3522_v37 = vmax.f32 %v9761_v13, %v3458_v35  ;;  %v9764_v14 = vld [vmem:[#allocation19_spill] sm:$0xff]  ;;  %v9765_v34 = vld [vmem:[#allocation82_spill] sm:$0xff] }
 0x2df   :  { %v3519_v21 = vmax.f32 %v9752_v25, %v3455_v63  ;;  %v3462_v63 = vld [vmem:[#allocation2 + $0x192] sm:$0xff]  ;;  %v9759_v25 = vmax.f32 %v9757_v10, %v9758_v47  ;;  %v9762_v39 = vld [vmem:[#allocation52_spill] sm:$0xff]  ;;  %v9772_v10 = vld [vmem:[#allocation15_spill] sm:$0xff] }
 0x2e0   :  { %v9763_v50 = vmax.f32 %v9715_v44, %v9762_v39  ;;  %v8173_v28 = vld [vmem:[#allocation2 + $0x451] sm:$0xff]  ;;  %v3526_v32 = vmax.f32 %v9771_v5, %v3462_v63  ;;  %3582 = vst.msk [vmem:[#allocation2 + $0x110] sm:$0xff] %vm73_vm0, %v3518_v15  ;;  %3584 = vst.msk [vmem:[#allocation2 + $0x130] sm:$0xff] %vm73_vm0, %v3520_v41  ;;  %v9774_v22 = vld [vmem:[#allocation48_spill] sm:$0xff] }
 0x2e1   :  { %v3521_v53 = vmax.f32 %v9759_v25, %v3457_v52  ;;  %v3463_v52 = vld [vmem:[#allocation2 + $0x1aa] sm:$0xff]  ;;  %v3464_v47 = vld [vmem:[#allocation2 + $0x1b2] sm:$0xff]  ;;  %3583 = vst.msk [vmem:[#allocation2 + $0x128] sm:$0xff] %vm73_vm0, %v3519_v21  ;;  %v9775_v56 = vmax.f32 %v9721_v59, %v9774_v22  ;;  %3586 = vst.msk [vmem:[#allocation2 + $0x150] sm:$0xff] %vm73_vm0, %v3522_v37  ;;  %v9780_v59 = vmax.f32 %v7757_v60, %v7989_v23 }
 0x2e2   :  { %v3523_v48 = vmax.f32 %v9763_v50, %v3459_v31  ;;  %v3465_v25 = vld [vmem:[#allocation2 + $0x1ca] sm:$0xff]  ;;  %v9766_v35 = vld [vmem:[#allocation10_spill] sm:$0xff]  ;;  %3590 = vst.msk [vmem:[#allocation2 + $0x190] sm:$0xff] %vm73_vm0, %v3526_v32 }
 0x2e3   :  { %v9767_v11 = vmax.f32 %v9765_v34, %v9766_v35  ;;  %v9768_v44 = vld [vmem:[#allocation77_spill] sm:$0xff]  ;;  %v9769_v31 = vld [vmem:[#allocation32_spill] sm:$0xff]  ;;  %v3432_v34 = vmax.f32 %v9772_v10, %v8140_v38  ;;  %v3528_v15 = vmax.f32 %v9775_v56, %v3464_v47  ;;  %3585 = vst.msk [vmem:[#allocation2 + $0x148] sm:$0xff] %vm73_vm0, %v3521_v53 }
 0x2e4   :  { %v9770_v39 = vmax.f32 %v9768_v44, %v9769_v31  ;;  %v8189_v50 = vld [vmem:[#allocation2 + $0x469] sm:$0xff]  ;;  %3587 = vst.msk [vmem:[#allocation2 + $0x168] sm:$0xff] %vm73_vm0, %v3523_v48  ;;  %v3472_v23 = vld [vmem:[#allocation2 + $0x232] sm:$0xff] }
 0x2e5   :  { %v3524_v13 = vmax.f32 %v9767_v11, %v3460_v4  ;;  %v3466_v4 = vld [vmem:[#allocation2 + $0x1d2] sm:$0xff]  ;;  %v3467_v35 = vld [vmem:[#allocation2 + $0x1ea] sm:$0xff]  ;;  %3592 = vst.msk [vmem:[#allocation2 + $0x1b0] sm:$0xff] %vm73_vm0, %v3528_v15  ;;  %v9796_v15 = vmax.f32 %v7797_v30, %v8021_v33 }
 0x2e6   :  { %v3525_v24 = vmax.f32 %v9770_v39, %v3461_v17  ;;  %v3468_v11 = vld [vmem:[#allocation2 + $0x1f2] sm:$0xff]  ;;  %v9773_v17 = vmax.f32 %v9720_v1, %v7975_v19  ;;  %v9776_v63 = vld [vmem:[#allocation80_spill] sm:$0xff]  ;;  %v3530_v47 = vmax.f32 %v9780_v59, %v3466_v4  ;;  %v9790_v59 = vld [vmem:[#allocation7_spill] sm:$0xff] }
 0x2e7   :  { %v9777_v21 = vld [vmem:[#allocation49_spill] sm:$0xff]  ;;  %3588 = vst.msk [vmem:[#allocation2 + $0x170] sm:$0xff] %vm73_vm0, %v3524_v13  ;;  %v9799_v30 = vld [vmem:[#allocation56_spill] sm:$0xff] }
 0x2e8   :  { %v3527_v44 = vmax.f32 %v9773_v17, %v3463_v52  ;;  %v9778_v31 = vmax.f32 %v9776_v63, %v9777_v21  ;;  %v8205_v39 = vld [vmem:[#allocation2 + $0x471] sm:$0xff]  ;;  %3589 = vst.msk [vmem:[#allocation2 + $0x188] sm:$0xff] %vm73_vm0, %v3525_v24  ;;  %v8221_v56 = vld [vmem:[#allocation2 + $0x489] sm:$0xff]  ;;  %v9789_v24 = vmax.f32 %v7782_v57, %v8007_v26  ;;  %3594 = vst.msk [vmem:[#allocation2 + $0x1d0] sm:$0xff] %vm73_vm0, %v3530_v47 }
 0x2e9   :  { %v9779_v5 = vld [vmem:[#allocation41_spill] sm:$0xff]  ;;  %v9794_v26 = vld [vmem:[#allocation36_spill] sm:$0xff]  ;;  %v9800_v33 = vmax.f32 %v7807_v20, %v9799_v30  ;;  %v9804_v20 = vmax.f32 %v7817_v40, %v8037_v0  ;;  %v9812_v30 = vld [vmem:[#allocation86_spill] sm:$0xff] }
 0x2ea   :  { %v3529_v41 = vmax.f32 %v9778_v31, %v3465_v25  ;;  %v3433_v1 = vmax.f32 %v9779_v5, %v8157_v36  ;;  %v3469_v19 = vld [vmem:[#allocation2 + $0x20a] sm:$0xff]  ;;  %v3470_v52 = vld [vmem:[#allocation2 + $0x212] sm:$0xff]  ;;  %v9781_v25 = vmax.f32 %v7762_v43, %v7991_v18  ;;  %v9785_v43 = vld [vmem:[#allocation83_spill] sm:$0xff]  ;;  %3591 = vst.msk [vmem:[#allocation2 + $0x1a8] sm:$0xff] %vm73_vm0, %v3527_v44 }
 0x2eb   :  { %v3471_v17 = vld [vmem:[#allocation2 + $0x22a] sm:$0xff]  ;;  %v3478_v21 = vld [vmem:[#allocation2 + $0x312] sm:$0xff] }
 0x2ec   :  { %v3531_v53 = vmax.f32 %v9781_v25, %v3467_v35  ;;  %v9782_v37 = vld [vmem:[#allocation53_spill] sm:$0xff]  ;;  %v9786_v18 = vld [vmem:[#allocation54_spill] sm:$0xff]  ;;  %v3535_v32 = vmax.f32 %v9789_v24, %v3471_v17  ;;  %3593 = vst.msk [vmem:[#allocation2 + $0x1c8] sm:$0xff] %vm73_vm0, %v3529_v41  ;;  %v3435_v25 = vmax.f32 %v9790_v59, %v8189_v50  ;;  %v3542_v41 = vmax.f32 %v9796_v15, %v3478_v21  ;;  %v8365_v59 = vld [vmem:[#allocation2 + $0x88] sm:$0xff] }
 0x2ed   :  { %v9783_v22 = vmax.f32 %v7767_v46, %v9782_v37  ;;  %v9784_v63 = vld [vmem:[#allocation17_spill] sm:$0xff]  ;;  %v9787_v35 = vmax.f32 %v9785_v43, %v9786_v18  ;;  %v9788_v46 = vmax.f32 %v7777_v62, %v8005_v16  ;;  %v9791_v62 = vld [vmem:[#allocation16_spill] sm:$0xff] }
 0x2ee   :  { %v3434_v60 = vmax.f32 %v9784_v63, %v8173_v28  ;;  %v3477_v4 = vld [vmem:[#allocation2 + $0x30a] sm:$0xff]  ;;  %v3480_v37 = vld [vmem:[#allocation2 + $0x332] sm:$0xff]  ;;  %v9792_v16 = vmax.f32 %v7787_v58, %v9791_v62  ;;  %3595 = vst.msk [vmem:[#allocation2 + $0x1e8] sm:$0xff] %vm73_vm0, %v3531_v53  ;;  %3599 = vst.msk [vmem:[#allocation2 + $0x228] sm:$0xff] %vm73_vm0, %v3535_v32 }
 0x2ef   :  { %v3532_v48 = vmax.f32 %v9783_v22, %v3468_v11  ;;  %v3533_v31 = vmax.f32 %v9787_v35, %v3469_v19  ;;  %v3534_v13 = vmax.f32 %v9788_v46, %v3470_v52  ;;  %v8237_v11 = vld [vmem:[#allocation2 + $0x491] sm:$0xff]  ;;  %v8253_v43 = vld [vmem:[#allocation2 + $0x4a9] sm:$0xff]  ;;  %v3544_v47 = vmax.f32 %v9800_v33, %v3480_v37  ;;  %3606 = vst.msk [vmem:[#allocation2 + $0x310] sm:$0xff] %vm73_vm0, %v3542_v41 }
 0x2f0   :  { %v3479_v19 = vld [vmem:[#allocation2 + $0x32a] sm:$0xff]  ;;  %v3536_v52 = vmax.f32 %v9792_v16, %v3472_v23  ;;  %v3482_v23 = vld [vmem:[#allocation2 + $0x352] sm:$0xff] }
 0x2f1   :  { %v3481_v22 = vld [vmem:[#allocation2 + $0x34a] sm:$0xff]  ;;  %3596 = vst.msk [vmem:[#allocation2 + $0x1f0] sm:$0xff] %vm73_vm0, %v3532_v48  ;;  %v3484_v46 = vld [vmem:[#allocation2 + $0x372] sm:$0xff]  ;;  %3597 = vst.msk [vmem:[#allocation2 + $0x208] sm:$0xff] %vm73_vm0, %v3533_v31  ;;  %v3546_v37 = vmax.f32 %v9804_v20, %v3482_v23  ;;  %v9811_v23 = vmax.f32 %v7832_v55, %v8051_v3 }
 0x2f2   :  { %v9793_v57 = vld [vmem:[#allocation85_spill] sm:$0xff]  ;;  %v9801_v53 = vld [vmem:[#allocation20_spill] sm:$0xff]  ;;  %3598 = vst.msk [vmem:[#allocation2 + $0x210] sm:$0xff] %vm73_vm0, %v3534_v13  ;;  %v9808_v13 = vld [vmem:[#allocation18_spill] sm:$0xff] }
 0x2f3   :  { %v9795_v17 = vmax.f32 %v9793_v57, %v9794_v26  ;;  %v9797_v18 = vld [vmem:[#allocation21_spill] sm:$0xff]  ;;  %v9802_v21 = vmax.f32 %v7812_v45, %v9801_v53  ;;  %3600 = vst.msk [vmem:[#allocation2 + $0x230] sm:$0xff] %vm73_vm0, %v3536_v52  ;;  %v9815_v53 = vld [vmem:[#allocation3_spill] sm:$0xff]  ;;  %3608 = vst.msk [vmem:[#allocation2 + $0x330] sm:$0xff] %vm73_vm0, %v3544_v47 }
 0x2f4   :  { %v3436_v58 = vmax.f32 %v9797_v18, %v8205_v39  ;;  %v3483_v35 = vld [vmem:[#allocation2 + $0x36a] sm:$0xff]  ;;  %v3490_v0 = vld [vmem:[#allocation2 + $0x3d2] sm:$0xff]  ;;  %v9820_v20 = vld [vmem:[#allocation59_spill] sm:$0xff]  ;;  %3610 = vst.msk [vmem:[#allocation2 + $0x350] sm:$0xff] %vm73_vm0, %v3546_v37 }
 0x2f5   :  { %v3541_v44 = vmax.f32 %v9795_v17, %v3477_v4  ;;  %v9798_v4 = vmax.f32 %v7802_v27, %v8023_v49  ;;  %v3545_v48 = vmax.f32 %v9802_v21, %v3481_v22  ;;  %v8269_v62 = vld [vmem:[#allocation2 + $0x4b1] sm:$0xff]  ;;  %v9806_v22 = vld [vmem:[#allocation55_spill] sm:$0xff]  ;;  %v9809_v17 = vmax.f32 %v7827_v6, %v9808_v13  ;;  %v3633_v28 = vld [vmem:[#allocation2 + $0x8] sm:$0xff] }
 0x2f6   :  { %v9803_v16 = vld [vmem:[#allocation45_spill] sm:$0xff]  ;;  %v3825_v39 = vld [vmem:[#allocation2 + $0x48] sm:$0xff] }
 0x2f7   :  { %v3543_v24 = vmax.f32 %v9798_v4, %v3479_v19  ;;  %v3437_v27 = vmax.f32 %v9803_v16, %v8221_v56  ;;  %v3485_v49 = vld [vmem:[#allocation2 + $0x38a] sm:$0xff]  ;;  %v3486_v19 = vld [vmem:[#allocation2 + $0x392] sm:$0xff]  ;;  %v3548_v32 = vmax.f32 %v9809_v17, %v3484_v46  ;;  %3605 = vst.msk [vmem:[#allocation2 + $0x308] sm:$0xff] %vm73_vm0, %v3541_v44  ;;  %3609 = vst.msk [vmem:[#allocation2 + $0x348] sm:$0xff] %vm73_vm0, %v3545_v48 }
 0x2f8   :  { %v3487_v57 = vld [vmem:[#allocation2 + $0x3aa] sm:$0xff]  ;;  %v3488_v4 = vld [vmem:[#allocation2 + $0x3b2] sm:$0xff] }
 0x2f9   :  { %v9805_v45 = vld [vmem:[#allocation5_spill] sm:$0xff]  ;;  %3607 = vst.msk [vmem:[#allocation2 + $0x328] sm:$0xff] %vm73_vm0, %v3543_v24  ;;  %v9825_v24 = vmax.f32 %v7857_v29, %v8077_v2  ;;  %3612 = vst.msk [vmem:[#allocation2 + $0x370] sm:$0xff] %vm73_vm0, %v3548_v32  ;;  %v9830_v29 = vmax.f32 %v7867_v54, %v8089_v8  ;;  %v9832_v54 = vmax.f32 %v9764_v14, %v8125_v7  ;;  %v8360_v63 = vld [vmem:[#allocation2 + $0x68] sm:$0xff] }
 0x2fa   :  { %v9807_v26 = vmax.f32 %v9805_v45, %v9806_v22  ;;  %v9810_v56 = vld [vmem:[#allocation9_spill] sm:$0xff]  ;;  %v9822_v22 = vld [vmem:[#allocation6_spill] sm:$0xff] }
 0x2fb   :  { %v3438_v15 = vmax.f32 %v9810_v56, %v8237_v11  ;;  %v3489_v40 = vld [vmem:[#allocation2 + $0x3ca] sm:$0xff]  ;;  %v9818_v11 = vld [vmem:[#allocation42_spill] sm:$0xff]  ;;  %v3554_v47 = vmax.f32 %v9825_v24, %v3490_v0  ;;  %v9831_v0 = vmax.f32 %v9756_v9, %v8111_v61 }
 0x2fc   :  { %v3547_v31 = vmax.f32 %v9807_v26, %v3483_v35  ;;  %v3549_v35 = vmax.f32 %v9811_v23, %v3485_v49  ;;  %v9813_v33 = vld [vmem:[#allocation33_spill] sm:$0xff]  ;;  %v3439_v41 = vmax.f32 %v9818_v11, %v8253_v43  ;;  %v9819_v49 = vld [vmem:[#allocation87_spill] sm:$0xff]  ;;  %v9823_v26 = vld [vmem:[#allocation22_spill] sm:$0xff] }
 0x2fd   :  { %v9814_v6 = vmax.f32 %v9812_v30, %v9813_v33  ;;  %v9816_v52 = vld [vmem:[#allocation57_spill] sm:$0xff]  ;;  %v9821_v45 = vmax.f32 %v9819_v49, %v9820_v20  ;;  %v9824_v13 = vmax.f32 %v9822_v22, %v9823_v26  ;;  %v9826_v43 = vld [vmem:[#allocation50_spill] sm:$0xff]  ;;  %v9827_v23 = vld [vmem:[#allocation88_spill] sm:$0xff]  ;;  %3618 = vst.msk [vmem:[#allocation2 + $0x3d0] sm:$0xff] %vm73_vm0, %v3554_v47 }
 0x2fe   :  { %v9817_v21 = vmax.f32 %v9815_v53, %v9816_v52  ;;  %v3491_v16 = vld [vmem:[#allocation2 + $0x3ea] sm:$0xff]  ;;  %v3492_v55 = vld [vmem:[#allocation2 + $0x3f2] sm:$0xff]  ;;  %3611 = vst.msk [vmem:[#allocation2 + $0x368] sm:$0xff] %vm73_vm0, %v3547_v31  ;;  %v3440_v48 = vmax.f32 %v9826_v43, %v8269_v62  ;;  %3613 = vst.msk [vmem:[#allocation2 + $0x388] sm:$0xff] %vm73_vm0, %v3549_v35  ;;  %v3767_v52 = vmax.f32 %v8360_v63, %v8365_v59 }
 0x2ff   :  { %v3550_v46 = vmax.f32 %v9814_v6, %v3486_v19  ;;  %v3493_v3 = vld [vmem:[#allocation2 + $0x40a] sm:$0xff]  ;;  %v3552_v19 = vmax.f32 %v9821_v45, %v3488_v4  ;;  %v3494_v17 = vld [vmem:[#allocation2 + $0x412] sm:$0xff]  ;;  %v3556_v2 = vmax.f32 %v9830_v29, %v3492_v55 }
 0x300   :  { %v3551_v44 = vmax.f32 %v9817_v21, %v3487_v57  ;;  %v3553_v57 = vmax.f32 %v9824_v13, %v3489_v40  ;;  %v3495_v56 = vld [vmem:[#allocation2 + $0x42a] sm:$0xff]  ;;  %v3496_v4 = vld [vmem:[#allocation2 + $0x432] sm:$0xff]  ;;  %v3557_v37 = vmax.f32 %v3429_v12, %v3493_v3  ;;  %v3558_v6 = vmax.f32 %v9831_v0, %v3494_v17 }
 0x301   :  { %v9828_v30 = vld [vmem:[#allocation37_spill] sm:$0xff]  ;;  %3614 = vst.msk [vmem:[#allocation2 + $0x390] sm:$0xff] %vm73_vm0, %v3550_v46  ;;  %v3559_v8 = vmax.f32 %v9832_v54, %v3495_v56  ;;  %v3560_v51 = vmax.f32 %v3432_v34, %v3496_v4  ;;  %3616 = vst.msk [vmem:[#allocation2 + $0x3b0] sm:$0xff] %vm73_vm0, %v3552_v19  ;;  %v3729_v11 = vld [vmem:[#allocation2 + $0x2a8] sm:$0xff] }
 0x302   :  { %v9829_v33 = vmax.f32 %v9827_v23, %v9828_v30  ;;  %3615 = vst.msk [vmem:[#allocation2 + $0x3a8] sm:$0xff] %vm73_vm0, %v3551_v44  ;;  %v3497_v62 = vld [vmem:[#allocation2 + $0x44a] sm:$0xff]  ;;  %v3498_v31 = vld [vmem:[#allocation2 + $0x452] sm:$0xff]  ;;  %3617 = vst.msk [vmem:[#allocation2 + $0x3c8] sm:$0xff] %vm73_vm0, %v3553_v57 }
 0x303   :  { %v3499_v32 = vld [vmem:[#allocation2 + $0x46a] sm:$0xff]  ;;  %v3500_v42 = vld [vmem:[#allocation2 + $0x472] sm:$0xff]  ;;  %v3561_v61 = vmax.f32 %v3433_v1, %v3497_v62  ;;  %v3562_v7 = vmax.f32 %v3434_v60, %v3498_v31  ;;  %3620 = vst.msk [vmem:[#allocation2 + $0x3f0] sm:$0xff] %vm73_vm0, %v3556_v2  ;;  %3621 = vst.msk [vmem:[#allocation2 + $0x408] sm:$0xff] %vm73_vm0, %v3557_v37 }
 0x304   :  { %v3555_v40 = vmax.f32 %v9829_v33, %v3491_v16  ;;  %v3501_v12 = vld [vmem:[#allocation2 + $0x48a] sm:$0xff]  ;;  %v3502_v35 = vld [vmem:[#allocation2 + $0x492] sm:$0xff]  ;;  %v3563_v38 = vmax.f32 %v3435_v25, %v3499_v32  ;;  %v3564_v36 = vmax.f32 %v3436_v58, %v3500_v42  ;;  %3622 = vst.msk [vmem:[#allocation2 + $0x410] sm:$0xff] %vm73_vm0, %v3558_v6  ;;  %3623 = vst.msk [vmem:[#allocation2 + $0x428] sm:$0xff] %vm73_vm0, %v3559_v8 }
 0x305   :  { %v3503_v9 = vld [vmem:[#allocation2 + $0x4aa] sm:$0xff]  ;;  %v3504_v14 = vld [vmem:[#allocation2 + $0x4b2] sm:$0xff]  ;;  %v3565_v10 = vmax.f32 %v3437_v27, %v3501_v12  ;;  %v3566_v34 = vmax.f32 %v3438_v15, %v3502_v35  ;;  %3624 = vst.msk [vmem:[#allocation2 + $0x430] sm:$0xff] %vm73_vm0, %v3560_v51  ;;  %3625 = vst.msk [vmem:[#allocation2 + $0x448] sm:$0xff] %vm73_vm0, %v3561_v61  ;;  %v3765_v27 = vmax.f32 %v3825_v39, %v8360_v63 }
 0x306   :  { %3619 = vst.msk [vmem:[#allocation2 + $0x3e8] sm:$0xff] %vm73_vm0, %v3555_v40  ;;  %v3567_v50 = vmax.f32 %v3439_v41, %v3503_v9  ;;  %v3568_v5 = vmax.f32 %v3440_v48, %v3504_v14  ;;  %3626 = vst.msk [vmem:[#allocation2 + $0x450] sm:$0xff] %vm73_vm0, %v3562_v7  ;;  %v3697_v1 = vld [vmem:[#allocation2 + $0x28] sm:$0xff]  ;;  %v3634_v25 = vld [vmem:[#allocation2 + $0x10] sm:$0xff] }
 0x307   :  { %3627 = vst.msk [vmem:[#allocation2 + $0x468] sm:$0xff] %vm73_vm0, %v3563_v38  ;;  %3628 = vst.msk [vmem:[#allocation2 + $0x470] sm:$0xff] %vm73_vm0, %v3564_v36  ;;  %v3761_v60 = vmax.f32 %v3633_v28, %v3697_v1  ;;  %v3698_v18 = vld [vmem:[#allocation2 + $0x30] sm:$0xff]  ;;  %v3763_v58 = vmax.f32 %v3697_v1, %v3825_v39  ;;  %v3665_v44 = vld [vmem:[#allocation2 + $0x288] sm:$0xff]  ;;  %v3893_v3 = vmax.f32 %v3765_v27, %v8365_v59 }
 0x308   :  { %3629 = vst.msk [vmem:[#allocation2 + $0x488] sm:$0xff] %vm73_vm0, %v3565_v10  ;;  %3630 = vst.msk [vmem:[#allocation2 + $0x490] sm:$0xff] %vm73_vm0, %v3566_v34  ;;  %v3762_v15 = vmax.f32 %v3634_v25, %v3698_v18  ;;  %v3826_v46 = vld [vmem:[#allocation2 + $0x50] sm:$0xff]  ;;  %v3857_v41 = vld [vmem:[#allocation2 + $0x2c8] sm:$0xff]  ;;  %v3793_v45 = vmax.f32 %v3665_v44, %v3729_v11 }
 0x309   :  { %3631 = vst.msk [vmem:[#allocation2 + $0x4a8] sm:$0xff] %vm73_vm0, %v3567_v50  ;;  %3632 = vst.msk [vmem:[#allocation2 + $0x4b0] sm:$0xff] %vm73_vm0, %v3568_v5  ;;  %v8370_v53 = vld [vmem:[#allocation2 + $0x70] sm:$0xff]  ;;  %v3889_v21 = vmax.f32 %v3761_v60, %v3825_v39  ;;  %v3891_v16 = vmax.f32 %v3763_v58, %v8360_v63  ;;  %v3764_v55 = vmax.f32 %v3698_v18, %v3826_v46  ;;  %v8378_v19 = vld [vmem:[#allocation2 + $0x2e8] sm:$0xff] }
 0x30a   :  { %v3890_v49 = vmax.f32 %v3762_v15, %v3826_v46  ;;  %v8376_v20 = vld [vmem:[#allocation2 + $0x90] sm:$0xff]  ;;  %v3795_v26 = vmax.f32 %v3729_v11, %v3857_v41  ;;  %v3766_v13 = vmax.f32 %v3826_v46, %v8370_v53  ;;  %v8382_v24 = vld [vmem:[#allocation2 + $0x308] sm:$0xff]  ;;  %v3797_v56 = vmax.f32 %v3857_v41, %v8378_v19 }
 0x30b   :  { %v3666_v22 = vld [vmem:[#allocation2 + $0x290] sm:$0xff]  ;;  %v4017_v57 = vmax.f32 %v3889_v21, %v8360_v63  ;;  %v4019_v48 = vmax.f32 %v3891_v16, %v8365_v59  ;;  %v3892_v17 = vmax.f32 %v3764_v55, %v8370_v53  ;;  %v3921_v23 = vmax.f32 %v3793_v45, %v3857_v41  ;;  %v8390_v40 = vld [vmem:[#allocation2 + $0xa8] sm:$0xff] }
 0x30c   :  { %v3730_v47 = vld [vmem:[#allocation2 + $0x2b0] sm:$0xff]  ;;  %v4018_v4 = vmax.f32 %v3890_v49, %v8370_v53  ;;  %v3923_v29 = vmax.f32 %v3795_v26, %v8378_v19  ;;  %v8409_v12 = vld [vmem:[#allocation2 + $0x328] sm:$0xff]  ;;  %v4021_v61 = vmax.f32 %v3893_v3, %v8390_v40  ;;  %v3894_v7 = vmax.f32 %v3766_v13, %v8376_v20 }
 0x30d   :  { %v3858_v43 = vld [vmem:[#allocation2 + $0x2d0] sm:$0xff]  ;;  %v3794_v30 = vmax.f32 %v3666_v22, %v3730_v47  ;;  %v4145_v2 = vmax.f32 %v4017_v57, %v8365_v59  ;;  %v4147_v37 = vmax.f32 %v4019_v48, %v8390_v40  ;;  %v4020_v62 = vmax.f32 %v3892_v17, %v8376_v20  ;;  %v4085_v36 = vld [vmem:[#allocation2 + $0xc8] sm:$0xff] }
 0x30e   :  { %v8388_v33 = vld [vmem:[#allocation2 + $0x2f0] sm:$0xff]  ;;  %v3796_v31 = vmax.f32 %v3730_v47, %v3858_v43  ;;  %v4146_v32 = vmax.f32 %v4018_v4, %v8376_v20  ;;  %v4049_v0 = vmax.f32 %v3921_v23, %v8378_v19  ;;  %v4051_v51 = vmax.f32 %v3923_v29, %v8382_v24  ;;  %v8448_v15 = vld [vmem:[#allocation2 + $0x348] sm:$0xff] }
 0x30f   :  { %v3922_v6 = vmax.f32 %v3794_v30, %v3858_v43  ;;  %v8398_v54 = vld [vmem:[#allocation2 + $0x310] sm:$0xff]  ;;  %4209 = vst.msk [vmem:[%s8709_s1] sm:$0xff] %vm73_vm0, %v4145_v2  ;;  %4211 = vst.msk [vmem:[%s8709_s1 + $0x10] sm:$0xff] %vm73_vm0, %v4147_v37  ;;  %v3925_v10 = vmax.f32 %v3797_v56, %v8382_v24  ;;  %v4149_v28 = vmax.f32 %v4021_v61, %v4085_v36  ;;  %v4087_v21 = vld [vmem:[#allocation2 + $0xe8] sm:$0xff] }
 0x310   :  { %v4084_v8 = vld [vmem:[#allocation2 + $0xb0] sm:$0xff]  ;;  %v3924_v35 = vmax.f32 %v3796_v31, %v8388_v33  ;;  %4210 = vst.msk [vmem:[%s8709_s1 + $0x8] sm:$0xff] %vm73_vm0, %v4146_v32  ;;  %v4177_v38 = vmax.f32 %v4049_v0, %v8382_v24  ;;  %v4179_v14 = vmax.f32 %v4051_v51, %v8409_v12  ;;  %v3798_v5 = vmax.f32 %v3858_v43, %v8388_v33  ;;  %v4089_v26 = vld [vmem:[#allocation2 + $0x108] sm:$0xff] }
 0x311   :  { %v4148_v42 = vmax.f32 %v4020_v62, %v4084_v8  ;;  %v4050_v9 = vmax.f32 %v3922_v6, %v8388_v33  ;;  %v4022_v50 = vmax.f32 %v3894_v7, %v4084_v8  ;;  %v8437_v39 = vld [vmem:[#allocation2 + $0x330] sm:$0xff]  ;;  %v4053_v60 = vmax.f32 %v3925_v10, %v8409_v12  ;;  %4213 = vst.msk [vmem:[%s8709_s1 + $0x20] sm:$0xff] %vm73_vm0, %v4149_v28  ;;  %v4091_v30 = vld [vmem:[#allocation2 + $0x128] sm:$0xff] }
 0x312   :  { %v4052_v34 = vmax.f32 %v3924_v35, %v8398_v54  ;;  %4241 = vst.msk [vmem:[%s8709_s1 + $0x400] sm:$0xff] %vm73_vm0, %v4177_v38  ;;  %4243 = vst.msk [vmem:[%s8709_s1 + $0x410] sm:$0xff] %vm73_vm0, %v4179_v14  ;;  %v4086_v63 = vld [vmem:[#allocation2 + $0xd0] sm:$0xff]  ;;  %v3895_v25 = vmax.f32 %v3767_v52, %v8390_v40  ;;  %v3768_v18 = vmax.f32 %v8370_v53, %v8376_v20 }
 0x313   :  { %4212 = vst.msk [vmem:[%s8709_s1 + $0x18] sm:$0xff] %vm73_vm0, %v4148_v42  ;;  %v4178_v1 = vmax.f32 %v4050_v9, %v8398_v54  ;;  %v4150_v27 = vmax.f32 %v4022_v50, %v4086_v63  ;;  %v3926_v46 = vmax.f32 %v3798_v5, %v8398_v54  ;;  %v3769_v44 = vmax.f32 %v8365_v59, %v8390_v40  ;;  %v4088_v16 = vld [vmem:[#allocation2 + $0xf0] sm:$0xff]  ;;  %v4095_v9 = vld [vmem:[#allocation2 + $0x168] sm:$0xff] }
 0x314   :  { %v4180_v58 = vmax.f32 %v4052_v34, %v8437_v39  ;;  %v4181_v53 = vmax.f32 %v4053_v60, %v8448_v15  ;;  %v4023_v52 = vmax.f32 %v3895_v25, %v4085_v36  ;;  %v3896_v11 = vmax.f32 %v3768_v18, %v4084_v8  ;;  %v4090_v48 = vld [vmem:[#allocation2 + $0x110] sm:$0xff] }
 0x315   :  { %4242 = vst.msk [vmem:[%s8709_s1 + $0x408] sm:$0xff] %vm73_vm0, %v4178_v1  ;;  %v3770_v41 = vmax.f32 %v8376_v20, %v4084_v8  ;;  %4214 = vst.msk [vmem:[%s8709_s1 + $0x28] sm:$0xff] %vm73_vm0, %v4150_v27  ;;  %v4054_v59 = vmax.f32 %v3926_v46, %v8437_v39  ;;  %v3897_v55 = vmax.f32 %v3769_v44, %v4085_v36  ;;  %v8473_v20 = vld [vmem:[#allocation2 + $0x350] sm:$0xff] }
 0x316   :  { %4244 = vst.msk [vmem:[%s8709_s1 + $0x418] sm:$0xff] %vm73_vm0, %v4180_v58  ;;  %v3771_v3 = vmax.f32 %v8390_v40, %v4085_v36  ;;  %v3772_v49 = vmax.f32 %v4084_v8, %v4086_v63  ;;  %4245 = vst.msk [vmem:[%s8709_s1 + $0x420] sm:$0xff] %vm73_vm0, %v4181_v53  ;;  %v4151_v45 = vmax.f32 %v4023_v52, %v4087_v21  ;;  %v4092_v31 = vld [vmem:[#allocation2 + $0x130] sm:$0xff]  ;;  %v4093_v8 = vld [vmem:[#allocation2 + $0x148] sm:$0xff] }
 0x317   :  { %v4024_v22 = vmax.f32 %v3896_v11, %v4086_v63  ;;  %v3898_v13 = vmax.f32 %v3770_v41, %v4086_v63  ;;  %v3773_v57 = vmax.f32 %v4085_v36, %v4087_v21  ;;  %v4182_v47 = vmax.f32 %v4054_v59, %v8473_v20  ;;  %v4094_v42 = vld [vmem:[#allocation2 + $0x150] sm:$0xff]  ;;  %v4097_v58 = vld [vmem:[#allocation2 + $0x188] sm:$0xff] }
 0x318   :  { %v4025_v43 = vmax.f32 %v3897_v55, %v4087_v21  ;;  %v3899_v17 = vmax.f32 %v3771_v3, %v4087_v21  ;;  %v3900_v56 = vmax.f32 %v3772_v49, %v4088_v16  ;;  %4215 = vst.msk [vmem:[%s8709_s1 + $0x30] sm:$0xff] %vm73_vm0, %v4151_v45  ;;  %v3774_v29 = vmax.f32 %v4086_v63, %v4088_v16  ;;  %v4096_v5 = vld [vmem:[#allocation2 + $0x170] sm:$0xff] }
 0x319   :  { %v4152_v4 = vmax.f32 %v4024_v22, %v4088_v16  ;;  %v4026_v23 = vmax.f32 %v3898_v13, %v4088_v16  ;;  %v3901_v40 = vmax.f32 %v3773_v57, %v4089_v26  ;;  %4246 = vst.msk [vmem:[%s8709_s1 + $0x428] sm:$0xff] %vm73_vm0, %v4182_v47  ;;  %v3775_v32 = vmax.f32 %v4087_v21, %v4089_v26  ;;  %v4098_v53 = vld [vmem:[#allocation2 + $0x190] sm:$0xff] }
 0x31a   :  { %v4153_v2 = vmax.f32 %v4025_v43, %v4089_v26  ;;  %v4027_v37 = vmax.f32 %v3899_v17, %v4089_v26  ;;  %v4028_v62 = vmax.f32 %v3900_v56, %v4090_v48  ;;  %v3902_v51 = vmax.f32 %v3774_v29, %v4090_v48  ;;  %v4101_v43 = vld [vmem:[#allocation2 + $0x1c8] sm:$0xff]  ;;  %v4102_v17 = vld [vmem:[#allocation2 + $0x1d0] sm:$0xff] }
 0x31b   :  { %4216 = vst.msk [vmem:[%s8709_s1 + $0x38] sm:$0xff] %vm73_vm0, %v4152_v4  ;;  %v4154_v0 = vmax.f32 %v4026_v23, %v4090_v48  ;;  %v4029_v6 = vmax.f32 %v3901_v40, %v4091_v30  ;;  %v3776_v35 = vmax.f32 %v4088_v16, %v4090_v48  ;;  %v3903_v38 = vmax.f32 %v3775_v32, %v4091_v30  ;;  %v4099_v16 = vld [vmem:[#allocation2 + $0x1a8] sm:$0xff] }
 0x31c   :  { %4217 = vst.msk [vmem:[%s8709_s1 + $0x40] sm:$0xff] %vm73_vm0, %v4153_v2  ;;  %v4155_v61 = vmax.f32 %v4027_v37, %v4091_v30  ;;  %v4156_v7 = vmax.f32 %v4028_v62, %v4092_v31  ;;  %v3777_v14 = vmax.f32 %v4089_v26, %v4091_v30  ;;  %v4030_v10 = vmax.f32 %v3902_v51, %v4092_v31  ;;  %v4100_v26 = vld [vmem:[#allocation2 + $0x1b0] sm:$0xff]  ;;  %v4103_v40 = vld [vmem:[#allocation2 + $0x1e8] sm:$0xff] }
 0x31d   :  { %4218 = vst.msk [vmem:[%s8709_s1 + $0x48] sm:$0xff] %vm73_vm0, %v4154_v0  ;;  %v4157_v36 = vmax.f32 %v4029_v6, %v4093_v8  ;;  %v3904_v34 = vmax.f32 %v3776_v35, %v4092_v31  ;;  %v3778_v28 = vmax.f32 %v4090_v48, %v4092_v31  ;;  %v4031_v50 = vmax.f32 %v3903_v38, %v4093_v8  ;;  %v4104_v0 = vld [vmem:[#allocation2 + $0x1f0] sm:$0xff] }
 0x31e   :  { %4219 = vst.msk [vmem:[%s8709_s1 + $0x50] sm:$0xff] %vm73_vm0, %v4155_v61  ;;  %4220 = vst.msk [vmem:[%s8709_s1 + $0x58] sm:$0xff] %vm73_vm0, %v4156_v7  ;;  %v3905_v1 = vmax.f32 %v3777_v14, %v4093_v8  ;;  %v3779_v63 = vmax.f32 %v4091_v30, %v4093_v8  ;;  %v3780_v60 = vmax.f32 %v4092_v31, %v4094_v42  ;;  %v4105_v61 = vld [vmem:[#allocation2 + $0x208] sm:$0xff] }
 0x31f   :  { %4221 = vst.msk [vmem:[%s8709_s1 + $0x60] sm:$0xff] %vm73_vm0, %v4157_v36  ;;  %v4158_v25 = vmax.f32 %v4030_v10, %v4094_v42  ;;  %v4032_v18 = vmax.f32 %v3904_v34, %v4094_v42  ;;  %v3906_v27 = vmax.f32 %v3778_v28, %v4094_v42  ;;  %v3781_v46 = vmax.f32 %v4093_v8, %v4095_v9  ;;  %v4106_v36 = vld [vmem:[#allocation2 + $0x210] sm:$0xff] }
 0x320   :  { %v4159_v21 = vmax.f32 %v4031_v50, %v4095_v9  ;;  %v4033_v44 = vmax.f32 %v3905_v1, %v4095_v9  ;;  %v3907_v52 = vmax.f32 %v3779_v63, %v4095_v9  ;;  %v3908_v11 = vmax.f32 %v3780_v60, %v4096_v5 }
 0x321   :  { %4222 = vst.msk [vmem:[%s8709_s1 + $0x68] sm:$0xff] %vm73_vm0, %v4158_v25  ;;  %v4160_v41 = vmax.f32 %v4032_v18, %v4096_v5  ;;  %v4034_v59 = vmax.f32 %v3906_v27, %v4096_v5  ;;  %v3909_v55 = vmax.f32 %v3781_v46, %v4097_v58  ;;  %v3782_v3 = vmax.f32 %v4094_v42, %v4096_v5  ;;  %v4107_v25 = vld [vmem:[#allocation2 + $0x228] sm:$0xff]  ;;  %v4108_v46 = vld [vmem:[#allocation2 + $0x230] sm:$0xff] }
 0x322   :  { %4223 = vst.msk [vmem:[%s8709_s1 + $0x70] sm:$0xff] %vm73_vm0, %v4159_v21  ;;  %v4161_v49 = vmax.f32 %v4033_v44, %v4097_v58  ;;  %v4035_v45 = vmax.f32 %v3907_v52, %v4097_v58  ;;  %v4036_v22 = vmax.f32 %v3908_v11, %v4098_v53  ;;  %v3783_v13 = vmax.f32 %v4095_v9, %v4097_v58 }
 0x323   :  { %4224 = vst.msk [vmem:[%s8709_s1 + $0x78] sm:$0xff] %vm73_vm0, %v4160_v41  ;;  %v4162_v57 = vmax.f32 %v4034_v59, %v4098_v53  ;;  %v4037_v47 = vmax.f32 %v3909_v55, %v4099_v16  ;;  %v3910_v48 = vmax.f32 %v3782_v3, %v4098_v53  ;;  %v3784_v56 = vmax.f32 %v4096_v5, %v4098_v53  ;;  %v4109_v41 = vld [vmem:[#allocation2 + $0x248] sm:$0xff] }
 0x324   :  { %4225 = vst.msk [vmem:[%s8709_s1 + $0x80] sm:$0xff] %vm73_vm0, %v4161_v49  ;;  %v4163_v4 = vmax.f32 %v4035_v45, %v4099_v16  ;;  %v4164_v23 = vmax.f32 %v4036_v22, %v4100_v26  ;;  %v3911_v30 = vmax.f32 %v3783_v13, %v4099_v16  ;;  %v3785_v29 = vmax.f32 %v4097_v58, %v4099_v16 }
 0x325   :  { %4226 = vst.msk [vmem:[%s8709_s1 + $0x88] sm:$0xff] %vm73_vm0, %v4162_v57  ;;  %v4165_v2 = vmax.f32 %v4037_v47, %v4101_v43  ;;  %v4038_v37 = vmax.f32 %v3910_v48, %v4100_v26  ;;  %v3912_v62 = vmax.f32 %v3784_v56, %v4100_v26  ;;  %v3786_v31 = vmax.f32 %v4098_v53, %v4100_v26  ;;  %v4111_v47 = vld [vmem:[#allocation2 + $0x268] sm:$0xff] }
 0x326   :  { %4227 = vst.msk [vmem:[%s8709_s1 + $0x90] sm:$0xff] %vm73_vm0, %v4163_v4  ;;  %4228 = vst.msk [vmem:[%s8709_s1 + $0x98] sm:$0xff] %vm73_vm0, %v4164_v23  ;;  %v4039_v32 = vmax.f32 %v3911_v30, %v4101_v43  ;;  %v3913_v6 = vmax.f32 %v3785_v29, %v4101_v43  ;;  %v3787_v8 = vmax.f32 %v4099_v16, %v4101_v43  ;;  %v4119_v48 = vld [vmem:[#allocation2 + $0x368] sm:$0xff]  ;;  %v4112_v23 = vld [vmem:[#allocation2 + $0x270] sm:$0xff] }
 0x327   :  { %v3788_v51 = vmax.f32 %v4100_v26, %v4102_v17  ;;  %4229 = vst.msk [vmem:[%s8709_s1 + $0xa0] sm:$0xff] %vm73_vm0, %v4165_v2  ;;  %v4166_v42 = vmax.f32 %v4038_v37, %v4102_v17  ;;  %v4040_v35 = vmax.f32 %v3912_v62, %v4102_v17  ;;  %v3914_v7 = vmax.f32 %v3786_v31, %v4102_v17  ;;  %v4120_v30 = vld [vmem:[#allocation2 + $0x370] sm:$0xff]  ;;  %v4121_v37 = vld [vmem:[#allocation2 + $0x388] sm:$0xff] }
 0x328   :  { %v3789_v38 = vmax.f32 %v4101_v43, %v4103_v40  ;;  %v4167_v9 = vmax.f32 %v4039_v32, %v4103_v40  ;;  %v4041_v14 = vmax.f32 %v3913_v6, %v4103_v40  ;;  %v3915_v10 = vmax.f32 %v3787_v8, %v4103_v40  ;;  %v4122_v6 = vld [vmem:[#allocation2 + $0x390] sm:$0xff] }
 0x329   :  { %v3916_v34 = vmax.f32 %v3788_v51, %v4104_v0  ;;  %4230 = vst.msk [vmem:[%s8709_s1 + $0xa8] sm:$0xff] %vm73_vm0, %v4166_v42  ;;  %v4168_v28 = vmax.f32 %v4040_v35, %v4104_v0  ;;  %v4042_v50 = vmax.f32 %v3914_v7, %v4104_v0  ;;  %v3790_v1 = vmax.f32 %v4102_v17, %v4104_v0  ;;  %v4123_v35 = vld [vmem:[#allocation2 + $0x3a8] sm:$0xff] }
 0x32a   :  { %v3917_v5 = vmax.f32 %v3789_v38, %v4105_v61  ;;  %4231 = vst.msk [vmem:[%s8709_s1 + $0xb0] sm:$0xff] %vm73_vm0, %v4167_v9  ;;  %v4169_v63 = vmax.f32 %v4041_v14, %v4105_v61  ;;  %v4043_v60 = vmax.f32 %v3915_v10, %v4105_v61  ;;  %v3791_v58 = vmax.f32 %v4103_v40, %v4105_v61  ;;  %v4124_v61 = vld [vmem:[#allocation2 + $0x3b0] sm:$0xff]  ;;  %v4125_v14 = vld [vmem:[#allocation2 + $0x3c8] sm:$0xff] }
 0x32b   :  { %v4044_v18 = vmax.f32 %v3916_v34, %v4106_v36  ;;  %4232 = vst.msk [vmem:[%s8709_s1 + $0xb8] sm:$0xff] %vm73_vm0, %v4168_v28  ;;  %v4170_v27 = vmax.f32 %v4042_v50, %v4106_v36  ;;  %v3918_v44 = vmax.f32 %v3790_v1, %v4106_v36  ;;  %v3792_v53 = vmax.f32 %v4104_v0, %v4106_v36 }
 0x32c   :  { %v4045_v21 = vmax.f32 %v3917_v5, %v4107_v25  ;;  %4233 = vst.msk [vmem:[%s8709_s1 + $0xc0] sm:$0xff] %vm73_vm0, %v4169_v63  ;;  %v4171_v52 = vmax.f32 %v4043_v60, %v4107_v25  ;;  %v3919_v59 = vmax.f32 %v3791_v58, %v4107_v25  ;;  %v3799_v16 = vmax.f32 %v8378_v19, %v8382_v24  ;;  %v4110_v19 = vld [vmem:[#allocation2 + $0x250] sm:$0xff]  ;;  %v4127_v58 = vld [vmem:[#allocation2 + $0x3e8] sm:$0xff] }
 0x32d   :  { %v4172_v11 = vmax.f32 %v4044_v18, %v4108_v46  ;;  %4234 = vst.msk [vmem:[%s8709_s1 + $0xc8] sm:$0xff] %vm73_vm0, %v4170_v27  ;;  %v4046_v3 = vmax.f32 %v3918_v44, %v4108_v46  ;;  %v3920_v49 = vmax.f32 %v3792_v53, %v4108_v46  ;;  %v3800_v45 = vmax.f32 %v8388_v33, %v8398_v54  ;;  %v4126_v5 = vld [vmem:[#allocation2 + $0x3d0] sm:$0xff] }
 0x32e   :  { %v4173_v55 = vmax.f32 %v4045_v21, %v4109_v41  ;;  %4235 = vst.msk [vmem:[%s8709_s1 + $0xd0] sm:$0xff] %vm73_vm0, %v4171_v52  ;;  %v4047_v22 = vmax.f32 %v3919_v59, %v4109_v41  ;;  %v3927_v26 = vmax.f32 %v3799_v16, %v8409_v12  ;;  %v3801_v13 = vmax.f32 %v8382_v24, %v8409_v12  ;;  %v4128_v53 = vld [vmem:[#allocation2 + $0x3f0] sm:$0xff]  ;;  %v4129_v16 = vld [vmem:[#allocation2 + $0x408] sm:$0xff] }
 0x32f   :  { %4236 = vst.msk [vmem:[%s8709_s1 + $0xd8] sm:$0xff] %vm73_vm0, %v4172_v11  ;;  %v3802_v33 = vmax.f32 %v8398_v54, %v8437_v39  ;;  %v4174_v57 = vmax.f32 %v4046_v3, %v4110_v19  ;;  %v4048_v43 = vmax.f32 %v3920_v49, %v4110_v19  ;;  %v3928_v17 = vmax.f32 %v3800_v45, %v8437_v39 }
 0x330   :  { %4237 = vst.msk [vmem:[%s8709_s1 + $0xe0] sm:$0xff] %vm73_vm0, %v4173_v55  ;;  %v3803_v56 = vmax.f32 %v8409_v12, %v8448_v15  ;;  %v4175_v4 = vmax.f32 %v4047_v22, %v4111_v47  ;;  %v4055_v24 = vmax.f32 %v3927_v26, %v8448_v15  ;;  %v3929_v54 = vmax.f32 %v3801_v13, %v8448_v15  ;;  %v4130_v22 = vld [vmem:[#allocation2 + $0x410] sm:$0xff] }
 0x331   :  { %v3930_v40 = vmax.f32 %v3802_v33, %v8473_v20  ;;  %4238 = vst.msk [vmem:[%s8709_s1 + $0xe8] sm:$0xff] %vm73_vm0, %v4174_v57  ;;  %v4176_v29 = vmax.f32 %v4048_v43, %v4112_v23  ;;  %v4056_v2 = vmax.f32 %v3928_v17, %v8473_v20  ;;  %v3804_v12 = vmax.f32 %v8437_v39, %v8473_v20  ;;  %v4131_v57 = vld [vmem:[#allocation2 + $0x428] sm:$0xff]  ;;  %v4132_v43 = vld [vmem:[#allocation2 + $0x430] sm:$0xff] }
 0x332   :  { %v3931_v62 = vmax.f32 %v3803_v56, %v4119_v48  ;;  %4239 = vst.msk [vmem:[%s8709_s1 + $0xf0] sm:$0xff] %vm73_vm0, %v4175_v4  ;;  %v4183_v31 = vmax.f32 %v4055_v24, %v4119_v48  ;;  %v4057_v32 = vmax.f32 %v3929_v54, %v4119_v48  ;;  %v3805_v8 = vmax.f32 %v8448_v15, %v4119_v48  ;;  %v4133_v23 = vld [vmem:[#allocation2 + $0x448] sm:$0xff] }
 0x333   :  { %v4058_v0 = vmax.f32 %v3930_v40, %v4120_v30  ;;  %4240 = vst.msk [vmem:[%s8709_s1 + $0xf8] sm:$0xff] %vm73_vm0, %v4176_v29  ;;  %v4184_v51 = vmax.f32 %v4056_v2, %v4120_v30  ;;  %v3932_v39 = vmax.f32 %v3804_v12, %v4120_v30  ;;  %v3806_v7 = vmax.f32 %v8473_v20, %v4120_v30 }
 0x334   :  { %v4059_v42 = vmax.f32 %v3931_v62, %v4121_v37  ;;  %4247 = vst.msk [vmem:[%s8709_s1 + $0x430] sm:$0xff] %vm73_vm0, %v4183_v31  ;;  %v4185_v38 = vmax.f32 %v4057_v32, %v4121_v37  ;;  %v3933_v15 = vmax.f32 %v3805_v8, %v4121_v37  ;;  %v3807_v36 = vmax.f32 %v4119_v48, %v4121_v37 }
 0x335   :  { %v4186_v9 = vmax.f32 %v4058_v0, %v4122_v6  ;;  %4248 = vst.msk [vmem:[%s8709_s1 + $0x438] sm:$0xff] %vm73_vm0, %v4184_v51  ;;  %v4060_v34 = vmax.f32 %v3932_v39, %v4122_v6  ;;  %v3934_v28 = vmax.f32 %v3806_v7, %v4122_v6  ;;  %v3808_v50 = vmax.f32 %v4120_v30, %v4122_v6  ;;  %v4136_v39 = vld [vmem:[#allocation2 + $0x470] sm:$0xff] }
 0x336   :  { %v4187_v10 = vmax.f32 %v4059_v42, %v4123_v35  ;;  %4249 = vst.msk [vmem:[%s8709_s1 + $0x440] sm:$0xff] %vm73_vm0, %v4185_v38  ;;  %v4061_v20 = vmax.f32 %v3933_v15, %v4123_v35  ;;  %v3935_v1 = vmax.f32 %v3807_v36, %v4123_v35  ;;  %v3809_v63 = vmax.f32 %v4121_v37, %v4123_v35  ;;  %v4134_v37 = vld [vmem:[#allocation2 + $0x450] sm:$0xff]  ;;  %v4137_v15 = vld [vmem:[#allocation2 + $0x488] sm:$0xff] }
 0x337   :  { %4250 = vst.msk [vmem:[%s8709_s1 + $0x448] sm:$0xff] %vm73_vm0, %v4186_v9  ;;  %v3810_v60 = vmax.f32 %v4122_v6, %v4124_v61  ;;  %v4188_v25 = vmax.f32 %v4060_v34, %v4124_v61  ;;  %v4062_v18 = vmax.f32 %v3934_v28, %v4124_v61  ;;  %v3936_v27 = vmax.f32 %v3808_v50, %v4124_v61  ;;  %v4135_v6 = vld [vmem:[#allocation2 + $0x468] sm:$0xff]  ;;  %v4138_v50 = vld [vmem:[#allocation2 + $0x490] sm:$0xff] }
 0x338   :  { %4251 = vst.msk [vmem:[%s8709_s1 + $0x450] sm:$0xff] %vm73_vm0, %v4187_v10  ;;  %v3811_v46 = vmax.f32 %v4123_v35, %v4125_v14  ;;  %v4189_v21 = vmax.f32 %v4061_v20, %v4125_v14  ;;  %v4063_v44 = vmax.f32 %v3935_v1, %v4125_v14  ;;  %v3937_v52 = vmax.f32 %v3809_v63, %v4125_v14 }
 0x339   :  { %v3938_v11 = vmax.f32 %v3810_v60, %v4126_v5  ;;  %4252 = vst.msk [vmem:[%s8709_s1 + $0x458] sm:$0xff] %vm73_vm0, %v4188_v25  ;;  %v4190_v41 = vmax.f32 %v4062_v18, %v4126_v5  ;;  %v4064_v59 = vmax.f32 %v3936_v27, %v4126_v5  ;;  %v3812_v3 = vmax.f32 %v4124_v61, %v4126_v5 }
 0x33a   :  { %v3939_v55 = vmax.f32 %v3811_v46, %v4127_v58  ;;  %4253 = vst.msk [vmem:[%s8709_s1 + $0x460] sm:$0xff] %vm73_vm0, %v4189_v21  ;;  %v4191_v49 = vmax.f32 %v4063_v44, %v4127_v58  ;;  %v4065_v45 = vmax.f32 %v3937_v52, %v4127_v58  ;;  %v3813_v26 = vmax.f32 %v4125_v14, %v4127_v58 }
 0x33b   :  { %v4066_v19 = vmax.f32 %v3938_v11, %v4128_v53  ;;  %4254 = vst.msk [vmem:[%s8709_s1 + $0x468] sm:$0xff] %vm73_vm0, %v4190_v41  ;;  %v4192_v13 = vmax.f32 %v4064_v59, %v4128_v53  ;;  %v3940_v47 = vmax.f32 %v3812_v3, %v4128_v53  ;;  %v3814_v48 = vmax.f32 %v4126_v5, %v4128_v53  ;;  %v4140_v11 = vld [vmem:[#allocation2 + $0x4b0] sm:$0xff] }
 0x33c   :  { %v4067_v33 = vmax.f32 %v3939_v55, %v4129_v16  ;;  %4255 = vst.msk [vmem:[%s8709_s1 + $0x470] sm:$0xff] %vm73_vm0, %v4191_v49  ;;  %v4193_v17 = vmax.f32 %v4065_v45, %v4129_v16  ;;  %v3941_v4 = vmax.f32 %v3813_v26, %v4129_v16  ;;  %v3815_v24 = vmax.f32 %v4127_v58, %v4129_v16  ;;  %v4139_v58 = vld [vmem:[#allocation2 + $0x4a8] sm:$0xff] }
 0x33d   :  { %v4194_v56 = vmax.f32 %v4066_v19, %v4130_v22  ;;  %4256 = vst.msk [vmem:[%s8709_s1 + $0x478] sm:$0xff] %vm73_vm0, %v4192_v13  ;;  %v4068_v54 = vmax.f32 %v3940_v47, %v4130_v22  ;;  %v3942_v40 = vmax.f32 %v3814_v48, %v4130_v22  ;;  %v3816_v29 = vmax.f32 %v4128_v53, %v4130_v22  ;;  %v4141_v55 = vld [vmem:[#allocation2 + $0x4c8] sm:$0xff]  ;;  %v4142_v19 = vld [vmem:[#allocation2 + $0x4d0] sm:$0xff] }
 0x33e   :  { %v4195_v30 = vmax.f32 %v4067_v33, %v4131_v57  ;;  %4257 = vst.msk [vmem:[%s8709_s1 + $0x480] sm:$0xff] %vm73_vm0, %v4193_v17  ;;  %v4069_v2 = vmax.f32 %v3941_v4, %v4131_v57  ;;  %v3943_v62 = vmax.f32 %v3815_v24, %v4131_v57  ;;  %v3817_v12 = vmax.f32 %v4129_v16, %v4131_v57  ;;  %v4143_v13 = vld [vmem:[#allocation2 + $0x4e8] sm:$0xff]  ;;  %v4144_v47 = vld [vmem:[#allocation2 + $0x4f0] sm:$0xff] }
 0x33f   :  { %4258 = vst.msk [vmem:[%s8709_s1 + $0x488] sm:$0xff] %vm73_vm0, %v4194_v56  ;;  %v3818_v31 = vmax.f32 %v4130_v22, %v4132_v43  ;;  %v4196_v32 = vmax.f32 %v4068_v54, %v4132_v43  ;;  %v4070_v0 = vmax.f32 %v3942_v40, %v4132_v43  ;;  %v3944_v8 = vmax.f32 %v3816_v29, %v4132_v43 }
 0x340   :  { %4259 = vst.msk [vmem:[%s8709_s1 + $0x490] sm:$0xff] %vm73_vm0, %v4195_v30  ;;  %v3819_v51 = vmax.f32 %v4131_v57, %v4133_v23  ;;  %v4197_v42 = vmax.f32 %v4069_v2, %v4133_v23  ;;  %v4071_v35 = vmax.f32 %v3943_v62, %v4133_v23  ;;  %v3945_v61 = vmax.f32 %v3817_v12, %v4133_v23 }
 0x341   :  { %v3946_v7 = vmax.f32 %v3818_v31, %v4134_v37  ;;  %4260 = vst.msk [vmem:[%s8709_s1 + $0x498] sm:$0xff] %vm73_vm0, %v4196_v32  ;;  %v4198_v38 = vmax.f32 %v4070_v0, %v4134_v37  ;;  %v4072_v9 = vmax.f32 %v3944_v8, %v4134_v37  ;;  %v3820_v36 = vmax.f32 %v4132_v43, %v4134_v37 }
 0x342   :  { %v3947_v14 = vmax.f32 %v3819_v51, %v4135_v6  ;;  %4261 = vst.msk [vmem:[%s8709_s1 + $0x4a0] sm:$0xff] %vm73_vm0, %v4197_v42  ;;  %v4199_v10 = vmax.f32 %v4071_v35, %v4135_v6  ;;  %v4073_v34 = vmax.f32 %v3945_v61, %v4135_v6  ;;  %v3821_v20 = vmax.f32 %v4133_v23, %v4135_v6 }
 0x343   :  { %v4074_v28 = vmax.f32 %v3946_v7, %v4136_v39  ;;  %4262 = vst.msk [vmem:[%s8709_s1 + $0x4a8] sm:$0xff] %vm73_vm0, %v4198_v38  ;;  %v4200_v5 = vmax.f32 %v4072_v9, %v4136_v39  ;;  %v3948_v63 = vmax.f32 %v3820_v36, %v4136_v39  ;;  %v3822_v60 = vmax.f32 %v4134_v37, %v4136_v39 }
 0x344   :  { %v4075_v1 = vmax.f32 %v3947_v14, %v4137_v15  ;;  %4263 = vst.msk [vmem:[%s8709_s1 + $0x4b0] sm:$0xff] %vm73_vm0, %v4199_v10  ;;  %v4201_v25 = vmax.f32 %v4073_v34, %v4137_v15  ;;  %v3949_v27 = vmax.f32 %v3821_v20, %v4137_v15  ;;  %v3823_v46 = vmax.f32 %v4135_v6, %v4137_v15 }
 0x345   :  { %v4202_v18 = vmax.f32 %v4074_v28, %v4138_v50  ;;  %4264 = vst.msk [vmem:[%s8709_s1 + $0x4b8] sm:$0xff] %vm73_vm0, %v4200_v5  ;;  %v4076_v44 = vmax.f32 %v3948_v63, %v4138_v50  ;;  %v3950_v53 = vmax.f32 %v3822_v60, %v4138_v50  ;;  %v3824_v52 = vmax.f32 %v4136_v39, %v4138_v50 }
 0x346   :  { %v4203_v21 = vmax.f32 %v4075_v1, %v4139_v58  ;;  %4265 = vst.msk [vmem:[%s8709_s1 + $0x4c0] sm:$0xff] %vm73_vm0, %v4201_v25  ;;  %v4077_v41 = vmax.f32 %v3949_v27, %v4139_v58  ;;  %v3951_v59 = vmax.f32 %v3823_v46, %v4139_v58 }
 0x347   :  { %4266 = vst.msk [vmem:[%s8709_s1 + $0x4c8] sm:$0xff] %vm73_vm0, %v4202_v18  ;;  %v4204_v16 = vmax.f32 %v4076_v44, %v4140_v11  ;;  %v4078_v3 = vmax.f32 %v3950_v53, %v4140_v11  ;;  %v3952_v49 = vmax.f32 %v3824_v52, %v4140_v11 }
 0x348   :  { %4267 = vst.msk [vmem:[%s8709_s1 + $0x4d0] sm:$0xff] %vm73_vm0, %v4203_v21  ;;  %v4205_v45 = vmax.f32 %v4077_v41, %v4141_v55  ;;  %v4079_v22 = vmax.f32 %v3951_v59, %v4141_v55 }
 0x349   :  { %4268 = vst.msk [vmem:[%s8709_s1 + $0x4d8] sm:$0xff] %vm73_vm0, %v4204_v16  ;;  %v4206_v26 = vmax.f32 %v4078_v3, %v4142_v19  ;;  %v4080_v33 = vmax.f32 %v3952_v49, %v4142_v19 }
 0x34a   :  { %4269 = vst.msk [vmem:[%s8709_s1 + $0x4e0] sm:$0xff] %vm73_vm0, %v4205_v45  ;;  %v4207_v57 = vmax.f32 %v4079_v22, %v4143_v13 }
 0x34b   :  { %4270 = vst.msk [vmem:[%s8709_s1 + $0x4e8] sm:$0xff] %vm73_vm0, %v4206_v26  ;;  %v4208_v43 = vmax.f32 %v4080_v33, %v4144_v47 }
 0x34c   :  { %4271 = vst.msk [vmem:[%s8709_s1 + $0x4f0] sm:$0xff] %vm73_vm0, %v4207_v57 }
 0x34d   :  { %4272 = vst.msk [vmem:[%s8709_s1 + $0x4f8] sm:$0xff] %vm73_vm0, %v4208_v43 }

</bundles_post_ra>
